<compile_context>
chip_gen: v5e
topology: v5e:2x2
jax: 0.10.0
libtpu: 0.0.40
codegen_flags: <defaults>
</compile_context>

<pallas_src>
import numpy as np
import jax
import jax.numpy as jnp
from jax.experimental import pallas as pl
from jax.experimental.pallas import tpu as pltpu


# ----------------------------------------------------------------------------
# Small helpers
# ----------------------------------------------------------------------------
def _rup(n, m):
  return ((n + m - 1) // m) * m


def _pad(x, shape):
  return jnp.pad(x, [(0, s - d) for d, s in zip(x.shape, shape)])


# ----------------------------------------------------------------------------
# Pallas kernel: one decode timestep per grid iteration (grid = (NB, T)).
# Carries (h, c) in VMEM scratch across the time axis; batch chunks are
# independent ("parallel").
# ----------------------------------------------------------------------------
def _decoder_step_kernel(
    dec_len_ref, pixbias_ref, enc_ref, att1_ref, h0_ref, c0_ref, emb_ref,
    w_da_ref, b_da_ref, w_fa_ref, b_fa_ref,
    w_fb_ref, b_fb_ref, w_lstm_ref, b_lstm_ref,
    h_out_ref, alpha_out_ref,
    h_scr, c_scr,
):
  t = pl.program_id(1)
  Bc, H_p = h_scr.shape
  f32 = jnp.float32
  bf16 = jnp.bfloat16

  # init_hidden_state() result (computed once in the wrapper) -> scratch.
  @pl.when(t == 0)
  def _():
    h_scr[...] = h0_ref[...]
    c_scr[...] = c0_ref[...]

  h = h_scr[...]                                        # (Bc, H) f32
  c = c_scr[...]
  h_b = h.astype(bf16)
  # rows with decode_length <= t are inactive (PyTorch batch_size_t slicing).
  mask = (dec_len_ref[...] > t).astype(f32)             # (Bc, 1)

  # ---- Attention (att1 = enc @ W_ea + b_ea precomputed outside the loop) ----
  att2 = jnp.dot(h_b, w_da_ref[...],
                 preferred_element_type=f32) + b_da_ref[...]          # (Bc, A)
  act = jnp.maximum(att1_ref[...].astype(f32) + att2[:, None, :], 0.0)  # (Bc,P,A)
  scores = (jnp.sum(act * w_fa_ref[...], axis=-1)
            + b_fa_ref[...] + pixbias_ref[...])                       # (Bc, P)
  m = jnp.max(scores, axis=-1, keepdims=True)
  e = jnp.exp(scores - m)
  inv_denom = pl.reciprocal(jnp.sum(e, axis=-1, keepdims=True), approx=True)
  alpha = e * inv_denom                                               # (Bc, P)

  # Weighted sum over pixels on the MXU: batched (1,P)@(P,E) contraction.
  awe = jnp.einsum('bqp,bpe->bqe',
                   alpha[:, None, :].astype(bf16), enc_ref[...],
                   preferred_element_type=f32)[:, 0, :]               # (Bc, E)

  # ---- Gate ----
  gate = jax.nn.sigmoid(jnp.dot(h_b, w_fb_ref[...],
                                preferred_element_type=f32) + b_fb_ref[...])
  awe = gate * awe

  # ---- LSTMCell: single fused matmul over concat([embedding_t, awe, h]) ----
  x = jnp.concatenate([emb_ref[0], awe.astype(bf16), h_b], axis=1)
  gates = jnp.dot(x, w_lstm_ref[...],
                  preferred_element_type=f32) + b_lstm_ref[...]       # (Bc, 4H)
  i_g = jax.nn.sigmoid(gates[:, 0:H_p])
  f_g = jax.nn.sigmoid(gates[:, H_p:2 * H_p])
  g_g = jnp.tanh(gates[:, 2 * H_p:3 * H_p])
  o_g = jax.nn.sigmoid(gates[:, 3 * H_p:4 * H_p])
  c_new = f_g * c + i_g * g_g
  h_new = o_g * jnp.tanh(c_new)

  # Only active rows update their state (matches h[:batch_size_t] semantics).
  h_upd = mask * h_new + (1.0 - mask) * h
  c_upd = mask * c_new + (1.0 - mask) * c
  h_scr[...] = h_upd
  c_scr[...] = c_upd

  h_out_ref[0] = h_upd                  # vocab projection happens outside
  alpha_out_ref[0] = mask * alpha


# ----------------------------------------------------------------------------
# pallas_call wrapper (operands already padded / cast by the caller)
# ----------------------------------------------------------------------------
def _pallas_decode(dec_len, pix_bias, enc, att1, h0, c0, emb, weights,
                   *, T, NB, Bc):
  B_p, P_p, E_p = enc.shape
  A_p = att1.shape[-1]
  H_p = h0.shape[-1]
  De_p = emb.shape[-1]

  def fixed(shape):
    n = len(shape)
    return pl.BlockSpec(shape, lambda bi, t, _n=n: (0,) * _n)

  def bblk(shape):  # batch-chunk blocked, timestep-invariant
    n = len(shape)
    return pl.BlockSpec(shape, lambda bi, t, _n=n: (bi,) + (0,) * (_n - 1))

  in_specs = [
      bblk((Bc, 1)),                                          # dec_len
      fixed(pix_bias.shape),                                  # pixel mask bias
      bblk((Bc, P_p, E_p)),                                   # enc
      bblk((Bc, P_p, A_p)),                                   # att1 (hoisted)
      bblk((Bc, H_p)),                                        # h0
      bblk((Bc, H_p)),                                        # c0
      pl.BlockSpec((1, Bc, De_p), lambda bi, t: (t, bi, 0)),  # emb_t
  ] + [fixed(w.shape) for w in weights]

  out_specs = [
      pl.BlockSpec((1, Bc, H_p), lambda bi, t: (t, bi, 0)),   # h per step
      pl.BlockSpec((1, Bc, P_p), lambda bi, t: (t, bi, 0)),   # alpha per step
  ]
  out_shape = (jax.ShapeDtypeStruct((T, B_p, H_p), jnp.float32),
               jax.ShapeDtypeStruct((T, B_p, P_p), jnp.float32))

  # VMEM budget derived from the actual resident buffers (+ headroom).
  fixed_arrs = [dec_len, pix_bias, enc, att1, h0, c0] + list(weights)
  fixed_bytes = sum(int(a.size) * a.dtype.itemsize for a in fixed_arrs)
  step_bytes = Bc * (De_p * 2 + H_p * 4 + P_p * 4)
  vmem_limit = int(min(64 << 20,
                       max(16 << 20, 3 * fixed_bytes + 8 * step_bytes
                           + (4 << 20))))

  return pl.pallas_call(
      _decoder_step_kernel,
      out_shape=out_shape,
      grid_spec=pltpu.PrefetchScalarGridSpec(
          num_scalar_prefetch=0,
          grid=(NB, T),
          in_specs=in_specs,
          out_specs=out_specs,
          scratch_shapes=[pltpu.VMEM((Bc, H_p), jnp.float32),   # h carry
                          pltpu.VMEM((Bc, H_p), jnp.float32)],  # c carry
      ),
      compiler_params=pltpu.CompilerParams(
          dimension_semantics=("parallel", "arbitrary"),
          vmem_limit_bytes=vmem_limit),
  )(dec_len, pix_bias, enc, att1, h0, c0, emb, *weights)


# ----------------------------------------------------------------------------
# Parameter init (deterministic, uniform(-0.1, 0.1) like the PyTorch init)
# Weights are stored (in_dim, out_dim); biases as (1, out_dim).
# ----------------------------------------------------------------------------
def init_params(key, *, vocab_size, embed_dim, decoder_dim, attention_dim,
                encoder_dim):
  names_shapes = [
      ('emb',    (vocab_size, embed_dim)),
      ('w_ea',   (encoder_dim, attention_dim)),      # attention.encoder_att
      ('b_ea',   (1, attention_dim)),
      ('w_da',   (decoder_dim, attention_dim)),      # attention.decoder_att
      ('b_da',   (1, attention_dim)),
      ('w_fa',   (1, attention_dim)),                # attention.full_att (A->1)
      ('b_fa',   (1, 1)),
      ('w_ih0',  (encoder_dim, decoder_dim)),        # init_h
      ('b_ih0',  (1, decoder_dim)),
      ('w_ic0',  (encoder_dim, decoder_dim)),        # init_c
      ('b_ic0',  (1, decoder_dim)),
      ('w_fb',   (decoder_dim, encoder_dim)),        # f_beta
      ('b_fb',   (1, encoder_dim)),
      ('w_ih_e', (embed_dim, 4 * decoder_dim)),      # LSTM W_ih (embed part)
      ('w_ih_a', (encoder_dim, 4 * decoder_dim)),    # LSTM W_ih (attn part)
      ('b_ih',   (1, 4 * decoder_dim)),
      ('w_hh',   (decoder_dim, 4 * decoder_dim)),    # LSTM W_hh
      ('b_hh',   (1, 4 * decoder_dim)),
      ('w_fc',   (decoder_dim, vocab_size)),         # fc
      ('b_fc',   (1, vocab_size)),
  ]
  keys = jax.random.split(key, len(names_shapes))
  return {n: jax.random.uniform(k, s, jnp.float32, -0.1, 0.1)
          for (n, s), k in zip(names_shapes, keys)}


def _fuse_lstm_weights(params, H, De_p, E_p, H_p):
  """Stack [W_ih_e; W_ih_a; W_hh] with per-gate column padding H -> H_p."""
  def pad_gate_cols(w):
    r = w.shape[0]
    w4 = w.reshape(r, 4, H)
    w4 = jnp.pad(w4, ((0, 0), (0, 0), (0, H_p - H)))
    return w4.reshape(r, 4 * H_p)

  w_e = _pad(pad_gate_cols(params['w_ih_e']), (De_p, 4 * H_p))
  w_a = _pad(pad_gate_cols(params['w_ih_a']), (E_p, 4 * H_p))
  w_h = _pad(pad_gate_cols(params['w_hh']), (H_p, 4 * H_p))
  w_lstm = jnp.concatenate([w_e, w_a, w_h], axis=0).astype(jnp.bfloat16)
  b_lstm = pad_gate_cols(params['b_ih'] + params['b_hh']).astype(jnp.float32)
  return w_lstm, b_lstm


# ----------------------------------------------------------------------------
# Full forward (glue: sort, embedding gather, hoisted one-time matmuls,
# padding/bf16 casts, batched output projection; hot loop in Pallas).
# ----------------------------------------------------------------------------
def decoder_forward(params, encoder_out, encoded_captions, caption_lengths):
  B = encoder_out.shape[0]
  E = encoder_out.shape[-1]
  enc = encoder_out.reshape(B, -1, E)                      # (B, P, E)
  P = enc.shape[1]
  De = params['emb'].shape[1]
  H = params['w_hh'].shape[0]
  A = params['w_ea'].shape[1]
  HIGH = jax.lax.Precision.HIGHEST

  cap_len = caption_lengths.squeeze(1)
  sort_ind = jnp.argsort(-cap_len)                         # descending
  cap_sorted = cap_len[sort_ind]
  enc = enc[sort_ind]
  caps_sorted = encoded_captions[sort_ind]
  decode_lengths = cap_sorted - 1
  # NOTE: host sync (same as PyTorch's max(decode_lengths) python scalar).
  T = int(jnp.max(decode_lengths))

  # --- one-time, timestep-invariant work hoisted out of the Pallas loop ---
  mean_enc = jnp.mean(enc, axis=1)                         # (B, E)
  h0 = jnp.dot(mean_enc, params['w_ih0'], precision=HIGH) + params['b_ih0']
  c0 = jnp.dot(mean_enc, params['w_ic0'], precision=HIGH) + params['b_ic0']
  att1 = jnp.einsum('bpe,ea->bpa', enc, params['w_ea'],
                    precision=HIGH) + params['b_ea']       # (B, P, A)

  emb = params['emb'][caps_sorted]                         # (B, L, De) gather
  emb_t = jnp.transpose(emb[:, :T, :], (1, 0, 2))          # (T, B, De)

  # --- padding to vreg-friendly shapes (sublane 8 / lane 128) ---
  Bc = 8
  B_p = _rup(B, Bc)
  P_p, E_p, A_p = _rup(P, 128), _rup(E, 128), _rup(A, 128)
  H_p, De_p = _rup(H, 128), _rup(De, 128)
  NB = B_p // Bc
  bf16 = jnp.bfloat16

  enc_p = _pad(enc, (B_p, P_p, E_p)).astype(bf16)
  att1_p = _pad(att1, (B_p, P_p, A_p)).astype(bf16)
  h0_p = _pad(h0, (B_p, H_p))
  c0_p = _pad(c0, (B_p, H_p))
  emb_p = _pad(emb_t, (T, B_p, De_p)).astype(bf16)
  dec_len = _pad(decode_lengths.astype(jnp.int32).reshape(B, 1), (B_p, 1))
  pix_bias = jnp.where(jnp.arange(P_p) < P, 0.0,
                       -1e30).astype(jnp.float32)[None, :]  # mask pad pixels

  w_da_p = _pad(params['w_da'], (H_p, A_p)).astype(bf16)
  b_da_p = _pad(params['b_da'], (1, A_p))
  w_fa_p = _pad(params['w_fa'], (1, A_p))
  b_fa_p = params['b_fa']
  w_fb_p = _pad(params['w_fb'], (H_p, E_p)).astype(bf16)
  b_fb_p = _pad(params['b_fb'], (1, E_p))
  w_lstm_p, b_lstm_p = _fuse_lstm_weights(params, H, De_p, E_p, H_p)
  weights = [w_da_p, b_da_p, w_fa_p, b_fa_p, w_fb_p, b_fb_p,
             w_lstm_p, b_lstm_p]

  h_seq, alpha_seq = _pallas_decode(
      dec_len, pix_bias, enc_p, att1_p, h0_p, c0_p, emb_p, weights,
      T=T, NB=NB, Bc=Bc)

  # --- batched output projection (one (T*B, H)@(H, V) matmul, mask applied
  #     here instead of per step inside the recurrence) ---
  # TODO(synk): nn.Dropout(p=0.5) before fc is treated as identity (eval mode).
  h_real = h_seq[:, :B, :H]                                # (T, B, H)
  logits = jnp.einsum('tbh,hv->tbv', h_real, params['w_fc'],
                      precision=HIGH) + params['b_fc']     # (T, B, V)
  mask_tb = (jnp.arange(T)[:, None] < decode_lengths[None, :]).astype(
      logits.dtype)                                        # (T, B)
  preds = logits * mask_tb[:, :, None]

  predictions = jnp.transpose(preds, (1, 0, 2))            # (B, T, V)
  alphas = jnp.transpose(alpha_seq[:, :B, :P], (1, 0, 2))  # (B, T, P)
  return predictions, caps_sorted, decode_lengths, alphas, sort_ind


# ----------------------------------------------------------------------------
# NumPy reference (direct port of the PyTorch forward, for verification).
# ----------------------------------------------------------------------------
def reference_forward(params, enc_sorted, emb_bt, decode_lengths):
  p = {k: np.asarray(v, np.float32) for k, v in params.items()}
  B, P, _ = enc_sorted.shape
  H = p['w_hh'].shape[0]
  V = p['w_fc'].shape[1]
  T = max(decode_lengths)
  enc = np.asarray(enc_sorted, np.float32)
  emb = np.asarray(emb_bt, np.float32)

  def sigmoid(x):
    return 1.0 / (1.0 + np.exp(-x))

  mean_enc = enc.mean(axis=1)
  h = mean_enc @ p['w_ih0'] + p['b_ih0']
  c = mean_enc @ p['w_ic0'] + p['b_ic0']
  preds_out = np.zeros((B, T, V), np.float32)
  alphas_out = np.zeros((B, T, P), np.float32)
  for t in range(T):
    bt = sum(l > t for l in decode_lengths)
    e_t, h_t, c_t = enc[:bt], h[:bt], c[:bt]
    att1 = e_t @ p['w_ea'] + p['b_ea']
    att2 = h_t @ p['w_da'] + p['b_da']
    act = np.maximum(att1 + att2[:, None, :], 0.0)
    scores = (act * p['w_fa']).sum(-1) + p['b_fa'][0, 0]
    scores = scores - scores.max(-1, keepdims=True)
    ex = np.exp(scores)
    alpha = ex / ex.sum(-1, keepdims=True)
    awe = (e_t * alpha[:, :, None]).sum(1)
    gate = sigmoid(h_t @ p['w_fb'] + p['b_fb'])
    awe = gate * awe
    x_e = emb[:bt, t, :]
    gates = (x_e @ p['w_ih_e'] + awe @ p['w_ih_a'] + p['b_ih']
             + h_t @ p['w_hh'] + p['b_hh'])
    i_g = sigmoid(gates[:, 0:H]); f_g = sigmoid(gates[:, H:2 * H])
    g_g = np.tanh(gates[:, 2 * H:3 * H]); o_g = sigmoid(gates[:, 3 * H:4 * H])
    c_new = f_g * c_t + i_g * g_g
    h_new = o_g * np.tanh(c_new)
    preds = h_new @ p['w_fc'] + p['b_fc']
    preds_out[:bt, t, :] = preds
    alphas_out[:bt, t, :] = alpha
    h = np.concatenate([h_new, h[bt:]], axis=0)
    c = np.concatenate([c_new, c[bt:]], axis=0)
  return preds_out, alphas_out


if __name__ == "__main__":
  # Small shapes consistent with the module's forward.
  B, Hs, Ws = 4, 4, 4                      # encoder feature map -> P = 16 pixels
  encoder_dim, attention_dim = 32, 32
  embed_dim, decoder_dim = 16, 32
  vocab_size = 40
  max_len = 10

  key = jax.random.PRNGKey(0)
  k_par, k_enc, k_cap, k_len = jax.random.split(key, 4)
  params = init_params(k_par, vocab_size=vocab_size, embed_dim=embed_dim,
                       decoder_dim=decoder_dim, attention_dim=attention_dim,
                       encoder_dim=encoder_dim)
  # The kernel keeps weights / encoder features in bf16; round the inputs to
  # bf16-representable values so the f32 reference and the kernel see
  # identical parameters (remaining diff = bf16 activation rounding only).
  params = {k: v.astype(jnp.bfloat16).astype(jnp.float32)
            for k, v in params.items()}
  encoder_out = jax.random.normal(k_enc, (B, Hs, Ws, encoder_dim), jnp.float32)
  encoder_out = encoder_out.astype(jnp.bfloat16).astype(jnp.float32)
  encoded_captions = jax.random.randint(k_cap, (B, max_len), 0, vocab_size,
                                        jnp.int32)
  caption_lengths = jax.random.randint(k_len, (B, 1), 4, max_len + 1, jnp.int32)

  predictions, caps_sorted, decode_lengths, alphas, sort_ind = decoder_forward(
      params, encoder_out, encoded_captions, caption_lengths)
  jax.block_until_ready((predictions, alphas))

  # Verify against the NumPy port of the PyTorch forward.
  enc_flat = np.asarray(encoder_out).reshape(B, -1, encoder_dim)
  si = np.asarray(sort_ind)
  enc_sorted = enc_flat[si]
  emb_np = np.asarray(params['emb'])[np.asarray(caps_sorted)]
  dl = [int(x) for x in np.asarray(decode_lengths)]
  ref_pred, ref_alpha = reference_forward(params, enc_sorted, emb_np, dl)
  # bf16 matmul operands (f32 accumulation) -> compare at 1e-2.
  np.testing.assert_allclose(np.asarray(predictions), ref_pred,
                             rtol=1e-2, atol=1e-2)
  np.testing.assert_allclose(np.asarray(alphas), ref_alpha,
                             rtol=1e-2, atol=1e-2)
  print("KERNEL_OK")
</pallas_src>

<mosaic_0001>
module attributes {stable_mosaic.version = 11 : i64} {
  func.func @_decoder_step_kernel(%arg0: i32, %arg1: i32, %arg2: memref<8x1xi32, #tpu.memory_space<vmem>>, %arg3: memref<1x128xf32, #tpu.memory_space<vmem>>, %arg4: memref<8x128x128xbf16, #tpu.memory_space<vmem>>, %arg5: memref<8x128x128xbf16, #tpu.memory_space<vmem>>, %arg6: memref<8x128xf32, #tpu.memory_space<vmem>>, %arg7: memref<8x128xf32, #tpu.memory_space<vmem>>, %arg8: memref<1x8x128xbf16, #tpu.memory_space<vmem>>, %arg9: memref<128x128xbf16, #tpu.memory_space<vmem>>, %arg10: memref<1x128xf32, #tpu.memory_space<vmem>>, %arg11: memref<1x128xf32, #tpu.memory_space<vmem>>, %arg12: memref<1x1xf32, #tpu.memory_space<vmem>>, %arg13: memref<128x128xbf16, #tpu.memory_space<vmem>>, %arg14: memref<1x128xf32, #tpu.memory_space<vmem>>, %arg15: memref<384x512xbf16, #tpu.memory_space<vmem>>, %arg16: memref<1x512xf32, #tpu.memory_space<vmem>>, %arg17: memref<1x8x128xf32, #tpu.memory_space<vmem>>, %arg18: memref<1x8x128xf32, #tpu.memory_space<vmem>>, %arg19: memref<8x128xf32, #tpu.memory_space<vmem>>, %arg20: memref<8x128xf32, #tpu.memory_space<vmem>>) attributes {dimension_semantics = [#tpu.dimension_semantics<parallel>, #tpu.dimension_semantics<arbitrary>], iteration_bounds = array<i64: 1, 7>, scalar_prefetch = 0 : i64, scratch_operands = 2 : i64, tpu.core_type = #tpu.core_type<tc>, window_params = [{transform_indices = @transform_0, window_bounds = array<i64: 8, 1>}, {pipeline_mode = #tpu.pipeline_mode<synchronous>, transform_indices = @transform_1, window_bounds = array<i64: 1, 128>}, {transform_indices = @transform_2, window_bounds = array<i64: 8, 128, 128>}, {transform_indices = @transform_3, window_bounds = array<i64: 8, 128, 128>}, {transform_indices = @transform_4, window_bounds = array<i64: 8, 128>}, {transform_indices = @transform_5, window_bounds = array<i64: 8, 128>}, {transform_indices = @transform_6, window_bounds = array<i64: 1, 8, 128>}, {pipeline_mode = #tpu.pipeline_mode<synchronous>, transform_indices = @transform_7, window_bounds = array<i64: 128, 128>}, {pipeline_mode = #tpu.pipeline_mode<synchronous>, transform_indices = @transform_8, window_bounds = array<i64: 1, 128>}, {pipeline_mode = #tpu.pipeline_mode<synchronous>, transform_indices = @transform_9, window_bounds = array<i64: 1, 128>}, {pipeline_mode = #tpu.pipeline_mode<synchronous>, transform_indices = @transform_10, window_bounds = array<i64: 1, 1>}, {pipeline_mode = #tpu.pipeline_mode<synchronous>, transform_indices = @transform_11, window_bounds = array<i64: 128, 128>}, {pipeline_mode = #tpu.pipeline_mode<synchronous>, transform_indices = @transform_12, window_bounds = array<i64: 1, 128>}, {pipeline_mode = #tpu.pipeline_mode<synchronous>, transform_indices = @transform_13, window_bounds = array<i64: 384, 512>}, {pipeline_mode = #tpu.pipeline_mode<synchronous>, transform_indices = @transform_14, window_bounds = array<i64: 1, 512>}, {transform_indices = @transform_15, window_bounds = array<i64: 1, 8, 128>}, {transform_indices = @transform_16, window_bounds = array<i64: 1, 8, 128>}]} {
    %c0_i32 = arith.constant 0 : i32
    %0 = arith.cmpi eq, %arg1, %c0_i32 : i32
    %1 = arith.extui %0 : i1 to i32
    %c0_i32_0 = arith.constant 0 : i32
    %2 = arith.cmpi ne, %1, %c0_i32_0 : i32
    scf.if %2 {
      %c0_56 = arith.constant 0 : index
      %c0_57 = arith.constant 0 : index
      %118 = vector.load %arg6[%c0_56, %c0_57] : memref<8x128xf32, #tpu.memory_space<vmem>>, vector<8x128xf32>
      %c0_58 = arith.constant 0 : index
      %c0_59 = arith.constant 0 : index
      %119 = vector.load %arg19[%c0_58, %c0_59] : memref<8x128xf32, #tpu.memory_space<vmem>>, vector<8x128xf32>
      tpu.vector_store %arg19[%c0_58, %c0_59], %118 {strides = array<i32>} : memref<8x128xf32, #tpu.memory_space<vmem>>, vector<8x128xf32>,
      %c0_60 = arith.constant 0 : index
      %c0_61 = arith.constant 0 : index
      %120 = vector.load %arg7[%c0_60, %c0_61] : memref<8x128xf32, #tpu.memory_space<vmem>>, vector<8x128xf32>
      %c0_62 = arith.constant 0 : index
      %c0_63 = arith.constant 0 : index
      %121 = vector.load %arg20[%c0_62, %c0_63] : memref<8x128xf32, #tpu.memory_space<vmem>>, vector<8x128xf32>
      tpu.vector_store %arg20[%c0_62, %c0_63], %120 {strides = array<i32>} : memref<8x128xf32, #tpu.memory_space<vmem>>, vector<8x128xf32>,
    } else {
    }
    %c0 = arith.constant 0 : index
    %c0_1 = arith.constant 0 : index
    %3 = vector.load %arg19[%c0, %c0_1] : memref<8x128xf32, #tpu.memory_space<vmem>>, vector<8x128xf32>
    %c0_2 = arith.constant 0 : index
    %c0_3 = arith.constant 0 : index
    %4 = vector.load %arg20[%c0_2, %c0_3] : memref<8x128xf32, #tpu.memory_space<vmem>>, vector<8x128xf32>
    %5 = arith.truncf %3 : vector<8x128xf32> to vector<8x128xbf16>
    %c0_4 = arith.constant 0 : index
    %c0_5 = arith.constant 0 : index
    %6 = vector.load %arg2[%c0_4, %c0_5] : memref<8x1xi32, #tpu.memory_space<vmem>>, vector<8x1xi32>
    %7 = vector.broadcast %arg1 : i32 to vector<8x1xi32>
    %8 = arith.cmpi sgt, %6, %7 : vector<8x1xi32>
    %9 = arith.extui %8 : vector<8x1xi1> to vector<8x1xi32>
    %10 = arith.sitofp %9 : vector<8x1xi32> to vector<8x1xf32>
    %c0_6 = arith.constant 0 : index
    %c0_7 = arith.constant 0 : index
    %11 = vector.load %arg9[%c0_6, %c0_7] : memref<128x128xbf16, #tpu.memory_space<vmem>>, vector<128x128xbf16>
    %cst = arith.constant dense<0.000000e+00> : vector<8x128xf32>
    %12 = tpu.matmul %5, %11, %cst {dimension_numbers = #tpu.dot_dimension_numbers<[1], [0], [0], [1], [0, 0, 1, 1], [], []>} : vector<8x128xbf16>, vector<128x128xbf16>, vector<8x128xf32> -> vector<8x128xf32>
    %c0_8 = arith.constant 0 : index
    %c0_9 = arith.constant 0 : index
    %13 = vector.load %arg10[%c0_8, %c0_9] : memref<1x128xf32, #tpu.memory_space<vmem>>, vector<1x128xf32>
    %14 = vector.broadcast %13 : vector<1x128xf32> to vector<8x128xf32>
    %15 = arith.addf %12, %14 : vector<8x128xf32>
    %c0_10 = arith.constant 0 : index
    %c0_11 = arith.constant 0 : index
    %c0_12 = arith.constant 0 : index
    %16 = vector.load %arg5[%c0_10, %c0_11, %c0_12] : memref<8x128x128xbf16, #tpu.memory_space<vmem>>, vector<8x128x128xbf16>
    %17 = arith.extf %16 : vector<8x128x128xbf16> to vector<8x128x128xf32>
    %18 = vector.shape_cast %15 : vector<8x128xf32> to vector<8x1x128xf32>
    %19 = vector.broadcast %18 : vector<8x1x128xf32> to vector<8x128x128xf32>
    %20 = arith.addf %17, %19 : vector<8x128x128xf32>
    %cst_13 = arith.constant 0.000000e+00 : f32
    %21 = vector.broadcast %cst_13 : f32 to vector<8x128x128xf32>
    %22 = arith.maximumf %20, %21 : vector<8x128x128xf32>
    %c0_14 = arith.constant 0 : index
    %c0_15 = arith.constant 0 : index
    %23 = vector.load %arg11[%c0_14, %c0_15] : memref<1x128xf32, #tpu.memory_space<vmem>>, vector<1x128xf32>
    %24 = vector.shape_cast %23 : vector<1x128xf32> to vector<1x1x128xf32>
    %25 = vector.broadcast %24 : vector<1x1x128xf32> to vector<8x128x128xf32>
    %26 = arith.mulf %22, %25 : vector<8x128x128xf32>
    %cst_16 = arith.constant dense<0.000000e+00> : vector<8x128xf32>
    %27 = vector.multi_reduction <add>, %26, %cst_16 [2] : vector<8x128x128xf32> to vector<8x128xf32>
    %c0_17 = arith.constant 0 : index
    %c0_18 = arith.constant 0 : index
    %28 = vector.load %arg12[%c0_17, %c0_18] : memref<1x1xf32, #tpu.memory_space<vmem>>, vector<1x1xf32>
    %29 = vector.broadcast %28 : vector<1x1xf32> to vector<8x128xf32>
    %30 = arith.addf %27, %29 : vector<8x128xf32>
    %c0_19 = arith.constant 0 : index
    %c0_20 = arith.constant 0 : index
    %31 = vector.load %arg3[%c0_19, %c0_20] : memref<1x128xf32, #tpu.memory_space<vmem>>, vector<1x128xf32>
    %32 = vector.broadcast %31 : vector<1x128xf32> to vector<8x128xf32>
    %33 = arith.addf %30, %32 : vector<8x128xf32>
    %cst_21 = arith.constant dense<0xFF800000> : vector<8xf32>
    %34 = vector.multi_reduction <maximumf>, %33, %cst_21 [1] : vector<8x128xf32> to vector<8xf32>
    %35 = vector.shape_cast %34 : vector<8xf32> to vector<8x1xf32>
    %36 = vector.broadcast %35 : vector<8x1xf32> to vector<8x128xf32>
    %37 = arith.subf %33, %36 : vector<8x128xf32>
    %38 = math.exp %37 : vector<8x128xf32>
    %cst_22 = arith.constant dense<0.000000e+00> : vector<8xf32>
    %39 = vector.multi_reduction <add>, %38, %cst_22 [1] : vector<8x128xf32> to vector<8xf32>
    %40 = vector.shape_cast %39 : vector<8xf32> to vector<8x1xf32>
    %41 = tpu.reciprocal %40 {approx = true} : vector<8x1xf32> -> vector<8x1xf32>
    %42 = vector.broadcast %41 : vector<8x1xf32> to vector<8x128xf32>
    %43 = arith.mulf %38, %42 : vector<8x128xf32>
    %44 = vector.shape_cast %43 : vector<8x128xf32> to vector<8x1x128xf32>
    %45 = arith.truncf %44 : vector<8x1x128xf32> to vector<8x1x128xbf16>
    %c0_23 = arith.constant 0 : index
    %c0_24 = arith.constant 0 : index
    %c0_25 = arith.constant 0 : index
    %46 = vector.load %arg4[%c0_23, %c0_24, %c0_25] : memref<8x128x128xbf16, #tpu.memory_space<vmem>>, vector<8x128x128xbf16>
    "tpu.trace_start"() <{level = 10 : i32, message = "bqp,bpe->bqe"}> : () -> ()
    %cst_26 = arith.constant dense<0.000000e+00> : vector<8x1x128xf32>
    %47 = tpu.matmul %45, %46, %cst_26 {dimension_numbers = #tpu.dot_dimension_numbers<[2], [1], [1], [2], [0, 0, 0, 1, 1, 2], [0], [0]>} : vector<8x1x128xbf16>, vector<8x128x128xbf16>, vector<8x1x128xf32> -> vector<8x1x128xf32>
    "tpu.trace_stop"() : () -> ()
    %48 = vector.shape_cast %47 : vector<8x1x128xf32> to vector<8x128xf32>
    %c0_27 = arith.constant 0 : index
    %c0_28 = arith.constant 0 : index
    %49 = vector.load %arg13[%c0_27, %c0_28] : memref<128x128xbf16, #tpu.memory_space<vmem>>, vector<128x128xbf16>
    %cst_29 = arith.constant dense<0.000000e+00> : vector<8x128xf32>
    %50 = tpu.matmul %5, %49, %cst_29 {dimension_numbers = #tpu.dot_dimension_numbers<[1], [0], [0], [1], [0, 0, 1, 1], [], []>} : vector<8x128xbf16>, vector<128x128xbf16>, vector<8x128xf32> -> vector<8x128xf32>
    %c0_30 = arith.constant 0 : index
    %c0_31 = arith.constant 0 : index
    %51 = vector.load %arg14[%c0_30, %c0_31] : memref<1x128xf32, #tpu.memory_space<vmem>>, vector<1x128xf32>
    %52 = vector.broadcast %51 : vector<1x128xf32> to vector<8x128xf32>
    %53 = arith.addf %50, %52 : vector<8x128xf32>
    %54 = arith.negf %53 : vector<8x128xf32>
    %55 = math.exp %54 : vector<8x128xf32>
    %cst_32 = arith.constant 1.000000e+00 : f32
    %56 = vector.broadcast %cst_32 : f32 to vector<8x128xf32>
    %57 = arith.addf %56, %55 : vector<8x128xf32>
    %58 = arith.divf %56, %57 : vector<8x128xf32>
    %59 = arith.mulf %58, %48 : vector<8x128xf32>
    %c0_33 = arith.constant 0 : index
    %c0_34 = arith.constant 0 : index
    %c0_35 = arith.constant 0 : index
    %60 = vector.load %arg8[%c0_33, %c0_34, %c0_35] : memref<1x8x128xbf16, #tpu.memory_space<vmem>>, vector<1x8x128xbf16>
    %61 = vector.shape_cast %60 : vector<1x8x128xbf16> to vector<8x128xbf16>
    %62 = arith.truncf %59 : vector<8x128xf32> to vector<8x128xbf16>
    %63 = tpu.concatenate %61, %62, %5 in 1 : vector<8x128xbf16>, vector<8x128xbf16>, vector<8x128xbf16> -> vector<8x384xbf16>
    %c0_36 = arith.constant 0 : index
    %c0_37 = arith.constant 0 : index
    %64 = vector.load %arg15[%c0_36, %c0_37] : memref<384x512xbf16, #tpu.memory_space<vmem>>, vector<384x512xbf16>
    %cst_38 = arith.constant dense<0.000000e+00> : vector<8x512xf32>
    %65 = tpu.matmul %63, %64, %cst_38 {dimension_numbers = #tpu.dot_dimension_numbers<[1], [0], [0], [1], [0, 0, 1, 1], [], []>} : vector<8x384xbf16>, vector<384x512xbf16>, vector<8x512xf32> -> vector<8x512xf32>
    %c0_39 = arith.constant 0 : index
    %c0_40 = arith.constant 0 : index
    %66 = vector.load %arg16[%c0_39, %c0_40] : memref<1x512xf32, #tpu.memory_space<vmem>>, vector<1x512xf32>
    %67 = vector.broadcast %66 : vector<1x512xf32> to vector<8x512xf32>
    %68 = arith.addf %65, %67 : vector<8x512xf32>
    %69 = vector.extract_strided_slice %68 {offsets = [0, 0], sizes = [8, 128], strides = [1, 1]} : vector<8x512xf32> to vector<8x128xf32>
    %70 = arith.negf %69 : vector<8x128xf32>
    %71 = math.exp %70 : vector<8x128xf32>
    %cst_41 = arith.constant 1.000000e+00 : f32
    %72 = vector.broadcast %cst_41 : f32 to vector<8x128xf32>
    %73 = arith.addf %72, %71 : vector<8x128xf32>
    %74 = arith.divf %72, %73 : vector<8x128xf32>
    %75 = vector.extract_strided_slice %68 {offsets = [0, 128], sizes = [8, 128], strides = [1, 1]} : vector<8x512xf32> to vector<8x128xf32>
    %76 = arith.negf %75 : vector<8x128xf32>
    %77 = math.exp %76 : vector<8x128xf32>
    %cst_42 = arith.constant 1.000000e+00 : f32
    %78 = vector.broadcast %cst_42 : f32 to vector<8x128xf32>
    %79 = arith.addf %78, %77 : vector<8x128xf32>
    %80 = arith.divf %78, %79 : vector<8x128xf32>
    %81 = vector.extract_strided_slice %68 {offsets = [0, 256], sizes = [8, 128], strides = [1, 1]} : vector<8x512xf32> to vector<8x128xf32>
    %82 = math.tanh %81 : vector<8x128xf32>
    %83 = vector.extract_strided_slice %68 {offsets = [0, 384], sizes = [8, 128], strides = [1, 1]} : vector<8x512xf32> to vector<8x128xf32>
    %84 = arith.negf %83 : vector<8x128xf32>
    %85 = math.exp %84 : vector<8x128xf32>
    %cst_43 = arith.constant 1.000000e+00 : f32
    %86 = vector.broadcast %cst_43 : f32 to vector<8x128xf32>
    %87 = arith.addf %86, %85 : vector<8x128xf32>
    %88 = arith.divf %86, %87 : vector<8x128xf32>
    %89 = arith.mulf %80, %4 : vector<8x128xf32>
    %90 = arith.mulf %74, %82 : vector<8x128xf32>
    %91 = arith.addf %89, %90 : vector<8x128xf32>
    %92 = math.tanh %91 : vector<8x128xf32>
    %93 = arith.mulf %88, %92 : vector<8x128xf32>
    %94 = vector.broadcast %10 : vector<8x1xf32> to vector<8x128xf32>
    %95 = arith.mulf %94, %93 : vector<8x128xf32>
    %cst_44 = arith.constant 1.000000e+00 : f32
    %96 = vector.broadcast %cst_44 : f32 to vector<8x1xf32>
    %97 = arith.subf %96, %10 : vector<8x1xf32>
    %98 = vector.broadcast %97 : vector<8x1xf32> to vector<8x128xf32>
    %99 = arith.mulf %98, %3 : vector<8x128xf32>
    %100 = arith.addf %95, %99 : vector<8x128xf32>
    %101 = vector.broadcast %10 : vector<8x1xf32> to vector<8x128xf32>
    %102 = arith.mulf %101, %91 : vector<8x128xf32>
    %cst_45 = arith.constant 1.000000e+00 : f32
    %103 = vector.broadcast %cst_45 : f32 to vector<8x1xf32>
    %104 = arith.subf %103, %10 : vector<8x1xf32>
    %105 = vector.broadcast %104 : vector<8x1xf32> to vector<8x128xf32>
    %106 = arith.mulf %105, %4 : vector<8x128xf32>
    %107 = arith.addf %102, %106 : vector<8x128xf32>
    %c0_46 = arith.constant 0 : index
    %c0_47 = arith.constant 0 : index
    %108 = vector.load %arg19[%c0_46, %c0_47] : memref<8x128xf32, #tpu.memory_space<vmem>>, vector<8x128xf32>
    tpu.vector_store %arg19[%c0_46, %c0_47], %100 {strides = array<i32>} : memref<8x128xf32, #tpu.memory_space<vmem>>, vector<8x128xf32>,
    %c0_48 = arith.constant 0 : index
    %c0_49 = arith.constant 0 : index
    %109 = vector.load %arg20[%c0_48, %c0_49] : memref<8x128xf32, #tpu.memory_space<vmem>>, vector<8x128xf32>
    tpu.vector_store %arg20[%c0_48, %c0_49], %107 {strides = array<i32>} : memref<8x128xf32, #tpu.memory_space<vmem>>, vector<8x128xf32>,
    %c0_50 = arith.constant 0 : index
    %c0_51 = arith.constant 0 : index
    %c0_52 = arith.constant 0 : index
    %110 = vector.load %arg17[%c0_50, %c0_51, %c0_52] : memref<1x8x128xf32, #tpu.memory_space<vmem>>, vector<1x8x128xf32>
    %111 = vector.shape_cast %110 : vector<1x8x128xf32> to vector<8x128xf32>
    %112 = vector.shape_cast %100 : vector<8x128xf32> to vector<1x8x128xf32>
    tpu.vector_store %arg17[%c0_50, %c0_51, %c0_52], %112 {strides = array<i32>} : memref<1x8x128xf32, #tpu.memory_space<vmem>>, vector<1x8x128xf32>,
    %113 = vector.broadcast %10 : vector<8x1xf32> to vector<8x128xf32>
    %114 = arith.mulf %113, %43 : vector<8x128xf32>
    %c0_53 = arith.constant 0 : index
    %c0_54 = arith.constant 0 : index
    %c0_55 = arith.constant 0 : index
    %115 = vector.load %arg18[%c0_53, %c0_54, %c0_55] : memref<1x8x128xf32, #tpu.memory_space<vmem>>, vector<1x8x128xf32>
    %116 = vector.shape_cast %115 : vector<1x8x128xf32> to vector<8x128xf32>
    %117 = vector.shape_cast %114 : vector<8x128xf32> to vector<1x8x128xf32>
    tpu.vector_store %arg18[%c0_53, %c0_54, %c0_55], %117 {strides = array<i32>} : memref<1x8x128xf32, #tpu.memory_space<vmem>>, vector<1x8x128xf32>,
    return
  }
  func.func @transform_0(%arg0: i32, %arg1: i32) -> (i32, i32) {
    %c0_i32 = arith.constant 0 : i32
    %c0_i32_0 = arith.constant 0 : i32
    return %arg0, %c0_i32 : i32, i32
  }
  func.func @transform_1(%arg0: i32, %arg1: i32) -> (i32, i32) {
    %c0_i32 = arith.constant 0 : i32
    %c0_i32_0 = arith.constant 0 : i32
    %c0_i32_1 = arith.constant 0 : i32
    return %c0_i32, %c0_i32_0 : i32, i32
  }
  func.func @transform_2(%arg0: i32, %arg1: i32) -> (i32, i32, i32) {
    %c0_i32 = arith.constant 0 : i32
    %c0_i32_0 = arith.constant 0 : i32
    %c0_i32_1 = arith.constant 0 : i32
    return %arg0, %c0_i32, %c0_i32_0 : i32, i32, i32
  }
  func.func @transform_3(%arg0: i32, %arg1: i32) -> (i32, i32, i32) {
    %c0_i32 = arith.constant 0 : i32
    %c0_i32_0 = arith.constant 0 : i32
    %c0_i32_1 = arith.constant 0 : i32
    return %arg0, %c0_i32, %c0_i32_0 : i32, i32, i32
  }
  func.func @transform_4(%arg0: i32, %arg1: i32) -> (i32, i32) {
    %c0_i32 = arith.constant 0 : i32
    %c0_i32_0 = arith.constant 0 : i32
    return %arg0, %c0_i32 : i32, i32
  }
  func.func @transform_5(%arg0: i32, %arg1: i32) -> (i32, i32) {
    %c0_i32 = arith.constant 0 : i32
    %c0_i32_0 = arith.constant 0 : i32
    return %arg0, %c0_i32 : i32, i32
  }
  func.func @transform_6(%arg0: i32, %arg1: i32) -> (i32, i32, i32) {
    %c0_i32 = arith.constant 0 : i32
    %c0_i32_0 = arith.constant 0 : i32
    return %arg1, %arg0, %c0_i32 : i32, i32, i32
  }
  func.func @transform_7(%arg0: i32, %arg1: i32) -> (i32, i32) {
    %c0_i32 = arith.constant 0 : i32
    %c0_i32_0 = arith.constant 0 : i32
    %c0_i32_1 = arith.constant 0 : i32
    return %c0_i32, %c0_i32_0 : i32, i32
  }
  func.func @transform_8(%arg0: i32, %arg1: i32) -> (i32, i32) {
    %c0_i32 = arith.constant 0 : i32
    %c0_i32_0 = arith.constant 0 : i32
    %c0_i32_1 = arith.constant 0 : i32
    return %c0_i32, %c0_i32_0 : i32, i32
  }
  func.func @transform_9(%arg0: i32, %arg1: i32) -> (i32, i32) {
    %c0_i32 = arith.constant 0 : i32
    %c0_i32_0 = arith.constant 0 : i32
    %c0_i32_1 = arith.constant 0 : i32
    return %c0_i32, %c0_i32_0 : i32, i32
  }
  func.func @transform_10(%arg0: i32, %arg1: i32) -> (i32, i32) {
    %c0_i32 = arith.constant 0 : i32
    %c0_i32_0 = arith.constant 0 : i32
    %c0_i32_1 = arith.constant 0 : i32
    return %c0_i32, %c0_i32_0 : i32, i32
  }
  func.func @transform_11(%arg0: i32, %arg1: i32) -> (i32, i32) {
    %c0_i32 = arith.constant 0 : i32
    %c0_i32_0 = arith.constant 0 : i32
    %c0_i32_1 = arith.constant 0 : i32
    return %c0_i32, %c0_i32_0 : i32, i32
  }
  func.func @transform_12(%arg0: i32, %arg1: i32) -> (i32, i32) {
    %c0_i32 = arith.constant 0 : i32
    %c0_i32_0 = arith.constant 0 : i32
    %c0_i32_1 = arith.constant 0 : i32
    return %c0_i32, %c0_i32_0 : i32, i32
  }
  func.func @transform_13(%arg0: i32, %arg1: i32) -> (i32, i32) {
    %c0_i32 = arith.constant 0 : i32
    %c0_i32_0 = arith.constant 0 : i32
    %c0_i32_1 = arith.constant 0 : i32
    return %c0_i32, %c0_i32_0 : i32, i32
  }
  func.func @transform_14(%arg0: i32, %arg1: i32) -> (i32, i32) {
    %c0_i32 = arith.constant 0 : i32
    %c0_i32_0 = arith.constant 0 : i32
    %c0_i32_1 = arith.constant 0 : i32
    return %c0_i32, %c0_i32_0 : i32, i32
  }
  func.func @transform_15(%arg0: i32, %arg1: i32) -> (i32, i32, i32) {
    %c0_i32 = arith.constant 0 : i32
    %c0_i32_0 = arith.constant 0 : i32
    return %arg1, %arg0, %c0_i32 : i32, i32, i32
  }
  func.func @transform_16(%arg0: i32, %arg1: i32) -> (i32, i32, i32) {
    %c0_i32 = arith.constant 0 : i32
    %c0_i32_0 = arith.constant 0 : i32
    return %arg1, %arg0, %c0_i32 : i32, i32, i32
  }
}

</mosaic_0001>

<bundles_post_ra>
// kernel: tpu_custom_call.1
= control target key start
LH: loop header
LB: loop body
LE: loop exit
PB: predicated region body
PF: predicated region fallthrough
CT: control target
= control target key end

     0   :  { %s15844_s0 = inlined_call_operand.vmem [shape: s32[8,1], index: 0, kind: input, shape index: {}]   ;;  %s15845_s1 = inlined_call_operand.vmem [shape: f32[1,128], index: 1, kind: input, shape index: {}]   ;;  %s15846_s2 = inlined_call_operand.hbm [shape: bf16[8,128,128], index: 2, kind: input, shape index: {}]   ;;  %s15847_s3 = inlined_call_operand.hbm [shape: bf16[8,128,128], index: 3, kind: input, shape index: {}]   ;;  %s15848_s4 = inlined_call_operand.vmem [shape: f32[8,128], index: 4, kind: input, shape index: {}]   ;;  %s15849_s5 = inlined_call_operand.hbm [shape: f32[8,128], index: 5, kind: input, shape index: {}]   ;;  %s15850_s6 = inlined_call_operand.hbm [shape: bf16[7,8,128], index: 6, kind: input, shape index: {}]   ;;  %s15851_s7 = inlined_call_operand.hbm [shape: bf16[128,128], index: 7, kind: input, shape index: {}]   ;;  %s15852_s8 = inlined_call_operand.vmem [shape: f32[1,128], index: 8, kind: input, shape index: {}]   ;;  %s15853_s9 = inlined_call_operand.vmem [shape: f32[1,128], index: 9, kind: input, shape index: {}]   ;;  %s15854_s10 = inlined_call_operand.<no memory space> [shape: f32[1,1], index: 10, kind: input, shape index: {}]   ;;  %s15855_s11 = inlined_call_operand.hbm [shape: bf16[128,128], index: 11, kind: input, shape index: {}]   ;;  %s15856_s12 = inlined_call_operand.vmem [shape: f32[1,128], index: 12, kind: input, shape index: {}]   ;;  %s15857_s13 = inlined_call_operand.hbm [shape: bf16[384,512], index: 13, kind: input, shape index: {}]   ;;  %s15858_s14 = inlined_call_operand.vmem [shape: f32[1,512], index: 14, kind: input, shape index: {}]   ;;  %s15859_s15 = inlined_call_operand.hbm [shape: f32[7,8,128], index: 15, kind: output, shape index: {0}]   ;;  %s15860_s16 = inlined_call_operand.hbm [shape: f32[7,8,128], index: 16, kind: output, shape index: {1}]  }
   0x1   :  { %16258 = sst [smem:[#allocation221_spill]] %s15844_s0  ;;  %v22_v0 = vstv %s15854_s10 }
   0x2   :  { %16259 = sst [smem:[#allocation222_spill]] %s15845_s1  ;;  %23 = vst [vmem:[#allocation4] sm:$0x1] %v22_v0 }
   0x3   :  { %16260 = sst [smem:[#allocation223_spill]] %s15846_s2 }
   0x4   :  { %16261 = sst [smem:[#allocation224_spill]] %s15847_s3 }
   0x5   :  { %16262 = sst [smem:[#allocation225_spill]] %s15851_s7 }
   0x6   :  { %16263 = sst [smem:[#allocation226_spill]] %s15853_s9 }
   0x7   :  { %16264 = sst [smem:[#allocation227_spill]] %s15855_s11 }
   0x8   :  { %16265 = sst [smem:[#allocation228_spill]] %s15856_s12 }
   0x9   :  { %16266 = sst [smem:[#allocation229_spill]] %s15858_s14 }
   0xa   :  { %16267 = sst [smem:[#allocation230_spill]] %s15859_s15 }
   0xb   :  { %16268 = sst [smem:[#allocation231_spill]] %s15860_s16 }
   0xc   :  { %24 = vsyncpa [#allocation6], 0 }
   0xd   :  { %25 = vsyncpa [#allocation9], 0 }
   0xe   :  { %26 = vsyncpa [#allocation12], 0 }
   0xf   :  { %28 = vsyncpa [#allocation12 + $0x1], 0 }
  0x10   :  { %29 = vsyncpa [#allocation15], 0 }
  0x11   :  { %30 = vsyncpa [#allocation7], 0 }
  0x12   :  { %32 = vsyncpa [#allocation7 + $0x1], 0 }
  0x13   :  { %33 = vsyncpa [#allocation19], 0 }
  0x14   :  { %35 = vsyncpa [#allocation19 + $0x1], 0  ;;  %s10305_s23 = smov 0   ;;  %s10307_s24 = smov 0  }
  0x15   :  { %s10309_s25 = smov 0   ;;  %s10311_s26 = smov 0  }
  0x16   :  { %s10313_s27 = smov 0   ;;  %s10315_s10 = smov 0  }
  0x17 LB: > { %s10336_s28 = sadd.s32 4294967295, %s10203_s10   ;;  %p8063_p0 = scmp.ge.s32.totalorder %s10203_s10, 1  ;;  %s10203_s10 = sphi %s10315_s10, %s41_s10   ;;  %s10199_s27 = sphi %s10313_s27, %s17489_s27   ;;  %s10195_s26 = sphi %s10311_s26, %s17488_s26   ;;  %s10191_s25 = sphi %s10309_s25, %s17487_s25   ;;  %s10187_s24 = sphi %s10307_s24, %s17486_s24   ;;  %s10183_s23 = sphi %s10305_s23, %s17485_s23  }
  0x18   : > { %p227_p1 = scmp.eq.s32.totalorder %s10336_s28, 0  ;;  %p461_p2 = scmp.lt.s32.totalorder %s10203_s10, 8 }
  0x19   : > { %s16269_s3 = sld [smem:[#allocation224_spill]]  ;;  %s10205_s18 = smov [#allocation8]  }
  0x1a   : > { %p10344_p3 = pnand %p8063_p0, %p461_p2  ;;  %s506_s19 = sshll.u32 %s10205_s18, 4  ;;  %s507_s19 = int_to_ptr.vmem [resolvable:$true] %s506_s19 }
  0x1b   : > { %s16271_s7 = sld [smem:[#allocation225_spill]]  ;;  %s10206_s15 = smov [#allocation13]  }
  0x1c   : > { %p9454_p4 = pneg %p10344_p3  ;;  %s16273_s11 = sld [smem:[#allocation227_spill]] }
  0x1d   : > { %s541_s18 = sshll.u32 %s10206_s15, 4  ;;  %s10207_s14 = smov 64   ;;  %s542_s18 = int_to_ptr.vmem [resolvable:$true] %s541_s18 }
  0x1e   : > { %p10355_p5 = pnand %p9454_p4, %p227_p1  ;;  %s10208_s12 = smov 4  }
  0x1f   : > { %s504_s0 = sshll.u32 %s16269_s3, 4  ;;  %s10209_s20 = smov [#allocation14]   ;;  %s505_s0 = int_to_ptr.hbm [resolvable:$true] %s504_s0 }
  0x20   : > { %9460 = dma.hbm_to_vmem [thread:$0]  (!%p10355_p5), %s505_s0, 8192, %s507_s19, [#allocation9], %s10207_s14, %s10207_s14, %s10208_s12  }
  0x21   : > { %s539_s22 = sshll.u32 %s16271_s7, 4  ;;  %s564_s21 = sshll.u32 %s10209_s20, 4  ;;  %s540_s22 = int_to_ptr.hbm [resolvable:$true] %s539_s22  ;;  %s565_s21 = int_to_ptr.vmem [resolvable:$true] %s564_s21 }
  0x22   : > { %s562_s3 = sshll.u32 %s16273_s11, 4  ;;  %s16274_s2 = sld [smem:[#allocation223_spill]]  ;;  %s563_s3 = int_to_ptr.hbm [resolvable:$true] %s562_s3 }
  0x23   : > { %9466 = dma.hbm_to_vmem [thread:$0]  (!%p10355_p5), %s540_s22, 1024, %s542_s18, [#allocation12], %s10207_s14, %s10207_s14, %s10208_s12  }
  0x24   : > { %9469 = dma.hbm_to_vmem [thread:$0]  (!%p10355_p5), %s563_s3, 1024, %s565_s21, [#allocation15], %s10207_s14, %s10207_s14, %s10208_s12  }
  0x25   : > { %s10210_s15 = smov [#allocation5]   ;;  %s528_s0 = sshll.u32 %s15849_s5, 4  ;;  %s529_s0 = int_to_ptr.hbm [resolvable:$true] %s528_s0 }
  0x26   : > { %s488_s30 = sshll.u32 %s10210_s15, 4  ;;  %s579_s1 = sshll.u32 %s15857_s13, 4  ;;  %s489_s30 = int_to_ptr.vmem [resolvable:$true] %s488_s30  ;;  %s580_s1 = int_to_ptr.hbm [resolvable:$true] %s579_s1 }
  0x27   : > { %s10211_s3 = smov [#allocation10]   ;;  %s10212_s9 = smov [#allocation16]  }
  0x28   : > { %s486_s29 = sshll.u32 %s16274_s2, 4  ;;  %s530_s7 = sshll.u32 %s10211_s3, 4  ;;  %s487_s29 = int_to_ptr.hbm [resolvable:$true] %s486_s29  ;;  %s531_s7 = int_to_ptr.vmem [resolvable:$true] %s530_s7 }
  0x29   : > { %9457 = dma.hbm_to_vmem [thread:$0]  (!%p10355_p5), %s487_s29, 8192, %s489_s30, [#allocation6], %s10207_s14, %s10207_s14, %s10208_s12  }
  0x2a   : > { %9463 = dma.hbm_to_vmem [thread:$0]  (!%p10355_p5), %s529_s0, 128, %s531_s7, [#allocation9]  }
  0x2b   : > { %s581_s11 = sshll.u32 %s10212_s9, 4  ;;  %s10213_s12 = smov 256   ;;  %s582_s11 = int_to_ptr.vmem [resolvable:$true] %s581_s11 }
  0x2c   : > { %s10214_s14 = smov 16   ;;  %s8062_s18 = sadd.s32 4294967294, %s10203_s10  }
  0x2d   : > { %9472 = dma.hbm_to_vmem [thread:$0]  (!%p10355_p5), %s580_s1, 12288, %s582_s11, [#allocation15], %s10213_s12, %s10213_s12, %s10214_s14  }
  0x2e   : > { %s50_s20 = sadd.s32 1, %s10199_s27  ;;  %s213_s21 = sadd.s32 1, %s10191_s25 }
  0x2f   : > { %p51_p6 = scmp.ge.s32.totalorder %s50_s20, 7  ;;  %p220_p7 = scmp.ne.s32.totalorder %s10191_s25, %s10187_s24 }
  0x30   : > { %p221_p8 = scmp.eq.s32.totalorder %s10203_s10, 0  ;;  %p226_p10 = scmp.ne.s32.totalorder %s10187_s24, %s10183_s23 }
  0x31   : > { %s17491_s20 = smov (%p51_p6, %s50_s20), 0  ;;  %p420_p11 = scmp.eq.s32.totalorder %s10336_s28, 6 }
  0x32   : > { %p10391_p9 = por %p221_p8, %p220_p7  ;;  %s208_s16 = ssub.s32 %s10199_s27, %s17491_s20 }
  0x33   : > { %p211_p12 = scmp.eq.s32.totalorder %s208_s16, 0  ;;  %p10402_p13 = por %p227_p1, %p226_p10 }
  0x34   : > { %p10406_p0 = por %p420_p11, %p220_p7  ;;  %p426_p2 = scmp.eq.s32.totalorder %s8062_s18, 6 }
  0x35   : > { %s10411_s0 = scalar_select %p211_p12, %s10191_s25, %s213_s21  }
  0x36   : > { %p10413_p4 = por %p426_p2, %p226_p10  ;;  %p9490_p5 = scmp.lt.s32.totalorder %s10203_s10, 7 }
  0x37   : > { %s598_s22 = sand.u32 1, %s10203_s10   ;;  %s600_s1 = sand.u32 1, %s10191_s25  }
  0x38   : > { %s8073_s3 = sshll.u32 %s600_s1, 2  ;;  %s8074_s7 = sshll.u32 %s10199_s27, 2 }
  0x39   : > { %s607_s12 = scalar_lea.hbm %s15850_s6, %s8074_s7  ;;  %s602_s14 = scalar_lea.vmem [#allocation11], %s8073_s3 }
  0x3a   : > { %s611_s16 = sshll.u32 %s602_s14, 4  ;;  %s609_s2 = sshll.u32 %s607_s12, 4  ;;  %s612_s16 = int_to_ptr.vmem [resolvable:$true] %s611_s16  ;;  %s610_s2 = int_to_ptr.hbm [resolvable:$true] %s609_s2 }
  0x3b   : > { %p9474_p6 = pnand %p9490_p5, %p10391_p9  ;;  %s599_s18 = scalar_lea.sflag [#allocation12], %s598_s22 }
  0x3c   : > { %620 = sbr.rel (%p10344_p3) target bundleno = 2801 (0xaf1), region = 80 }
  0x3d   : > { %9476 = dma.hbm_to_vmem [thread:$0]  (!%p9474_p6), %s610_s2, 64, %s612_s16, %s599_s18  }
  0x41   : > { %10154 = dma.done.wait (%p227_p1), [#allocation6], 8192  }
  0x42   : > { %10156 = vsyncadd (%p227_p1), [#allocation6], 4294959104 }
  0x43   : > { %10158 = dma.done.wait (%p227_p1), [#allocation9], 8320  }
  0x44   : > { %10160 = vsyncadd (%p227_p1), [#allocation9], 4294958976  ;;  %s637_s21 = sand.u32 1, %s10336_s28   ;;  %s10438_s2 = sand.u32 1, %s10187_s24  }
  0x45   : > { %s8079_s17 = sshll.u32 %s10438_s2, 2  ;;  %s638_s29 = scalar_lea.sflag [#allocation12], %s637_s21 }
  0x46   : > { %s10441_s22 = scalar_lea.vmem [#allocation11], %s8079_s17 }
  0x47   : > { %10162 = dma.done.wait (%p10402_p13), %s638_s29, 64  }
  0x48   : > { %10164 = vsyncadd (%p10402_p13), %s638_s29, 4294967232 }
  0x49   : > { %10166 = dma.done.wait (%p227_p1), [#allocation12], 1024  }
  0x4a   : > { %10168 = vsyncadd (%p227_p1), [#allocation12], 4294966272 }
  0x4b   : > { %10170 = dma.done.wait (%p227_p1), [#allocation15], 13312  }
  0x4c   : > { %10172 = vsyncadd (%p227_p1), [#allocation15], 4294953984  ;;  %s8083_s1 = sshll.u32 %s10438_s2, 3  ;;  %p8085_p3 = scmp.ne.s32.totalorder %s10195_s26, 0 }
  0x4d   : > { %s10456_s3 = scalar_lea.vmem [#allocation17], %s8083_s1  ;;  %s10458_s7 = scalar_lea.vmem [#allocation18], %s8083_s1 }
  0x4e   : > { %732 = sbr.rel (%p8085_p3) target bundleno = 86 (0x56), region = 112 }
  0x53   : > { %v733_v1 = vld [vmem:[%s15848_s4] sm:$0xff]  ;;  %v735_v2 = vld [vmem:[#allocation10] sm:$0xff] }
  0x54   : > { %734 = vst [vmem:[#allocation2] sm:$0xff] %v733_v1 }
  0x55   : > { %736 = vst [vmem:[#allocation3] sm:$0xff] %v735_v2 }
  0x56 PF: > { %v8936_v3 = vld [vmem:[#allocation13 + $0x38] sm:$0xff]  ;;  %v8935_v4 = vld [vmem:[#allocation13 + $0x30] sm:$0xff]  ;;  %v8934_v5 = vld [vmem:[#allocation13 + $0x28] sm:$0xff]  ;;  %s16280_s16 = sld [smem:[#allocation226_spill]]  ;;  %vm2645_vm0 = vcmask 130112   ;;  %vm2649_vm1 = vcmask 195712  }
  0x57   : > { %813 = vmatpush.bf16.msra.mxu0 %v8936_v3  ;;  %v8933_v6 = vld [vmem:[#allocation13 + $0x20] sm:$0xff]  ;;  %v8932_v7 = vld [vmem:[#allocation13 + $0x18] sm:$0xff]  ;;  %v8931_v8 = vld [vmem:[#allocation13 + $0x10] sm:$0xff]  ;;  %s16319_s1 = sld [smem:[#allocation222_spill]]  ;;  %vm2653_vm2 = vcmask 261312   ;;  %vm2657_vm3 = vcmask 326912  }
  0x58   : > { %v8930_v9 = vld [vmem:[#allocation13 + $0x8] sm:$0xff]  ;;  %v8929_v10 = vld [vmem:[#allocation13] sm:$0xff]  ;;  %v9578_v13 = vld [vmem:[%s15852_s8] ss:$0 sm:$0xff]  ;;  %vm15999_vm4 = vcmask 392512   ;;  %vm2665_vm5 = vcmask 458112  }
  0x59   : > { %v9362_v14 = vld [vmem:[#allocation8 + $0x10] sm:$0xff]   ;;  %v9361_v16 = vld [vmem:[#allocation8 + $0x8] sm:$0xff]   ;;  %v9106_v17 = vld [vmem:[#allocation8] sm:$0xff]   ;;  %vm2669_vm6 = vcmask 523712   ;;  %vm2673_vm7 = vcmask 589312   ;;  %vm16004_vm8 = vcmask 654912  }
  0x5a   : > { %v9115_v19 = vunpack.c.l.bf16 %v9362_v14  ;;  %v9111_v20 = vunpack.c.l.bf16 %v9361_v16  ;;  %v9107_v21 = vunpack.c.l.bf16 %v9106_v17  ;;  %v9116_v25 = vunpack.c.h.bf16 %v9362_v14  ;;  %v9364_v40 = vld [vmem:[#allocation8 + $0x20] sm:$0xff]   ;;  %v9363_v41 = vld [vmem:[#allocation8 + $0x18] sm:$0xff]   ;;  %v9365_v54 = vld [vmem:[#allocation8 + $0x28] sm:$0xff]   ;;  %s17324_s28 = sld [smem:[#allocation221_spill]]  ;;  %s8925_s17 = sshll.u32 %s10195_s26, 3 }
  0x5b   : > { %814 = vmatpush.bf16.msra.mxu0 %v8935_v4  ;;  %v737_v11 = vld [vmem:[#allocation2] sm:$0xff]  ;;  %v9112_v28 = vunpack.c.h.bf16 %v9361_v16  ;;  %v9108_v29 = vunpack.c.h.bf16 %v9106_v17  ;;  %v9123_v43 = vunpack.c.l.bf16 %v9364_v40  ;;  %v9120_v46 = vunpack.c.h.bf16 %v9363_v41  ;;  %v9367_v3 = vld [vmem:[#allocation8 + $0x38] sm:$0xff]   ;;  %s17414_s14 = sld [smem:[#allocation228_spill]]  ;;  %s7816_s12 = scalar_lea.sflag [#allocation7], %s10438_s2 }
  0x5c   : > { %v10464_v12 = vpack.c.bf16 %v737_v11, %v737_v11  ;;  %v10479_v24 = vld [vmem:[%s16280_s16] ss:$0 sm:$0xff]  ;;  %v9119_v47 = vunpack.c.l.bf16 %v9363_v41  ;;  %v9128_v56 = vunpack.c.h.bf16 %v9365_v54  ;;  %v9127_v59 = vunpack.c.l.bf16 %v9365_v54  ;;  %v9366_v4 = vld [vmem:[#allocation8 + $0x30] sm:$0xff]   ;;  %s17470_s21 = sld [smem:[#allocation229_spill]] }
  0x5d   : > { %v9124_v60 = vunpack.c.h.bf16 %v9364_v40  ;;  %vm16001_vm9 = vcmask 720512   ;;  %vm16003_vm10 = vcmask 786112   ;;  %vm2689_vm11 = vcmask 851712   ;;  %s17479_s15 = sld [smem:[#allocation230_spill]] }
  0x5e   : > { %16279 = vst [vmem:[#allocation27_spill] sm:$0xff] %v10464_v12  ;;  %vm2693_vm12 = vcmask 917312   ;;  %vm2697_vm13 = vcmask 982912   ;;  %vm2701_vm14 = vcmask 1048512   ;;  %vm16000_vm15 = vcmask 1041409  }
  0x5f   : > { %815 = vmatpush.bf16.msra.mxu0 %v8934_v5 }
  0x63   : > { %816 = vmatpush.bf16.msra.mxu0 %v8933_v6  ;;  %v9135_v6 = vunpack.c.l.bf16 %v9367_v3  ;;  %s7832_s9 = scalar_lea.hbm %s17479_s15, %s8925_s17  ;;  %s10093_s29 = scalar_lea.hbm %s17479_s15, 56 }
  0x64   : > { %s7836_s11 = sshll.u32 %s7832_s9, 4  ;;  %s7837_s11 = int_to_ptr.hbm [resolvable:$true] %s7836_s11 }
  0x67   : > { %817 = vmatpush.bf16.msra.mxu0 %v8932_v7 }
  0x6b   : > { %818 = vmatpush.bf16.msra.mxu0 %v8931_v8 }
  0x6f   : > { %819 = vmatpush.bf16.msra.mxu0 %v8930_v9  ;;  %v9132_v9 = vunpack.c.h.bf16 %v9366_v4 }
  0x73   : > { %820 = vmatpush.bf16.msra.mxu0 %v8929_v10  ;;  %v9131_v10 = vunpack.c.l.bf16 %v9366_v4 }
  0x76   : > { %821 = vmatmul.bf16.vlgmr.msra.gmra.mxu0 %v10464_v12 }
  0xf3   : > { %v822_v15 = vpop.f32.mrf.mxu0 }
  0xf4   : > { %v10470_v18 = vadd.f32 %v9578_v13, %v822_v15 }
  0xf6   : > { %v10473_v22 = vperm.slane %v10470_v18, 0  ;;  %v1083_v11 = vrot.slane %v10470_v18, 1 }
  0xf8   : > { %v1110_v23 = vadd.f32 %v9115_v19, %v10473_v22  ;;  %v1108_v26 = vadd.f32 %v9111_v20, %v10473_v22  ;;  %v1106_v27 = vadd.f32 %v9107_v21, %v10473_v22  ;;  %v1111_v35 = vadd.f32 %v9116_v25, %v10473_v22  ;;  %v9368_v20 = vld [vmem:[#allocation8 + $0x40] sm:$0xff]  }
  0xf9   : > { %v1109_v38 = vadd.f32 %v9112_v28, %v10473_v22  ;;  %v1107_v39 = vadd.f32 %v9108_v29, %v10473_v22  ;;  %v1114_v49 = vadd.f32 %v9123_v43, %v10473_v22  ;;  %v1113_v52 = vadd.f32 %v9120_v46, %v10473_v22 }
  0xfa   : > { %v1238_v31 = vmax.f32 %v1110_v23, 0.0  ;;  %v1236_v32 = vmax.f32 %v1108_v26, 0.0  ;;  %v1234_v33 = vmax.f32 %v1106_v27, 0.0  ;;  %v1239_v42 = vmax.f32 %v1111_v35, 0.0 }
  0xfb   : > { %v824_v30 = vpop.f32.mrf.mxu0  ;;  %v1237_v44 = vmax.f32 %v1109_v38, 0.0  ;;  %v1235_v45 = vmax.f32 %v1107_v39, 0.0  ;;  %v1112_v53 = vadd.f32 %v9119_v47, %v10473_v22  ;;  %v1242_v55 = vmax.f32 %v1114_v49, 0.0  ;;  %v9371_v49 = vld [vmem:[#allocation8 + $0x58] sm:$0xff]  }
  0xfc   : > { %v1370_v34 = vmul.f32 %v10479_v24, %v1238_v31  ;;  %v1368_v36 = vmul.f32 %v10479_v24, %v1236_v32  ;;  %v1366_v37 = vmul.f32 %v10479_v24, %v1234_v33  ;;  %v1371_v48 = vmul.f32 %v10479_v24, %v1239_v42 }
  0xfd   : > { %v1369_v50 = vmul.f32 %v10479_v24, %v1237_v44  ;;  %v1367_v51 = vmul.f32 %v10479_v24, %v1235_v45  ;;  %v1241_v57 = vmax.f32 %v1113_v52, 0.0  ;;  %v1240_v58 = vmax.f32 %v1112_v53, 0.0 }
  0xfe   : > { %1502 = vadd.xlane.f32.xlu2 %v1370_v34  ;;  %1498 = vadd.xlane.f32.xlu1 %v1368_v36  ;;  %v1374_v61 = vmul.f32 %v10479_v24, %v1242_v55  ;;  %v1117_v62 = vadd.f32 %v9128_v56, %v10473_v22  ;;  %v1116_v1 = vadd.f32 %v9127_v59, %v10473_v22  ;;  %v10508_v21 = vperm.slane %v1083_v11, 0  ;;  %v9370_v36 = vld [vmem:[#allocation8 + $0x50] sm:$0xff]  }
  0xff   : > { %1494 = vadd.xlane.f32.xlu0 %v1366_v37  ;;  %v1373_v63 = vmul.f32 %v10479_v24, %v1241_v57  ;;  %v1372_v0 = vmul.f32 %v10479_v24, %v1240_v58  ;;  %v1115_v2 = vadd.f32 %v9124_v60, %v10473_v22  ;;  %v1120_v14 = vadd.f32 %v9135_v6, %v10473_v22  ;;  %v9369_v37 = vld [vmem:[#allocation8 + $0x48] sm:$0xff]  }
 0x100   : > { %v1245_v5 = vmax.f32 %v1117_v62, 0.0  ;;  %v1244_v7 = vmax.f32 %v1116_v1, 0.0  ;;  %v1119_v17 = vadd.f32 %v9132_v9, %v10473_v22  ;;  %v1118_v19 = vadd.f32 %v9131_v10, %v10473_v22  ;;  %v9373_v62 = vld [vmem:[#allocation8 + $0x68] sm:$0xff]  }
 0x101   : > { %v1243_v8 = vmax.f32 %v1115_v2, 0.0  ;;  %v1248_v23 = vmax.f32 %v1120_v14, 0.0  ;;  %v9140_v25 = vunpack.c.h.bf16 %v9368_v20  ;;  %v9136_v28 = vunpack.c.h.bf16 %v9367_v3 }
 0x102   : > { %v1377_v13 = vmul.f32 %v10479_v24, %v1245_v5  ;;  %v1376_v15 = vmul.f32 %v10479_v24, %v1244_v7  ;;  %v1247_v26 = vmax.f32 %v1119_v17, 0.0  ;;  %v1246_v27 = vmax.f32 %v1118_v19, 0.0 }
 0x103   : > { %v1375_v16 = vmul.f32 %v10479_v24, %v1243_v8  ;;  %v9139_v29 = vunpack.c.l.bf16 %v9368_v20  ;;  %v1380_v30 = vmul.f32 %v10479_v24, %v1248_v23  ;;  %v1123_v31 = vadd.f32 %v9140_v25, %v10508_v21 }
 0x104   : > { %v1379_v32 = vmul.f32 %v10479_v24, %v1247_v26  ;;  %v1378_v33 = vmul.f32 %v10479_v24, %v1246_v27  ;;  %v1121_v34 = vadd.f32 %v9136_v28, %v10473_v22  ;;  %v9147_v39 = vunpack.c.l.bf16 %v9370_v36 }
 0x105   : > { %v1122_v35 = vadd.f32 %v9139_v29, %v10508_v21  ;;  %v1251_v38 = vmax.f32 %v1123_v31, 0.0  ;;  %v9143_v42 = vunpack.c.l.bf16 %v9369_v37  ;;  %v9144_v43 = vunpack.c.h.bf16 %v9369_v37  ;;  %v9376_v31 = vld [vmem:[#allocation8 + $0x80] sm:$0xff]  }
 0x106   : > { %1504 = vadd.xlane.f32.xlu2 %v1371_v48  ;;  %1500 = vadd.xlane.f32.xlu1 %v1369_v50  ;;  %v1249_v40 = vmax.f32 %v1121_v34, 0.0  ;;  %v1126_v45 = vadd.f32 %v9147_v39, %v10508_v21  ;;  %v9148_v54 = vunpack.c.h.bf16 %v9370_v36  ;;  %v9151_v55 = vunpack.c.l.bf16 %v9371_v49 }
 0x107   : > { %1496 = vadd.xlane.f32.xlu0 %v1367_v51  ;;  %v1250_v41 = vmax.f32 %v1122_v35, 0.0  ;;  %v1383_v44 = vmul.f32 %v10479_v24, %v1251_v38  ;;  %v1124_v47 = vadd.f32 %v9143_v42, %v10508_v21  ;;  %v1125_v48 = vadd.f32 %v9144_v43, %v10508_v21 }
 0x108   : > { %v1381_v46 = vmul.f32 %v10479_v24, %v1249_v40  ;;  %v1254_v50 = vmax.f32 %v1126_v45, 0.0  ;;  %v9152_v51 = vunpack.c.h.bf16 %v9371_v49  ;;  %v1127_v60 = vadd.f32 %v9148_v54, %v10508_v21 }
 0x109   : > { %v1382_v22 = vmul.f32 %v10479_v24, %v1250_v41  ;;  %v1252_v52 = vmax.f32 %v1124_v47, 0.0  ;;  %v1253_v53 = vmax.f32 %v1125_v48, 0.0  ;;  %v9159_v1 = vunpack.c.l.bf16 %v9373_v62 }
 0x10a   : > { %v1386_v56 = vmul.f32 %v10479_v24, %v1254_v50  ;;  %v1129_v57 = vadd.f32 %v9152_v51, %v10508_v21  ;;  %v1255_v2 = vmax.f32 %v1127_v60, 0.0  ;;  %v9160_v19 = vunpack.c.h.bf16 %v9373_v62 }
 0x10b   : > { %v1384_v58 = vmul.f32 %v10479_v24, %v1252_v52  ;;  %v1385_v59 = vmul.f32 %v10479_v24, %v1253_v53  ;;  %v1132_v7 = vadd.f32 %v9159_v1, %v10508_v21  ;;  %v1084_v23 = vrot.slane %v10470_v18, 2 }
 0x10c   : > { %v1387_v8 = vmul.f32 %v10479_v24, %v1255_v2  ;;  %v1133_v29 = vadd.f32 %v9160_v19, %v10508_v21  ;;  %v9171_v35 = vunpack.c.l.bf16 %v9376_v31  ;;  %v9172_v50 = vunpack.c.h.bf16 %v9376_v31 }
 0x10d   : > { %v1260_v14 = vmax.f32 %v1132_v7, 0.0  ;;  %v9380_v7 = vld [vmem:[#allocation8 + $0xa0] sm:$0xff]  }
 0x10e   : > { %1510 = vadd.xlane.f32.xlu2 %v1374_v61  ;;  %1508 = vadd.xlane.f32.xlu1 %v1373_v63  ;;  %v1128_v61 = vadd.f32 %v9151_v55, %v10508_v21  ;;  %v9372_v63 = vld [vmem:[#allocation8 + $0x60] sm:$0xff]   ;;  %v1261_v36 = vmax.f32 %v1133_v29, 0.0 }
 0x10f   : > { %1506 = vadd.xlane.f32.xlu0 %v1372_v0  ;;  %v1257_v0 = vmax.f32 %v1129_v57, 0.0  ;;  %v9155_v4 = vunpack.c.l.bf16 %v9372_v63  ;;  %v9156_v5 = vunpack.c.h.bf16 %v9372_v63  ;;  %v1392_v25 = vmul.f32 %v10479_v24, %v1260_v14  ;;  %v9379_v57 = vld [vmem:[#allocation8 + $0x98] sm:$0xff]  }
 0x110   : > { %v1256_v3 = vmax.f32 %v1128_v61, 0.0  ;;  %v1393_v42 = vmul.f32 %v10479_v24, %v1261_v36  ;;  %v9183_v60 = vunpack.c.l.bf16 %v9379_v57  ;;  %v9187_v14 = vunpack.c.l.bf16 %v9380_v7 }
 0x111   : > { %v1389_v6 = vmul.f32 %v10479_v24, %v1257_v0  ;;  %v1130_v10 = vadd.f32 %v9155_v4, %v10508_v21  ;;  %v1131_v11 = vadd.f32 %v9156_v5, %v10508_v21 }
 0x112   : > { %v1388_v9 = vmul.f32 %v10479_v24, %v1256_v3 }
 0x113   : > { %v1259_v17 = vmax.f32 %v1131_v11, 0.0 }
 0x115   : > { %v1391_v28 = vmul.f32 %v10479_v24, %v1259_v17 }
 0x116   : > { %1516 = vadd.xlane.f32.xlu2 %v1377_v13  ;;  %1514 = vadd.xlane.f32.xlu1 %v1376_v15  ;;  %v9374_v13 = vld [vmem:[#allocation8 + $0x70] sm:$0xff]  }
 0x117   : > { %1512 = vadd.xlane.f32.xlu0 %v1375_v16  ;;  %v9164_v15 = vunpack.c.h.bf16 %v9374_v13  ;;  %v1258_v16 = vmax.f32 %v1130_v10, 0.0  ;;  %v9163_v20 = vunpack.c.l.bf16 %v9374_v13  ;;  %v9184_v13 = vunpack.c.h.bf16 %v9379_v57 }
 0x119   : > { %v1135_v26 = vadd.f32 %v9164_v15, %v10508_v21  ;;  %v1390_v27 = vmul.f32 %v10479_v24, %v1258_v16 }
 0x11b   : > { %v1263_v34 = vmax.f32 %v1135_v26, 0.0  ;;  %v9381_v26 = vld [vmem:[#allocation8 + $0xa8] sm:$0xff]  }
 0x11c   : > { %v9191_v31 = vunpack.c.l.bf16 %v9381_v26 }
 0x11d   : > { %v1395_v40 = vmul.f32 %v10479_v24, %v1263_v34 }
 0x11e   : > { %1522 = vadd.xlane.f32.xlu2 %v1380_v30  ;;  %1520 = vadd.xlane.f32.xlu1 %v1379_v32  ;;  %v1134_v30 = vadd.f32 %v9163_v20, %v10508_v21  ;;  %v9375_v32 = vld [vmem:[#allocation8 + $0x78] sm:$0xff]  }
 0x11f   : > { %1518 = vadd.xlane.f32.xlu0 %v1378_v33  ;;  %v10541_v33 = vperm.slane %v1084_v23, 0  ;;  %v9167_v38 = vunpack.c.l.bf16 %v9375_v32  ;;  %v9168_v39 = vunpack.c.h.bf16 %v9375_v32  ;;  %v9192_v32 = vunpack.c.h.bf16 %v9381_v26  ;;  %v9388_v26 = vld [vmem:[#allocation8 + $0xe0] sm:$0xff]  }
 0x120   : > { %v1262_v37 = vmax.f32 %v1134_v30, 0.0 }
 0x121   : > { %v1138_v41 = vadd.f32 %v9171_v35, %v10541_v33  ;;  %v1137_v45 = vadd.f32 %v9168_v39, %v10508_v21  ;;  %v1144_v2 = vadd.f32 %v9183_v60, %v10541_v33  ;;  %v1145_v20 = vadd.f32 %v9184_v13, %v10541_v33 }
 0x122   : > { %v1394_v43 = vmul.f32 %v10479_v24, %v1262_v37  ;;  %v1146_v23 = vadd.f32 %v9187_v14, %v10541_v33  ;;  %v1149_v39 = vadd.f32 %v9192_v32, %v10541_v33 }
 0x123   : > { %v1265_v49 = vmax.f32 %v1137_v45, 0.0  ;;  %v1273_v29 = vmax.f32 %v1145_v20, 0.0 }
 0x124   : > { %v1274_v30 = vmax.f32 %v1146_v23, 0.0 }
 0x125   : > { %v1397_v55 = vmul.f32 %v10479_v24, %v1265_v49  ;;  %v1405_v36 = vmul.f32 %v10479_v24, %v1273_v29  ;;  %v9219_v29 = vunpack.c.l.bf16 %v9388_v26 }
 0x126   : > { %1528 = vadd.xlane.f32.xlu2 %v1383_v44  ;;  %1526 = vadd.xlane.f32.xlu1 %v1382_v22  ;;  %v1136_v44 = vadd.f32 %v9167_v38, %v10508_v21  ;;  %v1266_v22 = vmax.f32 %v1138_v41, 0.0  ;;  %v1139_v21 = vadd.f32 %v9172_v50, %v10541_v33  ;;  %v1406_v37 = vmul.f32 %v10479_v24, %v1274_v30 }
 0x127   : > { %1524 = vadd.xlane.f32.xlu0 %v1381_v46  ;;  %v9377_v46 = vld [vmem:[#allocation8 + $0x88] sm:$0xff]   ;;  %v1148_v38 = vadd.f32 %v9191_v31, %v10541_v33 }
 0x128   : > { %v9176_v47 = vunpack.c.h.bf16 %v9377_v46  ;;  %v1264_v48 = vmax.f32 %v1136_v44, 0.0  ;;  %v9175_v51 = vunpack.c.l.bf16 %v9377_v46  ;;  %v1398_v52 = vmul.f32 %v10479_v24, %v1266_v22 }
 0x129   : > { %v1267_v61 = vmax.f32 %v1139_v21, 0.0  ;;  %v1277_v44 = vmax.f32 %v1149_v39, 0.0  ;;  %v1085_v22 = vrot.slane %v10470_v18, 3 }
 0x12a   : > { %v1141_v53 = vadd.f32 %v9176_v47, %v10541_v33  ;;  %v1396_v54 = vmul.f32 %v10479_v24, %v1264_v48 }
 0x12b   : > { %v1399_v3 = vmul.f32 %v10479_v24, %v1267_v61  ;;  %v1409_v50 = vmul.f32 %v10479_v24, %v1277_v44  ;;  %v9389_v44 = vld [vmem:[#allocation8 + $0xe8] sm:$0xff]  }
 0x12e   : > { %1534 = vadd.xlane.f32.xlu2 %v1386_v56  ;;  %1532 = vadd.xlane.f32.xlu1 %v1385_v59  ;;  %v1140_v56 = vadd.f32 %v9175_v51, %v10541_v33  ;;  %v1269_v59 = vmax.f32 %v1141_v53, 0.0  ;;  %v9385_v53 = vld [vmem:[#allocation8 + $0xc8] sm:$0xff]  }
 0x12f   : > { %1530 = vadd.xlane.f32.xlu0 %v1384_v58  ;;  %v9378_v58 = vld [vmem:[#allocation8 + $0x90] sm:$0xff]  }
 0x130   : > { %v1268_v62 = vmax.f32 %v1140_v56, 0.0  ;;  %v9179_v63 = vunpack.c.l.bf16 %v9378_v58  ;;  %v9180_v0 = vunpack.c.h.bf16 %v9378_v58  ;;  %v1401_v1 = vmul.f32 %v10479_v24, %v1269_v59 }
 0x131   : > { %v9207_v56 = vunpack.c.l.bf16 %v9385_v53 }
 0x132   : > { %v1400_v4 = vmul.f32 %v10479_v24, %v1268_v62  ;;  %v1142_v5 = vadd.f32 %v9179_v63, %v10541_v33 }
 0x134   : > { %v1270_v10 = vmax.f32 %v1142_v5, 0.0  ;;  %v9386_v5 = vld [vmem:[#allocation8 + $0xd0] sm:$0xff]  }
 0x135   : > { %v9211_v13 = vunpack.c.l.bf16 %v9386_v5 }
 0x136   : > { %1540 = vadd.xlane.f32.xlu2 %v1389_v6  ;;  %1538 = vadd.xlane.f32.xlu1 %v1388_v9  ;;  %v1143_v6 = vadd.f32 %v9180_v0, %v10541_v33  ;;  %v9188_v9 = vunpack.c.h.bf16 %v9380_v7  ;;  %v1402_v17 = vmul.f32 %v10479_v24, %v1270_v10  ;;  %v9212_v7 = vunpack.c.h.bf16 %v9386_v5 }
 0x137   : > { %1536 = vadd.xlane.f32.xlu0 %v1387_v8  ;;  %v1272_v8 = vmax.f32 %v1144_v2, 0.0 }
 0x138   : > { %v1271_v11 = vmax.f32 %v1143_v6, 0.0  ;;  %v1147_v16 = vadd.f32 %v9188_v9, %v10541_v33 }
 0x139   : > { %v1404_v15 = vmul.f32 %v10479_v24, %v1272_v8 }
 0x13a   : > { %v1403_v19 = vmul.f32 %v10479_v24, %v1271_v11  ;;  %v9208_v11 = vunpack.c.h.bf16 %v9385_v53 }
 0x13e   : > { %1546 = vadd.xlane.f32.xlu2 %v1392_v25  ;;  %1544 = vadd.xlane.f32.xlu1 %v1391_v28  ;;  %v9382_v25 = vld [vmem:[#allocation8 + $0xb0] sm:$0xff]  }
 0x13f   : > { %1542 = vadd.xlane.f32.xlu0 %v1390_v27  ;;  %v1275_v27 = vmax.f32 %v1147_v16, 0.0  ;;  %v9195_v28 = vunpack.c.l.bf16 %v9382_v25  ;;  %v9196_v45 = vunpack.c.h.bf16 %v9382_v25 }
 0x141   : > { %v1407_v34 = vmul.f32 %v10479_v24, %v1275_v27  ;;  %v1150_v35 = vadd.f32 %v9195_v28, %v10541_v33  ;;  %v1151_v51 = vadd.f32 %v9196_v45, %v10541_v33  ;;  %v9387_v27 = vld [vmem:[#allocation8 + $0xd8] sm:$0xff]  }
 0x143   : > { %v1278_v41 = vmax.f32 %v1150_v35, 0.0  ;;  %v1279_v58 = vmax.f32 %v1151_v51, 0.0  ;;  %v9216_v35 = vunpack.c.h.bf16 %v9387_v27 }
 0x145   : > { %v1410_v47 = vmul.f32 %v10479_v24, %v1278_v41 }
 0x146   : > { %1552 = vadd.xlane.f32.xlu2 %v1395_v40  ;;  %1550 = vadd.xlane.f32.xlu1 %v1394_v43  ;;  %v9383_v40 = vld [vmem:[#allocation8 + $0xb8] sm:$0xff]   ;;  %v1276_v43 = vmax.f32 %v1148_v38, 0.0 }
 0x147   : > { %1548 = vadd.xlane.f32.xlu0 %v1393_v42  ;;  %v9200_v42 = vunpack.c.h.bf16 %v9383_v40  ;;  %v9199_v46 = vunpack.c.l.bf16 %v9383_v40 }
 0x148   : > { %v1408_v49 = vmul.f32 %v10479_v24, %v1276_v43 }
 0x149   : > { %v1153_v48 = vadd.f32 %v9200_v42, %v10541_v33 }
 0x14b   : > { %v1281_v21 = vmax.f32 %v1153_v48, 0.0 }
 0x14e   : > { %1558 = vadd.xlane.f32.xlu2 %v1398_v52  ;;  %1556 = vadd.xlane.f32.xlu1 %v1397_v55  ;;  %v1152_v52 = vadd.f32 %v9199_v46, %v10541_v33  ;;  %v10580_v55 = vperm.slane %v1085_v22, 0  ;;  %v1413_v33 = vmul.f32 %v10479_v24, %v1281_v21  ;;  %v9224_v46 = vunpack.c.h.bf16 %v9389_v44 }
 0x14f   : > { %1554 = vadd.xlane.f32.xlu0 %v1396_v54  ;;  %v9384_v54 = vld [vmem:[#allocation8 + $0xc0] sm:$0xff]  }
 0x150   : > { %v1280_v59 = vmax.f32 %v1152_v52, 0.0  ;;  %v9203_v60 = vunpack.c.l.bf16 %v9384_v54  ;;  %v9204_v61 = vunpack.c.h.bf16 %v9384_v54  ;;  %v1156_v0 = vadd.f32 %v9207_v56, %v10580_v55 }
 0x151   : > { %v1157_v23 = vadd.f32 %v9208_v11, %v10580_v55  ;;  %v1158_v25 = vadd.f32 %v9211_v13, %v10580_v55  ;;  %v1162_v39 = vadd.f32 %v9219_v29, %v10580_v55  ;;  %v1161_v43 = vadd.f32 %v9216_v35, %v10580_v55 }
 0x152   : > { %v1412_v2 = vmul.f32 %v10479_v24, %v1280_v59  ;;  %v1284_v6 = vmax.f32 %v1156_v0, 0.0  ;;  %v1165_v54 = vadd.f32 %v9224_v46, %v10580_v55 }
 0x153   : > { %v1285_v31 = vmax.f32 %v1157_v23, 0.0  ;;  %v1286_v32 = vmax.f32 %v1158_v25, 0.0  ;;  %v1290_v45 = vmax.f32 %v1162_v39, 0.0  ;;  %v1289_v48 = vmax.f32 %v1161_v43, 0.0 }
 0x154   : > { %v1416_v16 = vmul.f32 %v10479_v24, %v1284_v6 }
 0x155   : > { %v1417_v40 = vmul.f32 %v10479_v24, %v1285_v31  ;;  %v1418_v41 = vmul.f32 %v10479_v24, %v1286_v32  ;;  %v1422_v53 = vmul.f32 %v10479_v24, %v1290_v45  ;;  %v1421_v56 = vmul.f32 %v10479_v24, %v1289_v48  ;;  %v9393_v45 = vld [vmem:[#allocation8 + $0x108] sm:$0xff]  }
 0x156   : > { %1564 = vadd.xlane.f32.xlu2 %v1401_v1  ;;  %1562 = vadd.xlane.f32.xlu1 %v1400_v4  ;;  %v1411_v1 = vmul.f32 %v10479_v24, %v1279_v58  ;;  %v1155_v4 = vadd.f32 %v9204_v61, %v10580_v55  ;;  %v9390_v61 = vld [vmem:[#allocation8 + $0xf0] sm:$0xff]  }
 0x157   : > { %1560 = vadd.xlane.f32.xlu0 %v1399_v3  ;;  %v1154_v3 = vadd.f32 %v9203_v60, %v10580_v55  ;;  %v9391_v60 = vld [vmem:[#allocation8 + $0xf8] sm:$0xff]   ;;  %v9228_v5 = vunpack.c.h.bf16 %v9390_v61 }
 0x158   : > { %v1283_v10 = vmax.f32 %v1155_v4, 0.0  ;;  %v9231_v0 = vunpack.c.l.bf16 %v9391_v60  ;;  %v9227_v4 = vunpack.c.l.bf16 %v9390_v61  ;;  %v9232_v31 = vunpack.c.h.bf16 %v9391_v60 }
 0x159   : > { %v1282_v9 = vmax.f32 %v1154_v3, 0.0 }
 0x15a   : > { %v1415_v20 = vmul.f32 %v10479_v24, %v1283_v10  ;;  %v1168_v11 = vadd.f32 %v9231_v0, %v10580_v55  ;;  %v9395_v0 = vld [vmem:[#allocation8 + $0x118] sm:$0xff]  }
 0x15c   : > { %v1296_v25 = vmax.f32 %v1168_v11, 0.0  ;;  %v9247_v11 = vunpack.c.l.bf16 %v9395_v0 }
 0x15e   : > { %1570 = vadd.xlane.f32.xlu2 %v1404_v15  ;;  %1568 = vadd.xlane.f32.xlu1 %v1403_v19  ;;  %v1414_v19 = vmul.f32 %v10479_v24, %v1282_v9  ;;  %v1086_v9 = vrot.slane %v10470_v18, 4 }
 0x15f   : > { %1566 = vadd.xlane.f32.xlu0 %v1402_v17  ;;  %v1159_v17 = vadd.f32 %v9212_v7, %v10580_v55 }
 0x160   : > { %v10643_v23 = vperm.slane %v1086_v9, 0 }
 0x161   : > { %v1287_v28 = vmax.f32 %v1159_v17, 0.0  ;;  %v1166_v17 = vadd.f32 %v9227_v4, %v10580_v55 }
 0x163   : > { %v1419_v38 = vmul.f32 %v10479_v24, %v1287_v28  ;;  %v1294_v28 = vmax.f32 %v1166_v17, 0.0 }
 0x166   : > { %1576 = vadd.xlane.f32.xlu2 %v1407_v34  ;;  %1574 = vadd.xlane.f32.xlu1 %v1406_v37  ;;  %v9215_v34 = vunpack.c.l.bf16 %v9387_v27 }
 0x167   : > { %1572 = vadd.xlane.f32.xlu0 %v1405_v36 }
 0x168   : > { %v1160_v42 = vadd.f32 %v9215_v34, %v10580_v55 }
 0x16e   : > { %1582 = vadd.xlane.f32.xlu2 %v1410_v47  ;;  %1580 = vadd.xlane.f32.xlu1 %v1409_v50  ;;  %v1288_v47 = vmax.f32 %v1160_v42, 0.0  ;;  %v9223_v50 = vunpack.c.l.bf16 %v9389_v44  ;;  %v1169_v42 = vadd.f32 %v9232_v31, %v10580_v55  ;;  %v9394_v44 = vld [vmem:[#allocation8 + $0x110] sm:$0xff]   ;;  %v9396_v31 = vld [vmem:[#allocation8 + $0x120] sm:$0xff]  }
 0x16f   : > { %1578 = vadd.xlane.f32.xlu0 %v1408_v49  ;;  %v9220_v49 = vunpack.c.h.bf16 %v9388_v26 }
 0x170   : > { %v1420_v21 = vmul.f32 %v10479_v24, %v1288_v47  ;;  %v1164_v59 = vadd.f32 %v9223_v50, %v10580_v55  ;;  %v9243_v47 = vunpack.c.l.bf16 %v9394_v44 }
 0x171   : > { %v10582_v57 = vpop.xlane.xlu2 %1502  ;;  %v10584_v62 = vpop.xlane.xlu1 %1498  ;;  %v1163_v58 = vadd.f32 %v9220_v49, %v10580_v55  ;;  %v1297_v49 = vmax.f32 %v1169_v42, 0.0  ;;  %v9251_v42 = vunpack.c.l.bf16 %v9396_v31 }
 0x172   : > { %v10586_v63 = vpop.xlane.xlu0 %1494  ;;  %v1292_v3 = vmax.f32 %v1164_v59, 0.0 }
 0x173   : > { %v1429_v59 = vmul.f32 %v10479_v24, %v1297_v49 }
 0x176   : > { %1588 = vadd.xlane.f32.xlu2 %v1413_v33  ;;  %1586 = vadd.xlane.f32.xlu1 %v1412_v2  ;;  %v1293_v33 = vmax.f32 %v1165_v54, 0.0  ;;  %v1291_v2 = vmax.f32 %v1163_v58, 0.0  ;;  %v9240_v54 = vunpack.c.h.bf16 %v9393_v45  ;;  %v1174_v58 = vadd.f32 %v9243_v47, %v10643_v23 }
 0x177   : > { %1584 = vadd.xlane.f32.xlu0 %v1411_v1 }
 0x178   : > { %v1425_v10 = vmul.f32 %v10479_v24, %v1293_v33  ;;  %v1423_v13 = vmul.f32 %v10479_v24, %v1291_v2  ;;  %v1173_v33 = vadd.f32 %v9240_v54, %v10643_v23  ;;  %v1302_v2 = vmax.f32 %v1174_v58, 0.0 }
 0x179   : > { %v10594_v8 = vpop.xlane.xlu2 %1504  ;;  %v10596_v14 = vpop.xlane.xlu1 %1500 }
 0x17a   : > { %v10598_v15 = vpop.xlane.xlu0 %1496  ;;  %v1301_v9 = vmax.f32 %v1173_v33, 0.0  ;;  %v1434_v17 = vmul.f32 %v10479_v24, %v1302_v2 }
 0x17e   : > { %1594 = vadd.xlane.f32.xlu2 %v1416_v16  ;;  %1592 = vadd.xlane.f32.xlu1 %v1415_v20  ;;  %v1424_v16 = vmul.f32 %v10479_v24, %v1292_v3  ;;  %v9392_v20 = vld [vmem:[#allocation8 + $0x100] sm:$0xff]   ;;  %v9248_v3 = vunpack.c.h.bf16 %v9395_v0 }
 0x17f   : > { %1590 = vadd.xlane.f32.xlu0 %v1414_v19  ;;  %v1167_v19 = vadd.f32 %v9228_v5, %v10580_v55  ;;  %v9236_v26 = vunpack.c.h.bf16 %v9392_v20  ;;  %v9235_v32 = vunpack.c.l.bf16 %v9392_v20 }
 0x181   : > { %v10606_v30 = vpop.xlane.xlu2 %1510  ;;  %v10608_v36 = vpop.xlane.xlu1 %1508  ;;  %v1295_v29 = vmax.f32 %v1167_v19, 0.0  ;;  %v1171_v39 = vadd.f32 %v9236_v26, %v10643_v23  ;;  %v1170_v43 = vadd.f32 %v9235_v32, %v10643_v23  ;;  %v1177_v19 = vadd.f32 %v9248_v3, %v10643_v23 }
 0x182   : > { %v10610_v37 = vpop.xlane.xlu0 %1506 }
 0x183   : > { %v1299_v46 = vmax.f32 %v1171_v39, 0.0  ;;  %v1298_v50 = vmax.f32 %v1170_v43, 0.0  ;;  %v1305_v32 = vmax.f32 %v1177_v19, 0.0  ;;  %v9252_v43 = vunpack.c.h.bf16 %v9396_v31 }
 0x185   : > { %v1431_v55 = vmul.f32 %v10479_v24, %v1299_v46  ;;  %v1430_v60 = vmul.f32 %v10479_v24, %v1298_v50  ;;  %v1437_v46 = vmul.f32 %v10479_v24, %v1305_v32  ;;  %v1179_v54 = vadd.f32 %v9252_v43, %v10643_v23 }
 0x186   : > { %1600 = vadd.xlane.f32.xlu2 %v1419_v38  ;;  %1598 = vadd.xlane.f32.xlu1 %v1418_v41  ;;  %v1428_v38 = vmul.f32 %v10479_v24, %v1296_v25  ;;  %v1427_v41 = vmul.f32 %v10479_v24, %v1295_v29  ;;  %v1433_v25 = vmul.f32 %v10479_v24, %v1301_v9  ;;  %v9397_v29 = vld [vmem:[#allocation8 + $0x128] sm:$0xff]   ;;  %v1087_v9 = vrot.slane %v10470_v18, 5 }
 0x187   : > { %1596 = vadd.xlane.f32.xlu0 %v1417_v40  ;;  %v1426_v40 = vmul.f32 %v10479_v24, %v1294_v28  ;;  %v1176_v28 = vadd.f32 %v9247_v11, %v10643_v23  ;;  %v1307_v33 = vmax.f32 %v1179_v54, 0.0  ;;  %v9256_v0 = vunpack.c.h.bf16 %v9397_v29 }
 0x189   : > { %v10618_v22 = vpop.xlane.xlu2 %1516  ;;  %v10620_v51 = vpop.xlane.xlu1 %1514  ;;  %v1439_v19 = vmul.f32 %v10479_v24, %v1307_v33 }
 0x18a   : > { %v10622_v52 = vpop.xlane.xlu0 %1512 }
 0x18e   : > { %1606 = vadd.xlane.f32.xlu2 %v1422_v53  ;;  %1604 = vadd.xlane.f32.xlu1 %v1421_v56  ;;  %v9239_v53 = vunpack.c.l.bf16 %v9393_v45 }
 0x18f   : > { %1602 = vadd.xlane.f32.xlu0 %v1420_v21 }
 0x190   : > { %v1172_v61 = vadd.f32 %v9239_v53, %v10643_v23  ;;  %v1178_v53 = vadd.f32 %v9251_v42, %v10643_v23 }
 0x191   : > { %v10630_v1 = vpop.xlane.xlu2 %1522  ;;  %v10632_v6 = vpop.xlane.xlu1 %1520 }
 0x192   : > { %v10634_v7 = vpop.xlane.xlu0 %1518  ;;  %v1300_v5 = vmax.f32 %v1172_v61, 0.0  ;;  %v1306_v61 = vmax.f32 %v1178_v53, 0.0 }
 0x194   : > { %v1432_v20 = vmul.f32 %v10479_v24, %v1300_v5 }
 0x196   : > { %1612 = vadd.xlane.f32.xlu2 %v1425_v10  ;;  %1610 = vadd.xlane.f32.xlu1 %v1424_v16  ;;  %v9244_v10 = vunpack.c.h.bf16 %v9394_v44 }
 0x197   : > { %1608 = vadd.xlane.f32.xlu0 %v1423_v13 }
 0x198   : > { %v1175_v26 = vadd.f32 %v9244_v10, %v10643_v23 }
 0x199   : > { %v10645_v27 = vpop.xlane.xlu2 %1528  ;;  %v10649_v35 = vpop.xlane.xlu1 %1526 }
 0x19a   : > { %v10647_v34 = vpop.xlane.xlu0 %1524 }
 0x19e   : > { %1618 = vadd.xlane.f32.xlu2 %v1428_v38  ;;  %1616 = vadd.xlane.f32.xlu1 %v1427_v41  ;;  %v9255_v38 = vunpack.c.l.bf16 %v9397_v29  ;;  %v1304_v41 = vmax.f32 %v1176_v28, 0.0  ;;  %v9399_v28 = vld [vmem:[#allocation8 + $0x138] sm:$0xff]   ;;  %v10706_v29 = vperm.slane %v1087_v9, 0 }
 0x19f   : > { %1614 = vadd.xlane.f32.xlu0 %v1426_v40  ;;  %v1303_v40 = vmax.f32 %v1175_v26, 0.0  ;;  %v9400_v26 = vld [vmem:[#allocation8 + $0x140] sm:$0xff]   ;;  %v9263_v42 = vunpack.c.l.bf16 %v9399_v28  ;;  %v9264_v43 = vunpack.c.h.bf16 %v9399_v28 }
 0x1a0   : > { %v1180_v47 = vadd.f32 %v9255_v38, %v10643_v23  ;;  %v1436_v50 = vmul.f32 %v10479_v24, %v1304_v41  ;;  %v9267_v32 = vunpack.c.l.bf16 %v9400_v26 }
 0x1a1   : > { %v10657_v48 = vpop.xlane.xlu2 %1534  ;;  %v10661_v56 = vpop.xlane.xlu1 %1532  ;;  %v1435_v49 = vmul.f32 %v10479_v24, %v1303_v40 }
 0x1a2   : > { %v10659_v21 = vpop.xlane.xlu0 %1530  ;;  %v1308_v58 = vmax.f32 %v1180_v47, 0.0 }
 0x1a4   : > { %v1440_v10 = vmul.f32 %v10479_v24, %v1308_v58  ;;  %v1185_v58 = vadd.f32 %v9264_v43, %v10643_v23 }
 0x1a6   : > { %1624 = vadd.xlane.f32.xlu2 %v1431_v55  ;;  %1622 = vadd.xlane.f32.xlu1 %v1430_v60  ;;  %v9398_v55 = vld [vmem:[#allocation8 + $0x130] sm:$0xff]   ;;  %v1313_v9 = vmax.f32 %v1185_v58, 0.0 }
 0x1a7   : > { %1620 = vadd.xlane.f32.xlu0 %v1429_v59  ;;  %v9260_v59 = vunpack.c.h.bf16 %v9398_v55  ;;  %v9259_v2 = vunpack.c.l.bf16 %v9398_v55  ;;  %v1184_v55 = vadd.f32 %v9263_v42, %v10643_v23 }
 0x1a8   : > { %v1445_v28 = vmul.f32 %v10479_v24, %v1313_v9 }
 0x1a9   : > { %v10669_v4 = vpop.xlane.xlu2 %1540  ;;  %v10673_v16 = vpop.xlane.xlu1 %1538  ;;  %v1183_v11 = vadd.f32 %v9260_v59, %v10643_v23  ;;  %v9401_v59 = vld [vmem:[#allocation8 + $0x148] sm:$0xff]  }
 0x1aa   : > { %v10671_v13 = vpop.xlane.xlu0 %1536  ;;  %v9272_v33 = vunpack.c.h.bf16 %v9401_v59 }
 0x1ab   : > { %v1311_v31 = vmax.f32 %v1183_v11, 0.0  ;;  %v9271_v11 = vunpack.c.l.bf16 %v9401_v59 }
 0x1ae   : > { %1630 = vadd.xlane.f32.xlu2 %v1434_v17  ;;  %1628 = vadd.xlane.f32.xlu1 %v1433_v25  ;;  %v1438_v17 = vmul.f32 %v10479_v24, %v1306_v61  ;;  %v1182_v25 = vadd.f32 %v9259_v2, %v10643_v23  ;;  %v1312_v2 = vmax.f32 %v1184_v55, 0.0 }
 0x1af   : > { %1626 = vadd.xlane.f32.xlu0 %v1432_v20  ;;  %v1181_v20 = vadd.f32 %v9256_v0, %v10643_v23  ;;  %v1189_v23 = vadd.f32 %v9272_v33, %v10706_v29 }
 0x1b0   : > { %v1310_v41 = vmax.f32 %v1182_v25, 0.0  ;;  %v1444_v25 = vmul.f32 %v10479_v24, %v1312_v2 }
 0x1b1   : > { %v10681_v39 = vpop.xlane.xlu2 %1546  ;;  %v10685_v45 = vpop.xlane.xlu1 %1544  ;;  %v1309_v40 = vmax.f32 %v1181_v20, 0.0 }
 0x1b2   : > { %v10683_v44 = vpop.xlane.xlu0 %1542  ;;  %v1442_v54 = vmul.f32 %v10479_v24, %v1310_v41  ;;  %v1317_v41 = vmax.f32 %v1189_v23, 0.0 }
 0x1b3   : > { %v1441_v53 = vmul.f32 %v10479_v24, %v1309_v40  ;;  %v9403_v40 = vld [vmem:[#allocation8 + $0x158] sm:$0xff]  }
 0x1b4   : > { %v9279_v42 = vunpack.c.l.bf16 %v9403_v40  ;;  %v1449_v59 = vmul.f32 %v10479_v24, %v1317_v41 }
 0x1b6   : > { %1636 = vadd.xlane.f32.xlu2 %v1437_v46  ;;  %1634 = vadd.xlane.f32.xlu1 %v1436_v50  ;;  %v1186_v50 = vadd.f32 %v9267_v32, %v10706_v29  ;;  %v1188_v32 = vadd.f32 %v9271_v11, %v10706_v29  ;;  %v9404_v11 = vld [vmem:[#allocation8 + $0x160] sm:$0xff]  }
 0x1b7   : > { %1632 = vadd.xlane.f32.xlu0 %v1435_v49  ;;  %v1443_v49 = vmul.f32 %v10479_v24, %v1311_v31  ;;  %v9284_v23 = vunpack.c.h.bf16 %v9404_v11 }
 0x1b8   : > { %v1314_v61 = vmax.f32 %v1186_v50, 0.0  ;;  %v1316_v50 = vmax.f32 %v1188_v32, 0.0  ;;  %v9280_v32 = vunpack.c.h.bf16 %v9403_v40 }
 0x1b9   : > { %v10693_v60 = vpop.xlane.xlu2 %1552  ;;  %v10697_v5 = vpop.xlane.xlu1 %1550 }
 0x1ba   : > { %v10695_v3 = vpop.xlane.xlu0 %1548  ;;  %v1446_v20 = vmul.f32 %v10479_v24, %v1314_v61  ;;  %v1192_v61 = vadd.f32 %v9279_v42, %v10706_v29  ;;  %v1448_v2 = vmul.f32 %v10479_v24, %v1316_v50  ;;  %v1195_v50 = vadd.f32 %v9284_v23, %v10706_v29 }
 0x1bb   : > { %v1193_v40 = vadd.f32 %v9280_v32, %v10706_v29 }
 0x1be   : > { %1642 = vadd.xlane.f32.xlu2 %v1440_v10  ;;  %1640 = vadd.xlane.f32.xlu1 %v1439_v19  ;;  %v9268_v10 = vunpack.c.h.bf16 %v9400_v26  ;;  %v9402_v26 = vld [vmem:[#allocation8 + $0x150] sm:$0xff]  }
 0x1bf   : > { %1638 = vadd.xlane.f32.xlu0 %v1438_v17 }
 0x1c0   : > { %v1187_v31 = vadd.f32 %v9268_v10, %v10706_v29 }
 0x1c1   : > { %v10708_v38 = vpop.xlane.xlu2 %1558  ;;  %v10712_v47 = vpop.xlane.xlu1 %1556 }
 0x1c2   : > { %v10710_v46 = vpop.xlane.xlu0 %1554 }
 0x1c6   : > { %1648 = vadd.xlane.f32.xlu2 %v1443_v49  ;;  %1646 = vadd.xlane.f32.xlu1 %v1442_v54  ;;  %v1315_v49 = vmax.f32 %v1187_v31, 0.0  ;;  %v9276_v54 = vunpack.c.h.bf16 %v9402_v26 }
 0x1c7   : > { %1644 = vadd.xlane.f32.xlu0 %v1441_v53  ;;  %v9275_v53 = vunpack.c.l.bf16 %v9402_v26  ;;  %v9283_v26 = vunpack.c.l.bf16 %v9404_v11  ;;  %v1321_v11 = vmax.f32 %v1193_v40, 0.0  ;;  %v9407_v40 = vld [vmem:[#allocation8 + $0x178] sm:$0xff]  }
 0x1c8   : > { %v1447_v33 = vmul.f32 %v10479_v24, %v1315_v49  ;;  %v1191_v10 = vadd.f32 %v9276_v54, %v10706_v29  ;;  %v10753_v24 = vld [vmem:[%s16280_s16] ss:$0 sm:$0xff] }
 0x1c9   : > { %v10720_v0 = vpop.xlane.xlu2 %1564  ;;  %v10724_v19 = vpop.xlane.xlu1 %1562  ;;  %v1190_v9 = vadd.f32 %v9275_v53, %v10706_v29 }
 0x1ca   : > { %v10722_v17 = vpop.xlane.xlu0 %1560  ;;  %v1319_v31 = vmax.f32 %v1191_v10, 0.0 }
 0x1cc   : > { %v1451_v54 = vmul.f32 %v10753_v24, %v1319_v31 }
 0x1ce   : > { %1654 = vadd.xlane.f32.xlu2 %v1446_v20  ;;  %1652 = vadd.xlane.f32.xlu1 %v1445_v28  ;;  %v1320_v20 = vmax.f32 %v1192_v61, 0.0  ;;  %v1318_v28 = vmax.f32 %v1190_v9, 0.0  ;;  %v9406_v61 = vld [vmem:[#allocation8 + $0x170] sm:$0xff]  }
 0x1cf   : > { %1650 = vadd.xlane.f32.xlu0 %v1444_v25  ;;  %v9291_v9 = vunpack.c.l.bf16 %v9406_v61 }
 0x1d0   : > { %v1452_v49 = vmul.f32 %v10753_v24, %v1320_v20  ;;  %v1450_v53 = vmul.f32 %v10753_v24, %v1318_v28 }
 0x1d1   : > { %v10732_v43 = vpop.xlane.xlu2 %1570  ;;  %v10736_v58 = vpop.xlane.xlu1 %1568 }
 0x1d2   : > { %16281 = vst [vmem:[#allocation28_spill] sm:$0xff] %v10732_v43  ;;  %v10734_v55 = vpop.xlane.xlu0 %1566 }
 0x1d6   : > { %1660 = vadd.xlane.f32.xlu2 %v1449_v59  ;;  %1658 = vadd.xlane.f32.xlu1 %v1448_v2  ;;  %v1194_v59 = vadd.f32 %v9283_v26, %v10706_v29  ;;  %v1323_v2 = vmax.f32 %v1195_v50, 0.0  ;;  %v1198_v26 = vadd.f32 %v9291_v9, %v10706_v29  ;;  %v9295_v9 = vunpack.c.l.bf16 %v9407_v40 }
 0x1d7   : > { %1656 = vadd.xlane.f32.xlu0 %v1447_v33  ;;  %v9405_v33 = vld [vmem:[#allocation8 + $0x168] sm:$0xff]  }
 0x1d8   : > { %v1322_v20 = vmax.f32 %v1194_v59, 0.0  ;;  %v9287_v23 = vunpack.c.l.bf16 %v9405_v33  ;;  %v9288_v12 = vunpack.c.h.bf16 %v9405_v33  ;;  %v1455_v32 = vmul.f32 %v10753_v24, %v1323_v2 }
 0x1d9   : > { %v10744_v25 = vpop.xlane.xlu2 %1576  ;;  %v10748_v42 = vpop.xlane.xlu1 %1574  ;;  %v1326_v59 = vmax.f32 %v1198_v26, 0.0  ;;  %v9296_v33 = vunpack.c.h.bf16 %v9407_v40 }
 0x1da   : > { %16282 = vst [vmem:[#allocation29_spill] sm:$0xff] %v10744_v25  ;;  %v10746_v41 = vpop.xlane.xlu0 %1572  ;;  %v1196_v50 = vadd.f32 %v9287_v23, %v10706_v29 }
 0x1db   : > { %v1201_v23 = vadd.f32 %v9296_v33, %v10706_v29 }
 0x1dc   : > { %v1324_v25 = vmax.f32 %v1196_v50, 0.0  ;;  %v9408_v50 = vld [vmem:[#allocation8 + $0x180] sm:$0xff]  }
 0x1dd   : > { %v1329_v40 = vmax.f32 %v1201_v23, 0.0 }
 0x1de   : > { %1666 = vadd.xlane.f32.xlu2 %v1452_v49  ;;  %1664 = vadd.xlane.f32.xlu1 %v1451_v54  ;;  %v1453_v49 = vmul.f32 %v10753_v24, %v1321_v11  ;;  %v1197_v54 = vadd.f32 %v9288_v12, %v10706_v29  ;;  %v1458_v12 = vmul.f32 %v10753_v24, %v1326_v59 }
 0x1df   : > { %1662 = vadd.xlane.f32.xlu0 %v1450_v53  ;;  %v1454_v53 = vmul.f32 %v10753_v24, %v1322_v20  ;;  %v1088_v20 = vrot.slane %v10470_v18, 6 }
 0x1e0   : > { %v1325_v2 = vmax.f32 %v1197_v54, 0.0 }
 0x1e1   : > { %v10761_v10 = vpop.xlane.xlu2 %1582  ;;  %v10765_v31 = vpop.xlane.xlu1 %1580  ;;  %v10786_v54 = vperm.slane %v1088_v20, 0 }
 0x1e2   : > { %16283 = vst [vmem:[#allocation30_spill] sm:$0xff] %v10761_v10  ;;  %v10763_v28 = vpop.xlane.xlu0 %1578  ;;  %v1457_v26 = vmul.f32 %v10753_v24, %v1325_v2 }
 0x1e3   : > { %16284 = vst [vmem:[#allocation31_spill] sm:$0xff] %v10763_v28  ;;  %v9292_v28 = vunpack.c.h.bf16 %v9406_v61  ;;  %v9409_v61 = vld [vmem:[#allocation8 + $0x188] sm:$0xff]  }
 0x1e6   : > { %1672 = vadd.xlane.f32.xlu2 %v1455_v32  ;;  %1670 = vadd.xlane.f32.xlu1 %v1454_v53  ;;  %v1456_v32 = vmul.f32 %v10753_v24, %v1324_v25  ;;  %v1200_v53 = vadd.f32 %v9295_v9, %v10706_v29  ;;  %v9299_v25 = vunpack.c.l.bf16 %v9408_v50 }
 0x1e7   : > { %1668 = vadd.xlane.f32.xlu0 %v1453_v49  ;;  %v1199_v49 = vadd.f32 %v9292_v28, %v10706_v29  ;;  %v1461_v29 = vmul.f32 %v10753_v24, %v1329_v40 }
 0x1e8   : > { %v1202_v23 = vadd.f32 %v9299_v25, %v10786_v54 }
 0x1e9   : > { %v10773_v10 = vpop.xlane.xlu2 %1588  ;;  %v10777_v11 = vpop.xlane.xlu1 %1586  ;;  %v1327_v33 = vmax.f32 %v1199_v49, 0.0 }
 0x1ea   : > { %16285 = vst [vmem:[#allocation32_spill] sm:$0xff] %v10773_v10  ;;  %v10775_v43 = vpop.xlane.xlu0 %1584  ;;  %v9303_v10 = vunpack.c.l.bf16 %v9409_v61 }
 0x1eb   : > { %16286 = vst [vmem:[#allocation33_spill] sm:$0xff] %v10775_v43  ;;  %v1328_v43 = vmax.f32 %v1200_v53, 0.0 }
 0x1ec   : > { %16287 = vst [vmem:[#allocation34_spill] sm:$0xff] %v10777_v11  ;;  %v9300_v11 = vunpack.c.h.bf16 %v9408_v50  ;;  %v1204_v9 = vadd.f32 %v9303_v10, %v10786_v54 }
 0x1ed   : > { %v1460_v20 = vmul.f32 %v10753_v24, %v1328_v43 }
 0x1ee   : > { %1678 = vadd.xlane.f32.xlu2 %v1458_v12  ;;  %1676 = vadd.xlane.f32.xlu1 %v1457_v26  ;;  %v1459_v12 = vmul.f32 %v10753_v24, %v1327_v33  ;;  %v9410_v26 = vld [vmem:[#allocation8 + $0x190] sm:$0xff]   ;;  %v1332_v49 = vmax.f32 %v1204_v9, 0.0 }
 0x1ef   : > { %1674 = vadd.xlane.f32.xlu0 %v1456_v32  ;;  %v1203_v32 = vadd.f32 %v9300_v11, %v10786_v54  ;;  %v9308_v53 = vunpack.c.h.bf16 %v9410_v26  ;;  %v9307_v10 = vunpack.c.l.bf16 %v9410_v26 }
 0x1f0   : > { %v1464_v43 = vmul.f32 %v10753_v24, %v1332_v49 }
 0x1f1   : > { %v10788_v59 = vpop.xlane.xlu2 %1594  ;;  %v10792_v28 = vpop.xlane.xlu1 %1592  ;;  %v1331_v40 = vmax.f32 %v1203_v32, 0.0  ;;  %v1207_v11 = vadd.f32 %v9308_v53, %v10786_v54 }
 0x1f2   : > { %16288 = vst [vmem:[#allocation35_spill] sm:$0xff] %v10788_v59  ;;  %v10790_v2 = vpop.xlane.xlu0 %1590  ;;  %v1330_v59 = vmax.f32 %v1202_v23, 0.0 }
 0x1f3   : > { %16289 = vst [vmem:[#allocation36_spill] sm:$0xff] %v10790_v2  ;;  %v9304_v2 = vunpack.c.h.bf16 %v9409_v61  ;;  %v9411_v61 = vld [vmem:[#allocation8 + $0x198] sm:$0xff]   ;;  %v1335_v23 = vmax.f32 %v1207_v11, 0.0 }
 0x1f4   : > { %16290 = vst [vmem:[#allocation37_spill] sm:$0xff] %v10792_v28  ;;  %v1462_v25 = vmul.f32 %v10753_v24, %v1330_v59  ;;  %v9311_v53 = vunpack.c.l.bf16 %v9411_v61 }
 0x1f5   : > { %v1205_v9 = vadd.f32 %v9304_v2, %v10786_v54  ;;  %v1467_v2 = vmul.f32 %v10753_v24, %v1335_v23 }
 0x1f6   : > { %1684 = vadd.xlane.f32.xlu2 %v1461_v29  ;;  %1682 = vadd.xlane.f32.xlu1 %v1460_v20  ;;  %v1463_v29 = vmul.f32 %v10753_v24, %v1331_v40  ;;  %v9412_v20 = vld [vmem:[#allocation8 + $0x1a0] sm:$0xff]   ;;  %v1208_v11 = vadd.f32 %v9311_v53, %v10786_v54 }
 0x1f7   : > { %1680 = vadd.xlane.f32.xlu0 %v1459_v12  ;;  %v1206_v12 = vadd.f32 %v9307_v10, %v10786_v54  ;;  %v9315_v32 = vunpack.c.l.bf16 %v9412_v20  ;;  %v1333_v49 = vmax.f32 %v1205_v9, 0.0  ;;  %v9413_v9 = vld [vmem:[#allocation8 + $0x1a8] sm:$0xff]  }
 0x1f9   : > { %v10800_v50 = vpop.xlane.xlu2 %1600  ;;  %v10804_v33 = vpop.xlane.xlu1 %1598  ;;  %v1210_v10 = vadd.f32 %v9315_v32, %v10786_v54  ;;  %v9319_v32 = vunpack.c.l.bf16 %v9413_v9 }
 0x1fa   : > { %16291 = vst [vmem:[#allocation38_spill] sm:$0xff] %v10800_v50  ;;  %v10802_v28 = vpop.xlane.xlu0 %1596  ;;  %v1334_v50 = vmax.f32 %v1206_v12, 0.0 }
 0x1fb   : > { %16292 = vst [vmem:[#allocation39_spill] sm:$0xff] %v10802_v28  ;;  %v9312_v28 = vunpack.c.h.bf16 %v9411_v61  ;;  %v1338_v12 = vmax.f32 %v1210_v10, 0.0  ;;  %v9320_v61 = vunpack.c.h.bf16 %v9413_v9 }
 0x1fc   : > { %16293 = vst [vmem:[#allocation40_spill] sm:$0xff] %v10804_v33 }
 0x1fe   : > { %1690 = vadd.xlane.f32.xlu2 %v1464_v43  ;;  %1688 = vadd.xlane.f32.xlu1 %v1463_v29  ;;  %v1465_v43 = vmul.f32 %v10753_v24, %v1333_v49  ;;  %v1209_v29 = vadd.f32 %v9312_v28, %v10786_v54  ;;  %v1213_v28 = vadd.f32 %v9320_v61, %v10786_v54 }
 0x1ff   : > { %1686 = vadd.xlane.f32.xlu0 %v1462_v25  ;;  %v1466_v25 = vmul.f32 %v10753_v24, %v1334_v50  ;;  %v1470_v50 = vmul.f32 %v10753_v24, %v1338_v12 }
 0x200   : > { %v1337_v23 = vmax.f32 %v1209_v29, 0.0 }
 0x201   : > { %v10812_v26 = vpop.xlane.xlu2 %1606  ;;  %v10816_v40 = vpop.xlane.xlu1 %1604 }
 0x202   : > { %16294 = vst [vmem:[#allocation41_spill] sm:$0xff] %v10812_v26  ;;  %v10814_v59 = vpop.xlane.xlu0 %1602 }
 0x203   : > { %16295 = vst [vmem:[#allocation42_spill] sm:$0xff] %v10814_v59  ;;  %v1336_v59 = vmax.f32 %v1208_v11, 0.0  ;;  %v1341_v11 = vmax.f32 %v1213_v28, 0.0 }
 0x204   : > { %16296 = vst [vmem:[#allocation43_spill] sm:$0xff] %v10816_v40  ;;  %v9316_v40 = vunpack.c.h.bf16 %v9412_v20  ;;  %v9414_v20 = vld [vmem:[#allocation8 + $0x1b0] sm:$0xff]  }
 0x205   : > { %v1468_v53 = vmul.f32 %v10753_v24, %v1336_v59  ;;  %v9323_v61 = vunpack.c.l.bf16 %v9414_v20 }
 0x206   : > { %1696 = vadd.xlane.f32.xlu2 %v1467_v2  ;;  %1694 = vadd.xlane.f32.xlu1 %v1466_v25  ;;  %v1469_v2 = vmul.f32 %v10753_v24, %v1337_v23  ;;  %v1211_v10 = vadd.f32 %v9316_v40, %v10786_v54  ;;  %v9415_v25 = vld [vmem:[#allocation8 + $0x1b8] sm:$0xff]   ;;  %v1089_v40 = vrot.slane %v10470_v18, 7 }
 0x207   : > { %1692 = vadd.xlane.f32.xlu0 %v1465_v43  ;;  %v1212_v43 = vadd.f32 %v9319_v32, %v10786_v54  ;;  %v9327_v29 = vunpack.c.l.bf16 %v9415_v25  ;;  %v1473_v32 = vmul.f32 %v10753_v24, %v1341_v11 }
 0x208   : > { %v1339_v12 = vmax.f32 %v1211_v10, 0.0 }
 0x209   : > { %v10824_v26 = vpop.xlane.xlu2 %1612  ;;  %v10828_v49 = vpop.xlane.xlu1 %1610 }
 0x20a   : > { %16297 = vst [vmem:[#allocation44_spill] sm:$0xff] %v10824_v26  ;;  %v10826_v33 = vpop.xlane.xlu0 %1608  ;;  %v1340_v26 = vmax.f32 %v1212_v43, 0.0  ;;  %v9416_v43 = vld [vmem:[#allocation8 + $0x1c0] sm:$0xff]  }
 0x20b   : > { %16298 = vst [vmem:[#allocation45_spill] sm:$0xff] %v10826_v33  ;;  %v9324_v33 = vunpack.c.h.bf16 %v9414_v20  ;;  %v10849_v20 = vperm.slane %v1089_v40, 0  ;;  %v9332_v18 = vunpack.c.h.bf16 %v9416_v43 }
 0x20c   : > { %16299 = vst [vmem:[#allocation46_spill] sm:$0xff] %v10828_v49  ;;  %v1472_v28 = vmul.f32 %v10753_v24, %v1340_v26 }
 0x20d   : > { %v1215_v10 = vadd.f32 %v9324_v33, %v10786_v54 }
 0x20e   : > { %1702 = vadd.xlane.f32.xlu2 %v1470_v50  ;;  %1700 = vadd.xlane.f32.xlu1 %v1469_v2  ;;  %v1216_v50 = vadd.f32 %v9327_v29, %v10786_v54  ;;  %v1214_v2 = vadd.f32 %v9323_v61, %v10786_v54  ;;  %v1219_v61 = vadd.f32 %v9332_v18, %v10849_v20 }
 0x20f   : > { %1698 = vadd.xlane.f32.xlu0 %v1468_v53  ;;  %v1471_v53 = vmul.f32 %v10753_v24, %v1339_v12  ;;  %v1343_v29 = vmax.f32 %v1215_v10, 0.0  ;;  %v9331_v12 = vunpack.c.l.bf16 %v9416_v43 }
 0x210   : > { %v1342_v11 = vmax.f32 %v1214_v2, 0.0  ;;  %v1347_v2 = vmax.f32 %v1219_v61, 0.0 }
 0x211   : > { %v10836_v9 = vpop.xlane.xlu2 %1618  ;;  %v10840_v23 = vpop.xlane.xlu1 %1616  ;;  %v1475_v40 = vmul.f32 %v10753_v24, %v1343_v29 }
 0x212   : > { %16300 = vst [vmem:[#allocation47_spill] sm:$0xff] %v10836_v9  ;;  %v10838_v59 = vpop.xlane.xlu0 %1614  ;;  %v1344_v9 = vmax.f32 %v1216_v50, 0.0 }
 0x213   : > { %16301 = vst [vmem:[#allocation48_spill] sm:$0xff] %v10838_v59 }
 0x214   : > { %16302 = vst [vmem:[#allocation49_spill] sm:$0xff] %v10840_v23  ;;  %v9328_v23 = vunpack.c.h.bf16 %v9415_v25  ;;  %v1476_v33 = vmul.f32 %v10753_v24, %v1344_v9  ;;  %v9417_v25 = vld [vmem:[#allocation8 + $0x1c8] sm:$0xff]  }
 0x215   : > { %v9335_v18 = vunpack.c.l.bf16 %v9417_v25 }
 0x216   : > { %1708 = vadd.xlane.f32.xlu2 %v1473_v32  ;;  %1706 = vadd.xlane.f32.xlu1 %v1472_v28  ;;  %v1474_v32 = vmul.f32 %v10753_v24, %v1342_v11  ;;  %v1217_v50 = vadd.f32 %v9328_v23, %v10786_v54  ;;  %v9418_v28 = vld [vmem:[#allocation8 + $0x1d0] sm:$0xff]   ;;  %v1479_v54 = vmul.f32 %v10753_v24, %v1347_v2 }
 0x217   : > { %1704 = vadd.xlane.f32.xlu0 %v1471_v53  ;;  %v1218_v53 = vadd.f32 %v9331_v12, %v10849_v20  ;;  %v9339_v10 = vunpack.c.l.bf16 %v9418_v28  ;;  %v1220_v61 = vadd.f32 %v9335_v18, %v10849_v20 }
 0x218   : > { %v1345_v9 = vmax.f32 %v1217_v50, 0.0 }
 0x219   : > { %v10851_v59 = vpop.xlane.xlu2 %1624  ;;  %v10855_v26 = vpop.xlane.xlu1 %1622  ;;  %v1222_v23 = vadd.f32 %v9339_v10, %v10849_v20 }
 0x21a   : > { %16303 = vst [vmem:[#allocation50_spill] sm:$0xff] %v10851_v59  ;;  %v10853_v49 = vpop.xlane.xlu0 %1620  ;;  %v1346_v59 = vmax.f32 %v1218_v53, 0.0  ;;  %v1477_v12 = vmul.f32 %v10753_v24, %v1345_v9 }
 0x21b   : > { %16304 = vst [vmem:[#allocation51_spill] sm:$0xff] %v10853_v49  ;;  %v9336_v49 = vunpack.c.h.bf16 %v9417_v25  ;;  %v1350_v50 = vmax.f32 %v1222_v23, 0.0 }
 0x21e   : > { %1714 = vadd.xlane.f32.xlu2 %v1476_v33  ;;  %1712 = vadd.xlane.f32.xlu1 %v1475_v40  ;;  %v1478_v33 = vmul.f32 %v10753_v24, %v1346_v59  ;;  %v9419_v40 = vld [vmem:[#allocation8 + $0x1d8] sm:$0xff]   ;;  %v1482_v59 = vmul.f32 %v10753_v24, %v1350_v50 }
 0x21f   : > { %1710 = vadd.xlane.f32.xlu0 %v1474_v32  ;;  %v1221_v32 = vadd.f32 %v9336_v49, %v10849_v20  ;;  %v9344_v53 = vunpack.c.h.bf16 %v9419_v40  ;;  %v9343_v10 = vunpack.c.l.bf16 %v9419_v40 }
 0x221   : > { %v10863_v43 = vpop.xlane.xlu2 %1630  ;;  %v10867_v29 = vpop.xlane.xlu1 %1628  ;;  %v1349_v2 = vmax.f32 %v1221_v32, 0.0  ;;  %v1225_v49 = vadd.f32 %v9344_v53, %v10849_v20 }
 0x222   : > { %16305 = vst [vmem:[#allocation52_spill] sm:$0xff] %v10863_v43  ;;  %v10865_v11 = vpop.xlane.xlu0 %1626  ;;  %v1348_v43 = vmax.f32 %v1220_v61, 0.0 }
 0x223   : > { %16306 = vst [vmem:[#allocation53_spill] sm:$0xff] %v10865_v11  ;;  %v9340_v11 = vunpack.c.h.bf16 %v9418_v28  ;;  %v9420_v28 = vld [vmem:[#allocation8 + $0x1e0] sm:$0xff]   ;;  %v1353_v61 = vmax.f32 %v1225_v49, 0.0 }
 0x224   : > { %16307 = vst [vmem:[#allocation54_spill] sm:$0xff] %v10867_v29  ;;  %v1480_v18 = vmul.f32 %v10753_v24, %v1348_v43  ;;  %v9347_v53 = vunpack.c.l.bf16 %v9420_v28 }
 0x225   : > { %v1223_v23 = vadd.f32 %v9340_v11, %v10849_v20  ;;  %v1485_v11 = vmul.f32 %v10753_v24, %v1353_v61 }
 0x226   : > { %1720 = vadd.xlane.f32.xlu2 %v1479_v54  ;;  %1718 = vadd.xlane.f32.xlu1 %v1478_v33  ;;  %v1481_v54 = vmul.f32 %v10753_v24, %v1349_v2  ;;  %v9421_v33 = vld [vmem:[#allocation8 + $0x1e8] sm:$0xff]   ;;  %v1226_v49 = vadd.f32 %v9347_v53, %v10849_v20  ;;  %v15867_v53 = vmov 0  }
 0x227   : > { %1716 = vadd.xlane.f32.xlu0 %v1477_v12  ;;  %v1224_v12 = vadd.f32 %v9343_v10, %v10849_v20  ;;  %v9351_v32 = vunpack.c.l.bf16 %v9421_v33  ;;  %v1351_v50 = vmax.f32 %v1223_v23, 0.0  ;;  %v9422_v23 = vld [vmem:[#allocation8 + $0x1f0] sm:$0xff]   ;;  %9558 = vset.pattern.permute.xlu2 %v15867_v53 }
 0x229   : > { %v10875_v25 = vpop.xlane.xlu2 %1636  ;;  %v10879_v9 = vpop.xlane.xlu1 %1634  ;;  %v1228_v10 = vadd.f32 %v9351_v32, %v10849_v20  ;;  %v9355_v32 = vunpack.c.l.bf16 %v9422_v23 }
 0x22a   : > { %16308 = vst [vmem:[#allocation55_spill] sm:$0xff] %v10875_v25  ;;  %v10877_v29 = vpop.xlane.xlu0 %1632  ;;  %v1352_v25 = vmax.f32 %v1224_v12, 0.0 }
 0x22b   : > { %16309 = vst [vmem:[#allocation56_spill] sm:$0xff] %v10877_v29  ;;  %v9348_v29 = vunpack.c.h.bf16 %v9420_v28  ;;  %v1356_v12 = vmax.f32 %v1228_v10, 0.0  ;;  %v9356_v28 = vunpack.c.h.bf16 %v9422_v23 }
 0x22c   : > { %16310 = vst [vmem:[#allocation57_spill] sm:$0xff] %v10879_v9 }
 0x22e   : > { %1726 = vadd.xlane.f32.xlu2 %v1482_v59  ;;  %1724 = vadd.xlane.f32.xlu1 %v1481_v54  ;;  %v1483_v59 = vmul.f32 %v10753_v24, %v1351_v50  ;;  %v1227_v54 = vadd.f32 %v9348_v29, %v10849_v20  ;;  %v1488_v29 = vmul.f32 %v10753_v24, %v1356_v12 }
 0x22f   : > { %1722 = vadd.xlane.f32.xlu0 %v1480_v18  ;;  %v1484_v18 = vmul.f32 %v10753_v24, %v1352_v25  ;;  %v15866_v25 = vlaneseq }
 0x230   : > { %v1355_v61 = vmax.f32 %v1227_v54, 0.0  ;;  %v9423_v54 = vld [vmem:[#allocation8 + $0x1f8] sm:$0xff]  }
 0x231   : > { %v10887_v40 = vpop.xlane.xlu2 %1642  ;;  %v10891_v2 = vpop.xlane.xlu1 %1640  ;;  %v10909_v10 = vshrl.u32 %v15866_v25, 7  ;;  %v9359_v53 = vunpack.c.l.bf16 %v9423_v54 }
 0x232   : > { %16311 = vst [vmem:[#allocation58_spill] sm:$0xff] %v10887_v40  ;;  %v10889_v43 = vpop.xlane.xlu0 %1638 }
 0x233   : > { %16312 = vst [vmem:[#allocation59_spill] sm:$0xff] %v10889_v43  ;;  %v1354_v43 = vmax.f32 %v1226_v49, 0.0  ;;  %v1230_v49 = vadd.f32 %v9355_v32, %v10849_v20  ;;  %9559 = vset.pattern.permute.xlu0 %v10909_v10  ;;  %v1896_v23 = vadd.s32 8, %v10909_v10 }
 0x234   : > { %16313 = vst [vmem:[#allocation60_spill] sm:$0xff] %v10891_v2  ;;  %v9352_v2 = vunpack.c.h.bf16 %v9421_v33  ;;  %v1487_v33 = vmul.f32 %v10753_v24, %v1355_v61  ;;  %v9360_v61 = vunpack.c.h.bf16 %v9423_v54 }
 0x235   : > { %9560 = vset.pattern.permute.xlu1 %v1896_v23 }
 0x236   : > { %1732 = vadd.xlane.f32.xlu2 %v1485_v11  ;;  %1730 = vadd.xlane.f32.xlu1 %v1484_v18  ;;  %v1231_v11 = vadd.f32 %v9356_v28, %v10849_v20  ;;  %v1229_v18 = vadd.f32 %v9352_v2, %v10849_v20 }
 0x237   : > { %1728 = vadd.xlane.f32.xlu0 %v1483_v59  ;;  %v1486_v59 = vmul.f32 %v10753_v24, %v1354_v43  ;;  %v1358_v43 = vmax.f32 %v1230_v49, 0.0 }
 0x238   : > { %v1359_v12 = vmax.f32 %v1231_v11, 0.0  ;;  %v1357_v25 = vmax.f32 %v1229_v18, 0.0  ;;  %v1233_v11 = vadd.f32 %v9360_v61, %v10849_v20 }
 0x239   : > { %v10899_v40 = vpop.xlane.xlu2 %1648  ;;  %v10903_v50 = vpop.xlane.xlu1 %1646 }
 0x23a   : > { %16314 = vst [vmem:[#allocation61_spill] sm:$0xff] %v10899_v40  ;;  %v10901_v9 = vpop.xlane.xlu0 %1644  ;;  %v1491_v32 = vmul.f32 %v10753_v24, %v1359_v12  ;;  %v1361_v49 = vmax.f32 %v1233_v11, 0.0 }
 0x23b   : > { %16315 = vst [vmem:[#allocation62_spill] sm:$0xff] %v10901_v9  ;;  %v1490_v9 = vmul.f32 %v10753_v24, %v1358_v43 }
 0x23e   : > { %1738 = vadd.xlane.f32.xlu2 %v1488_v29  ;;  %1736 = vadd.xlane.f32.xlu1 %v1487_v33  ;;  %v1489_v29 = vmul.f32 %v10753_v24, %v1357_v25  ;;  %v1493_v25 = vmul.f32 %v10753_v24, %v1361_v49  ;;  %v1902_v49 = vadd.s32 16, %v10909_v10 }
 0x23f   : > { %1734 = vadd.xlane.f32.xlu0 %v1486_v59  ;;  %v1232_v59 = vadd.f32 %v9359_v53, %v10849_v20 }
 0x241   : > { %v10917_v28 = vpop.xlane.xlu2 %1654  ;;  %v10921_v2 = vpop.xlane.xlu1 %1652  ;;  %v1360_v18 = vmax.f32 %v1232_v59, 0.0 }
 0x242   : > { %v10919_v40 = vpop.xlane.xlu0 %1650 }
 0x243   : > { %v1492_v12 = vmul.f32 %v10753_v24, %v1360_v18  ;;  %v10951_v24 = vld [vmem:[%s16319_s1] ss:$0 sm:$0xff] }
 0x246   : > { %1744 = vadd.xlane.f32.xlu2 %v1491_v32  ;;  %1742 = vadd.xlane.f32.xlu1 %v1490_v9 }
 0x247   : > { %1740 = vadd.xlane.f32.xlu0 %v1489_v29  ;;  %v9580_v29 = vld [vmem:[#allocation4] ss:$0 sm:$0xff] }
 0x249   : > { %v10928_v33 = vpop.xlane.xlu2 %1660  ;;  %v10932_v23 = vpop.xlane.xlu1 %1658 }
 0x24a   : > { %v10930_v54 = vpop.xlane.xlu0 %1656 }
 0x24e   : > { %1748 = vadd.xlane.f32.xlu1 %v1493_v25 }
 0x24f   : > { %1746 = vadd.xlane.f32.xlu0 %v1492_v12  ;;  %v1932_v12 = vadd.s32 56, %v10909_v10 }
 0x251   : > { %v10936_v53 = vpop.xlane.xlu2 %1666  ;;  %v10940_v43 = vpop.xlane.xlu1 %1664 }
 0x252   : > { %16316 = vst [vmem:[#allocation63_spill] sm:$0xff] %v10936_v53  ;;  %v10938_v20 = vpop.xlane.xlu0 %1662 }
 0x259   : > { %v10942_v9 = vpop.xlane.xlu2 %1672  ;;  %v10946_v32 = vpop.xlane.xlu1 %1670 }
 0x25a   : > { %16317 = vst [vmem:[#allocation64_spill] sm:$0xff] %v10942_v9  ;;  %v10944_v61 = vpop.xlane.xlu0 %1668 }
 0x25b   : > { %16318 = vst [vmem:[#allocation65_spill] sm:$0xff] %v10944_v61  ;;  %v1908_v61 = vadd.s32 24, %v10909_v10 }
 0x25e   : > { %1754 = vperm.xlu2 %9558, %v9580_v29  }
 0x261   : > { %v10953_v59 = vpop.xlane.xlu2 %1678  ;;  %v10957_v18 = vpop.xlane.xlu1 %1676 }
 0x262   : > { %16320 = vst [vmem:[#allocation66_spill] sm:$0xff] %v10953_v59  ;;  %v10955_v11 = vpop.xlane.xlu0 %1674  ;;  %v1914_v59 = vadd.s32 32, %v10909_v10 }
 0x263   : > { %16321 = vst [vmem:[#allocation67_spill] sm:$0xff] %v10955_v11  ;;  %1892 = vperm.xlu0 %9559, %v10951_v24  }
 0x264   : > { %16322 = vst [vmem:[#allocation68_spill] sm:$0xff] %v10957_v18 }
 0x266   : > { %9561 = vset.pattern.permute.xlu2 %v1902_v49 }
 0x267   : > { %1898 = vperm.xlu1 %9560, %v10951_v24  }
 0x269   : > { %v10963_v25 = vpop.xlane.xlu2 %1684  ;;  %v10967_v9 = vpop.xlane.xlu1 %1682 }
 0x26a   : > { %16323 = vst [vmem:[#allocation69_spill] sm:$0xff] %v10963_v25  ;;  %v10965_v29 = vpop.xlane.xlu0 %1680  ;;  %v1962_v25 = vadd.s32 96, %v10909_v10 }
 0x26b   : > { %16324 = vst [vmem:[#allocation70_spill] sm:$0xff] %v10965_v29  ;;  %9566 = vset.pattern.permute.xlu0 %v1932_v12 }
 0x26c   : > { %16325 = vst [vmem:[#allocation71_spill] sm:$0xff] %v10967_v9  ;;  %v1920_v9 = vadd.s32 40, %v10909_v10 }
 0x26e   : > { %1904 = vperm.xlu2 %9561, %v10951_v24  }
 0x26f   : > { %9563 = vset.pattern.permute.xlu1 %v1914_v59 }
 0x271   : > { %v10971_v11 = vpop.xlane.xlu2 %1690  ;;  %v10975_v49 = vpop.xlane.xlu1 %1688 }
 0x272   : > { %16326 = vst [vmem:[#allocation72_spill] sm:$0xff] %v10971_v11  ;;  %v10973_v53 = vpop.xlane.xlu0 %1686  ;;  %v1926_v11 = vadd.s32 48, %v10909_v10 }
 0x273   : > { %16327 = vst [vmem:[#allocation73_spill] sm:$0xff] %v10973_v53  ;;  %1934 = vperm.xlu0 %9566, %v10951_v24  }
 0x274   : > { %16328 = vst [vmem:[#allocation74_spill] sm:$0xff] %v10975_v49 }
 0x276   : > { %9562 = vset.pattern.permute.xlu2 %v1908_v61 }
 0x277   : > { %1916 = vperm.xlu1 %9563, %v10951_v24  }
 0x279   : > { %v10981_v12 = vpop.xlane.xlu2 %1696  ;;  %v10985_v59 = vpop.xlane.xlu1 %1694 }
 0x27a   : > { %16329 = vst [vmem:[#allocation75_spill] sm:$0xff] %v10981_v12  ;;  %v10983_v29 = vpop.xlane.xlu0 %1692 }
 0x27b   : > { %16330 = vst [vmem:[#allocation76_spill] sm:$0xff] %v10983_v29  ;;  %9571 = vset.pattern.permute.xlu0 %v1962_v25  ;;  %v16337_v29 = vmov 0  }
 0x27c   : > { %16331 = vst [vmem:[#allocation77_spill] sm:$0xff] %v10985_v59 }
 0x27e   : > { %1910 = vperm.xlu2 %9562, %v10951_v24  }
 0x27f   : > { %9565 = vset.pattern.permute.xlu1 %v1926_v11 }
 0x281   : > { %v10989_v53 = vpop.xlane.xlu2 %1702  ;;  %v10993_v61 = vpop.xlane.xlu1 %1700 }
 0x282   : > { %16332 = vst [vmem:[#allocation78_spill] sm:$0xff] %v10989_v53  ;;  %v10991_v49 = vpop.xlane.xlu0 %1698  ;;  %v1944_v53 = vadd.s32 72, %v10909_v10 }
 0x283   : > { %16333 = vst [vmem:[#allocation79_spill] sm:$0xff] %v10991_v49  ;;  %1964 = vperm.xlu0 %9571, %v10951_v24  }
 0x284   : > { %16334 = vst [vmem:[#allocation80_spill] sm:$0xff] %v10993_v61 }
 0x286   : > { %9564 = vset.pattern.permute.xlu2 %v1920_v9  ;;  %v1938_v9 = vadd.s32 64, %v10909_v10 }
 0x287   : > { %1928 = vperm.xlu1 %9565, %v10951_v24  }
 0x289   : > { %v10998_v12 = vpop.xlane.xlu2 %1708  ;;  %v11003_v11 = vpop.xlane.xlu1 %1706 }
 0x28a   : > { %16335 = vst [vmem:[#allocation81_spill] sm:$0xff] %v10998_v12  ;;  %v11000_v25 = vpop.xlane.xlu0 %1704 }
 0x28b   : > { %16336 = vst [vmem:[#allocation82_spill] sm:$0xff] %v11000_v25  ;;  %9576 = vset.pattern.permute.xlu0 %v16337_v29 }
 0x28c   : > { %16338 = vst [vmem:[#allocation83_spill] sm:$0xff] %v11003_v11  ;;  %v1956_v11 = vadd.s32 88, %v10909_v10 }
 0x28e   : > { %1922 = vperm.xlu2 %9564, %v10951_v24  }
 0x28f   : > { %9568 = vset.pattern.permute.xlu1 %v1944_v53 }
 0x291   : > { %v11007_v49 = vpop.xlane.xlu2 %1714  ;;  %v11012_v59 = vpop.xlane.xlu1 %1712 }
 0x292   : > { %16339 = vst [vmem:[#allocation84_spill] sm:$0xff] %v11007_v49  ;;  %v11009_v61 = vpop.xlane.xlu0 %1710 }
 0x293   : > { %16340 = vst [vmem:[#allocation85_spill] sm:$0xff] %v11009_v61  ;;  %v1950_v61 = vadd.s32 80, %v10909_v10 }
 0x294   : > { %16341 = vst [vmem:[#allocation86_spill] sm:$0xff] %v11012_v59 }
 0x296   : > { %9567 = vset.pattern.permute.xlu2 %v1938_v9 }
 0x297   : > { %1946 = vperm.xlu1 %9568, %v10951_v24  }
 0x299   : > { %v11015_v12 = vpop.xlane.xlu2 %1720  ;;  %v11021_v53 = vpop.xlane.xlu1 %1718 }
 0x29a   : > { %16342 = vst [vmem:[#allocation87_spill] sm:$0xff] %v11015_v12  ;;  %v11017_v25 = vpop.xlane.xlu0 %1716 }
 0x29b   : > { %16343 = vst [vmem:[#allocation88_spill] sm:$0xff] %v11017_v25  ;;  %v1974_v25 = vadd.s32 112, %v10909_v10 }
 0x29c   : > { %16344 = vst [vmem:[#allocation89_spill] sm:$0xff] %v11021_v53 }
 0x29e   : > { %1940 = vperm.xlu2 %9567, %v10951_v24  }
 0x29f   : > { %9570 = vset.pattern.permute.xlu1 %v1956_v11  ;;  %v1968_v11 = vadd.s32 104, %v10909_v10 }
 0x2a1   : > { %v11023_v49 = vpop.xlane.xlu2 %1726  ;;  %v11029_v9 = vpop.xlane.xlu1 %1724 }
 0x2a2   : > { %16345 = vst [vmem:[#allocation90_spill] sm:$0xff] %v11023_v49  ;;  %v11026_v18 = vpop.xlane.xlu0 %1722 }
 0x2a3   : > { %16346 = vst [vmem:[#allocation91_spill] sm:$0xff] %v11026_v18 }
 0x2a6   : > { %9569 = vset.pattern.permute.xlu2 %v1950_v61 }
 0x2a7   : > { %1958 = vperm.xlu1 %9570, %v10951_v24  }
 0x2a9   : > { %v11031_v12 = vpop.xlane.xlu2 %1732  ;;  %v11038_v49 = vpop.xlane.xlu1 %1730 }
 0x2aa   : > { %16347 = vst [vmem:[#allocation92_spill] sm:$0xff] %v11031_v12  ;;  %v11035_v59 = vpop.xlane.xlu0 %1728 }
 0x2ab   : > { %16348 = vst [vmem:[#allocation93_spill] sm:$0xff] %v11035_v59 }
 0x2ac   : > { %16349 = vst [vmem:[#allocation94_spill] sm:$0xff] %v11038_v49 }
 0x2ae   : > { %1952 = vperm.xlu2 %9569, %v10951_v24  }
 0x2af   : > { %9573 = vset.pattern.permute.xlu1 %v1974_v25  ;;  %v1980_v25 = vadd.s32 120, %v10909_v10 }
 0x2b1   : > { %v11040_v53 = vpop.xlane.xlu2 %1738  ;;  %v11045_v18 = vpop.xlane.xlu1 %1736 }
 0x2b2   : > { %16350 = vst [vmem:[#allocation95_spill] sm:$0xff] %v11040_v53  ;;  %v11043_v61 = vpop.xlane.xlu0 %1734 }
 0x2b3   : > { %16351 = vst [vmem:[#allocation96_spill] sm:$0xff] %v11043_v61 }
 0x2b4   : > { %16352 = vst [vmem:[#allocation97_spill] sm:$0xff] %v11045_v18 }
 0x2b6   : > { %9572 = vset.pattern.permute.xlu2 %v1968_v11 }
 0x2b7   : > { %1976 = vperm.xlu1 %9573, %v10951_v24  }
 0x2b9   : > { %v11047_v12 = vpop.xlane.xlu2 %1744  ;;  %v11054_v49 = vpop.xlane.xlu1 %1742 }
 0x2ba   : > { %16353 = vst [vmem:[#allocation98_spill] sm:$0xff] %v11047_v12  ;;  %v11052_v59 = vpop.xlane.xlu0 %1740 }
 0x2bb   : > { %16354 = vst [vmem:[#allocation99_spill] sm:$0xff] %v11052_v59 }
 0x2be   : > { %1970 = vperm.xlu2 %9572, %v10951_v24  }
 0x2bf   : > { %9575 = vset.pattern.permute.xlu1 %v16337_v29 }
 0x2c1   : > { %v11056_v11 = vpop.permute.xlu2 %1754  ;;  %v11061_v61 = vpop.xlane.xlu1 %1748 }
 0x2c2   : > { %v11058_v53 = vpop.xlane.xlu0 %1746  ;;  %16356 = vst [vmem:[#allocation101_spill] sm:$0xff] %v11061_v61  ;;  %v1759_v18 = vadd.f32 %v11056_v11, %v10584_v62  ;;  %v1757_v10 = vadd.f32 %v11056_v11, %v10586_v63  ;;  %v1758_v62 = vadd.f32 %v11056_v11, %v10598_v15  ;;  %v1762_v15 = vadd.f32 %v11056_v11, %v10594_v8 }
 0x2c3   : > { %16355 = vst [vmem:[#allocation100_spill] sm:$0xff] %v11058_v53  ;;  %v1764_v8 = vadd.f32 %v11056_v11, %v10608_v36 }
 0x2c6   : > { %9574 = vset.pattern.permute.xlu2 %v1980_v25 }
 0x2c9   : > { %v11063_v12 = vpop.permute.xlu2 %1904 }
 0x2ca   : > { %v11072_v25 = vadd.f32 %v11063_v12, %v1759_v18  ;;  %v1760_v18 = vadd.f32 %v11056_v11, %v10596_v14 }
 0x2cc   : > { %16357 = vst [vmem:[#allocation102_spill] sm:$0xff] %v11072_v25 }
 0x2ce   : > { %1982 = vperm.xlu2 %9574, %v10951_v24  }
 0x2d5   : > { %v11069_v59 = vpop.permute.xlu0 %1892 }
 0x2d6   : > { %9577 = vset.pattern.permute.xlu2 %v16337_v29  ;;  %v11076_v53 = vadd.f32 %v11069_v59, %v1757_v10 }
 0x2d7   : > { %2263 = vperm.xlu2 %9577, %v11072_v25  }
 0x2d8   : > { %16358 = vst [vmem:[#allocation103_spill] sm:$0xff] %v11076_v53  ;;  %2257 = vperm.xlu1 %9575, %v11076_v53   ;;  %v11084_v63 = vpop.permute.xlu2 %1910 }
 0x2d9   : > { %v11082_v24 = vpop.permute.xlu1 %1898  ;;  %v11093_v29 = vadd.f32 %v11084_v63, %v1760_v18 }
 0x2da   : > { %v11087_v61 = vadd.f32 %v11082_v24, %v1758_v62  ;;  %v1761_v62 = vadd.f32 %v11056_v11, %v10582_v57  ;;  %v1765_v57 = vadd.f32 %v11056_v11, %v10606_v30  ;;  %v1767_v30 = vadd.f32 %v11056_v11, %v10620_v51 }
 0x2db   : > { %16360 = vst [vmem:[#allocation105_spill] sm:$0xff] %v11093_v29  ;;  %v1769_v51 = vadd.f32 %v11056_v11, %v10634_v7 }
 0x2dc   : > { %16359 = vst [vmem:[#allocation104_spill] sm:$0xff] %v11087_v61  ;;  %2260 = vperm.xlu0 %9576, %v11087_v61  }
 0x2e0   : > { %2266 = vperm.xlu1 %9575, %v11093_v29  }
 0x2e5   : > { %v11112_v18 = vpop.permute.xlu0 %1934 }
 0x2e8   : > { %v11098_v10 = vpop.permute.xlu2 %1922 }
 0x2e9   : > { %v11101_v25 = vadd.f32 %v11098_v10, %v1762_v15  ;;  %v11105_v53 = vpop.permute.xlu1 %1916  ;;  %v11117_v15 = vadd.f32 %v11112_v18, %v1764_v8 }
 0x2ea   : > { %v11109_v14 = vadd.f32 %v11105_v53, %v1761_v62 }
 0x2eb   : > { %16361 = vst [vmem:[#allocation106_spill] sm:$0xff] %v11101_v25  ;;  %2272 = vperm.xlu1 %9575, %v11101_v25  }
 0x2ec   : > { %16362 = vst [vmem:[#allocation107_spill] sm:$0xff] %v11109_v14  ;;  %2269 = vperm.xlu2 %9577, %v11109_v14   ;;  %v1763_v14 = vadd.f32 %v11056_v11, %v10610_v37  ;;  %v1766_v37 = vadd.f32 %v11056_v11, %v10622_v52  ;;  %v1770_v52 = vadd.f32 %v11056_v11, %v10632_v6 }
 0x2ed   : > { %16363 = vst [vmem:[#allocation108_spill] sm:$0xff] %v11117_v15  ;;  %v1773_v6 = vadd.f32 %v11056_v11, %v10649_v35  ;;  %v1771_v35 = vadd.f32 %v11056_v11, %v10630_v1 }
 0x2f4   : > { %2278 = vperm.xlu2 %9577, %v11117_v15  }
 0x2f8   : > { %v11122_v29 = vpop.permute.xlu2 %1940 }
 0x2f9   : > { %v11125_v62 = vadd.f32 %v11122_v29, %v1765_v57  ;;  %v11129_v25 = vpop.permute.xlu1 %1928 }
 0x2fa   : > { %v11133_v36 = vadd.f32 %v11129_v25, %v1763_v14 }
 0x2fb   : > { %16364 = vst [vmem:[#allocation109_spill] sm:$0xff] %v11125_v62  ;;  %2281 = vperm.xlu1 %9575, %v11125_v62   ;;  %v11152_v62 = vpop.permute.xlu0 %1964 }
 0x2fc   : > { %16365 = vst [vmem:[#allocation110_spill] sm:$0xff] %v11133_v36  ;;  %2275 = vperm.xlu0 %9576, %v11133_v36  }
 0x308   : > { %v11138_v8 = vpop.permute.xlu2 %1952 }
 0x309   : > { %v11141_v57 = vadd.f32 %v11138_v8, %v1767_v30  ;;  %v11145_v15 = vpop.permute.xlu1 %1946  ;;  %v11157_v30 = vadd.f32 %v11152_v62, %v1769_v51  ;;  %v11179_v51 = vadd.f32 %v11069_v59, %v1773_v6 }
 0x30a   : > { %v11149_v14 = vadd.f32 %v11145_v15, %v1766_v37 }
 0x30b   : > { %16366 = vst [vmem:[#allocation111_spill] sm:$0xff] %v11141_v57  ;;  %2287 = vperm.xlu2 %9577, %v11141_v57   ;;  %v16453_v57 = vld [vmem:[#allocation53_spill] sm:$0xff] }
 0x30c   : > { %16367 = vst [vmem:[#allocation112_spill] sm:$0xff] %v11149_v14  ;;  %2284 = vperm.xlu0 %9576, %v11149_v14   ;;  %v1768_v14 = vadd.f32 %v11056_v11, %v10618_v22  ;;  %v1776_v22 = vadd.f32 %v11056_v11, %v10661_v56 }
 0x30d   : > { %16368 = vst [vmem:[#allocation113_spill] sm:$0xff] %v11157_v30 }
 0x30e   : > { %16371 = vst [vmem:[#allocation116_spill] sm:$0xff] %v11179_v51 }
 0x314   : > { %2293 = vperm.xlu0 %9576, %v11157_v30   ;;  %v16440_v30 = vld [vmem:[#allocation48_spill] sm:$0xff] }
 0x318   : > { %v11162_v36 = vpop.permute.xlu2 %1970 }
 0x319   : > { %v11165_v37 = vadd.f32 %v11162_v36, %v1770_v52  ;;  %v11169_v61 = vpop.permute.xlu1 %1958  ;;  %v1772_v52 = vadd.f32 %v11056_v11, %v10647_v34  ;;  %v1779_v34 = vadd.f32 %v11056_v11, %v10673_v16  ;;  %v1778_v16 = vadd.f32 %v11056_v11, %v10671_v13 }
 0x31a   : > { %v11173_v7 = vadd.f32 %v11169_v61, %v1768_v14  ;;  %v11189_v14 = vadd.f32 %v11084_v63, %v1776_v22  ;;  %v1775_v22 = vadd.f32 %v11056_v11, %v10659_v21  ;;  %v1782_v21 = vadd.f32 %v11056_v11, %v10685_v45 }
 0x31b   : > { %16369 = vst [vmem:[#allocation114_spill] sm:$0xff] %v11165_v37  ;;  %2296 = vperm.xlu2 %9577, %v11165_v37   ;;  %v1785_v13 = vadd.f32 %v11056_v11, %v10697_v5  ;;  %v1781_v45 = vadd.f32 %v11056_v11, %v10683_v44  ;;  %v1788_v44 = vadd.f32 %v11056_v11, %v10712_v47 }
 0x31c   : > { %16370 = vst [vmem:[#allocation115_spill] sm:$0xff] %v11173_v7  ;;  %2290 = vperm.xlu1 %9575, %v11173_v7   ;;  %v11212_v1 = vadd.f32 %v11063_v12, %v1775_v22  ;;  %v1777_v22 = vadd.f32 %v11056_v11, %v10657_v48  ;;  %v1784_v5 = vadd.f32 %v11056_v11, %v10695_v3 }
 0x31d   : > { %16372 = vst [vmem:[#allocation117_spill] sm:$0xff] %v11189_v14  ;;  %v11248_v48 = vadd.f32 %v11122_v29, %v1781_v45  ;;  %v1783_v45 = vadd.f32 %v11056_v11, %v10681_v39  ;;  %v1791_v3 = vadd.f32 %v11056_v11, %v10724_v19  ;;  %v1787_v47 = vadd.f32 %v11056_v11, %v10710_v46 }
 0x31e   : > { %16376 = vst [vmem:[#allocation121_spill] sm:$0xff] %v11212_v1  ;;  %v1794_v46 = vadd.f32 %v11056_v11, %v10736_v58 }
 0x31f   : > { %16382 = vst [vmem:[#allocation127_spill] sm:$0xff] %v11248_v48 }
 0x323   : > { %2305 = vperm.xlu2 %9577, %v11179_v51  }
 0x328   : > { %v11186_v37 = vpop.permute.xlu2 %1982 }
 0x329   : > { %v11192_v7 = vadd.f32 %v11186_v37, %v1772_v52  ;;  %v11196_v6 = vpop.permute.xlu1 %1976  ;;  %v11209_v52 = vadd.f32 %v11129_v25, %v1779_v34  ;;  %v11227_v34 = vadd.f32 %v11145_v15, %v1782_v21  ;;  %v11245_v21 = vadd.f32 %v11152_v62, %v1785_v13 }
 0x32a   : > { %v11201_v56 = vadd.f32 %v11196_v6, %v1771_v35  ;;  %v11263_v13 = vadd.f32 %v11186_v37, %v1788_v44  ;;  %v11281_v44 = vadd.f32 %v11063_v12, %v1791_v3  ;;  %v11284_v39 = vadd.f32 %v11196_v6, %v1787_v47 }
 0x32b   : > { %16373 = vst [vmem:[#allocation118_spill] sm:$0xff] %v11192_v7  ;;  %2314 = vperm.xlu2 %9577, %v11189_v14   ;;  %2302 = vperm.xlu0 %9576, %v11192_v7   ;;  %v1774_v14 = vadd.f32 %v11056_v11, %v10645_v27  ;;  %v11230_v27 = vadd.f32 %v11098_v10, %v1778_v16  ;;  %v16426_v7 = vld [vmem:[#allocation42_spill] sm:$0xff] }
 0x32c   : > { %16374 = vst [vmem:[#allocation119_spill] sm:$0xff] %v11201_v56  ;;  %2299 = vperm.xlu1 %9575, %v11201_v56   ;;  %v1780_v16 = vadd.f32 %v11056_v11, %v10669_v4  ;;  %v11266_v4 = vadd.f32 %v11169_v61, %v1784_v5  ;;  %v1786_v5 = vadd.f32 %v11056_v11, %v10693_v60  ;;  %v16432_v56 = vld [vmem:[#allocation45_spill] sm:$0xff] }
 0x32d   : > { %16375 = vst [vmem:[#allocation120_spill] sm:$0xff] %v11209_v52  ;;  %v11219_v35 = vadd.f32 %v11082_v24, %v1774_v14  ;;  %v11237_v14 = vadd.f32 %v11105_v53, %v1777_v22  ;;  %v11301_v3 = vadd.f32 %v11098_v10, %v1794_v46  ;;  %v1789_v47 = vadd.f32 %v11056_v11, %v10708_v38 }
 0x32e   : > { %16378 = vst [vmem:[#allocation123_spill] sm:$0xff] %v11227_v34  ;;  %v11255_v22 = vadd.f32 %v11112_v18, %v1780_v16  ;;  %v11273_v16 = vadd.f32 %v11138_v8, %v1783_v45  ;;  %v11293_v19 = vadd.f32 %v11162_v36, %v1786_v5  ;;  %v1790_v45 = vadd.f32 %v11056_v11, %v10722_v17 }
 0x32f   : > { %16377 = vst [vmem:[#allocation122_spill] sm:$0xff] %v11219_v35  ;;  %v11313_v58 = vadd.f32 %v11069_v59, %v1789_v47  ;;  %v1797_v17 = vadd.f32 %v11056_v11, %v10748_v42  ;;  %v1793_v5 = vadd.f32 %v11056_v11, %v10734_v55  ;;  %v1800_v55 = vadd.f32 %v11056_v11, %v10765_v31 }
 0x330   : > { %16379 = vst [vmem:[#allocation124_spill] sm:$0xff] %v11230_v27  ;;  %v11304_v60 = vadd.f32 %v11082_v24, %v1790_v45  ;;  %v1792_v45 = vadd.f32 %v11056_v11, %v10720_v0 }
 0x331   : > { %16380 = vst [vmem:[#allocation125_spill] sm:$0xff] %v11237_v14  ;;  %v11321_v46 = vadd.f32 %v11122_v29, %v1797_v17  ;;  %v11324_v38 = vadd.f32 %v11105_v53, %v1793_v5  ;;  %v1796_v17 = vadd.f32 %v11056_v11, %v10746_v41  ;;  %v11341_v5 = vadd.f32 %v11169_v61, %v1800_v55  ;;  %v16400_v41 = vld [vmem:[#allocation34_spill] sm:$0xff] }
 0x332   : > { %16381 = vst [vmem:[#allocation126_spill] sm:$0xff] %v11245_v21  ;;  %v11331_v47 = vadd.f32 %v11084_v63, %v1792_v45  ;;  %v1803_v55 = vadd.f32 %v11056_v11, %v16400_v41 }
 0x333   : > { %2323 = vperm.xlu2 %9577, %v11209_v52   ;;  %2311 = vperm.xlu0 %9576, %v11212_v1   ;;  %16383 = vst [vmem:[#allocation128_spill] sm:$0xff] %v11255_v22  ;;  %v11344_v0 = vadd.f32 %v11112_v18, %v1796_v17 }
 0x334   : > { %2308 = vperm.xlu1 %9575, %v11219_v35   ;;  %16384 = vst [vmem:[#allocation129_spill] sm:$0xff] %v11263_v13 }
 0x335   : > { %16385 = vst [vmem:[#allocation130_spill] sm:$0xff] %v11266_v4 }
 0x336   : > { %16386 = vst [vmem:[#allocation131_spill] sm:$0xff] %v11273_v16 }
 0x337   : > { %16387 = vst [vmem:[#allocation132_spill] sm:$0xff] %v11281_v44 }
 0x338   : > { %16388 = vst [vmem:[#allocation133_spill] sm:$0xff] %v11284_v39 }
 0x339   : > { %16389 = vst [vmem:[#allocation134_spill] sm:$0xff] %v11293_v19 }
 0x33a   : > { %16390 = vst [vmem:[#allocation135_spill] sm:$0xff] %v11301_v3 }
 0x33b   : > { %2332 = vperm.xlu2 %9577, %v11227_v34   ;;  %2320 = vperm.xlu0 %9576, %v11230_v27   ;;  %16391 = vst [vmem:[#allocation136_spill] sm:$0xff] %v11304_v60  ;;  %v16414_v34 = vld [vmem:[#allocation36_spill] sm:$0xff] }
 0x33c   : > { %2317 = vperm.xlu1 %9575, %v11237_v14   ;;  %16392 = vst [vmem:[#allocation137_spill] sm:$0xff] %v11313_v58 }
 0x33d   : > { %16393 = vst [vmem:[#allocation138_spill] sm:$0xff] %v11321_v46 }
 0x33e   : > { %16394 = vst [vmem:[#allocation139_spill] sm:$0xff] %v11324_v38 }
 0x33f   : > { %16395 = vst [vmem:[#allocation140_spill] sm:$0xff] %v11331_v47 }
 0x340   : > { %16396 = vst [vmem:[#allocation141_spill] sm:$0xff] %v11341_v5 }
 0x341   : > { %16397 = vst [vmem:[#allocation142_spill] sm:$0xff] %v11344_v0 }
 0x343   : > { %2341 = vperm.xlu2 %9577, %v11245_v21   ;;  %2329 = vperm.xlu0 %9576, %v11248_v48  }
 0x344   : > { %2326 = vperm.xlu1 %9575, %v11255_v22   ;;  %v16447_v22 = vld [vmem:[#allocation51_spill] sm:$0xff] }
 0x34a   : > { %v11373_v41 = vpop.permute.xlu1 %2257 }
 0x34b   : > { %2350 = vperm.xlu2 %9577, %v11263_v13   ;;  %2338 = vperm.xlu0 %9576, %v11266_v4   ;;  %v11288_v13 = vpop.permute.xlu2 %2263 }
 0x34c   : > { %2335 = vperm.xlu1 %9575, %v11273_v16  }
 0x34e   : > { %v11390_v21 = vpop.permute.xlu0 %2260 }
 0x353   : > { %2359 = vperm.xlu2 %9577, %v11281_v44   ;;  %2347 = vperm.xlu0 %9576, %v11284_v39   ;;  %v11308_v44 = vpop.permute.xlu2 %2269  ;;  %v16408_v39 = vld [vmem:[#allocation33_spill] sm:$0xff] }
 0x354   : > { %2344 = vperm.xlu1 %9575, %v11293_v19   ;;  %v1802_v4 = vadd.f32 %v11056_v11, %v16408_v39 }
 0x35b   : > { %2368 = vperm.xlu2 %9577, %v11301_v3   ;;  %2356 = vperm.xlu0 %9576, %v11304_v60   ;;  %v11333_v42 = vpop.permute.xlu2 %2278  ;;  %v16401_v3 = vld [vmem:[#allocation31_spill] sm:$0xff]  ;;  %v11361_v60 = vadd.f32 %v11196_v6, %v1803_v55  ;;  %v16407_v55 = vld [vmem:[#allocation37_spill] sm:$0xff] }
 0x35c   : > { %2353 = vperm.xlu1 %9575, %v11313_v58   ;;  %v1799_v17 = vadd.f32 %v11056_v11, %v16401_v3 }
 0x35d   : > { %16402 = vst [vmem:[#allocation34_spill] sm:$0xff] %v11361_v60 }
 0x363   : > { %2377 = vperm.xlu2 %9577, %v11321_v46   ;;  %2365 = vperm.xlu0 %9576, %v11324_v38   ;;  %v16398_v46 = vld [vmem:[#allocation28_spill] sm:$0xff] }
 0x364   : > { %2362 = vperm.xlu1 %9575, %v11331_v47   ;;  %v1795_v45 = vadd.f32 %v11056_v11, %v16398_v46  ;;  %v11364_v46 = vadd.f32 %v11138_v8, %v1799_v17  ;;  %v1806_v17 = vadd.f32 %v11056_v11, %v16407_v55 }
 0x365   : > { %v11353_v31 = vpop.permute.xlu2 %2287 }
 0x366   : > { %v11351_v38 = vadd.f32 %v11129_v25, %v1795_v45  ;;  %16403 = vst [vmem:[#allocation31_spill] sm:$0xff] %v11364_v46 }
 0x368   : > { %16399 = vst [vmem:[#allocation28_spill] sm:$0xff] %v11351_v38 }
 0x36b   : > { %2386 = vperm.xlu2 %9577, %v11341_v5   ;;  %2374 = vperm.xlu0 %9576, %v11344_v0   ;;  %v16404_v5 = vld [vmem:[#allocation29_spill] sm:$0xff] }
 0x36c   : > { %2371 = vperm.xlu1 %9575, %v11351_v38   ;;  %v1798_v45 = vadd.f32 %v11056_v11, %v16404_v5  ;;  %v11383_v5 = vadd.f32 %v11082_v24, %v1806_v17  ;;  %v11400_v17 = vpop.permute.xlu1 %2266 }
 0x36e   : > { %v11371_v0 = vadd.f32 %v11145_v15, %v1798_v45  ;;  %16409 = vst [vmem:[#allocation37_spill] sm:$0xff] %v11383_v5  ;;  %v16411_v45 = vld [vmem:[#allocation30_spill] sm:$0xff] }
 0x370   : > { %16405 = vst [vmem:[#allocation29_spill] sm:$0xff] %v11371_v0 }
 0x373   : > { %2395 = vperm.xlu2 %9577, %v11361_v60   ;;  %2383 = vperm.xlu0 %9576, %v11364_v46   ;;  %v11386_v60 = vadd.f32 %v11162_v36, %v1802_v4  ;;  %v1801_v46 = vadd.f32 %v11056_v11, %v16411_v45  ;;  %v16413_v4 = vld [vmem:[#allocation40_spill] sm:$0xff]  ;;  %v1805_v45 = vadd.f32 %v11056_v11, %v16414_v34 }
 0x374   : > { %2380 = vperm.xlu1 %9575, %v11371_v0   ;;  %v1809_v48 = vadd.f32 %v11056_v11, %v16413_v4  ;;  %v16420_v0 = vld [vmem:[#allocation39_spill] sm:$0xff] }
 0x375   : > { %v11376_v3 = vpop.permute.xlu2 %2296  ;;  %16410 = vst [vmem:[#allocation33_spill] sm:$0xff] %v11386_v60  ;;  %v11395_v55 = vadd.f32 %v11152_v62, %v1801_v46  ;;  %v16417_v46 = vld [vmem:[#allocation32_spill] sm:$0xff] }
 0x376   : > { %16406 = vst [vmem:[#allocation143_spill] sm:$0xff] %v11376_v3  ;;  %v11407_v27 = vadd.f32 %v11105_v53, %v1809_v48  ;;  %v11424_v48 = vpop.permute.xlu1 %2272  ;;  %v16466_v3 = vld [vmem:[#allocation59_spill] sm:$0xff] }
 0x377   : > { %16412 = vst [vmem:[#allocation30_spill] sm:$0xff] %v11395_v55 }
 0x378   : > { %16415 = vst [vmem:[#allocation40_spill] sm:$0xff] %v11407_v27 }
 0x37b   : > { %2404 = vperm.xlu2 %9577, %v11383_v5   ;;  %2392 = vperm.xlu0 %9576, %v11386_v60   ;;  %v11410_v5 = vadd.f32 %v11069_v59, %v1805_v45  ;;  %v1804_v60 = vadd.f32 %v11056_v11, %v16417_v46  ;;  %v16419_v45 = vld [vmem:[#allocation43_spill] sm:$0xff]  ;;  %v1808_v46 = vadd.f32 %v11056_v11, %v16420_v0 }
 0x37c   : > { %2389 = vperm.xlu1 %9575, %v11395_v55   ;;  %v11414_v55 = vpop.permute.xlu0 %2275  ;;  %v1812_v52 = vadd.f32 %v11056_v11, %v16419_v45 }
 0x37d   : > { %v11398_v39 = vpop.permute.xlu2 %2305  ;;  %16416 = vst [vmem:[#allocation36_spill] sm:$0xff] %v11410_v5  ;;  %v11419_v4 = vadd.f32 %v11186_v37, %v1804_v60  ;;  %v16423_v60 = vld [vmem:[#allocation35_spill] sm:$0xff] }
 0x37e   : > { %v11431_v1 = vadd.f32 %v11112_v18, %v1812_v52  ;;  %v11448_v52 = vpop.permute.xlu1 %2281 }
 0x37f   : > { %16418 = vst [vmem:[#allocation32_spill] sm:$0xff] %v11419_v4 }
 0x380   : > { %16421 = vst [vmem:[#allocation43_spill] sm:$0xff] %v11431_v1 }
 0x383   : > { %2413 = vperm.xlu2 %9577, %v11407_v27   ;;  %2401 = vperm.xlu0 %9576, %v11410_v5   ;;  %v11434_v27 = vadd.f32 %v11084_v63, %v1808_v46  ;;  %v1807_v5 = vadd.f32 %v11056_v11, %v16423_v60  ;;  %v16425_v46 = vld [vmem:[#allocation46_spill] sm:$0xff]  ;;  %v1811_v60 = vadd.f32 %v11056_v11, %v16426_v7 }
 0x384   : > { %2398 = vperm.xlu1 %9575, %v11419_v4   ;;  %v11438_v4 = vpop.permute.xlu0 %2284  ;;  %v1815_v38 = vadd.f32 %v11056_v11, %v16425_v46 }
 0x385   : > { %v11422_v34 = vpop.permute.xlu2 %2314  ;;  %16422 = vst [vmem:[#allocation39_spill] sm:$0xff] %v11434_v27  ;;  %v11443_v45 = vadd.f32 %v11063_v12, %v1807_v5  ;;  %v16429_v5 = vld [vmem:[#allocation38_spill] sm:$0xff] }
 0x386   : > { %v11455_v51 = vadd.f32 %v11138_v8, %v1815_v38 }
 0x387   : > { %16424 = vst [vmem:[#allocation35_spill] sm:$0xff] %v11443_v45 }
 0x388   : > { %16427 = vst [vmem:[#allocation46_spill] sm:$0xff] %v11455_v51 }
 0x38b   : > { %2422 = vperm.xlu2 %9577, %v11431_v1   ;;  %2410 = vperm.xlu0 %9576, %v11434_v27   ;;  %v11458_v1 = vadd.f32 %v11129_v25, %v1811_v60  ;;  %v1810_v27 = vadd.f32 %v11056_v11, %v16429_v5  ;;  %v16431_v60 = vld [vmem:[#allocation49_spill] sm:$0xff]  ;;  %v1814_v5 = vadd.f32 %v11056_v11, %v16432_v56 }
 0x38c   : > { %2407 = vperm.xlu1 %9575, %v11443_v45   ;;  %v11467_v46 = vpop.permute.xlu0 %2293  ;;  %v1818_v47 = vadd.f32 %v11056_v11, %v16431_v60 }
 0x38d   : > { %v11446_v0 = vpop.permute.xlu2 %2323  ;;  %16428 = vst [vmem:[#allocation42_spill] sm:$0xff] %v11458_v1  ;;  %v11465_v45 = vadd.f32 %v11098_v10, %v1810_v27  ;;  %v11482_v27 = vadd.f32 %v11145_v15, %v1814_v5  ;;  %v1821_v5 = vadd.f32 %v11056_v11, %v10855_v26 }
 0x38e   : > { %v11472_v38 = vpop.permute.xlu1 %2290 }
 0x38f   : > { %16430 = vst [vmem:[#allocation38_spill] sm:$0xff] %v11465_v45 }
 0x390   : > { %16434 = vst [vmem:[#allocation45_spill] sm:$0xff] %v11482_v27 }
 0x393   : > { %2431 = vperm.xlu2 %9577, %v11455_v51   ;;  %2419 = vperm.xlu0 %9576, %v11458_v1   ;;  %v11479_v51 = vadd.f32 %v11162_v36, %v1818_v47  ;;  %v16435_v1 = vld [vmem:[#allocation41_spill] sm:$0xff] }
 0x394   : > { %2416 = vperm.xlu1 %9575, %v11465_v45   ;;  %v1813_v58 = vadd.f32 %v11056_v11, %v16435_v1  ;;  %v1817_v1 = vadd.f32 %v11056_v11, %v16440_v30 }
 0x395   : > { %v11470_v7 = vpop.permute.xlu2 %2332  ;;  %16433 = vst [vmem:[#allocation49_spill] sm:$0xff] %v11479_v51 }
 0x396   : > { %v11489_v45 = vadd.f32 %v11122_v29, %v1813_v58  ;;  %v11506_v58 = vadd.f32 %v11152_v62, %v1817_v1  ;;  %v16446_v1 = vld [vmem:[#allocation54_spill] sm:$0xff] }
 0x397   : > { %v1824_v16 = vadd.f32 %v11056_v11, %v16446_v1 }
 0x398   : > { %16436 = vst [vmem:[#allocation41_spill] sm:$0xff] %v11489_v45 }
 0x399   : > { %16442 = vst [vmem:[#allocation147_spill] sm:$0xff] %v11506_v58 }
 0x39b   : > { %2440 = vperm.xlu2 %9577, %v11479_v51   ;;  %2428 = vperm.xlu0 %9576, %v11482_v27   ;;  %v11503_v51 = vadd.f32 %v11069_v59, %v1821_v5  ;;  %v16443_v27 = vld [vmem:[#allocation44_spill] sm:$0xff] }
 0x39c   : > { %2425 = vperm.xlu1 %9575, %v11489_v45   ;;  %v1816_v45 = vadd.f32 %v11056_v11, %v16443_v27  ;;  %v1820_v27 = vadd.f32 %v11056_v11, %v16447_v22 }
 0x39d   : > { %v11492_v60 = vpop.permute.xlu2 %2341  ;;  %v11494_v56 = vpop.permute.xlu0 %2302  ;;  %16441 = vst [vmem:[#allocation48_spill] sm:$0xff] %v11503_v51 }
 0x39e   : > { %16437 = vst [vmem:[#allocation144_spill] sm:$0xff] %v11492_v60  ;;  %v11496_v47 = vpop.permute.xlu1 %2299  ;;  %v11513_v19 = vadd.f32 %v11169_v61, %v1816_v45  ;;  %v11530_v45 = vadd.f32 %v11186_v37, %v1820_v27  ;;  %v16452_v27 = vld [vmem:[#allocation57_spill] sm:$0xff]  ;;  %v16459_v60 = vld [vmem:[#allocation56_spill] sm:$0xff] }
 0x39f   : > { %16438 = vst [vmem:[#allocation145_spill] sm:$0xff] %v11494_v56  ;;  %v1827_v35 = vadd.f32 %v11056_v11, %v16452_v27 }
 0x3a0   : > { %16439 = vst [vmem:[#allocation146_spill] sm:$0xff] %v11496_v47 }
 0x3a1   : > { %16444 = vst [vmem:[#allocation44_spill] sm:$0xff] %v11513_v19 }
 0x3a2   : > { %16449 = vst [vmem:[#allocation51_spill] sm:$0xff] %v11530_v45 }
 0x3a3   : > { %2449 = vperm.xlu2 %9577, %v11503_v51   ;;  %2437 = vperm.xlu0 %9576, %v11506_v58   ;;  %v11527_v51 = vadd.f32 %v11084_v63, %v1824_v16  ;;  %v16450_v58 = vld [vmem:[#allocation47_spill] sm:$0xff] }
 0x3a4   : > { %2434 = vperm.xlu1 %9575, %v11513_v19   ;;  %v1819_v19 = vadd.f32 %v11056_v11, %v16450_v58  ;;  %v1823_v58 = vadd.f32 %v11056_v11, %v16453_v57 }
 0x3a5   : > { %v11516_v26 = vpop.permute.xlu2 %2350  ;;  %v11518_v30 = vpop.permute.xlu0 %2311  ;;  %16448 = vst [vmem:[#allocation54_spill] sm:$0xff] %v11527_v51 }
 0x3a6   : > { %16445 = vst [vmem:[#allocation148_spill] sm:$0xff] %v11516_v26  ;;  %v11520_v5 = vpop.permute.xlu1 %2308  ;;  %v11537_v14 = vadd.f32 %v11196_v6, %v1819_v19  ;;  %v11554_v19 = vadd.f32 %v11063_v12, %v1823_v58  ;;  %v16458_v58 = vld [vmem:[#allocation60_spill] sm:$0xff] }
 0x3a7   : > { %v1830_v56 = vadd.f32 %v11056_v11, %v16458_v58 }
 0x3a8   : > { %16451 = vst [vmem:[#allocation47_spill] sm:$0xff] %v11537_v14 }
 0x3a9   : > { %16455 = vst [vmem:[#allocation53_spill] sm:$0xff] %v11554_v19 }
 0x3ab   : > { %2458 = vperm.xlu2 %9577, %v11527_v51   ;;  %2446 = vperm.xlu0 %9576, %v11530_v45   ;;  %v11551_v51 = vadd.f32 %v11129_v25, %v1827_v35  ;;  %v16456_v45 = vld [vmem:[#allocation50_spill] sm:$0xff] }
 0x3ac   : > { %2443 = vperm.xlu1 %9575, %v11537_v14   ;;  %v1822_v14 = vadd.f32 %v11056_v11, %v16456_v45  ;;  %v1826_v45 = vadd.f32 %v11056_v11, %v16459_v60 }
 0x3ad   : > { %v11540_v1 = vpop.permute.xlu2 %2359  ;;  %v11542_v22 = vpop.permute.xlu0 %2320  ;;  %16454 = vst [vmem:[#allocation57_spill] sm:$0xff] %v11551_v51 }
 0x3ae   : > { %v11544_v16 = vpop.permute.xlu1 %2317  ;;  %v11561_v26 = vadd.f32 %v11082_v24, %v1822_v14  ;;  %v11578_v14 = vadd.f32 %v11098_v10, %v1826_v45  ;;  %v1833_v45 = vadd.f32 %v11056_v11, %v10903_v50 }
 0x3b0   : > { %16457 = vst [vmem:[#allocation50_spill] sm:$0xff] %v11561_v26 }
 0x3b1   : > { %16461 = vst [vmem:[#allocation56_spill] sm:$0xff] %v11578_v14 }
 0x3b3   : > { %2467 = vperm.xlu2 %9577, %v11551_v51   ;;  %2455 = vperm.xlu0 %9576, %v11554_v19   ;;  %v11575_v51 = vadd.f32 %v11145_v15, %v1830_v56  ;;  %v16462_v19 = vld [vmem:[#allocation52_spill] sm:$0xff] }
 0x3b4   : > { %2452 = vperm.xlu1 %9575, %v11561_v26   ;;  %v1825_v26 = vadd.f32 %v11056_v11, %v16462_v19  ;;  %v1829_v19 = vadd.f32 %v11056_v11, %v16466_v3 }
 0x3b5   : > { %v11564_v27 = vpop.permute.xlu2 %2368  ;;  %v11566_v57 = vpop.permute.xlu0 %2329  ;;  %16460 = vst [vmem:[#allocation60_spill] sm:$0xff] %v11575_v51 }
 0x3b6   : > { %v11568_v35 = vpop.permute.xlu1 %2326  ;;  %v11585_v47 = vadd.f32 %v11105_v53, %v1825_v26  ;;  %v11602_v26 = vadd.f32 %v11122_v29, %v1829_v19  ;;  %v1836_v19 = vadd.f32 %v11056_v11, %v10921_v2 }
 0x3b8   : > { %16463 = vst [vmem:[#allocation52_spill] sm:$0xff] %v11585_v47 }
 0x3b9   : > { %16468 = vst [vmem:[#allocation151_spill] sm:$0xff] %v11602_v26 }
 0x3bb   : > { %2476 = vperm.xlu2 %9577, %v11575_v51   ;;  %2464 = vperm.xlu0 %9576, %v11578_v14   ;;  %v11599_v51 = vadd.f32 %v11152_v62, %v1833_v45  ;;  %v16469_v14 = vld [vmem:[#allocation55_spill] sm:$0xff] }
 0x3bc   : > { %2461 = vperm.xlu1 %9575, %v11585_v47   ;;  %v1828_v47 = vadd.f32 %v11056_v11, %v16469_v14 }
 0x3bd   : > { %v11588_v58 = vpop.permute.xlu2 %2377  ;;  %v11590_v60 = vpop.permute.xlu0 %2338  ;;  %16467 = vst [vmem:[#allocation59_spill] sm:$0xff] %v11599_v51 }
 0x3be   : > { %16464 = vst [vmem:[#allocation149_spill] sm:$0xff] %v11588_v58  ;;  %v11592_v56 = vpop.permute.xlu1 %2335  ;;  %v11609_v58 = vadd.f32 %v11112_v18, %v1828_v47 }
 0x3bf   : > { %16465 = vst [vmem:[#allocation150_spill] sm:$0xff] %v11590_v60  ;;  %v16473_v60 = vld [vmem:[#allocation62_spill] sm:$0xff] }
 0x3c0   : > { %16470 = vst [vmem:[#allocation55_spill] sm:$0xff] %v11609_v58  ;;  %v1832_v14 = vadd.f32 %v11056_v11, %v16473_v60 }
 0x3c2   : > { %v11626_v47 = vadd.f32 %v11169_v61, %v1832_v14  ;;  %v1839_v14 = vadd.f32 %v11056_v11, %v10932_v23 }
 0x3c3   : > { %2485 = vperm.xlu2 %9577, %v11599_v51   ;;  %2473 = vperm.xlu0 %9576, %v11602_v26   ;;  %v11623_v51 = vadd.f32 %v11186_v37, %v1836_v19  ;;  %v16476_v26 = vld [vmem:[#allocation58_spill] sm:$0xff] }
 0x3c4   : > { %2470 = vperm.xlu1 %9575, %v11609_v58   ;;  %16475 = vst [vmem:[#allocation154_spill] sm:$0xff] %v11626_v47  ;;  %v1831_v58 = vadd.f32 %v11056_v11, %v16476_v26  ;;  %v1835_v26 = vadd.f32 %v11056_v11, %v10919_v40 }
 0x3c5   : > { %v11612_v50 = vpop.permute.xlu2 %2386  ;;  %v11614_v3 = vpop.permute.xlu0 %2347  ;;  %16474 = vst [vmem:[#allocation62_spill] sm:$0xff] %v11623_v51 }
 0x3c6   : > { %16471 = vst [vmem:[#allocation152_spill] sm:$0xff] %v11612_v50  ;;  %v11616_v45 = vpop.permute.xlu1 %2344  ;;  %v11633_v50 = vadd.f32 %v11138_v8, %v1831_v58  ;;  %v11650_v58 = vadd.f32 %v11196_v6, %v1835_v26  ;;  %v1842_v26 = vadd.f32 %v11056_v11, %v10940_v43 }
 0x3c7   : > { %16472 = vst [vmem:[#allocation153_spill] sm:$0xff] %v11614_v3  ;;  %v16494_v3 = vld [vmem:[#allocation65_spill] sm:$0xff] }
 0x3c8   : > { %16477 = vst [vmem:[#allocation58_spill] sm:$0xff] %v11633_v50 }
 0x3c9   : > { %16480 = vst [vmem:[#allocation157_spill] sm:$0xff] %v11650_v58 }
 0x3cb   : > { %2494 = vperm.xlu2 %9577, %v11623_v51   ;;  %2482 = vperm.xlu0 %9576, %v11626_v47   ;;  %v11647_v51 = vadd.f32 %v11063_v12, %v1839_v14  ;;  %v16481_v47 = vld [vmem:[#allocation61_spill] sm:$0xff] }
 0x3cc   : > { %2479 = vperm.xlu1 %9575, %v11633_v50   ;;  %v1834_v50 = vadd.f32 %v11056_v11, %v16481_v47  ;;  %v1838_v47 = vadd.f32 %v11056_v11, %v10930_v54 }
 0x3cd   : > { %v11636_v2 = vpop.permute.xlu2 %2395  ;;  %v11638_v60 = vpop.permute.xlu0 %2356  ;;  %16479 = vst [vmem:[#allocation156_spill] sm:$0xff] %v11647_v51 }
 0x3ce   : > { %16478 = vst [vmem:[#allocation155_spill] sm:$0xff] %v11636_v2  ;;  %v11640_v19 = vpop.permute.xlu1 %2353  ;;  %v11657_v2 = vadd.f32 %v11162_v36, %v1834_v50  ;;  %v11674_v50 = vadd.f32 %v11082_v24, %v1838_v47  ;;  %v1845_v47 = vadd.f32 %v11056_v11, %v10946_v32 }
 0x3d0   : > { %16482 = vst [vmem:[#allocation61_spill] sm:$0xff] %v11657_v2 }
 0x3d1   : > { %16485 = vst [vmem:[#allocation160_spill] sm:$0xff] %v11674_v50 }
 0x3d3   : > { %2503 = vperm.xlu2 %9577, %v11647_v51   ;;  %2491 = vperm.xlu0 %9576, %v11650_v58   ;;  %v11671_v51 = vadd.f32 %v11098_v10, %v1842_v26  ;;  %v1837_v58 = vadd.f32 %v11056_v11, %v10917_v28  ;;  %v1841_v28 = vadd.f32 %v11056_v11, %v10938_v20 }
 0x3d4   : > { %2488 = vperm.xlu1 %9575, %v11657_v2  }
 0x3d5   : > { %v11660_v23 = vpop.permute.xlu2 %2404  ;;  %v11662_v40 = vpop.permute.xlu0 %2365  ;;  %16484 = vst [vmem:[#allocation159_spill] sm:$0xff] %v11671_v51  ;;  %v11681_v2 = vadd.f32 %v11069_v59, %v1837_v58  ;;  %v11698_v58 = vadd.f32 %v11105_v53, %v1841_v28  ;;  %v16493_v28 = vld [vmem:[#allocation68_spill] sm:$0xff] }
 0x3d6   : > { %16483 = vst [vmem:[#allocation158_spill] sm:$0xff] %v11660_v23  ;;  %v11664_v14 = vpop.permute.xlu1 %2362  ;;  %v16503_v23 = vld [vmem:[#allocation67_spill] sm:$0xff] }
 0x3d7   : > { %16486 = vst [vmem:[#allocation161_spill] sm:$0xff] %v11681_v2 }
 0x3d8   : > { %16489 = vst [vmem:[#allocation164_spill] sm:$0xff] %v11698_v58 }
 0x3db   : > { %2512 = vperm.xlu2 %9577, %v11671_v51   ;;  %2500 = vperm.xlu0 %9576, %v11674_v50   ;;  %v11695_v51 = vadd.f32 %v11122_v29, %v1845_v47  ;;  %v1840_v50 = vadd.f32 %v11056_v11, %v10928_v33  ;;  %v1844_v33 = vadd.f32 %v11056_v11, %v16494_v3 }
 0x3dc   : > { %2497 = vperm.xlu1 %9575, %v11681_v2  }
 0x3dd   : > { %v11684_v43 = vpop.permute.xlu2 %2413  ;;  %v11686_v54 = vpop.permute.xlu0 %2374  ;;  %16488 = vst [vmem:[#allocation163_spill] sm:$0xff] %v11695_v51  ;;  %v11705_v2 = vadd.f32 %v11084_v63, %v1840_v50  ;;  %v11722_v50 = vadd.f32 %v11112_v18, %v1844_v33  ;;  %v16502_v33 = vld [vmem:[#allocation71_spill] sm:$0xff] }
 0x3de   : > { %16487 = vst [vmem:[#allocation162_spill] sm:$0xff] %v11684_v43  ;;  %v11688_v26 = vpop.permute.xlu1 %2371  ;;  %v1848_v43 = vadd.f32 %v11056_v11, %v16493_v28 }
 0x3df   : > { %16490 = vst [vmem:[#allocation165_spill] sm:$0xff] %v11705_v2 }
 0x3e0   : > { %16496 = vst [vmem:[#allocation65_spill] sm:$0xff] %v11722_v50 }
 0x3e3   : > { %2521 = vperm.xlu2 %9577, %v11695_v51   ;;  %2509 = vperm.xlu0 %9576, %v11698_v58   ;;  %v11719_v51 = vadd.f32 %v11169_v61, %v1848_v43  ;;  %v16497_v58 = vld [vmem:[#allocation63_spill] sm:$0xff] }
 0x3e4   : > { %2506 = vperm.xlu1 %9575, %v11705_v2   ;;  %v1843_v2 = vadd.f32 %v11056_v11, %v16497_v58  ;;  %v1847_v58 = vadd.f32 %v11056_v11, %v16503_v23 }
 0x3e5   : > { %v11708_v32 = vpop.permute.xlu2 %2422  ;;  %v11710_v20 = vpop.permute.xlu0 %2383  ;;  %16495 = vst [vmem:[#allocation68_spill] sm:$0xff] %v11719_v51 }
 0x3e6   : > { %16491 = vst [vmem:[#allocation166_spill] sm:$0xff] %v11708_v32  ;;  %v11712_v47 = vpop.permute.xlu1 %2380  ;;  %v11729_v32 = vadd.f32 %v11129_v25, %v1843_v2  ;;  %v11746_v2 = vadd.f32 %v11138_v8, %v1847_v58  ;;  %v16511_v58 = vld [vmem:[#allocation74_spill] sm:$0xff] }
 0x3e7   : > { %16492 = vst [vmem:[#allocation167_spill] sm:$0xff] %v11710_v20  ;;  %v1851_v20 = vadd.f32 %v11056_v11, %v16502_v33 }
 0x3e8   : > { %16498 = vst [vmem:[#allocation63_spill] sm:$0xff] %v11729_v32 }
 0x3e9   : > { %16505 = vst [vmem:[#allocation67_spill] sm:$0xff] %v11746_v2 }
 0x3eb   : > { %2530 = vperm.xlu2 %9577, %v11719_v51   ;;  %2518 = vperm.xlu0 %9576, %v11722_v50   ;;  %v11743_v51 = vadd.f32 %v11196_v6, %v1851_v20  ;;  %v16506_v50 = vld [vmem:[#allocation64_spill] sm:$0xff] }
 0x3ec   : > { %2515 = vperm.xlu1 %9575, %v11729_v32   ;;  %v1846_v32 = vadd.f32 %v11056_v11, %v16506_v50 }
 0x3ed   : > { %v11732_v28 = vpop.permute.xlu2 %2431  ;;  %v11734_v3 = vpop.permute.xlu0 %2392  ;;  %16504 = vst [vmem:[#allocation71_spill] sm:$0xff] %v11743_v51 }
 0x3ee   : > { %16499 = vst [vmem:[#allocation168_spill] sm:$0xff] %v11732_v28  ;;  %v11736_v43 = vpop.permute.xlu1 %2389  ;;  %v11753_v28 = vadd.f32 %v11145_v15, %v1846_v32 }
 0x3ef   : > { %16500 = vst [vmem:[#allocation169_spill] sm:$0xff] %v11734_v3  ;;  %v1854_v3 = vadd.f32 %v11056_v11, %v16511_v58 }
 0x3f0   : > { %16501 = vst [vmem:[#allocation170_spill] sm:$0xff] %v11736_v43  ;;  %v16512_v43 = vld [vmem:[#allocation70_spill] sm:$0xff] }
 0x3f1   : > { %16507 = vst [vmem:[#allocation64_spill] sm:$0xff] %v11753_v28  ;;  %v1850_v50 = vadd.f32 %v11056_v11, %v16512_v43 }
 0x3f3   : > { %2539 = vperm.xlu2 %9577, %v11743_v51   ;;  %2527 = vperm.xlu0 %9576, %v11746_v2   ;;  %v11767_v51 = vadd.f32 %v11082_v24, %v1854_v3  ;;  %v11770_v32 = vadd.f32 %v11162_v36, %v1850_v50  ;;  %v16515_v2 = vld [vmem:[#allocation66_spill] sm:$0xff]  ;;  %v16520_v50 = vld [vmem:[#allocation77_spill] sm:$0xff] }
 0x3f4   : > { %2524 = vperm.xlu1 %9575, %v11753_v28   ;;  %v1849_v28 = vadd.f32 %v11056_v11, %v16515_v2 }
 0x3f5   : > { %v11756_v33 = vpop.permute.xlu2 %2440  ;;  %v11758_v23 = vpop.permute.xlu0 %2401  ;;  %16513 = vst [vmem:[#allocation74_spill] sm:$0xff] %v11767_v51 }
 0x3f6   : > { %16508 = vst [vmem:[#allocation171_spill] sm:$0xff] %v11756_v33  ;;  %v11760_v20 = vpop.permute.xlu1 %2398  ;;  %v1857_v33 = vadd.f32 %v11056_v11, %v16520_v50 }
 0x3f7   : > { %16509 = vst [vmem:[#allocation172_spill] sm:$0xff] %v11758_v23  ;;  %v16521_v23 = vld [vmem:[#allocation73_spill] sm:$0xff] }
 0x3f8   : > { %16510 = vst [vmem:[#allocation173_spill] sm:$0xff] %v11760_v20  ;;  %v11777_v20 = vadd.f32 %v11152_v62, %v1849_v28  ;;  %v1853_v2 = vadd.f32 %v11056_v11, %v16521_v23 }
 0x3f9   : > { %16514 = vst [vmem:[#allocation70_spill] sm:$0xff] %v11770_v32 }
 0x3fa   : > { %16516 = vst [vmem:[#allocation66_spill] sm:$0xff] %v11777_v20  ;;  %v11794_v28 = vadd.f32 %v11069_v59, %v1853_v2  ;;  %v16529_v2 = vld [vmem:[#allocation80_spill] sm:$0xff] }
 0x3fb   : > { %2548 = vperm.xlu2 %9577, %v11767_v51   ;;  %2536 = vperm.xlu0 %9576, %v11770_v32   ;;  %v11791_v51 = vadd.f32 %v11105_v53, %v1857_v33  ;;  %v16524_v32 = vld [vmem:[#allocation69_spill] sm:$0xff] }
 0x3fc   : > { %2533 = vperm.xlu1 %9575, %v11777_v20   ;;  %16523 = vst [vmem:[#allocation73_spill] sm:$0xff] %v11794_v28  ;;  %v1852_v20 = vadd.f32 %v11056_v11, %v16524_v32 }
 0x3fd   : > { %v11780_v58 = vpop.permute.xlu2 %2449  ;;  %v11782_v43 = vpop.permute.xlu0 %2410  ;;  %16522 = vst [vmem:[#allocation77_spill] sm:$0xff] %v11791_v51 }
 0x3fe   : > { %16517 = vst [vmem:[#allocation174_spill] sm:$0xff] %v11780_v58  ;;  %v11784_v3 = vpop.permute.xlu1 %2407  ;;  %v1860_v58 = vadd.f32 %v11056_v11, %v16529_v2 }
 0x3ff   : > { %16518 = vst [vmem:[#allocation175_spill] sm:$0xff] %v11782_v43  ;;  %v11801_v43 = vadd.f32 %v11186_v37, %v1852_v20 }
 0x400   : > { %16519 = vst [vmem:[#allocation176_spill] sm:$0xff] %v11784_v3  ;;  %v16530_v3 = vld [vmem:[#allocation76_spill] sm:$0xff] }
 0x401   : > { %16525 = vst [vmem:[#allocation69_spill] sm:$0xff] %v11801_v43  ;;  %v1856_v32 = vadd.f32 %v11056_v11, %v16530_v3 }
 0x403   : > { %2557 = vperm.xlu2 %9577, %v11791_v51   ;;  %2545 = vperm.xlu0 %9576, %v11794_v28   ;;  %v11815_v51 = vadd.f32 %v11112_v18, %v1860_v58  ;;  %v11818_v20 = vadd.f32 %v11084_v63, %v1856_v32  ;;  %v16533_v28 = vld [vmem:[#allocation72_spill] sm:$0xff]  ;;  %v16538_v32 = vld [vmem:[#allocation83_spill] sm:$0xff] }
 0x404   : > { %2542 = vperm.xlu1 %9575, %v11801_v43   ;;  %v1855_v43 = vadd.f32 %v11056_v11, %v16533_v28 }
 0x405   : > { %v11804_v50 = vpop.permute.xlu2 %2458  ;;  %v11806_v23 = vpop.permute.xlu0 %2419  ;;  %16531 = vst [vmem:[#allocation80_spill] sm:$0xff] %v11815_v51 }
 0x406   : > { %16526 = vst [vmem:[#allocation177_spill] sm:$0xff] %v11804_v50  ;;  %v11808_v33 = vpop.permute.xlu1 %2416  ;;  %v1863_v50 = vadd.f32 %v11056_v11, %v16538_v32 }
 0x407   : > { %16527 = vst [vmem:[#allocation178_spill] sm:$0xff] %v11806_v23  ;;  %v11825_v23 = vadd.f32 %v11063_v12, %v1855_v43 }
 0x408   : > { %16528 = vst [vmem:[#allocation179_spill] sm:$0xff] %v11808_v33  ;;  %v16539_v33 = vld [vmem:[#allocation79_spill] sm:$0xff] }
 0x409   : > { %16532 = vst [vmem:[#allocation76_spill] sm:$0xff] %v11818_v20  ;;  %v1859_v28 = vadd.f32 %v11056_v11, %v16539_v33 }
 0x40a   : > { %16534 = vst [vmem:[#allocation72_spill] sm:$0xff] %v11825_v23 }
 0x40b   : > { %2566 = vperm.xlu2 %9577, %v11815_v51   ;;  %2554 = vperm.xlu0 %9576, %v11818_v20   ;;  %v11839_v51 = vadd.f32 %v11138_v8, %v1863_v50  ;;  %v11842_v43 = vadd.f32 %v11129_v25, %v1859_v28  ;;  %v16542_v20 = vld [vmem:[#allocation75_spill] sm:$0xff]  ;;  %v16547_v28 = vld [vmem:[#allocation86_spill] sm:$0xff] }
 0x40c   : > { %2551 = vperm.xlu1 %9575, %v11825_v23   ;;  %v1858_v23 = vadd.f32 %v11056_v11, %v16542_v20 }
 0x40d   : > { %v11828_v2 = vpop.permute.xlu2 %2467  ;;  %v11830_v3 = vpop.permute.xlu0 %2428  ;;  %16540 = vst [vmem:[#allocation83_spill] sm:$0xff] %v11839_v51 }
 0x40e   : > { %16535 = vst [vmem:[#allocation180_spill] sm:$0xff] %v11828_v2  ;;  %v11832_v58 = vpop.permute.xlu1 %2425  ;;  %v1866_v2 = vadd.f32 %v11056_v11, %v16547_v28 }
 0x40f   : > { %16536 = vst [vmem:[#allocation181_spill] sm:$0xff] %v11830_v3  ;;  %v11849_v3 = vadd.f32 %v11098_v10, %v1858_v23 }
 0x410   : > { %16537 = vst [vmem:[#allocation182_spill] sm:$0xff] %v11832_v58  ;;  %v16548_v58 = vld [vmem:[#allocation82_spill] sm:$0xff] }
 0x411   : > { %16541 = vst [vmem:[#allocation79_spill] sm:$0xff] %v11842_v43  ;;  %v1862_v20 = vadd.f32 %v11056_v11, %v16548_v58 }
 0x412   : > { %16543 = vst [vmem:[#allocation75_spill] sm:$0xff] %v11849_v3 }
 0x413   : > { %2575 = vperm.xlu2 %9577, %v11839_v51   ;;  %2563 = vperm.xlu0 %9576, %v11842_v43   ;;  %v11863_v51 = vadd.f32 %v11162_v36, %v1866_v2  ;;  %v11866_v23 = vadd.f32 %v11145_v15, %v1862_v20  ;;  %v16551_v43 = vld [vmem:[#allocation78_spill] sm:$0xff]  ;;  %v16556_v20 = vld [vmem:[#allocation89_spill] sm:$0xff] }
 0x414   : > { %2560 = vperm.xlu1 %9575, %v11849_v3   ;;  %v1861_v3 = vadd.f32 %v11056_v11, %v16551_v43 }
 0x415   : > { %v11852_v32 = vpop.permute.xlu2 %2476  ;;  %v11854_v33 = vpop.permute.xlu0 %2437  ;;  %16549 = vst [vmem:[#allocation86_spill] sm:$0xff] %v11863_v51 }
 0x416   : > { %16544 = vst [vmem:[#allocation183_spill] sm:$0xff] %v11852_v32  ;;  %v11856_v50 = vpop.permute.xlu1 %2434  ;;  %v1869_v32 = vadd.f32 %v11056_v11, %v16556_v20 }
 0x417   : > { %16545 = vst [vmem:[#allocation184_spill] sm:$0xff] %v11854_v33  ;;  %v11873_v33 = vadd.f32 %v11122_v29, %v1861_v3 }
 0x418   : > { %16546 = vst [vmem:[#allocation185_spill] sm:$0xff] %v11856_v50  ;;  %v16557_v50 = vld [vmem:[#allocation85_spill] sm:$0xff] }
 0x419   : > { %16550 = vst [vmem:[#allocation82_spill] sm:$0xff] %v11866_v23  ;;  %v1865_v43 = vadd.f32 %v11056_v11, %v16557_v50 }
 0x41a   : > { %16552 = vst [vmem:[#allocation78_spill] sm:$0xff] %v11873_v33 }
 0x41b   : > { %2584 = vperm.xlu2 %9577, %v11863_v51   ;;  %2572 = vperm.xlu0 %9576, %v11866_v23   ;;  %v11887_v51 = vadd.f32 %v11069_v59, %v1869_v32  ;;  %v11890_v3 = vadd.f32 %v11152_v62, %v1865_v43  ;;  %v16560_v23 = vld [vmem:[#allocation81_spill] sm:$0xff]  ;;  %v1872_v32 = vadd.f32 %v11056_v11, %v11029_v9  ;;  %v16563_v43 = vld [vmem:[#allocation88_spill] sm:$0xff] }
 0x41c   : > { %2569 = vperm.xlu1 %9575, %v11873_v33   ;;  %v1864_v33 = vadd.f32 %v11056_v11, %v16560_v23  ;;  %v1868_v23 = vadd.f32 %v11056_v11, %v16563_v43 }
 0x41d   : > { %v11876_v28 = vpop.permute.xlu2 %2485  ;;  %v11878_v58 = vpop.permute.xlu0 %2446  ;;  %16558 = vst [vmem:[#allocation89_spill] sm:$0xff] %v11887_v51 }
 0x41e   : > { %16553 = vst [vmem:[#allocation186_spill] sm:$0xff] %v11876_v28  ;;  %v11880_v2 = vpop.permute.xlu1 %2443 }
 0x41f   : > { %16554 = vst [vmem:[#allocation187_spill] sm:$0xff] %v11878_v58  ;;  %v11897_v58 = vadd.f32 %v11169_v61, %v1864_v33  ;;  %v11914_v33 = vadd.f32 %v11186_v37, %v1868_v23  ;;  %v16569_v23 = vld [vmem:[#allocation91_spill] sm:$0xff] }
 0x420   : > { %16555 = vst [vmem:[#allocation188_spill] sm:$0xff] %v11880_v2  ;;  %v1871_v2 = vadd.f32 %v11056_v11, %v16569_v23 }
 0x421   : > { %16559 = vst [vmem:[#allocation85_spill] sm:$0xff] %v11890_v3 }
 0x422   : > { %16561 = vst [vmem:[#allocation81_spill] sm:$0xff] %v11897_v58 }
 0x423   : > { %2593 = vperm.xlu2 %9577, %v11887_v51   ;;  %2581 = vperm.xlu0 %9576, %v11890_v3   ;;  %v11911_v51 = vadd.f32 %v11084_v63, %v1872_v32  ;;  %16565 = vst [vmem:[#allocation190_spill] sm:$0xff] %v11914_v33  ;;  %v16566_v3 = vld [vmem:[#allocation84_spill] sm:$0xff]  ;;  %v16568_v63 = vld [vmem:[#allocation94_spill] sm:$0xff] }
 0x424   : > { %2578 = vperm.xlu1 %9575, %v11897_v58   ;;  %v1867_v58 = vadd.f32 %v11056_v11, %v16566_v3  ;;  %v1875_v32 = vadd.f32 %v11056_v11, %v16568_v63 }
 0x425   : > { %v11900_v20 = vpop.permute.xlu0 %2455  ;;  %v11902_v50 = vpop.permute.xlu2 %2494  ;;  %16564 = vst [vmem:[#allocation88_spill] sm:$0xff] %v11911_v51 }
 0x426   : > { %16562 = vst [vmem:[#allocation189_spill] sm:$0xff] %v11902_v50  ;;  %v11904_v59 = vpop.permute.xlu1 %2452  ;;  %v11921_v50 = vadd.f32 %v11196_v6, %v1867_v58  ;;  %v11938_v58 = vadd.f32 %v11063_v12, %v1871_v2  ;;  %v16575_v2 = vld [vmem:[#allocation93_spill] sm:$0xff] }
 0x428   : > { %16567 = vst [vmem:[#allocation84_spill] sm:$0xff] %v11921_v50 }
 0x429   : > { %16571 = vst [vmem:[#allocation91_spill] sm:$0xff] %v11938_v58 }
 0x42b   : > { %2602 = vperm.xlu2 %9577, %v11911_v51   ;;  %2590 = vperm.xlu0 %9576, %v11914_v33   ;;  %v11935_v51 = vadd.f32 %v11129_v25, %v1875_v32  ;;  %v16572_v33 = vld [vmem:[#allocation87_spill] sm:$0xff]  ;;  %v16574_v25 = vld [vmem:[#allocation97_spill] sm:$0xff]  ;;  %v1874_v32 = vadd.f32 %v11056_v11, %v16575_v2 }
 0x42c   : > { %2587 = vperm.xlu1 %9575, %v11921_v50   ;;  %v1870_v50 = vadd.f32 %v11056_v11, %v16572_v33  ;;  %v1878_v12 = vadd.f32 %v11056_v11, %v16574_v25 }
 0x42d   : > { %v11924_v9 = vpop.permute.xlu0 %2464  ;;  %v11932_v3 = vpop.permute.xlu2 %2503  ;;  %16570 = vst [vmem:[#allocation94_spill] sm:$0xff] %v11935_v51 }
 0x42e   : > { %v11926_v43 = vpop.permute.xlu1 %2461  ;;  %v11945_v63 = vadd.f32 %v11082_v24, %v1870_v50  ;;  %v11957_v33 = vadd.f32 %v11145_v15, %v1878_v12  ;;  %v16578_v24 = vld [vmem:[#allocation90_spill] sm:$0xff]  ;;  %v16582_v12 = vld [vmem:[#allocation96_spill] sm:$0xff] }
 0x42f   : > { %v1873_v50 = vadd.f32 %v11056_v11, %v16578_v24 }
 0x430   : > { %16573 = vst [vmem:[#allocation87_spill] sm:$0xff] %v11945_v63 }
 0x431   : > { %16576 = vst [vmem:[#allocation97_spill] sm:$0xff] %v11957_v33  ;;  %v11969_v25 = vadd.f32 %v11105_v53, %v1873_v50  ;;  %v16585_v53 = vld [vmem:[#allocation92_spill] sm:$0xff] }
 0x432   : > { %v1876_v50 = vadd.f32 %v11056_v11, %v16585_v53 }
 0x433   : > { %2611 = vperm.xlu2 %9577, %v11935_v51   ;;  %2599 = vperm.xlu0 %9576, %v11938_v58   ;;  %v11960_v51 = vadd.f32 %v11098_v10, %v1874_v32  ;;  %16579 = vst [vmem:[#allocation90_spill] sm:$0xff] %v11969_v25  ;;  %v1881_v10 = vadd.f32 %v11056_v11, %v11054_v49 }
 0x434   : > { %2596 = vperm.xlu1 %9575, %v11945_v63   ;;  %v1877_v32 = vadd.f32 %v11056_v11, %v16582_v12 }
 0x435   : > { %v11948_v23 = vpop.permute.xlu0 %2473  ;;  %16577 = vst [vmem:[#allocation93_spill] sm:$0xff] %v11960_v51  ;;  %v11964_v58 = vpop.permute.xlu2 %2512  ;;  %v11981_v24 = vadd.f32 %v11152_v62, %v1881_v10  ;;  %v16589_v62 = vld [vmem:[#allocation101_spill] sm:$0xff] }
 0x436   : > { %v11950_v28 = vpop.permute.xlu1 %2470 }
 0x437   : > { %16583 = vst [vmem:[#allocation96_spill] sm:$0xff] %v11981_v24 }
 0x43b   : > { %2620 = vperm.xlu2 %9577, %v11957_v33   ;;  %2608 = vperm.xlu0 %9576, %v11960_v51   ;;  %v11984_v33 = vadd.f32 %v11122_v29, %v1877_v32  ;;  %v11991_v51 = vadd.f32 %v11112_v18, %v1876_v50  ;;  %v1884_v29 = vadd.f32 %v11056_v11, %v16589_v62  ;;  %v16591_v32 = vld [vmem:[#allocation99_spill] sm:$0xff] }
 0x43c   : > { %2605 = vperm.xlu1 %9575, %v11969_v25   ;;  %v1880_v53 = vadd.f32 %v11056_v11, %v16591_v32  ;;  %v16594_v50 = vld [vmem:[#allocation95_spill] sm:$0xff]  ;;  %v16607_v25 = vlaneseq }
 0x43d   : > { %v11972_v2 = vpop.permute.xlu0 %2482  ;;  %16584 = vst [vmem:[#allocation193_spill] sm:$0xff] %v11984_v33  ;;  %v11993_v49 = vpop.permute.xlu2 %2521 }
 0x43e   : > { %16580 = vst [vmem:[#allocation191_spill] sm:$0xff] %v11972_v2  ;;  %v11974_v15 = vpop.permute.xlu1 %2479  ;;  %v12008_v18 = vadd.f32 %v11169_v61, %v1880_v53  ;;  %v16597_v61 = vld [vmem:[#allocation100_spill] sm:$0xff]  ;;  %v12061_v63 = vand.u32 127, %v16607_v25 }
 0x43f   : > { %16581 = vst [vmem:[#allocation192_spill] sm:$0xff] %v11974_v15 }
 0x440   : > { %16586 = vst [vmem:[#allocation92_spill] sm:$0xff] %v11991_v51  ;;  %v2642_v25 = vperm.slane %v11373_v41, %v12061_v63  ;;  %v2703_v2 = vperm.slane %v11398_v39, %v12061_v63  ;;  %v12095_v41 = vadd.s32 4294967264, %v12061_v63  ;;  %v12100_v39 = vadd.s32 4294967256, %v12061_v63 }
 0x441   : > { %16587 = vst [vmem:[#allocation194_spill] sm:$0xff] %v11993_v49  ;;  %v12116_v15 = vadd.s32 4294967240, %v12061_v63 }
 0x442   : > { %16593 = vst [vmem:[#allocation196_spill] sm:$0xff] %v12008_v18 }
 0x443   : > { %2629 = vperm.xlu2 %9577, %v11981_v24   ;;  %2617 = vperm.xlu0 %9576, %v11984_v33   ;;  %v12005_v24 = vadd.f32 %v11186_v37, %v1884_v29  ;;  %v1879_v33 = vadd.f32 %v11056_v11, %v16594_v50  ;;  %v1883_v29 = vadd.f32 %v11056_v11, %v16597_v61  ;;  %v16599_v50 = vld [vmem:[#allocation98_spill] sm:$0xff] }
 0x444   : > { %2614 = vperm.xlu1 %9575, %v11991_v51  }
 0x445   : > { %v11996_v12 = vpop.permute.xlu0 %2491  ;;  %16592 = vst [vmem:[#allocation99_spill] sm:$0xff] %v12005_v24  ;;  %v12015_v62 = vadd.f32 %v11138_v8, %v1879_v33  ;;  %v12020_v32 = vpop.permute.xlu2 %2530  ;;  %v12027_v53 = vadd.f32 %v11196_v6, %v1883_v29 }
 0x446   : > { %16588 = vst [vmem:[#allocation195_spill] sm:$0xff] %v11996_v12  ;;  %v12000_v10 = vpop.permute.xlu1 %2488 }
 0x447   : > { %16590 = vst [vmem:[#allocation101_spill] sm:$0xff] %v12000_v10  ;;  %v12068_v10 = vadd.s32 4294967288, %v12061_v63 }
 0x448   : > { %16595 = vst [vmem:[#allocation95_spill] sm:$0xff] %v12015_v62 }
 0x449   : > { %16596 = vst [vmem:[#allocation197_spill] sm:$0xff] %v12020_v32  ;;  %v2644_v32 = vperm.slane %v11390_v21, %v12068_v10 }
 0x44a   : > { %16598 = vst [vmem:[#allocation100_spill] sm:$0xff] %v12027_v53 }
 0x44b   : > { %2638 = vperm.xlu2 %9577, %v12005_v24   ;;  %2626 = vperm.xlu0 %9576, %v12008_v18   ;;  %v1882_v24 = vadd.f32 %v11056_v11, %v16599_v50  ;;  %v2646_v21 = vsel %vm2645_vm0, %v2644_v32, %v2642_v25 }
 0x44c   : > { %2623 = vperm.xlu1 %9575, %v12015_v62  }
 0x44d   : > { %v12018_v51 = vpop.permute.xlu0 %2500  ;;  %v12033_v8 = vadd.f32 %v11162_v36, %v1882_v24  ;;  %v12040_v62 = vpop.permute.xlu2 %2539 }
 0x44e   : > { %v12022_v37 = vpop.permute.xlu1 %2497  ;;  %16601 = vst [vmem:[#allocation198_spill] sm:$0xff] %v12040_v62 }
 0x44f   : > { %16600 = vst [vmem:[#allocation98_spill] sm:$0xff] %v12033_v8 }
 0x453   : > { %2635 = vperm.xlu0 %9576, %v12027_v53  }
 0x454   : > { %2632 = vperm.xlu1 %9575, %v12033_v8  }
 0x455   : > { %v12036_v33 = vpop.permute.xlu0 %2509  ;;  %v12046_v29 = vpop.permute.xlu2 %2548 }
 0x456   : > { %v12038_v18 = vpop.permute.xlu1 %2506 }
 0x45d   : > { %v12042_v61 = vpop.permute.xlu0 %2518  ;;  %v12052_v36 = vpop.permute.xlu2 %2557 }
 0x45e   : > { %16602 = vst [vmem:[#allocation199_spill] sm:$0xff] %v12042_v61  ;;  %v12044_v6 = vpop.permute.xlu1 %2515 }
 0x465   : > { %v12048_v11 = vpop.permute.xlu0 %2527  ;;  %v12063_v62 = vpop.permute.xlu2 %2566 }
 0x466   : > { %16603 = vst [vmem:[#allocation200_spill] sm:$0xff] %v12048_v11  ;;  %v12050_v50 = vpop.permute.xlu1 %2524  ;;  %v12073_v11 = vadd.s32 4294967280, %v12061_v63 }
 0x467   : > { %16604 = vst [vmem:[#allocation201_spill] sm:$0xff] %v12050_v50 }
 0x468   : > { %16608 = vst [vmem:[#allocation204_spill] sm:$0xff] %v12063_v62  ;;  %v2648_v50 = vperm.slane %v11288_v13, %v12073_v11  ;;  %v2706_v32 = vperm.slane %v11518_v30, %v12073_v11  ;;  %v12106_v13 = vadd.s32 4294967248, %v12061_v63 }
 0x46a   : > { %v2650_v25 = vsel %vm2649_vm1, %v2648_v50, %v2646_v21  ;;  %v2660_v50 = vperm.slane %v11424_v48, %v12100_v39  ;;  %v2656_v21 = vperm.slane %v11308_v44, %v12095_v41  ;;  %v2734_v48 = vperm.slane %v11640_v19, %v12061_v63 }
 0x46b   : > { %v2712_v44 = vperm.slane %v11542_v22, %v12100_v39 }
 0x46d   : > { %v12054_v24 = vpop.permute.xlu0 %2536  ;;  %v12092_v62 = vpop.permute.xlu2 %2575 }
 0x46e   : > { %16605 = vst [vmem:[#allocation202_spill] sm:$0xff] %v12054_v24  ;;  %v12056_v53 = vpop.permute.xlu1 %2533  ;;  %v2704_v24 = vperm.slane %v11520_v5, %v12068_v10 }
 0x46f   : > { %16606 = vst [vmem:[#allocation203_spill] sm:$0xff] %v12056_v53 }
 0x470   : > { %v2705_v5 = vsel %vm2645_vm0, %v2704_v24, %v2703_v2  ;;  %16610 = vst [vmem:[#allocation206_spill] sm:$0xff] %v12092_v62  ;;  %v2710_v24 = vperm.slane %v11544_v16, %v12095_v41  ;;  %v2664_v16 = vperm.slane %v11414_v55, %v12106_v13 }
 0x471   : > { %v2707_v2 = vsel %vm2649_vm1, %v2706_v32, %v2705_v5 }
 0x475   : > { %v12058_v8 = vpop.permute.xlu0 %2545  ;;  %v12150_v22 = vpop.permute.xlu2 %2584 }
 0x476   : > { %v12065_v12 = vpop.permute.xlu1 %2542  ;;  %16611 = vst [vmem:[#allocation207_spill] sm:$0xff] %v12150_v22  ;;  %v16633_v22 = vld [vmem:[#allocation162_spill] sm:$0xff] }
 0x477   : > { %16609 = vst [vmem:[#allocation205_spill] sm:$0xff] %v12065_v12  ;;  %v12082_v12 = vadd.s32 4294967272, %v12061_v63 }
 0x479   : > { %v2652_v61 = vperm.slane %v11400_v17, %v12082_v12  ;;  %v2708_v17 = vperm.slane %v11422_v34, %v12082_v12 }
 0x47b   : > { %v2654_v30 = vsel %vm2653_vm2, %v2652_v61, %v2650_v25  ;;  %v2709_v34 = vsel %vm2653_vm2, %v2708_v17, %v2707_v2  ;;  %v2735_v61 = vperm.slane %v11638_v60, %v12068_v10  ;;  %v12138_v2 = vadd.s32 4294967216, %v12061_v63 }
 0x47c   : > { %v2711_v32 = vsel %vm2657_vm3, %v2710_v24, %v2709_v34  ;;  %v2658_v25 = vsel %vm2657_vm3, %v2656_v21, %v2654_v30  ;;  %v12141_v17 = vadd.s32 4294967232, %v12061_v63  ;;  %v12144_v24 = vadd.s32 4294967224, %v12061_v63 }
 0x47d   : > { %v12077_v53 = vpop.permute.xlu0 %2554  ;;  %v2662_v55 = vsel %vm15999_vm4, %v2660_v50, %v2658_v25  ;;  %v2713_v19 = vsel %vm15999_vm4, %v2712_v44, %v2711_v32  ;;  %v2716_v30 = vperm.slane %v11568_v35, %v12116_v15  ;;  %v2668_v50 = vperm.slane %v11333_v42, %v12116_v15 }
 0x47e   : > { %v12086_v49 = vpop.permute.xlu1 %2551  ;;  %v2666_v60 = vsel %vm2665_vm5, %v2664_v16, %v2662_v55  ;;  %v2714_v21 = vperm.slane %v11446_v0, %v12106_v13  ;;  %v2736_v34 = vsel %vm2645_vm0, %v2735_v61, %v2734_v48  ;;  %v2739_v25 = vperm.slane %v11664_v14, %v12082_v12 }
 0x47f   : > { %v2737_v16 = vperm.slane %v11540_v1, %v12073_v11  ;;  %v2670_v35 = vsel %vm2669_vm6, %v2668_v50, %v2666_v60  ;;  %v2676_v44 = vperm.slane %v11438_v4, %v12144_v24  ;;  %v12167_v42 = vadd.s32 4294967208, %v12061_v63 }
 0x480   : > { %v2715_v0 = vsel %vm2665_vm5, %v2714_v21, %v2713_v19  ;;  %v2672_v61 = vperm.slane %v11448_v52, %v12141_v17  ;;  %v2680_v55 = vperm.slane %v11353_v31, %v12138_v2  ;;  %v2718_v4 = vperm.slane %v11566_v57, %v12141_v17 }
 0x481   : > { %v2717_v14 = vsel %vm2669_vm6, %v2716_v30, %v2715_v0  ;;  %v2738_v1 = vsel %vm2649_vm1, %v2737_v16, %v2736_v34  ;;  %v12183_v50 = vadd.s32 4294967200, %v12061_v63  ;;  %v2741_v52 = vperm.slane %v11662_v40, %v12095_v41  ;;  %v12208_v0 = vpop.permute.xlu2 %2593 }
 0x482   : > { %v2740_v60 = vsel %vm2653_vm2, %v2739_v25, %v2738_v1  ;;  %v2674_v19 = vsel %vm2673_vm7, %v2672_v61, %v2670_v35  ;;  %v2684_v21 = vperm.slane %v11472_v38, %v12167_v42  ;;  %v2719_v31 = vsel %vm2673_vm7, %v2718_v4, %v2717_v14  ;;  %v16614_v1 = vld [vmem:[#allocation150_spill] sm:$0xff] }
 0x483   : > { %v2678_v30 = vsel %vm16004_vm8, %v2676_v44, %v2674_v19  ;;  %v2722_v57 = vperm.slane %v11592_v56, %v12138_v2  ;;  %v2720_v34 = vperm.slane %v11470_v7, %v12144_v24  ;;  %v2742_v25 = vsel %vm2657_vm3, %v2741_v52, %v2740_v60  ;;  %v16615_v19 = vld [vmem:[#allocation143_spill] sm:$0xff] }
 0x484   : > { %v2745_v16 = vperm.slane %v11688_v26, %v12106_v13  ;;  %v12199_v40 = vadd.s32 4294967192, %v12061_v63  ;;  %v2743_v38 = vperm.slane %v11564_v27, %v12100_v39  ;;  %v2682_v35 = vsel %vm16001_vm9, %v2680_v55, %v2678_v30 }
 0x485   : > { %v12113_v62 = vpop.permute.xlu0 %2563  ;;  %v12205_v44 = vadd.s32 4294967184, %v12061_v63  ;;  %v2721_v56 = vsel %vm16004_vm8, %v2720_v34, %v2719_v31  ;;  %v2686_v26 = vsel %vm16003_vm10, %v2684_v21, %v2682_v35  ;;  %v2688_v27 = vperm.slane %v11467_v46, %v12183_v50  ;;  %v16617_v46 = vld [vmem:[#allocation146_spill] sm:$0xff]  ;;  %v16618_v35 = vld [vmem:[#allocation172_spill] sm:$0xff] }
 0x486   : > { %v12126_v5 = vpop.permute.xlu1 %2560  ;;  %16612 = vst [vmem:[#allocation208_spill] sm:$0xff] %v12199_v40  ;;  %v2723_v61 = vsel %vm16001_vm9, %v2722_v57, %v2721_v56  ;;  %v2744_v14 = vsel %vm15999_vm4, %v2743_v38, %v2742_v25  ;;  %v2724_v55 = vperm.slane %v16614_v1, %v12167_v42  ;;  %v2692_v52 = vperm.slane %v16615_v19, %v12199_v40  ;;  %v16621_v1 = vld [vmem:[#allocation176_spill] sm:$0xff] }
 0x487   : > { %16613 = vst [vmem:[#allocation209_spill] sm:$0xff] %v12205_v44  ;;  %v2746_v4 = vsel %vm2665_vm5, %v2745_v16, %v2744_v14  ;;  %v12225_v30 = vadd.s32 4294967176, %v12061_v63  ;;  %v2747_v21 = vperm.slane %v11686_v54, %v12116_v15  ;;  %v2690_v31 = vsel %vm2689_vm11, %v2688_v27, %v2686_v26  ;;  %v16619_v54 = vld [vmem:[#allocation144_spill] sm:$0xff]  ;;  %v16620_v14 = vld [vmem:[#allocation149_spill] sm:$0xff] }
 0x488   : > { %v2696_v57 = vperm.slane %v16617_v46, %v12205_v44  ;;  %v2725_v34 = vsel %vm16003_vm10, %v2724_v55, %v2723_v61  ;;  %v2728_v25 = vperm.slane %v11616_v45, %v12199_v40  ;;  %v2751_v38 = vperm.slane %v11712_v47, %v12144_v24  ;;  %v16622_v45 = vld [vmem:[#allocation158_spill] sm:$0xff]  ;;  %v16623_v47 = vld [vmem:[#allocation145_spill] sm:$0xff] }
 0x489   : > { %16616 = vst [vmem:[#allocation150_spill] sm:$0xff] %v12225_v30  ;;  %v2748_v16 = vsel %vm2669_vm6, %v2747_v21, %v2746_v4  ;;  %v2765_v56 = vperm.slane %v16618_v35, %v12061_v63  ;;  %v2726_v26 = vperm.slane %v16619_v54, %v12183_v50  ;;  %v2749_v27 = vperm.slane %v16620_v14, %v12141_v17 }
 0x48a   : > { %v2768_v61 = vperm.slane %v16621_v1, %v12073_v11  ;;  %v2694_v55 = vsel %vm2693_vm12, %v2692_v52, %v2690_v31  ;;  %v2766_v4 = vperm.slane %v16622_v45, %v12068_v10  ;;  %v2700_v19 = vperm.slane %v16623_v47, %v12225_v30  ;;  %v16625_v45 = vld [vmem:[#allocation153_spill] sm:$0xff] }
 0x48b   : > { %v2698_v21 = vsel %vm2697_vm13, %v2696_v57, %v2694_v55  ;;  %v2727_v46 = vsel %vm2689_vm11, %v2726_v26, %v2725_v34  ;;  %v2750_v35 = vsel %vm2673_vm7, %v2749_v27, %v2748_v16  ;;  %v2797_v31 = vperm.slane %v11904_v59, %v12068_v10  ;;  %v16626_v57 = vld [vmem:[#allocation167_spill] sm:$0xff]  ;;  %v12266_v16 = vpop.permute.xlu2 %2602 }
 0x48c   : > { %v2729_v14 = vsel %vm2693_vm12, %v2728_v25, %v2727_v46  ;;  %v2752_v1 = vsel %vm16004_vm8, %v2751_v38, %v2750_v35  ;;  %v2767_v52 = vsel %vm2645_vm0, %v2766_v4, %v2765_v56  ;;  %v2730_v47 = vperm.slane %v16625_v45, %v12205_v44  ;;  %v16627_v38 = vld [vmem:[#allocation174_spill] sm:$0xff]  ;;  %v16628_v59 = vld [vmem:[#allocation175_spill] sm:$0xff]  ;;  %v16629_v4 = vld [vmem:[#allocation148_spill] sm:$0xff] }
 0x48d   : > { %v12161_v32 = vpop.permute.xlu0 %2572  ;;  %v2753_v55 = vperm.slane %v16626_v57, %v12138_v2  ;;  %v2769_v34 = vsel %vm2649_vm1, %v2768_v61, %v2767_v52  ;;  %v12271_v25 = vsel %vm2701_vm14, %v2700_v19, %v2698_v21  ;;  %v2796_v56 = vperm.slane %v16627_v38, %v12061_v63  ;;  %v16630_v35 = vld [vmem:[#allocation152_spill] sm:$0xff]  ;;  %v16631_v57 = vld [vmem:[#allocation170_spill] sm:$0xff]  ;;  %v16632_v38 = vld [vmem:[#allocation179_spill] sm:$0xff] }
 0x48e   : > { %v12174_v48 = vpop.permute.xlu1 %2569  ;;  %v2770_v27 = vperm.slane %v16628_v59, %v12082_v12  ;;  %v2732_v46 = vperm.slane %v16629_v4, %v12225_v30  ;;  %v2755_v45 = vperm.slane %v16630_v35, %v12167_v42  ;;  %v2731_v61 = vsel %vm2697_vm13, %v2730_v47, %v2729_v14 }
 0x48f   : > { %v2754_v52 = vsel %vm16001_vm9, %v2753_v55, %v2752_v1  ;;  %v2757_v19 = vperm.slane %v16631_v57, %v12183_v50  ;;  %v2798_v59 = vsel %vm2645_vm0, %v2797_v31, %v2796_v56  ;;  %v2772_v4 = vperm.slane %v16633_v22, %v12095_v41  ;;  %v16634_v55 = vld [vmem:[#allocation155_spill] sm:$0xff]  ;;  %v16635_v31 = vld [vmem:[#allocation169_spill] sm:$0xff] }
 0x490   : > { %v2771_v21 = vsel %vm2653_vm2, %v2770_v27, %v2769_v34  ;;  %v2799_v35 = vperm.slane %v11900_v20, %v12073_v11  ;;  %v2828_v14 = vperm.slane %v12018_v51, %v12068_v10  ;;  %v2827_v1 = vperm.slane %v12022_v37, %v12061_v63  ;;  %v16636_v57 = vld [vmem:[#allocation177_spill] sm:$0xff] }
 0x491   : > { %v12298_v47 = vsel %vm2701_vm14, %v2732_v46, %v2731_v61  ;;  %v2761_v34 = vperm.slane %v16634_v55, %v12205_v44  ;;  %v2759_v56 = vperm.slane %v16635_v31, %v12199_v40  ;;  %v2756_v22 = vsel %vm16003_vm10, %v2755_v45, %v2754_v52  ;;  %v16637_v52 = vld [vmem:[#allocation178_spill] sm:$0xff] }
 0x492   : > { %v2773_v27 = vsel %vm2657_vm3, %v2772_v4, %v2771_v21  ;;  %v2800_v20 = vsel %vm2649_vm1, %v2799_v35, %v2798_v59  ;;  %v2803_v51 = vperm.slane %v11926_v43, %v12095_v41  ;;  %v2858_v37 = vperm.slane %v12058_v8, %v12061_v63  ;;  %v16638_v4 = vld [vmem:[#allocation166_spill] sm:$0xff] }
 0x493   : > { %v2758_v61 = vsel %vm2689_vm11, %v2757_v19, %v2756_v22  ;;  %v2861_v45 = vperm.slane %v12086_v49, %v12073_v11  ;;  %v2776_v21 = vperm.slane %v16637_v52, %v12106_v13  ;;  %v2829_v59 = vsel %vm2645_vm0, %v2828_v14, %v2827_v1 }
 0x494   : > { %v2859_v43 = vperm.slane %v12046_v29, %v12068_v10  ;;  %v2832_v8 = vperm.slane %v12038_v18, %v12082_v12  ;;  %v2778_v35 = vperm.slane %v16638_v4, %v12116_v15  ;;  %v2830_v49 = vperm.slane %v11932_v3, %v12073_v11 }
 0x495   : > { %v12210_v7 = vpop.permute.xlu0 %2581  ;;  %v12332_v14 = vsel %vm2693_vm12, %v2759_v56, %v2758_v61  ;;  %v2805_v52 = vperm.slane %v11924_v9, %v12100_v39  ;;  %v16640_v56 = vld [vmem:[#allocation171_spill] sm:$0xff]  ;;  %v2809_v9 = vperm.slane %v11950_v28, %v12116_v15  ;;  %v2865_v28 = vperm.slane %v12052_v36, %v12095_v41 }
 0x496   : > { %v12220_v60 = vpop.permute.xlu1 %2578  ;;  %v2860_v18 = vsel %vm2645_vm0, %v2859_v43, %v2858_v37  ;;  %v2831_v4 = vsel %vm2649_vm1, %v2830_v49, %v2829_v59  ;;  %v2790_v61 = vperm.slane %v16640_v56, %v12199_v40  ;;  %v2863_v37 = vperm.slane %v12077_v53, %v12082_v12  ;;  %v16642_v43 = vld [vmem:[#allocation180_spill] sm:$0xff] }
 0x497   : > { %v2862_v3 = vsel %vm2649_vm1, %v2861_v45, %v2860_v18  ;;  %v2834_v45 = vperm.slane %v12036_v33, %v12095_v41  ;;  %v2889_v59 = vperm.slane %v12208_v0, %v12061_v63  ;;  %v2867_v53 = vperm.slane %v12126_v5, %v12100_v39 }
 0x498   : > { %v2838_v33 = vperm.slane %v12044_v6, %v12106_v13  ;;  %v2811_v36 = vperm.slane %v11948_v23, %v12141_v17  ;;  %v2869_v23 = vperm.slane %v12113_v62, %v12106_v13  ;;  %v2873_v62 = vperm.slane %v12174_v48, %v12141_v17 }
 0x49d   : > { %v12254_v54 = vpop.permute.xlu0 %2590 }
 0x49e   : > { %16624 = vst [vmem:[#allocation143_spill] sm:$0xff] %v12254_v54  ;;  %v12268_v26 = vpop.permute.xlu1 %2587  ;;  %v2774_v54 = vperm.slane %v16632_v38, %v12100_v39  ;;  %v2801_v38 = vperm.slane %v16636_v57, %v12082_v12  ;;  %v12337_v57 = vpop.permute.xlu2 %2611 }
 0x4a0   : > { %v2775_v31 = vsel %vm15999_vm4, %v2774_v54, %v2773_v27  ;;  %v16639_v54 = vld [vmem:[#allocation168_spill] sm:$0xff]  ;;  %v2802_v27 = vsel %vm2653_vm2, %v2801_v38, %v2800_v20  ;;  %v16641_v38 = vld [vmem:[#allocation182_spill] sm:$0xff] }
 0x4a1   : > { %v2784_v22 = vperm.slane %v16639_v54, %v12138_v2  ;;  %v2777_v29 = vsel %vm2665_vm5, %v2776_v21, %v2775_v31  ;;  %v2804_v1 = vsel %vm2657_vm3, %v2803_v51, %v2802_v27  ;;  %v2780_v31 = vperm.slane %v16641_v38, %v12141_v17 }
 0x4a2   : > { %v2833_v51 = vsel %vm2653_vm2, %v2832_v8, %v2831_v4  ;;  %v2806_v21 = vsel %vm15999_vm4, %v2805_v52, %v2804_v1  ;;  %v2779_v54 = vsel %vm2669_vm6, %v2778_v35, %v2777_v29  ;;  %v2864_v8 = vsel %vm2653_vm2, %v2863_v37, %v2862_v3  ;;  %v16643_v52 = vld [vmem:[#allocation181_spill] sm:$0xff] }
 0x4a3   : > { %v2835_v27 = vsel %vm2657_vm3, %v2834_v45, %v2833_v51  ;;  %v2781_v1 = vsel %vm2673_vm7, %v2780_v31, %v2779_v54  ;;  %v2836_v35 = vperm.slane %v11964_v58, %v12100_v39  ;;  %v2782_v4 = vperm.slane %v16643_v52, %v12144_v24 }
 0x4a4   : > { %v2866_v3 = vsel %vm2657_vm3, %v2865_v28, %v2864_v8  ;;  %v2894_v37 = vperm.slane %v12266_v16, %v12082_v12 }
 0x4a5   : > { %v2600_v46 = vpop.permute.xlu0 %2599  ;;  %v2868_v38 = vsel %vm15999_vm4, %v2867_v53, %v2866_v3  ;;  %v16647_v53 = vld [vmem:[#allocation183_spill] sm:$0xff]  ;;  %v16651_v3 = vld [vmem:[#allocation184_spill] sm:$0xff] }
 0x4a6   : > { %v2597_v19 = vpop.permute.xlu1 %2596  ;;  %v2892_v5 = vperm.slane %v2600_v46, %v12073_v11  ;;  %v2783_v46 = vsel %vm16004_vm8, %v2782_v4, %v2781_v1  ;;  %v12398_v8 = vpop.permute.xlu2 %2620  ;;  %v2813_v16 = vperm.slane %v16647_v53, %v12144_v24  ;;  %v16650_v4 = vld [vmem:[#allocation194_spill] sm:$0xff] }
 0x4a7   : > { %v2890_v20 = vperm.slane %v2597_v19, %v12068_v10  ;;  %v2807_v19 = vperm.slane %v16642_v43, %v12106_v13  ;;  %v2785_v52 = vsel %vm16001_vm9, %v2784_v22, %v2783_v46  ;;  %v16654_v53 = vld [vmem:[#allocation186_spill] sm:$0xff] }
 0x4a9   : > { %v2891_v0 = vsel %vm2645_vm0, %v2890_v20, %v2889_v59  ;;  %v2808_v29 = vsel %vm2665_vm5, %v2807_v19, %v2806_v21  ;;  %v2837_v20 = vsel %vm15999_vm4, %v2836_v35, %v2835_v27  ;;  %v16644_v21 = vld [vmem:[#allocation185_spill] sm:$0xff]  ;;  %v16645_v59 = vld [vmem:[#allocation192_spill] sm:$0xff]  ;;  %v16646_v19 = vld [vmem:[#allocation199_spill] sm:$0xff]  ;;  %v2870_v27 = vsel %vm2665_vm5, %v2869_v23, %v2868_v38 }
 0x4aa   : > { %v2810_v6 = vsel %vm2669_vm6, %v2809_v9, %v2808_v29  ;;  %v2893_v58 = vsel %vm2649_vm1, %v2892_v5, %v2891_v0  ;;  %v2839_v51 = vsel %vm2665_vm5, %v2838_v33, %v2837_v20  ;;  %v2786_v9 = vperm.slane %v16644_v21, %v12167_v42  ;;  %v16648_v0 = vld [vmem:[#allocation204_spill] sm:$0xff]  ;;  %v16649_v35 = vld [vmem:[#allocation201_spill] sm:$0xff] }
 0x4ab   : > { %v2812_v45 = vsel %vm2673_vm7, %v2811_v36, %v2810_v6  ;;  %v2815_v43 = vperm.slane %v16645_v59, %v12138_v2  ;;  %v2840_v54 = vperm.slane %v16646_v19, %v12116_v15  ;;  %v2895_v28 = vsel %vm2653_vm2, %v2894_v37, %v2893_v58 }
 0x4ac   : > { %v2871_v1 = vperm.slane %v16648_v0, %v12116_v15  ;;  %v2844_v29 = vperm.slane %v16649_v35, %v12144_v24  ;;  %v2842_v36 = vperm.slane %v16650_v4, %v12141_v17  ;;  %v2814_v48 = vsel %vm16004_vm8, %v2813_v16, %v2812_v45  ;;  %v16658_v4 = vld [vmem:[#allocation188_spill] sm:$0xff] }
 0x4ad   : > { %v2609_v49 = vpop.permute.xlu0 %2608  ;;  %v2841_v33 = vsel %vm2669_vm6, %v2840_v54, %v2839_v51  ;;  %v2788_v20 = vperm.slane %v16651_v3, %v12183_v50  ;;  %v2787_v38 = vsel %vm16003_vm10, %v2786_v9, %v2785_v52  ;;  %v2816_v58 = vsel %vm16001_vm9, %v2815_v43, %v2814_v48  ;;  %v16653_v43 = vld [vmem:[#allocation173_spill] sm:$0xff] }
 0x4ae   : > { %v2606_v18 = vpop.permute.xlu1 %2605  ;;  %v2898_v6 = vperm.slane %v2609_v49, %v12100_v39  ;;  %v2872_v51 = vsel %vm2669_vm6, %v2871_v1, %v2870_v27  ;;  %v2843_v37 = vsel %vm2673_vm7, %v2842_v36, %v2841_v33  ;;  %v16652_v49 = vld [vmem:[#allocation191_spill] sm:$0xff]  ;;  %v2900_v9 = vperm.slane %v12337_v57, %v12106_v13  ;;  %v16655_v27 = vld [vmem:[#allocation200_spill] sm:$0xff]  ;;  %v16656_v1 = vld [vmem:[#allocation206_spill] sm:$0xff] }
 0x4af   : > { %v2896_v31 = vperm.slane %v2606_v18, %v12095_v41  ;;  %v2874_v22 = vsel %vm2673_vm7, %v2873_v62, %v2872_v51  ;;  %v2817_v21 = vperm.slane %v16652_v49, %v12167_v42  ;;  %v2845_v45 = vsel %vm16004_vm8, %v2844_v29, %v2843_v37  ;;  %v16657_v29 = vld [vmem:[#allocation203_spill] sm:$0xff]  ;;  %v16659_v48 = vld [vmem:[#allocation197_spill] sm:$0xff] }
 0x4b0   : > { %v2875_v59 = vperm.slane %v12161_v32, %v12144_v24  ;;  %v2763_v19 = vperm.slane %v16653_v43, %v12225_v30  ;;  %v2789_v54 = vsel %vm2689_vm11, %v2788_v20, %v2787_v38  ;;  %v2819_v16 = vperm.slane %v16654_v53, %v12183_v50  ;;  %v2630_v20 = vpop.permute.xlu2 %2629  ;;  %v16663_v53 = vld [vmem:[#allocation187_spill] sm:$0xff] }
 0x4b1   : > { %v2897_v5 = vsel %vm2657_vm3, %v2896_v31, %v2895_v28  ;;  %v2846_v62 = vperm.slane %v16655_v27, %v12138_v2  ;;  %v2818_v28 = vsel %vm16003_vm10, %v2817_v21, %v2816_v58  ;;  %v2879_v57 = vperm.slane %v12220_v60, %v12167_v42  ;;  %v16660_v60 = vld [vmem:[#allocation101_spill] sm:$0xff]  ;;  %v16664_v27 = vld [vmem:[#allocation207_spill] sm:$0xff] }
 0x4b2   : > { %v2899_v46 = vsel %vm15999_vm4, %v2898_v6, %v2897_v5  ;;  %vm16002_vm4 = vcmask 1042434   ;;  %v2876_v33 = vsel %vm16004_vm8, %v2875_v59, %v2874_v22  ;;  %v2877_v35 = vperm.slane %v16656_v1, %v12138_v2  ;;  %v16662_v59 = vld [vmem:[#allocation195_spill] sm:$0xff] }
 0x4b3   : > { %v2901_v32 = vsel %vm2665_vm5, %v2900_v9, %v2899_v46  ;;  %v2847_v0 = vsel %vm16001_vm9, %v2846_v62, %v2845_v45  ;;  %v2850_v5 = vperm.slane %v16657_v29, %v12183_v50  ;;  %v2792_v36 = vperm.slane %v16658_v4, %v12205_v44  ;;  %v16661_v45 = vld [vmem:[#allocation202_spill] sm:$0xff]  ;;  %v16667_v29 = vld [vmem:[#allocation189_spill] sm:$0xff] }
 0x4b4   : > { %v2848_v6 = vperm.slane %v16659_v48, %v12167_v42  ;;  %v2821_v3 = vperm.slane %v16660_v60, %v12199_v40  ;;  %v2762_v51 = vsel %vm2697_vm13, %v2761_v34, %v12332_v14  ;;  %v2791_v37 = vsel %vm2693_vm12, %v2790_v61, %v2789_v54 }
 0x4b5   : > { %v2618_v18 = vpop.permute.xlu0 %2617  ;;  %v2878_v22 = vsel %vm16001_vm9, %v2877_v35, %v2876_v33  ;;  %v2764_v61 = vsel %vm2701_vm14, %v2763_v19, %v2762_v51  ;;  %v2793_v49 = vsel %vm2697_vm13, %v2792_v36, %v2791_v37  ;;  %v2852_v9 = vperm.slane %v16661_v45, %v12199_v40 }
 0x4b6   : > { %v2615_v31 = vpop.permute.xlu1 %2614  ;;  %v2904_v38 = vperm.slane %v2618_v18, %v12141_v17  ;;  %v2820_v18 = vsel %vm2689_vm11, %v2819_v16, %v2818_v28  ;;  %v2849_v46 = vsel %vm16003_vm10, %v2848_v6, %v2847_v0  ;;  %v2823_v43 = vperm.slane %v16662_v59, %v12205_v44  ;;  %v16666_v0 = vld [vmem:[#allocation205_spill] sm:$0xff] }
 0x4b7   : > { %v2902_v23 = vperm.slane %v2615_v31, %v12116_v15  ;;  %v2921_v31 = vsel %vm16000_vm15, %v12298_v47, %v12271_v25  ;;  %v2851_v14 = vsel %vm2689_vm11, %v2850_v5, %v2849_v46  ;;  %v2906_v25 = vperm.slane %v12398_v8, %v12144_v24 }
 0x4b8   : > { %v2881_v47 = vperm.slane %v12210_v7, %v12183_v50  ;;  %v2822_v21 = vsel %vm2693_vm12, %v2821_v3, %v2820_v18  ;;  %v2885_v8 = vperm.slane %v12268_v26, %v12205_v44  ;;  %v2794_v19 = vperm.slane %v16663_v53, %v12225_v30  ;;  %v2639_v51 = vpop.permute.xlu2 %2638  ;;  %v16671_v53 = vld [vmem:[#allocation103_spill] sm:$0xff] }
 0x4b9   : > { %v2903_v52 = vsel %vm2669_vm6, %v2902_v23, %v2901_v32  ;;  %v2880_v23 = vsel %vm16003_vm10, %v2879_v57, %v2878_v22  ;;  %v2853_v16 = vsel %vm2693_vm12, %v2852_v9, %v2851_v14  ;;  %v2883_v62 = vperm.slane %v16664_v27, %v12199_v40  ;;  %v16665_v57 = vld [vmem:[#allocation198_spill] sm:$0xff] }
 0x4ba   : > { %v2905_v55 = vsel %vm2673_vm7, %v2904_v38, %v2903_v52  ;;  %v2882_v54 = vsel %vm2689_vm11, %v2881_v47, %v2880_v23  ;;  %v2824_v33 = vsel %vm2697_vm13, %v2823_v43, %v2822_v21  ;;  %v2854_v32 = vperm.slane %v16665_v57, %v12205_v44  ;;  %v16668_v38 = vld [vmem:[#allocation143_spill] sm:$0xff]  ;;  %v16673_v57 = vld [vmem:[#allocation105_spill] sm:$0xff] }
 0x4bb   : > { %v2907_v7 = vsel %vm16004_vm8, %v2906_v25, %v2905_v55  ;;  %v2856_v26 = vperm.slane %v16666_v0, %v12225_v30  ;;  %v2795_v35 = vsel %vm2701_vm14, %v2794_v19, %v2793_v49  ;;  %v2825_v5 = vperm.slane %v16667_v29, %v12225_v30  ;;  %v16669_v43 = vld [vmem:[#allocation111_spill] sm:$0xff]  ;;  %v16674_v0 = vld [vmem:[#allocation102_spill] sm:$0xff] }
 0x4bc   : > { %v2884_v52 = vsel %vm2693_vm12, %v2883_v62, %v2882_v54  ;;  %vm16149_vm15 = vcmask 1043459   ;;  %v2923_v4 = vsel %vm16002_vm4, %v2764_v61, %v2921_v31  ;;  %v2855_v36 = vsel %vm2697_vm13, %v2854_v32, %v2853_v16 }
 0x4bd   : > { %v2627_v58 = vpop.permute.xlu0 %2626  ;;  %v2886_v48 = vsel %vm2697_vm13, %v2885_v8, %v2884_v52  ;;  %v2912_v3 = vperm.slane %v2630_v20, %v12183_v50  ;;  %v2826_v22 = vsel %vm2701_vm14, %v2825_v5, %v2824_v33  ;;  %v2857_v18 = vsel %vm2701_vm14, %v2856_v26, %v2855_v36  ;;  %v16670_v8 = vld [vmem:[#allocation104_spill] sm:$0xff]  ;;  %v16678_v36 = vld [vmem:[#allocation125_spill] sm:$0xff] }
 0x4be   : > { %v2624_v34 = vpop.permute.xlu1 %2623  ;;  %v2910_v1 = vperm.slane %v2627_v58, %v12167_v42  ;;  %v2887_v58 = vperm.slane %v16668_v38, %v12225_v30  ;;  %v2925_v46 = vsel %vm16149_vm15, %v2795_v35, %v2923_v4  ;;  %vm16147_vm4 = vcmask 1045509  }
 0x4bf   : > { %v2908_v56 = vperm.slane %v2624_v34, %v12138_v2  ;;  %v2918_v34 = vperm.slane %v2639_v51, %v12225_v30  ;;  %vm16145_vm8 = vcmask 1047559  }
 0x4c0   : > { %v2888_v20 = vsel %vm2701_vm14, %v2887_v58, %v2886_v48 }
 0x4c1   : > { %v2909_v28 = vsel %vm16001_vm9, %v2908_v56, %v2907_v7  ;;  %vm16148_vm9 = vcmask 1044484  }
 0x4c2   : > { %v2911_v6 = vsel %vm16003_vm10, %v2910_v1, %v2909_v28  ;;  %vm16146_vm10 = vcmask 1046534   ;;  %v2927_v25 = vsel %vm16148_vm9, %v2826_v22, %v2925_v46  ;;  %v16672_v28 = vld [vmem:[#allocation122_spill] sm:$0xff]  ;;  %v16684_v46 = vld [vmem:[#allocation128_spill] sm:$0xff]  ;;  %vm16993_vm9 = vcmask 786112  }
 0x4c3   : > { %v2913_v55 = vsel %vm2689_vm11, %v2912_v3, %v2911_v6  ;;  %v2929_v56 = vsel %vm16147_vm4, %v2857_v18, %v2927_v25  ;;  %v16679_v6 = vld [vmem:[#allocation106_spill] sm:$0xff]  ;;  %v16680_v3 = vld [vmem:[#allocation107_spill] sm:$0xff]  ;;  %vm16992_vm4 = vcmask 392512   ;;  %vm16997_vm15 = vmmov %vm16993_vm9 }
 0x4c4   : > { %v2931_v49 = vsel %vm16146_vm10, %v2888_v20, %v2929_v56 }
 0x4c5   : > { %v2636_v60 = vpop.permute.xlu0 %2635 }
 0x4c6   : > { %v2633_v37 = vpop.permute.xlu1 %2632  ;;  %v2916_v23 = vperm.slane %v2636_v60, %v12205_v44 }
 0x4c7   : > { %v2914_v31 = vperm.slane %v2633_v37, %v12199_v40 }
 0x4c9   : > { %v2915_v14 = vsel %vm2693_vm12, %v2914_v31, %v2913_v55  ;;  %v16685_v55 = vld [vmem:[#allocation108_spill] sm:$0xff] }
 0x4ca   : > { %v2917_v47 = vsel %vm2697_vm13, %v2916_v23, %v2915_v14 }
 0x4cb   : > { %v2919_v61 = vsel %vm2701_vm14, %v2918_v34, %v2917_v47  ;;  %v16686_v34 = vld [vmem:[#allocation110_spill] sm:$0xff] }
 0x4cc   : > { %v2933_v21 = vsel %vm16145_vm8, %v2919_v61, %v2931_v49  ;;  %vm16987_vm8 = vcmask 392512  }
 0x4cd   : > { %2935 = vmax.xlane.f32.xlu1 %v2933_v21  ;;  %vm16988_vm10 = vmmov %vm16987_vm8 }
 0x540   : > { %v12530_v45 = vpop.xlane.xlu1 %2935 }
 0x541   : > { %v12533_v9 = vperm.slane %v12530_v45, 0  ;;  %v12536_v59 = vperm.slane %v12530_v45, 1 }
 0x543   : > { %v2964_v54 = vsub.f32 %v16669_v43, %v12533_v9  ;;  %v2955_v7 = vsub.f32 %v16670_v8, %v12533_v9  ;;  %v2954_v19 = vsub.f32 %v16671_v53, %v12533_v9  ;;  %v2971_v33 = vsub.f32 %v16672_v28, %v12536_v59  ;;  %v16690_v43 = vld [vmem:[#allocation131_spill] sm:$0xff]  ;;  %v16691_v8 = vld [vmem:[#allocation112_spill] sm:$0xff]  ;;  %v16692_v53 = vld [vmem:[#allocation109_spill] sm:$0xff] }
 0x544   : > { %v2957_v32 = vsub.f32 %v16673_v57, %v12533_v9  ;;  %v2956_v26 = vsub.f32 %v16674_v0, %v12533_v9  ;;  %v2974_v48 = vsub.f32 %v16678_v36, %v12536_v59  ;;  %v2959_v60 = vsub.f32 %v16679_v6, %v12533_v9 }
 0x545   : > { %v3102_v16 = vmul.f32 1.442695, %v2964_v54  ;;  %v3084_v27 = vmul.f32 1.442695, %v2955_v7  ;;  %v3082_v62 = vmul.f32 1.442695, %v2954_v19  ;;  %v2958_v38 = vsub.f32 %v16680_v3, %v12533_v9 }
 0x546   : > { %v3116_v1 = vmul.f32 1.442695, %v2971_v33  ;;  %v3088_v35 = vmul.f32 1.442695, %v2957_v32  ;;  %v3086_v5 = vmul.f32 1.442695, %v2956_v26  ;;  %v2977_v23 = vsub.f32 %v16684_v46, %v12536_v59 }
 0x547   : > { %9583 = vpow2.f32 %v3102_v16  ;;  %v3122_v58 = vmul.f32 1.442695, %v2974_v48  ;;  %v3092_v51 = vmul.f32 1.442695, %v2959_v60  ;;  %v3090_v22 = vmul.f32 1.442695, %v2958_v38 }
 0x548   : > { %9585 = vpow2.f32 %v3084_v27  ;;  %v2961_v20 = vsub.f32 %v16685_v55, %v12533_v9  ;;  %v2960_v14 = vsub.f32 %v16686_v34, %v12533_v9  ;;  %v3128_v25 = vmul.f32 1.442695, %v2977_v23  ;;  %v16696_v32 = vld [vmem:[#allocation134_spill] sm:$0xff]  ;;  %v16697_v26 = vld [vmem:[#allocation113_spill] sm:$0xff]  ;;  %v16703_v46 = vld [vmem:[#allocation119_spill] sm:$0xff] }
 0x549   : > { %9587 = vpow2.f32 %v3082_v62  ;;  %v2980_v54 = vsub.f32 %v16690_v43, %v12536_v59  ;;  %v2963_v7 = vsub.f32 %v16691_v8, %v12533_v9  ;;  %v2962_v19 = vsub.f32 %v16692_v53, %v12533_v9  ;;  %v16704_v55 = vld [vmem:[#allocation114_spill] sm:$0xff] }
 0x54a   : > { %9589 = vpow2.f32 %v3116_v1  ;;  %v3096_v47 = vmul.f32 1.442695, %v2961_v20  ;;  %v3094_v61 = vmul.f32 1.442695, %v2960_v14  ;;  %v2983_v0 = vsub.f32 %v16696_v32, %v12536_v59 }
 0x54b   : > { %9591 = vpow2.f32 %v3088_v35  ;;  %v3134_v16 = vmul.f32 1.442695, %v2980_v54  ;;  %v3100_v27 = vmul.f32 1.442695, %v2963_v7  ;;  %v3098_v28 = vmul.f32 1.442695, %v2962_v19 }
 0x54c   : > { %9593 = vpow2.f32 %v3086_v5  ;;  %v2966_v1 = vsub.f32 %v16697_v26, %v12533_v9  ;;  %v16698_v35 = vld [vmem:[#allocation115_spill] sm:$0xff]  ;;  %v12611_v36 = vperm.slane %v12530_v45, 2  ;;  %v3140_v48 = vmul.f32 1.442695, %v2983_v0  ;;  %v16708_v54 = vld [vmem:[#allocation140_spill] sm:$0xff]  ;;  %v16710_v19 = vld [vmem:[#allocation118_spill] sm:$0xff] }
 0x54d   : > { %v12550_v29 = vpop.eup %9583  ;;  %9595 = vpow2.f32 %v3122_v58  ;;  %v2965_v5 = vsub.f32 %v16698_v35, %v12533_v9  ;;  %v2968_v23 = vsub.f32 %v16703_v46, %v12533_v9  ;;  %v2967_v20 = vsub.f32 %v16704_v55, %v12533_v9  ;;  %v16709_v7 = vld [vmem:[#allocation116_spill] sm:$0xff] }
 0x54e   : > { %16675 = vst [vmem:[#allocation146_spill] sm:$0xff] %v12550_v29  ;;  %v12552_v52 = vpop.eup %9585  ;;  %3497 = vperm.xlu1 %9575, %v12550_v29   ;;  %9597 = vpow2.f32 %v3092_v51  ;;  %v3106_v6 = vmul.f32 1.442695, %v2966_v1  ;;  %v16702_v51 = vld [vmem:[#allocation137_spill] sm:$0xff]  ;;  %v2989_v8 = vsub.f32 %v16708_v54, %v12611_v36  ;;  %v2970_v53 = vsub.f32 %v16709_v7, %v12536_v59  ;;  %v16714_v35 = vld [vmem:[#allocation28_spill] sm:$0xff] }
 0x54f   : > { %16676 = vst [vmem:[#allocation172_spill] sm:$0xff] %v12552_v52  ;;  %v12555_v4 = vpop.eup %9587  ;;  %3470 = vperm.xlu2 %9577, %v12552_v52   ;;  %9599 = vpow2.f32 %v3090_v22  ;;  %v3104_v3 = vmul.f32 1.442695, %v2965_v5  ;;  %v2986_v22 = vsub.f32 %v16702_v51, %v12611_v36  ;;  %v3110_v14 = vmul.f32 1.442695, %v2968_v23 }
 0x550   : > { %16677 = vst [vmem:[#allocation144_spill] sm:$0xff] %v12555_v4  ;;  %3467 = vperm.xlu0 %9576, %v12555_v4   ;;  %v12565_v37 = vpop.eup %9589  ;;  %9601 = vpow2.f32 %v3128_v25  ;;  %v2992_v5 = vsub.f32 %v16714_v35, %v12611_v36  ;;  %v16726_v35 = vld [vmem:[#allocation30_spill] sm:$0xff] }
 0x551   : > { %16681 = vst [vmem:[#allocation149_spill] sm:$0xff] %v12565_v37  ;;  %v12567_v18 = vpop.eup %9591  ;;  %9603 = vpow2.f32 %v3096_v47  ;;  %v3146_v34 = vmul.f32 1.442695, %v2986_v22  ;;  %v3108_v47 = vmul.f32 1.442695, %v2967_v20 }
 0x552   : > { %16682 = vst [vmem:[#allocation176_spill] sm:$0xff] %v12567_v18  ;;  %v12570_v31 = vpop.eup %9593  ;;  %9605 = vpow2.f32 %v3094_v61  ;;  %v3158_v51 = vmul.f32 1.442695, %v2992_v5  ;;  %v2998_v5 = vsub.f32 %v16726_v35, %v12611_v36  ;;  %v12704_v35 = vperm.slane %v12530_v45, 3 }
 0x553   : > { %16683 = vst [vmem:[#allocation158_spill] sm:$0xff] %v12570_v31  ;;  %v12580_v56 = vpop.eup %9595  ;;  %9607 = vpow2.f32 %v3134_v16  ;;  %v2969_v16 = vsub.f32 %v16710_v19, %v12533_v9  ;;  %v16715_v9 = vld [vmem:[#allocation117_spill] sm:$0xff] }
 0x554   : > { %16687 = vst [vmem:[#allocation145_spill] sm:$0xff] %v12580_v56  ;;  %v12582_v49 = vpop.eup %9597  ;;  %9609 = vpow2.f32 %v3100_v27  ;;  %v3152_v27 = vmul.f32 1.442695, %v2989_v8  ;;  %v16722_v8 = vld [vmem:[#allocation124_spill] sm:$0xff] }
 0x555   : > { %16688 = vst [vmem:[#allocation153_spill] sm:$0xff] %v12582_v49  ;;  %v12585_v21 = vpop.eup %9599  ;;  %9611 = vpow2.f32 %v3098_v28  ;;  %v3114_v28 = vmul.f32 1.442695, %v2970_v53  ;;  %v3112_v0 = vmul.f32 1.442695, %v2969_v16  ;;  %v2975_v7 = vsub.f32 %v16722_v8, %v12536_v59 }
 0x556   : > { %3518 = vperm.xlu1 %9575, %v12565_v37   ;;  %16689 = vst [vmem:[#allocation167_spill] sm:$0xff] %v12585_v21  ;;  %v12595_v62 = vpop.eup %9601  ;;  %9613 = vpow2.f32 %v3140_v48  ;;  %v2973_v48 = vsub.f32 %v16715_v9, %v12536_v59  ;;  %v16727_v9 = vld [vmem:[#allocation123_spill] sm:$0xff] }
 0x557   : > { %3476 = vperm.xlu2 %9577, %v12567_v18   ;;  %16693 = vst [vmem:[#allocation174_spill] sm:$0xff] %v12595_v62  ;;  %v12597_v33 = vpop.eup %9603  ;;  %9615 = vpow2.f32 %v3106_v6  ;;  %v16716_v6 = vld [vmem:[#allocation121_spill] sm:$0xff] }
 0x558   : > { %3473 = vperm.xlu0 %9576, %v12570_v31   ;;  %16694 = vst [vmem:[#allocation175_spill] sm:$0xff] %v12597_v33  ;;  %v12600_v57 = vpop.eup %9605  ;;  %9617 = vpow2.f32 %v3104_v3  ;;  %v2972_v3 = vsub.f32 %v16716_v6, %v12536_v59  ;;  %v3120_v22 = vmul.f32 1.442695, %v2973_v48  ;;  %v2979_v48 = vsub.f32 %v16727_v9, %v12536_v59  ;;  %v16728_v6 = vld [vmem:[#allocation127_spill] sm:$0xff] }
 0x559   : > { %16695 = vst [vmem:[#allocation148_spill] sm:$0xff] %v12600_v57  ;;  %v12613_v60 = vpop.eup %9607  ;;  %9619 = vpow2.f32 %v3146_v34  ;;  %v16720_v34 = vld [vmem:[#allocation29_spill] sm:$0xff] }
 0x55a   : > { %16699 = vst [vmem:[#allocation152_spill] sm:$0xff] %v12613_v60  ;;  %v12615_v38 = vpop.eup %9609  ;;  %9621 = vpow2.f32 %v3110_v14  ;;  %v3118_v23 = vmul.f32 1.442695, %v2972_v3  ;;  %v2995_v14 = vsub.f32 %v16720_v34, %v12611_v36  ;;  %v2978_v3 = vsub.f32 %v16728_v6, %v12536_v59 }
 0x55b   : > { %16700 = vst [vmem:[#allocation170_spill] sm:$0xff] %v12615_v38  ;;  %v12618_v58 = vpop.eup %9611  ;;  %9623 = vpow2.f32 %v3108_v47  ;;  %v16721_v47 = vld [vmem:[#allocation120_spill] sm:$0xff] }
 0x55c   : > { %16701 = vst [vmem:[#allocation179_spill] sm:$0xff] %v12618_v58  ;;  %v12628_v25 = vpop.eup %9613  ;;  %9625 = vpow2.f32 %v3152_v27  ;;  %v2976_v54 = vsub.f32 %v16721_v47, %v12536_v59  ;;  %v3164_v53 = vmul.f32 1.442695, %v2995_v14  ;;  %v3124_v27 = vmul.f32 1.442695, %v2975_v7  ;;  %v16733_v7 = vld [vmem:[#allocation126_spill] sm:$0xff] }
 0x55d   : > { %16705 = vst [vmem:[#allocation162_spill] sm:$0xff] %v12628_v25  ;;  %v12630_v61 = vpop.eup %9615  ;;  %9627 = vpow2.f32 %v3114_v28  ;;  %v3130_v34 = vmul.f32 1.442695, %v2978_v3 }
 0x55e   : > { %3527 = vperm.xlu1 %9575, %v12580_v56   ;;  %16706 = vst [vmem:[#allocation155_spill] sm:$0xff] %v12630_v61  ;;  %v12633_v43 = vpop.eup %9617  ;;  %9629 = vpow2.f32 %v3112_v0  ;;  %v3126_v19 = vmul.f32 1.442695, %v2976_v54  ;;  %v16732_v54 = vld [vmem:[#allocation32_spill] sm:$0xff] }
 0x55f   : > { %3482 = vperm.xlu2 %9577, %v12582_v49   ;;  %16707 = vst [vmem:[#allocation169_spill] sm:$0xff] %v12633_v43  ;;  %v12643_v32 = vpop.eup %9619  ;;  %9631 = vpow2.f32 %v3158_v51  ;;  %v3170_v51 = vmul.f32 1.442695, %v2998_v5  ;;  %v3001_v8 = vsub.f32 %v16732_v54, %v12611_v36  ;;  %v16739_v54 = vld [vmem:[#allocation129_spill] sm:$0xff] }
 0x560   : > { %3479 = vperm.xlu0 %9576, %v12585_v21   ;;  %16711 = vst [vmem:[#allocation177_spill] sm:$0xff] %v12643_v32  ;;  %v12645_v26 = vpop.eup %9621  ;;  %9633 = vpow2.f32 %v3120_v22  ;;  %v3132_v22 = vmul.f32 1.442695, %v2979_v48 }
 0x561   : > { %16712 = vst [vmem:[#allocation178_spill] sm:$0xff] %v12645_v26  ;;  %v12648_v1 = vpop.eup %9623  ;;  %9635 = vpow2.f32 %v3118_v23  ;;  %v3176_v5 = vmul.f32 1.442695, %v3001_v8  ;;  %v2985_v8 = vsub.f32 %v16739_v54, %v12536_v59  ;;  %v16746_v54 = vld [vmem:[#allocation136_spill] sm:$0xff] }
 0x562   : > { %16713 = vst [vmem:[#allocation166_spill] sm:$0xff] %v12648_v1  ;;  %v12658_v46 = vpop.eup %9625  ;;  %9637 = vpow2.f32 %v3164_v53  ;;  %v2982_v53 = vsub.f32 %v16733_v7, %v12536_v59  ;;  %v16740_v7 = vld [vmem:[#allocation133_spill] sm:$0xff] }
 0x563   : > { %16717 = vst [vmem:[#allocation168_spill] sm:$0xff] %v12658_v46  ;;  %v12660_v55 = vpop.eup %9627  ;;  %9639 = vpow2.f32 %v3126_v19  ;;  %v16734_v19 = vld [vmem:[#allocation130_spill] sm:$0xff] }
 0x564   : > { %16718 = vst [vmem:[#allocation171_spill] sm:$0xff] %v12660_v55  ;;  %v12663_v20 = vpop.eup %9629  ;;  %9641 = vpow2.f32 %v3124_v27  ;;  %v2981_v27 = vsub.f32 %v16734_v19, %v12536_v59  ;;  %v3138_v9 = vmul.f32 1.442695, %v2982_v53  ;;  %v2984_v53 = vsub.f32 %v16740_v7, %v12536_v59  ;;  %v16745_v59 = vld [vmem:[#allocation132_spill] sm:$0xff] }
 0x565   : > { %16719 = vst [vmem:[#allocation182_spill] sm:$0xff] %v12663_v20  ;;  %v12673_v16 = vpop.eup %9631  ;;  %9643 = vpow2.f32 %v3170_v51 }
 0x566   : > { %3536 = vperm.xlu1 %9575, %v12595_v62   ;;  %16723 = vst [vmem:[#allocation180_spill] sm:$0xff] %v12673_v16  ;;  %v12675_v28 = vpop.eup %9633  ;;  %9645 = vpow2.f32 %v3132_v22  ;;  %v3136_v6 = vmul.f32 1.442695, %v2981_v27  ;;  %v16738_v22 = vld [vmem:[#allocation35_spill] sm:$0xff]  ;;  %v3144_v27 = vmul.f32 1.442695, %v2985_v8  ;;  %v2987_v8 = vsub.f32 %v16746_v54, %v12611_v36 }
 0x567   : > { %3488 = vperm.xlu2 %9577, %v12597_v33   ;;  %16724 = vst [vmem:[#allocation181_spill] sm:$0xff] %v12675_v28  ;;  %v12678_v0 = vpop.eup %9635  ;;  %9647 = vpow2.f32 %v3130_v34  ;;  %v3004_v34 = vsub.f32 %v16738_v22, %v12704_v35  ;;  %v2988_v22 = vsub.f32 %v16745_v59, %v12611_v36  ;;  %v16752_v54 = vld [vmem:[#allocation139_spill] sm:$0xff] }
 0x568   : > { %3485 = vperm.xlu0 %9576, %v12600_v57   ;;  %16725 = vst [vmem:[#allocation185_spill] sm:$0xff] %v12678_v0  ;;  %v12688_v23 = vpop.eup %9637  ;;  %9649 = vpow2.f32 %v3176_v5 }
 0x569   : > { %16729 = vst [vmem:[#allocation192_spill] sm:$0xff] %v12688_v23  ;;  %v12690_v14 = vpop.eup %9639  ;;  %9651 = vpow2.f32 %v3138_v9  ;;  %v3182_v19 = vmul.f32 1.442695, %v3004_v34  ;;  %v16744_v9 = vld [vmem:[#allocation38_spill] sm:$0xff] }
 0x56a   : > { %16730 = vst [vmem:[#allocation199_spill] sm:$0xff] %v12690_v14  ;;  %v12693_v47 = vpop.eup %9641  ;;  %9653 = vpow2.f32 %v3136_v6  ;;  %v3007_v6 = vsub.f32 %v16744_v9, %v12704_v35 }
 0x56b   : > { %16731 = vst [vmem:[#allocation183_spill] sm:$0xff] %v12693_v47  ;;  %v12706_v48 = vpop.eup %9643  ;;  %9655 = vpow2.f32 %v3182_v19  ;;  %v3148_v19 = vmul.f32 1.442695, %v2987_v8  ;;  %v2990_v8 = vsub.f32 %v16752_v54, %v12611_v36  ;;  %v16758_v54 = vld [vmem:[#allocation142_spill] sm:$0xff] }
 0x56c   : > { %16735 = vst [vmem:[#allocation204_spill] sm:$0xff] %v12706_v48  ;;  %v12708_v3 = vpop.eup %9645  ;;  %9657 = vpow2.f32 %v3144_v27  ;;  %v3188_v7 = vmul.f32 1.442695, %v3007_v6  ;;  %v16750_v27 = vld [vmem:[#allocation41_spill] sm:$0xff]  ;;  %v16751_v6 = vld [vmem:[#allocation135_spill] sm:$0xff] }
 0x56d   : > { %16736 = vst [vmem:[#allocation201_spill] sm:$0xff] %v12708_v3  ;;  %v12711_v51 = vpop.eup %9647  ;;  %v2991_v59 = vsub.f32 %v16751_v6, %v12611_v36 }
 0x56e   : > { %3545 = vperm.xlu1 %9575, %v12613_v60   ;;  %16737 = vst [vmem:[#allocation194_spill] sm:$0xff] %v12711_v51 }
 0x56f   : > { %3494 = vperm.xlu2 %9577, %v12615_v38  }
 0x570   : > { %3491 = vperm.xlu0 %9576, %v12618_v58  }
 0x576   : > { %3554 = vperm.xlu1 %9575, %v12628_v25  }
 0x577   : > { %3503 = vperm.xlu2 %9577, %v12630_v61  }
 0x578   : > { %3500 = vperm.xlu0 %9576, %v12633_v43  }
 0x57e   : > { %3563 = vperm.xlu1 %9575, %v12643_v32  }
 0x57f   : > { %3509 = vperm.xlu2 %9577, %v12645_v26  }
 0x580   : > { %3506 = vperm.xlu0 %9576, %v12648_v1  }
 0x586   : > { %3572 = vperm.xlu1 %9575, %v12658_v46  }
 0x587   : > { %3515 = vperm.xlu2 %9577, %v12660_v55  }
 0x588   : > { %3512 = vperm.xlu0 %9576, %v12663_v20  }
 0x58e   : > { %3581 = vperm.xlu1 %9575, %v12673_v16  }
 0x58f   : > { %3524 = vperm.xlu2 %9577, %v12675_v28  }
 0x590   : > { %3521 = vperm.xlu0 %9576, %v12678_v0  }
 0x596   : > { %3590 = vperm.xlu1 %9575, %v12688_v23  }
 0x597   : > { %3533 = vperm.xlu2 %9577, %v12690_v14  }
 0x598   : > { %3530 = vperm.xlu0 %9576, %v12693_v47   ;;  %v3142_v47 = vmul.f32 1.442695, %v2984_v53  ;;  %v3150_v53 = vmul.f32 1.442695, %v2988_v22 }
 0x59a   : > { %9659 = vpow2.f32 %v3142_v47  ;;  %v3010_v47 = vsub.f32 %v16750_v27, %v12704_v35 }
 0x59b   : > { %9661 = vpow2.f32 %v3188_v7  ;;  %v3154_v7 = vmul.f32 1.442695, %v2990_v8  ;;  %v2993_v8 = vsub.f32 %v16758_v54, %v12611_v36 }
 0x59c   : > { %9663 = vpow2.f32 %v3150_v53  ;;  %v16756_v53 = vld [vmem:[#allocation44_spill] sm:$0xff] }
 0x59d   : > { %9665 = vpow2.f32 %v3148_v19  ;;  %v3013_v19 = vsub.f32 %v16756_v53, %v12704_v35 }
 0x59e   : > { %3599 = vperm.xlu1 %9575, %v12706_v48   ;;  %v12721_v48 = vpop.eup %9649 }
 0x59f   : > { %3542 = vperm.xlu2 %9577, %v12708_v3   ;;  %16741 = vst [vmem:[#allocation184_spill] sm:$0xff] %v12721_v48  ;;  %v12723_v3 = vpop.eup %9651 }
 0x5a0   : > { %3539 = vperm.xlu0 %9576, %v12711_v51   ;;  %16742 = vst [vmem:[#allocation191_spill] sm:$0xff] %v12723_v3  ;;  %v12726_v5 = vpop.eup %9653 }
 0x5a1   : > { %16743 = vst [vmem:[#allocation173_spill] sm:$0xff] %v12726_v5 }
 0x5a6   : > { %3608 = vperm.xlu1 %9575, %v12721_v48   ;;  %v12738_v48 = vpop.eup %9655 }
 0x5a7   : > { %3551 = vperm.xlu2 %9577, %v12723_v3   ;;  %16747 = vst [vmem:[#allocation186_spill] sm:$0xff] %v12738_v48  ;;  %v12740_v3 = vpop.eup %9657 }
 0x5a8   : > { %3548 = vperm.xlu0 %9576, %v12726_v5   ;;  %16748 = vst [vmem:[#allocation200_spill] sm:$0xff] %v12740_v3  ;;  %v12743_v9 = vpop.eup %9659  ;;  %v3156_v5 = vmul.f32 1.442695, %v2991_v59 }
 0x5a9   : > { %v12734_v34 = vpop.permute.xlu2 %3470  ;;  %16749 = vst [vmem:[#allocation206_spill] sm:$0xff] %v12743_v9  ;;  %v12755_v51 = vpop.eup %9661 }
 0x5aa   : > { %16753 = vst [vmem:[#allocation203_spill] sm:$0xff] %v12755_v51 }
 0x5ae   : > { %3617 = vperm.xlu1 %9575, %v12738_v48   ;;  %v3194_v48 = vmul.f32 1.442695, %v3010_v47  ;;  %v16757_v47 = vld [vmem:[#allocation138_spill] sm:$0xff] }
 0x5af   : > { %3560 = vperm.xlu2 %9577, %v12740_v3   ;;  %v12757_v3 = vpop.eup %9663  ;;  %v2994_v6 = vsub.f32 %v16757_v47, %v12611_v36 }
 0x5b0   : > { %3557 = vperm.xlu0 %9576, %v12743_v9   ;;  %16754 = vst [vmem:[#allocation188_spill] sm:$0xff] %v12757_v3  ;;  %v12760_v27 = vpop.eup %9665  ;;  %9667 = vpow2.f32 %v3194_v48  ;;  %v3160_v48 = vmul.f32 1.442695, %v2993_v8  ;;  %v16764_v8 = vld [vmem:[#allocation31_spill] sm:$0xff] }
 0x5b1   : > { %v12751_v22 = vpop.permute.xlu2 %3476  ;;  %16755 = vst [vmem:[#allocation197_spill] sm:$0xff] %v12760_v27  ;;  %9669 = vpow2.f32 %v3156_v5  ;;  %v3162_v9 = vmul.f32 1.442695, %v2994_v6  ;;  %v16762_v5 = vld [vmem:[#allocation47_spill] sm:$0xff] }
 0x5b2   : > { %9671 = vpow2.f32 %v3154_v7  ;;  %v3016_v7 = vsub.f32 %v16762_v5, %v12704_v35 }
 0x5b4   : > { %v3206_v5 = vmul.f32 1.442695, %v3016_v7  ;;  %v16769_v7 = vld [vmem:[#allocation34_spill] sm:$0xff] }
 0x5b6   : > { %3626 = vperm.xlu1 %9575, %v12755_v51   ;;  %v3200_v51 = vmul.f32 1.442695, %v3013_v19  ;;  %v12772_v14 = vpop.eup %9667  ;;  %v16763_v19 = vld [vmem:[#allocation141_spill] sm:$0xff] }
 0x5b7   : > { %3569 = vperm.xlu2 %9577, %v12757_v3   ;;  %16759 = vst [vmem:[#allocation101_spill] sm:$0xff] %v12772_v14  ;;  %v12774_v3 = vpop.eup %9669  ;;  %v2997_v6 = vsub.f32 %v16763_v19, %v12611_v36 }
 0x5b8   : > { %3566 = vperm.xlu0 %9576, %v12760_v27   ;;  %16760 = vst [vmem:[#allocation202_spill] sm:$0xff] %v12774_v3  ;;  %v12777_v53 = vpop.eup %9671  ;;  %9673 = vpow2.f32 %v3200_v51  ;;  %v12794_v51 = vperm.slane %v12530_v45, 4 }
 0x5b9   : > { %v12768_v59 = vpop.permute.xlu2 %3482  ;;  %16761 = vst [vmem:[#allocation195_spill] sm:$0xff] %v12777_v53  ;;  %9675 = vpow2.f32 %v3162_v9 }
 0x5ba   : > { %9677 = vpow2.f32 %v3160_v48  ;;  %v16768_v48 = vld [vmem:[#allocation50_spill] sm:$0xff] }
 0x5bb   : > { %9679 = vpow2.f32 %v3206_v5 }
 0x5be   : > { %3635 = vperm.xlu1 %9575, %v12772_v14   ;;  %v2996_v14 = vsub.f32 %v16764_v8, %v12611_v36  ;;  %v3019_v8 = vsub.f32 %v16768_v48, %v12794_v51 }
 0x5bf   : > { %3578 = vperm.xlu2 %9577, %v12774_v3   ;;  %v3168_v3 = vmul.f32 1.442695, %v2997_v6 }
 0x5c0   : > { %3575 = vperm.xlu0 %9576, %v12777_v53   ;;  %v12783_v47 = vpop.permute.xlu1 %3497  ;;  %v12796_v53 = vpop.eup %9673  ;;  %v3166_v23 = vmul.f32 1.442695, %v2996_v14  ;;  %v3000_v14 = vsub.f32 %v16769_v7, %v12611_v36  ;;  %v3212_v5 = vmul.f32 1.442695, %v3019_v8 }
 0x5c1   : > { %v12787_v54 = vpop.permute.xlu2 %3488  ;;  %16765 = vst [vmem:[#allocation187_spill] sm:$0xff] %v12796_v53  ;;  %v12798_v9 = vpop.eup %9675  ;;  %9681 = vpow2.f32 %v3168_v3 }
 0x5c2   : > { %v12791_v27 = vpop.permute.xlu0 %3467  ;;  %16766 = vst [vmem:[#allocation207_spill] sm:$0xff] %v12798_v9  ;;  %v12801_v19 = vpop.eup %9677  ;;  %9683 = vpow2.f32 %v3166_v23  ;;  %v16774_v23 = vld [vmem:[#allocation52_spill] sm:$0xff] }
 0x5c3   : > { %16767 = vst [vmem:[#allocation198_spill] sm:$0xff] %v12801_v19  ;;  %v12817_v20 = vpop.eup %9679  ;;  %9685 = vpow2.f32 %v3212_v5  ;;  %v3022_v7 = vsub.f32 %v16774_v23, %v12794_v51 }
 0x5c4   : > { %16771 = vst [vmem:[#allocation205_spill] sm:$0xff] %v12817_v20 }
 0x5c5   : > { %v3218_v5 = vmul.f32 1.442695, %v3022_v7  ;;  %v16781_v7 = vld [vmem:[#allocation40_spill] sm:$0xff] }
 0x5c6   : > { %3644 = vperm.xlu1 %9575, %v12796_v53   ;;  %v16770_v53 = vld [vmem:[#allocation33_spill] sm:$0xff] }
 0x5c7   : > { %3587 = vperm.xlu2 %9577, %v12798_v9   ;;  %v2999_v28 = vsub.f32 %v16770_v53, %v12611_v36  ;;  %v3174_v9 = vmul.f32 1.442695, %v3000_v14  ;;  %v16775_v53 = vld [vmem:[#allocation37_spill] sm:$0xff]  ;;  %v16776_v14 = vld [vmem:[#allocation36_spill] sm:$0xff] }
 0x5c8   : > { %3584 = vperm.xlu0 %9576, %v12801_v19   ;;  %v12807_v0 = vpop.permute.xlu1 %3518  ;;  %v12819_v19 = vpop.eup %9681 }
 0x5c9   : > { %v12811_v6 = vpop.permute.xlu2 %3494  ;;  %v3172_v48 = vmul.f32 1.442695, %v2999_v28  ;;  %16772 = vst [vmem:[#allocation189_spill] sm:$0xff] %v12819_v19  ;;  %v12822_v3 = vpop.eup %9683  ;;  %9687 = vpow2.f32 %v3174_v9  ;;  %v3003_v28 = vsub.f32 %v16775_v53, %v12704_v35 }
 0x5ca   : > { %v12815_v16 = vpop.permute.xlu0 %3473  ;;  %16773 = vst [vmem:[#allocation143_spill] sm:$0xff] %v12822_v3  ;;  %v12838_v46 = vpop.eup %9685 }
 0x5cb   : > { %9689 = vpow2.f32 %v3172_v48  ;;  %16777 = vst [vmem:[#allocation111_spill] sm:$0xff] %v12838_v46  ;;  %v16780_v48 = vld [vmem:[#allocation55_spill] sm:$0xff] }
 0x5cc   : > { %9691 = vpow2.f32 %v3218_v5  ;;  %v3025_v53 = vsub.f32 %v16780_v48, %v12794_v51 }
 0x5ce   : > { %3653 = vperm.xlu1 %9575, %v12817_v20   ;;  %v3002_v20 = vsub.f32 %v16776_v14, %v12704_v35  ;;  %v3224_v5 = vmul.f32 1.442695, %v3025_v53  ;;  %v16788_v53 = vld [vmem:[#allocation43_spill] sm:$0xff] }
 0x5cf   : > { %3596 = vperm.xlu2 %9577, %v12819_v19   ;;  %v3180_v19 = vmul.f32 1.442695, %v3003_v28 }
 0x5d0   : > { %3593 = vperm.xlu0 %9576, %v12822_v3   ;;  %v12828_v36 = vpop.permute.xlu1 %3527  ;;  %v3178_v23 = vmul.f32 1.442695, %v3002_v20  ;;  %v12840_v3 = vpop.eup %9687  ;;  %v3006_v20 = vsub.f32 %v16781_v7, %v12704_v35 }
 0x5d1   : > { %v12832_v8 = vpop.permute.xlu2 %3503  ;;  %16778 = vst [vmem:[#allocation104_spill] sm:$0xff] %v12840_v3  ;;  %v12843_v9 = vpop.eup %9689  ;;  %9693 = vpow2.f32 %v3180_v19 }
 0x5d2   : > { %v12836_v55 = vpop.permute.xlu0 %3479  ;;  %16779 = vst [vmem:[#allocation103_spill] sm:$0xff] %v12843_v9  ;;  %9695 = vpow2.f32 %v3178_v23  ;;  %v12859_v32 = vpop.eup %9691  ;;  %v16787_v23 = vld [vmem:[#allocation58_spill] sm:$0xff] }
 0x5d3   : > { %16784 = vst [vmem:[#allocation105_spill] sm:$0xff] %v12859_v32  ;;  %9697 = vpow2.f32 %v3224_v5  ;;  %v3028_v7 = vsub.f32 %v16787_v23, %v12794_v51 }
 0x5d5   : > { %v3230_v5 = vmul.f32 1.442695, %v3028_v7  ;;  %v16795_v7 = vld [vmem:[#allocation46_spill] sm:$0xff] }
 0x5d6   : > { %3662 = vperm.xlu1 %9575, %v12838_v46   ;;  %v16783_v46 = vld [vmem:[#allocation39_spill] sm:$0xff] }
 0x5d7   : > { %3605 = vperm.xlu2 %9577, %v12840_v3   ;;  %v3005_v1 = vsub.f32 %v16783_v46, %v12704_v35  ;;  %v3186_v3 = vmul.f32 1.442695, %v3006_v20 }
 0x5d8   : > { %3602 = vperm.xlu0 %9576, %v12843_v9   ;;  %v12849_v14 = vpop.permute.xlu1 %3536  ;;  %v12861_v9 = vpop.eup %9693 }
 0x5d9   : > { %v12853_v28 = vpop.permute.xlu2 %3509  ;;  %v3184_v48 = vmul.f32 1.442695, %v3005_v1  ;;  %16785 = vst [vmem:[#allocation102_spill] sm:$0xff] %v12861_v9  ;;  %v12864_v19 = vpop.eup %9695  ;;  %9699 = vpow2.f32 %v3186_v3  ;;  %v3009_v1 = vsub.f32 %v16788_v53, %v12704_v35 }
 0x5da   : > { %16782 = vst [vmem:[#allocation122_spill] sm:$0xff] %v12853_v28  ;;  %v12857_v26 = vpop.permute.xlu0 %3485  ;;  %v12880_v25 = vpop.eup %9697 }
 0x5db   : > { %16786 = vst [vmem:[#allocation125_spill] sm:$0xff] %v12864_v19  ;;  %9701 = vpow2.f32 %v3184_v48  ;;  %v16793_v48 = vld [vmem:[#allocation61_spill] sm:$0xff] }
 0x5dc   : > { %16790 = vst [vmem:[#allocation106_spill] sm:$0xff] %v12880_v25  ;;  %9703 = vpow2.f32 %v3230_v5  ;;  %v3031_v53 = vsub.f32 %v16793_v48, %v12794_v51  ;;  %v12902_v5 = vperm.slane %v12530_v45, 5 }
 0x5de   : > { %3671 = vperm.xlu1 %9575, %v12859_v32   ;;  %v16789_v32 = vld [vmem:[#allocation42_spill] sm:$0xff]  ;;  %v3236_v48 = vmul.f32 1.442695, %v3031_v53  ;;  %v16801_v53 = vld [vmem:[#allocation49_spill] sm:$0xff] }
 0x5df   : > { %3614 = vperm.xlu2 %9577, %v12861_v9   ;;  %v3008_v43 = vsub.f32 %v16789_v32, %v12704_v35  ;;  %v3192_v9 = vmul.f32 1.442695, %v3009_v1 }
 0x5e0   : > { %3611 = vperm.xlu0 %9576, %v12864_v19   ;;  %v12870_v46 = vpop.permute.xlu1 %3545  ;;  %v12882_v19 = vpop.eup %9699 }
 0x5e1   : > { %v12874_v20 = vpop.permute.xlu2 %3515  ;;  %v3190_v23 = vmul.f32 1.442695, %v3008_v43  ;;  %16791 = vst [vmem:[#allocation107_spill] sm:$0xff] %v12882_v19  ;;  %v12885_v3 = vpop.eup %9701  ;;  %9705 = vpow2.f32 %v3192_v9  ;;  %v3012_v43 = vsub.f32 %v16795_v7, %v12704_v35 }
 0x5e2   : > { %v12878_v61 = vpop.permute.xlu0 %3491  ;;  %16792 = vst [vmem:[#allocation128_spill] sm:$0xff] %v12885_v3 }
 0x5e3   : > { %9707 = vpow2.f32 %v3190_v23 }
 0x5e4   : > { %9709 = vpow2.f32 %v3236_v48 }
 0x5e6   : > { %3680 = vperm.xlu1 %9575, %v12880_v25   ;;  %v16796_v25 = vld [vmem:[#allocation45_spill] sm:$0xff] }
 0x5e7   : > { %3623 = vperm.xlu2 %9577, %v12882_v19   ;;  %v3011_v58 = vsub.f32 %v16796_v25, %v12704_v35  ;;  %v3198_v19 = vmul.f32 1.442695, %v3012_v43  ;;  %v16800_v25 = vld [vmem:[#allocation161_spill] sm:$0xff] }
 0x5e8   : > { %3620 = vperm.xlu0 %9576, %v12885_v3   ;;  %v12891_v32 = vpop.permute.xlu1 %3554  ;;  %v12904_v3 = vpop.eup %9703  ;;  %v3034_v23 = vsub.f32 %v16800_v25, %v12902_v5 }
 0x5e9   : > { %16794 = vst [vmem:[#allocation108_spill] sm:$0xff] %v12891_v32  ;;  %v12895_v1 = vpop.permute.xlu2 %3524  ;;  %v3196_v60 = vmul.f32 1.442695, %v3011_v58  ;;  %v12906_v9 = vpop.eup %9705  ;;  %9711 = vpow2.f32 %v3198_v19  ;;  %v3015_v58 = vsub.f32 %v16801_v53, %v12704_v35 }
 0x5ea   : > { %v12899_v38 = vpop.permute.xlu0 %3500  ;;  %16797 = vst [vmem:[#allocation110_spill] sm:$0xff] %v12904_v3  ;;  %v12909_v7 = vpop.eup %9707  ;;  %v3242_v48 = vmul.f32 1.442695, %v3034_v23  ;;  %v16808_v23 = vld [vmem:[#allocation48_spill] sm:$0xff] }
 0x5eb   : > { %16798 = vst [vmem:[#allocation131_spill] sm:$0xff] %v12906_v9  ;;  %9713 = vpow2.f32 %v3196_v60  ;;  %v12925_v21 = vpop.eup %9709  ;;  %v16807_v60 = vld [vmem:[#allocation165_spill] sm:$0xff] }
 0x5ec   : > { %16799 = vst [vmem:[#allocation112_spill] sm:$0xff] %v12909_v7  ;;  %9715 = vpow2.f32 %v3242_v48  ;;  %v3037_v53 = vsub.f32 %v16807_v60, %v12902_v5 }
 0x5ed   : > { %16804 = vst [vmem:[#allocation134_spill] sm:$0xff] %v12925_v21 }
 0x5ee   : > { %3689 = vperm.xlu1 %9575, %v12904_v3   ;;  %v16802_v3 = vld [vmem:[#allocation147_spill] sm:$0xff]  ;;  %v3248_v48 = vmul.f32 1.442695, %v3037_v53 }
 0x5ef   : > { %3632 = vperm.xlu2 %9577, %v12906_v9   ;;  %v3014_v33 = vsub.f32 %v16802_v3, %v12704_v35  ;;  %v3204_v9 = vmul.f32 1.442695, %v3015_v58 }
 0x5f0   : > { %3629 = vperm.xlu0 %9576, %v12909_v7   ;;  %v12915_v57 = vpop.permute.xlu1 %3563  ;;  %v12927_v7 = vpop.eup %9711 }
 0x5f1   : > { %v12919_v43 = vpop.permute.xlu2 %3533  ;;  %v3202_v25 = vmul.f32 1.442695, %v3014_v33  ;;  %16805 = vst [vmem:[#allocation113_spill] sm:$0xff] %v12927_v7  ;;  %v12930_v19 = vpop.eup %9713  ;;  %9717 = vpow2.f32 %v3204_v9  ;;  %v3018_v33 = vsub.f32 %v16808_v23, %v12794_v51 }
 0x5f2   : > { %v12923_v62 = vpop.permute.xlu0 %3506  ;;  %16806 = vst [vmem:[#allocation115_spill] sm:$0xff] %v12930_v19  ;;  %v12946_v31 = vpop.eup %9715 }
 0x5f3   : > { %16803 = vst [vmem:[#allocation109_spill] sm:$0xff] %v12923_v62  ;;  %9719 = vpow2.f32 %v3202_v25  ;;  %v16814_v25 = vld [vmem:[#allocation63_spill] sm:$0xff] }
 0x5f4   : > { %16811 = vst [vmem:[#allocation119_spill] sm:$0xff] %v12946_v31  ;;  %9721 = vpow2.f32 %v3248_v48  ;;  %v3040_v23 = vsub.f32 %v16814_v25, %v12902_v5 }
 0x5f6   : > { %3698 = vperm.xlu1 %9575, %v12925_v21   ;;  %v16809_v21 = vld [vmem:[#allocation51_spill] sm:$0xff]  ;;  %v3254_v48 = vmul.f32 1.442695, %v3040_v23  ;;  %v16823_v23 = vld [vmem:[#allocation57_spill] sm:$0xff] }
 0x5f7   : > { %3641 = vperm.xlu2 %9577, %v12927_v7   ;;  %v3017_v49 = vsub.f32 %v16809_v21, %v12704_v35  ;;  %v3210_v7 = vmul.f32 1.442695, %v3018_v33  ;;  %v16815_v35 = vld [vmem:[#allocation54_spill] sm:$0xff]  ;;  %v16817_v33 = vld [vmem:[#allocation53_spill] sm:$0xff] }
 0x5f8   : > { %3638 = vperm.xlu0 %9576, %v12930_v19   ;;  %v12936_v3 = vpop.permute.xlu1 %3572  ;;  %v12948_v19 = vpop.eup %9717 }
 0x5f9   : > { %v12940_v58 = vpop.permute.xlu2 %3542  ;;  %v3208_v60 = vmul.f32 1.442695, %v3017_v49  ;;  %16812 = vst [vmem:[#allocation114_spill] sm:$0xff] %v12948_v19  ;;  %v12951_v9 = vpop.eup %9719  ;;  %9723 = vpow2.f32 %v3210_v7  ;;  %v3021_v49 = vsub.f32 %v16815_v35, %v12794_v51 }
 0x5fa   : > { %v12944_v56 = vpop.permute.xlu0 %3512  ;;  %16813 = vst [vmem:[#allocation140_spill] sm:$0xff] %v12951_v9  ;;  %v12967_v37 = vpop.eup %9721 }
 0x5fb   : > { %16810 = vst [vmem:[#allocation137_spill] sm:$0xff] %v12944_v56  ;;  %9725 = vpow2.f32 %v3208_v60  ;;  %v16821_v60 = vld [vmem:[#allocation64_spill] sm:$0xff] }
 0x5fc   : > { %16818 = vst [vmem:[#allocation118_spill] sm:$0xff] %v12967_v37  ;;  %9727 = vpow2.f32 %v3254_v48  ;;  %v3043_v35 = vsub.f32 %v16821_v60, %v12902_v5 }
 0x5fe   : > { %3707 = vperm.xlu1 %9575, %v12946_v31   ;;  %v3020_v31 = vsub.f32 %v16817_v33, %v12794_v51  ;;  %v3260_v48 = vmul.f32 1.442695, %v3043_v35 }
 0x5ff   : > { %3650 = vperm.xlu2 %9577, %v12948_v19   ;;  %v3216_v19 = vmul.f32 1.442695, %v3021_v49 }
 0x600   : > { %3647 = vperm.xlu0 %9576, %v12951_v9   ;;  %v12957_v21 = vpop.permute.xlu1 %3581  ;;  %v3214_v25 = vmul.f32 1.442695, %v3020_v31  ;;  %v12969_v9 = vpop.eup %9723  ;;  %v3024_v31 = vsub.f32 %v16823_v23, %v12794_v51 }
 0x601   : > { %v12961_v53 = vpop.permute.xlu2 %3551  ;;  %16819 = vst [vmem:[#allocation28_spill] sm:$0xff] %v12969_v9  ;;  %v12972_v7 = vpop.eup %9725  ;;  %9729 = vpow2.f32 %v3216_v19 }
 0x602   : > { %16816 = vst [vmem:[#allocation116_spill] sm:$0xff] %v12961_v53  ;;  %v12965_v18 = vpop.permute.xlu0 %3521  ;;  %9731 = vpow2.f32 %v3214_v25  ;;  %v12988_v29 = vpop.eup %9727  ;;  %v16829_v25 = vld [vmem:[#allocation66_spill] sm:$0xff] }
 0x603   : > { %16820 = vst [vmem:[#allocation117_spill] sm:$0xff] %v12972_v7  ;;  %9733 = vpow2.f32 %v3260_v48  ;;  %v3046_v23 = vsub.f32 %v16829_v25, %v12902_v5 }
 0x604   : > { %16826 = vst [vmem:[#allocation120_spill] sm:$0xff] %v12988_v29 }
 0x605   : > { %v3266_v48 = vmul.f32 1.442695, %v3046_v23 }
 0x606   : > { %3716 = vperm.xlu1 %9575, %v12967_v37   ;;  %v16825_v37 = vld [vmem:[#allocation56_spill] sm:$0xff] }
 0x607   : > { %3659 = vperm.xlu2 %9577, %v12969_v9   ;;  %v3023_v4 = vsub.f32 %v16825_v37, %v12794_v51  ;;  %v3222_v9 = vmul.f32 1.442695, %v3024_v31  ;;  %v16830_v37 = vld [vmem:[#allocation60_spill] sm:$0xff] }
 0x608   : > { %3656 = vperm.xlu0 %9576, %v12972_v7   ;;  %v12978_v33 = vpop.permute.xlu1 %3590  ;;  %v12990_v7 = vpop.eup %9729  ;;  %v3027_v35 = vsub.f32 %v16830_v37, %v12794_v51 }
 0x609   : > { %16822 = vst [vmem:[#allocation121_spill] sm:$0xff] %v12978_v33  ;;  %v12982_v49 = vpop.permute.xlu2 %3560  ;;  %v3220_v60 = vmul.f32 1.442695, %v3023_v4  ;;  %v12993_v19 = vpop.eup %9731  ;;  %9735 = vpow2.f32 %v3222_v9 }
 0x60a   : > { %16824 = vst [vmem:[#allocation29_spill] sm:$0xff] %v12982_v49  ;;  %v12986_v52 = vpop.permute.xlu0 %3530  ;;  %v13009_v30 = vpop.eup %9733 }
 0x60b   : > { %16827 = vst [vmem:[#allocation124_spill] sm:$0xff] %v12990_v7  ;;  %9737 = vpow2.f32 %v3220_v60  ;;  %v16836_v60 = vld [vmem:[#allocation69_spill] sm:$0xff] }
 0x60c   : > { %16828 = vst [vmem:[#allocation30_spill] sm:$0xff] %v12993_v19  ;;  %9739 = vpow2.f32 %v3266_v48  ;;  %v3049_v37 = vsub.f32 %v16836_v60, %v12902_v5 }
 0x60d   : > { %16833 = vst [vmem:[#allocation127_spill] sm:$0xff] %v13009_v30 }
 0x60e   : > { %3725 = vperm.xlu1 %9575, %v12988_v29   ;;  %v16832_v29 = vld [vmem:[#allocation151_spill] sm:$0xff]  ;;  %v3272_v60 = vmul.f32 1.442695, %v3049_v37  ;;  %v16844_v37 = vld [vmem:[#allocation62_spill] sm:$0xff] }
 0x60f   : > { %3668 = vperm.xlu2 %9577, %v12990_v7   ;;  %v3026_v49 = vsub.f32 %v16832_v29, %v12794_v51  ;;  %v3228_v7 = vmul.f32 1.442695, %v3027_v35  ;;  %v16837_v29 = vld [vmem:[#allocation59_spill] sm:$0xff] }
 0x610   : > { %3665 = vperm.xlu0 %9576, %v12993_v19   ;;  %v13001_v31 = vpop.permute.xlu1 %3599  ;;  %v13011_v19 = vpop.eup %9735  ;;  %v3030_v23 = vsub.f32 %v16837_v29, %v12794_v51  ;;  %v16843_v29 = vld [vmem:[#allocation72_spill] sm:$0xff] }
 0x611   : > { %16831 = vst [vmem:[#allocation123_spill] sm:$0xff] %v13001_v31  ;;  %v13003_v4 = vpop.permute.xlu2 %3569  ;;  %v3226_v25 = vmul.f32 1.442695, %v3026_v49  ;;  %v13014_v9 = vpop.eup %9737  ;;  %9741 = vpow2.f32 %v3228_v7  ;;  %v16838_v49 = vld [vmem:[#allocation154_spill] sm:$0xff] }
 0x612   : > { %v13007_v56 = vpop.permute.xlu0 %3539  ;;  %16834 = vst [vmem:[#allocation32_spill] sm:$0xff] %v13011_v19  ;;  %v3234_v33 = vmul.f32 1.442695, %v3030_v23  ;;  %v3033_v23 = vsub.f32 %v16844_v37, %v12794_v51 }
 0x613   : > { %16835 = vst [vmem:[#allocation126_spill] sm:$0xff] %v13014_v9  ;;  %9743 = vpow2.f32 %v3226_v25 }
 0x614   : > { %9745 = vpow2.f32 %v3272_v60 }
 0x615   : > { %9747 = vpow2.f32 %v3234_v33 }
 0x616   : > { %3734 = vperm.xlu1 %9575, %v13009_v30   ;;  %v3029_v30 = vsub.f32 %v16838_v49, %v12794_v51 }
 0x617   : > { %3677 = vperm.xlu2 %9577, %v13011_v19   ;;  %v13029_v19 = vperm.slane %v12530_v45, 6 }
 0x618   : > { %3674 = vperm.xlu0 %9576, %v13014_v9   ;;  %v13031_v48 = vpop.permute.xlu1 %3608  ;;  %v13033_v9 = vpop.eup %9739  ;;  %v3232_v7 = vmul.f32 1.442695, %v3029_v30  ;;  %v16846_v30 = vld [vmem:[#allocation157_spill] sm:$0xff] }
 0x619   : > { %v13022_v35 = vpop.permute.xlu2 %3578  ;;  %16839 = vst [vmem:[#allocation130_spill] sm:$0xff] %v13031_v48  ;;  %v13035_v28 = vpop.eup %9741  ;;  %v3052_v49 = vsub.f32 %v16843_v29, %v13029_v19 }
 0x61a   : > { %v13026_v31 = vpop.permute.xlu0 %3548  ;;  %16840 = vst [vmem:[#allocation35_spill] sm:$0xff] %v13033_v9  ;;  %v13038_v25 = vpop.eup %9743  ;;  %9749 = vpow2.f32 %v3232_v7 }
 0x61b   : > { %16841 = vst [vmem:[#allocation129_spill] sm:$0xff] %v13035_v28  ;;  %v3278_v44 = vmul.f32 1.442695, %v3052_v49  ;;  %v13052_v60 = vpop.eup %9745  ;;  %v16853_v49 = vld [vmem:[#allocation156_spill] sm:$0xff] }
 0x61c   : > { %16842 = vst [vmem:[#allocation133_spill] sm:$0xff] %v13038_v25  ;;  %v3036_v37 = vsub.f32 %v16853_v49, %v12902_v5 }
 0x61d   : > { %16848 = vst [vmem:[#allocation136_spill] sm:$0xff] %v13052_v60  ;;  %9751 = vpow2.f32 %v3278_v44 }
 0x61e   : > { %3743 = vperm.xlu1 %9575, %v13033_v9   ;;  %v3032_v9 = vsub.f32 %v16846_v30, %v12794_v51  ;;  %v16852_v51 = vld [vmem:[#allocation75_spill] sm:$0xff] }
 0x61f   : > { %3686 = vperm.xlu2 %9577, %v13035_v28   ;;  %v3240_v28 = vmul.f32 1.442695, %v3033_v23  ;;  %v3055_v7 = vsub.f32 %v16852_v51, %v13029_v19 }
 0x620   : > { %3683 = vperm.xlu0 %9576, %v13038_v25   ;;  %v13054_v53 = vpop.permute.xlu1 %3617  ;;  %v3238_v29 = vmul.f32 1.442695, %v3032_v9  ;;  %v13056_v25 = vpop.eup %9747  ;;  %v16855_v9 = vld [vmem:[#allocation160_spill] sm:$0xff] }
 0x621   : > { %v13046_v48 = vpop.permute.xlu2 %3587  ;;  %16849 = vst [vmem:[#allocation41_spill] sm:$0xff] %v13054_v53  ;;  %v13059_v33 = vpop.eup %9749  ;;  %9753 = vpow2.f32 %v3240_v28  ;;  %v3035_v30 = vsub.f32 %v16855_v9, %v12902_v5  ;;  %v3284_v53 = vmul.f32 1.442695, %v3055_v7  ;;  %v16861_v7 = vld [vmem:[#allocation159_spill] sm:$0xff] }
 0x622   : > { %16845 = vst [vmem:[#allocation38_spill] sm:$0xff] %v13046_v48  ;;  %v13050_v32 = vpop.permute.xlu0 %3557  ;;  %9755 = vpow2.f32 %v3238_v29  ;;  %v16860_v29 = vld [vmem:[#allocation78_spill] sm:$0xff] }
 0x623   : > { %16847 = vst [vmem:[#allocation132_spill] sm:$0xff] %v13050_v32  ;;  %v13073_v44 = vpop.eup %9751  ;;  %v3244_v32 = vmul.f32 1.442695, %v3035_v30  ;;  %9757 = vpow2.f32 %v3284_v53  ;;  %v3058_v9 = vsub.f32 %v16860_v29, %v13029_v19 }
 0x624   : > { %16850 = vst [vmem:[#allocation135_spill] sm:$0xff] %v13056_v25 }
 0x625   : > { %16851 = vst [vmem:[#allocation139_spill] sm:$0xff] %v13059_v33 }
 0x626   : > { %3752 = vperm.xlu1 %9575, %v13052_v60   ;;  %16856 = vst [vmem:[#allocation138_spill] sm:$0xff] %v13073_v44 }
 0x627   : > { %3695 = vperm.xlu2 %9577, %v13056_v25   ;;  %v3246_v25 = vmul.f32 1.442695, %v3036_v37  ;;  %v13075_v51 = vpop.eup %9753  ;;  %v3039_v37 = vsub.f32 %v16861_v7, %v12902_v5 }
 0x628   : > { %3692 = vperm.xlu0 %9576, %v13059_v33   ;;  %16857 = vst [vmem:[#allocation142_spill] sm:$0xff] %v13075_v51  ;;  %v13078_v28 = vpop.eup %9755  ;;  %v13080_v49 = vpop.permute.xlu1 %3626 }
 0x629   : > { %v13067_v23 = vpop.permute.xlu2 %3596  ;;  %16858 = vst [vmem:[#allocation47_spill] sm:$0xff] %v13078_v28  ;;  %9759 = vpow2.f32 %v3246_v25  ;;  %v13094_v53 = vpop.eup %9757 }
 0x62a   : > { %16854 = vst [vmem:[#allocation44_spill] sm:$0xff] %v13067_v23  ;;  %v13071_v60 = vpop.permute.xlu0 %3566  ;;  %9761 = vpow2.f32 %v3244_v32  ;;  %v16867_v32 = vld [vmem:[#allocation81_spill] sm:$0xff] }
 0x62b   : > { %16859 = vst [vmem:[#allocation141_spill] sm:$0xff] %v13080_v49  ;;  %v3290_v49 = vmul.f32 1.442695, %v3058_v9  ;;  %v3061_v7 = vsub.f32 %v16867_v32, %v13029_v19 }
 0x62c   : > { %16864 = vst [vmem:[#allocation50_spill] sm:$0xff] %v13094_v53 }
 0x62d   : > { %9763 = vpow2.f32 %v3290_v49  ;;  %v3296_v49 = vmul.f32 1.442695, %v3061_v7 }
 0x62e   : > { %3761 = vperm.xlu1 %9575, %v13073_v44   ;;  %v16863_v44 = vld [vmem:[#allocation164_spill] sm:$0xff] }
 0x62f   : > { %3704 = vperm.xlu2 %9577, %v13075_v51   ;;  %v3038_v33 = vsub.f32 %v16863_v44, %v12902_v5  ;;  %v3252_v51 = vmul.f32 1.442695, %v3039_v37  ;;  %v13096_v29 = vpop.eup %9759  ;;  %v16868_v44 = vld [vmem:[#allocation163_spill] sm:$0xff] }
 0x630   : > { %3701 = vperm.xlu0 %9576, %v13078_v28   ;;  %16865 = vst [vmem:[#allocation34_spill] sm:$0xff] %v13096_v29  ;;  %v13099_v25 = vpop.eup %9761  ;;  %v3042_v9 = vsub.f32 %v16868_v44, %v12902_v5  ;;  %v13107_v37 = vpop.permute.xlu1 %3635 }
 0x631   : > { %v13088_v30 = vpop.permute.xlu2 %3605  ;;  %v3250_v48 = vmul.f32 1.442695, %v3038_v33  ;;  %16866 = vst [vmem:[#allocation33_spill] sm:$0xff] %v13099_v25  ;;  %9765 = vpow2.f32 %v3252_v51 }
 0x632   : > { %16862 = vst [vmem:[#allocation31_spill] sm:$0xff] %v13088_v30  ;;  %v13092_v23 = vpop.permute.xlu0 %3575 }
 0x633   : > { %16869 = vst [vmem:[#allocation52_spill] sm:$0xff] %v13107_v37  ;;  %9767 = vpow2.f32 %v3250_v48  ;;  %v13115_v62 = vpop.eup %9763  ;;  %v16875_v48 = vld [vmem:[#allocation84_spill] sm:$0xff] }
 0x634   : > { %16872 = vst [vmem:[#allocation36_spill] sm:$0xff] %v13115_v62  ;;  %9769 = vpow2.f32 %v3296_v49  ;;  %v3064_v44 = vsub.f32 %v16875_v48, %v13029_v19 }
 0x636   : > { %3770 = vperm.xlu1 %9575, %v13094_v53   ;;  %v16871_v53 = vld [vmem:[#allocation65_spill] sm:$0xff]  ;;  %v3302_v48 = vmul.f32 1.442695, %v3064_v44  ;;  %v16885_v44 = vld [vmem:[#allocation71_spill] sm:$0xff] }
 0x637   : > { %3713 = vperm.xlu2 %9577, %v13096_v29   ;;  %v3041_v28 = vsub.f32 %v16871_v53, %v12902_v5  ;;  %v3258_v29 = vmul.f32 1.442695, %v3042_v9  ;;  %v16876_v53 = vld [vmem:[#allocation68_spill] sm:$0xff] }
 0x638   : > { %3710 = vperm.xlu0 %9576, %v13099_v25   ;;  %v13117_v25 = vpop.eup %9765  ;;  %v3045_v7 = vsub.f32 %v16876_v53, %v12902_v5  ;;  %v13137_v49 = vpop.permute.xlu1 %3644  ;;  %v16884_v53 = vld [vmem:[#allocation87_spill] sm:$0xff] }
 0x639   : > { %v13109_v33 = vpop.permute.xlu2 %3614  ;;  %v3256_v32 = vmul.f32 1.442695, %v3041_v28  ;;  %16873 = vst [vmem:[#allocation55_spill] sm:$0xff] %v13117_v25  ;;  %v13120_v51 = vpop.eup %9767  ;;  %9771 = vpow2.f32 %v3258_v29  ;;  %v16878_v28 = vld [vmem:[#allocation67_spill] sm:$0xff] }
 0x63a   : > { %16870 = vst [vmem:[#allocation37_spill] sm:$0xff] %v13109_v33  ;;  %v13113_v30 = vpop.permute.xlu0 %3584  ;;  %v3264_v33 = vmul.f32 1.442695, %v3045_v7  ;;  %v3048_v7 = vsub.f32 %v16885_v44, %v12902_v5 }
 0x63b   : > { %16874 = vst [vmem:[#allocation40_spill] sm:$0xff] %v13120_v51  ;;  %9773 = vpow2.f32 %v3256_v32 }
 0x63c   : > { %16880 = vst [vmem:[#allocation43_spill] sm:$0xff] %v13137_v49  ;;  %9775 = vpow2.f32 %v3302_v48 }
 0x63d   : > { %9777 = vpow2.f32 %v3264_v33 }
 0x63e   : > { %3779 = vperm.xlu1 %9575, %v13115_v62   ;;  %v3044_v62 = vsub.f32 %v16878_v28, %v12902_v5 }
 0x63f   : > { %3722 = vperm.xlu2 %9577, %v13117_v25   ;;  %v13135_v25 = vperm.slane %v12530_v45, 7 }
 0x640   : > { %3719 = vperm.xlu0 %9576, %v13120_v51   ;;  %v13139_v51 = vpop.eup %9769  ;;  %v3262_v29 = vmul.f32 1.442695, %v3044_v62  ;;  %v16887_v62 = vld [vmem:[#allocation70_spill] sm:$0xff] }
 0x641   : > { %v13128_v9 = vpop.permute.xlu2 %3623  ;;  %16881 = vst [vmem:[#allocation42_spill] sm:$0xff] %v13139_v51  ;;  %v13141_v40 = vpop.eup %9771  ;;  %v3067_v45 = vsub.f32 %v16884_v53, %v13135_v25 }
 0x642   : > { %16877 = vst [vmem:[#allocation39_spill] sm:$0xff] %v13128_v9  ;;  %v13132_v37 = vpop.permute.xlu0 %3593  ;;  %v13144_v32 = vpop.eup %9773  ;;  %9779 = vpow2.f32 %v3262_v29 }
 0x643   : > { %16879 = vst [vmem:[#allocation58_spill] sm:$0xff] %v13132_v37  ;;  %v3308_v9 = vmul.f32 1.442695, %v3067_v45  ;;  %v13158_v48 = vpop.eup %9775  ;;  %v13160_v37 = vpop.permute.xlu1 %3653  ;;  %v16894_v45 = vld [vmem:[#allocation74_spill] sm:$0xff] }
 0x644   : > { %16882 = vst [vmem:[#allocation61_spill] sm:$0xff] %v13141_v40  ;;  %v3051_v44 = vsub.f32 %v16894_v45, %v13029_v19 }
 0x645   : > { %16883 = vst [vmem:[#allocation46_spill] sm:$0xff] %v13144_v32  ;;  %9781 = vpow2.f32 %v3308_v9 }
 0x646   : > { %3788 = vperm.xlu1 %9575, %v13139_v51   ;;  %v3047_v51 = vsub.f32 %v16887_v62, %v12902_v5  ;;  %16889 = vst [vmem:[#allocation49_spill] sm:$0xff] %v13158_v48  ;;  %v16893_v5 = vld [vmem:[#allocation90_spill] sm:$0xff] }
 0x647   : > { %3731 = vperm.xlu2 %9577, %v13141_v40   ;;  %v3270_v40 = vmul.f32 1.442695, %v3048_v7  ;;  %16890 = vst [vmem:[#allocation147_spill] sm:$0xff] %v13160_v37  ;;  %v3070_v29 = vsub.f32 %v16893_v5, %v13135_v25 }
 0x648   : > { %3728 = vperm.xlu0 %9576, %v13144_v32   ;;  %v3268_v53 = vmul.f32 1.442695, %v3047_v51  ;;  %v13162_v32 = vpop.eup %9777  ;;  %v16896_v51 = vld [vmem:[#allocation73_spill] sm:$0xff] }
 0x649   : > { %v13152_v28 = vpop.permute.xlu2 %3632  ;;  %16891 = vst [vmem:[#allocation165_spill] sm:$0xff] %v13162_v32  ;;  %v13165_v33 = vpop.eup %9779  ;;  %9783 = vpow2.f32 %v3270_v40  ;;  %v3050_v62 = vsub.f32 %v16896_v51, %v13029_v19 }
 0x64a   : > { %16886 = vst [vmem:[#allocation45_spill] sm:$0xff] %v13152_v28  ;;  %v13156_v49 = vpop.permute.xlu0 %3602  ;;  %9785 = vpow2.f32 %v3268_v53  ;;  %v3314_v28 = vmul.f32 1.442695, %v3070_v29  ;;  %v16901_v53 = vld [vmem:[#allocation92_spill] sm:$0xff]  ;;  %v16902_v29 = vld [vmem:[#allocation77_spill] sm:$0xff] }
 0x64b   : > { %16888 = vst [vmem:[#allocation161_spill] sm:$0xff] %v13156_v49  ;;  %v13179_v9 = vpop.eup %9781  ;;  %v3274_v49 = vmul.f32 1.442695, %v3050_v62  ;;  %v13186_v45 = vpop.permute.xlu1 %3662  ;;  %v3073_v51 = vsub.f32 %v16901_v53, %v13135_v25 }
 0x64c   : > { %16892 = vst [vmem:[#allocation48_spill] sm:$0xff] %v13165_v33  ;;  %9787 = vpow2.f32 %v3314_v28 }
 0x64d   : > { %16897 = vst [vmem:[#allocation63_spill] sm:$0xff] %v13179_v9  ;;  %v3320_v37 = vmul.f32 1.442695, %v3073_v51 }
 0x64e   : > { %3797 = vperm.xlu1 %9575, %v13158_v48   ;;  %16900 = vst [vmem:[#allocation64_spill] sm:$0xff] %v13186_v45 }
 0x64f   : > { %3740 = vperm.xlu2 %9577, %v13162_v32   ;;  %v3276_v32 = vmul.f32 1.442695, %v3051_v44  ;;  %v13181_v5 = vpop.eup %9783  ;;  %v3054_v44 = vsub.f32 %v16902_v29, %v13029_v19 }
 0x650   : > { %3737 = vperm.xlu0 %9576, %v13165_v33   ;;  %16898 = vst [vmem:[#allocation54_spill] sm:$0xff] %v13181_v5  ;;  %v13184_v40 = vpop.eup %9785 }
 0x651   : > { %v13173_v7 = vpop.permute.xlu2 %3641  ;;  %16899 = vst [vmem:[#allocation53_spill] sm:$0xff] %v13184_v40  ;;  %9789 = vpow2.f32 %v3276_v32 }
 0x652   : > { %16895 = vst [vmem:[#allocation51_spill] sm:$0xff] %v13173_v7  ;;  %v13177_v48 = vpop.permute.xlu0 %3611  ;;  %9791 = vpow2.f32 %v3274_v49  ;;  %v13200_v28 = vpop.eup %9787  ;;  %v16909_v49 = vld [vmem:[#allocation95_spill] sm:$0xff] }
 0x653   : > { %16906 = vst [vmem:[#allocation66_spill] sm:$0xff] %v13200_v28  ;;  %9793 = vpow2.f32 %v3320_v37  ;;  %v3076_v29 = vsub.f32 %v16909_v49, %v13135_v25 }
 0x655   : > { %v3326_v37 = vmul.f32 1.442695, %v3076_v29 }
 0x656   : > { %3806 = vperm.xlu1 %9575, %v13179_v9   ;;  %v16904_v9 = vld [vmem:[#allocation76_spill] sm:$0xff] }
 0x657   : > { %3749 = vperm.xlu2 %9577, %v13181_v5   ;;  %v3053_v33 = vsub.f32 %v16904_v9, %v13029_v19  ;;  %v3282_v5 = vmul.f32 1.442695, %v3054_v44  ;;  %v13202_v53 = vpop.eup %9789  ;;  %v16910_v9 = vld [vmem:[#allocation80_spill] sm:$0xff]  ;;  %v13213_v44 = vpop.permute.xlu1 %3671 }
 0x658   : > { %3746 = vperm.xlu0 %9576, %v13184_v40   ;;  %16907 = vst [vmem:[#allocation60_spill] sm:$0xff] %v13202_v53  ;;  %v13205_v32 = vpop.eup %9791  ;;  %v3057_v51 = vsub.f32 %v16910_v9, %v13029_v19 }
 0x659   : > { %v13194_v62 = vpop.permute.xlu2 %3650  ;;  %v3280_v45 = vmul.f32 1.442695, %v3053_v33  ;;  %16908 = vst [vmem:[#allocation151_spill] sm:$0xff] %v13205_v32  ;;  %9795 = vpow2.f32 %v3282_v5 }
 0x65a   : > { %16903 = vst [vmem:[#allocation57_spill] sm:$0xff] %v13194_v62  ;;  %v13198_v7 = vpop.permute.xlu0 %3620 }
 0x65b   : > { %16905 = vst [vmem:[#allocation56_spill] sm:$0xff] %v13198_v7  ;;  %9797 = vpow2.f32 %v3280_v45  ;;  %v13221_v7 = vpop.eup %9793  ;;  %v16918_v45 = vld [vmem:[#allocation98_spill] sm:$0xff] }
 0x65c   : > { %16911 = vst [vmem:[#allocation69_spill] sm:$0xff] %v13213_v44  ;;  %9799 = vpow2.f32 %v3326_v37  ;;  %v3079_v9 = vsub.f32 %v16918_v45, %v13135_v25 }
 0x65d   : > { %16915 = vst [vmem:[#allocation72_spill] sm:$0xff] %v13221_v7 }
 0x65e   : > { %3815 = vperm.xlu1 %9575, %v13200_v28   ;;  %v16913_v28 = vld [vmem:[#allocation79_spill] sm:$0xff]  ;;  %v3332_v37 = vmul.f32 1.442695, %v3079_v9 }
 0x65f   : > { %3758 = vperm.xlu2 %9577, %v13202_v53   ;;  %v3056_v40 = vsub.f32 %v16913_v28, %v13029_v19  ;;  %v3288_v53 = vmul.f32 1.442695, %v3057_v51  ;;  %v16919_v28 = vld [vmem:[#allocation83_spill] sm:$0xff] }
 0x660   : > { %3755 = vperm.xlu0 %9576, %v13205_v32   ;;  %v13223_v32 = vpop.eup %9795  ;;  %v3060_v29 = vsub.f32 %v16919_v28, %v13029_v19 }
 0x661   : > { %v13215_v33 = vpop.permute.xlu2 %3659  ;;  %v3286_v49 = vmul.f32 1.442695, %v3056_v40  ;;  %16916 = vst [vmem:[#allocation62_spill] sm:$0xff] %v13223_v32  ;;  %v13226_v5 = vpop.eup %9797  ;;  %9801 = vpow2.f32 %v3288_v53  ;;  %v16921_v40 = vld [vmem:[#allocation82_spill] sm:$0xff] }
 0x662   : > { %16912 = vst [vmem:[#allocation59_spill] sm:$0xff] %v13215_v33  ;;  %v13219_v62 = vpop.permute.xlu0 %3629  ;;  %v13242_v33 = vpop.eup %9799 }
 0x663   : > { %16914 = vst [vmem:[#allocation154_spill] sm:$0xff] %v13219_v62  ;;  %9803 = vpow2.f32 %v3286_v49  ;;  %v13240_v62 = vpop.permute.xlu1 %3680  ;;  %v16927_v49 = vld [vmem:[#allocation86_spill] sm:$0xff] }
 0x664   : > { %16917 = vst [vmem:[#allocation157_spill] sm:$0xff] %v13226_v5  ;;  %9805 = vpow2.f32 %v3332_v37  ;;  %v3063_v28 = vsub.f32 %v16927_v49, %v13029_v19 }
 0x665   : > { %16923 = vst [vmem:[#allocation160_spill] sm:$0xff] %v13240_v62 }
 0x666   : > { %3824 = vperm.xlu1 %9575, %v13221_v7   ;;  %v3059_v7 = vsub.f32 %v16921_v40, %v13029_v19  ;;  %16924 = vst [vmem:[#allocation78_spill] sm:$0xff] %v13242_v33 }
 0x667   : > { %3767 = vperm.xlu2 %9577, %v13223_v32   ;;  %v3294_v32 = vmul.f32 1.442695, %v3060_v29 }
 0x668   : > { %3764 = vperm.xlu0 %9576, %v13226_v5   ;;  %v3292_v45 = vmul.f32 1.442695, %v3059_v7  ;;  %v13244_v5 = vpop.eup %9801  ;;  %v16929_v7 = vld [vmem:[#allocation85_spill] sm:$0xff] }
 0x669   : > { %v13234_v51 = vpop.permute.xlu2 %3668  ;;  %16925 = vst [vmem:[#allocation159_spill] sm:$0xff] %v13244_v5  ;;  %v13247_v53 = vpop.eup %9803  ;;  %9807 = vpow2.f32 %v3294_v32  ;;  %v3062_v29 = vsub.f32 %v16929_v7, %v13029_v19  ;;  %v16937_v7 = vld [vmem:[#allocation190_spill] sm:$0xff] }
 0x66a   : > { %16920 = vst [vmem:[#allocation75_spill] sm:$0xff] %v13234_v51  ;;  %v13238_v44 = vpop.permute.xlu0 %3638  ;;  %9809 = vpow2.f32 %v3292_v45  ;;  %v13259_v62 = vpop.eup %9805  ;;  %v16935_v45 = vld [vmem:[#allocation89_spill] sm:$0xff] }
 0x66b   : > { %16922 = vst [vmem:[#allocation156_spill] sm:$0xff] %v13238_v44  ;;  %v13261_v44 = vpop.permute.xlu1 %3689  ;;  %v3298_v37 = vmul.f32 1.442695, %v3062_v29  ;;  %v3066_v49 = vsub.f32 %v16935_v45, %v13135_v25  ;;  %v3065_v29 = vsub.f32 %v16937_v7, %v13029_v19  ;;  %v16944_v19 = vld [vmem:[#allocation91_spill] sm:$0xff] }
 0x66c   : > { %16926 = vst [vmem:[#allocation164_spill] sm:$0xff] %v13247_v53 }
 0x66d   : > { %16931 = vst [vmem:[#allocation65_spill] sm:$0xff] %v13259_v62 }
 0x66e   : > { %3833 = vperm.xlu1 %9575, %v13242_v33   ;;  %v3300_v33 = vmul.f32 1.442695, %v3063_v28  ;;  %16932 = vst [vmem:[#allocation84_spill] sm:$0xff] %v13261_v44  ;;  %v3306_v44 = vmul.f32 1.442695, %v3066_v49  ;;  %v3068_v49 = vsub.f32 %v16944_v19, %v13135_v25 }
 0x66f   : > { %3776 = vperm.xlu2 %9577, %v13244_v5   ;;  %v13263_v5 = vpop.eup %9807 }
 0x670   : > { %3773 = vperm.xlu0 %9576, %v13247_v53   ;;  %16933 = vst [vmem:[#allocation68_spill] sm:$0xff] %v13263_v5  ;;  %v13266_v32 = vpop.eup %9809  ;;  %9811 = vpow2.f32 %v3300_v33  ;;  %v16942_v33 = vld [vmem:[#allocation88_spill] sm:$0xff] }
 0x671   : > { %v13253_v9 = vpop.permute.xlu2 %3677  ;;  %16934 = vst [vmem:[#allocation67_spill] sm:$0xff] %v13266_v32  ;;  %9813 = vpow2.f32 %v3298_v37  ;;  %v3069_v37 = vsub.f32 %v16942_v33, %v13135_v25 }
 0x672   : > { %16928 = vst [vmem:[#allocation81_spill] sm:$0xff] %v13253_v9  ;;  %v13257_v40 = vpop.permute.xlu0 %3647  ;;  %9815 = vpow2.f32 %v3306_v44  ;;  %v16947_v44 = vld [vmem:[#allocation94_spill] sm:$0xff] }
 0x673   : > { %16930 = vst [vmem:[#allocation163_spill] sm:$0xff] %v13257_v40  ;;  %v3072_v33 = vsub.f32 %v16947_v44, %v13135_v25 }
 0x676   : > { %3842 = vperm.xlu1 %9575, %v13259_v62   ;;  %v3304_v62 = vmul.f32 1.442695, %v3065_v29  ;;  %v13278_v40 = vpop.eup %9811  ;;  %v3312_v29 = vmul.f32 1.442695, %v3069_v37  ;;  %v16949_v37 = vld [vmem:[#allocation93_spill] sm:$0xff] }
 0x677   : > { %3785 = vperm.xlu2 %9577, %v13263_v5   ;;  %16939 = vst [vmem:[#allocation70_spill] sm:$0xff] %v13278_v40  ;;  %v13280_v9 = vpop.eup %9813  ;;  %v13282_v5 = vpop.permute.xlu1 %3698  ;;  %v3071_v19 = vsub.f32 %v16949_v37, %v13135_v25  ;;  %v16955_v37 = vld [vmem:[#allocation193_spill] sm:$0xff] }
 0x678   : > { %3782 = vperm.xlu0 %9576, %v13266_v32   ;;  %16940 = vst [vmem:[#allocation90_spill] sm:$0xff] %v13280_v9  ;;  %9817 = vpow2.f32 %v3304_v62  ;;  %v3310_v32 = vmul.f32 1.442695, %v3068_v49 }
 0x679   : > { %v13272_v28 = vpop.permute.xlu2 %3686  ;;  %16941 = vst [vmem:[#allocation74_spill] sm:$0xff] %v13282_v5  ;;  %9819 = vpow2.f32 %v3312_v29  ;;  %v16953_v29 = vld [vmem:[#allocation97_spill] sm:$0xff] }
 0x67a   : > { %16936 = vst [vmem:[#allocation87_spill] sm:$0xff] %v13272_v28  ;;  %v13276_v53 = vpop.permute.xlu0 %3656  ;;  %9821 = vpow2.f32 %v3310_v32  ;;  %v3075_v44 = vsub.f32 %v16953_v29, %v13135_v25 }
 0x67b   : > { %16938 = vst [vmem:[#allocation71_spill] sm:$0xff] %v13276_v53  ;;  %v13294_v53 = vpop.eup %9815 }
 0x67c   : > { %16945 = vst [vmem:[#allocation92_spill] sm:$0xff] %v13294_v53 }
 0x67e   : > { %v13296_v5 = vpop.eup %9817 }
 0x67f   : > { %3794 = vperm.xlu2 %9577, %v13278_v40   ;;  %16946 = vst [vmem:[#allocation77_spill] sm:$0xff] %v13296_v5  ;;  %v13302_v62 = vpop.permute.xlu1 %3707  ;;  %v3318_v40 = vmul.f32 1.442695, %v3072_v33  ;;  %v13310_v28 = vpop.eup %9819 }
 0x680   : > { %3791 = vperm.xlu0 %9576, %v13280_v9   ;;  %16951 = vst [vmem:[#allocation80_spill] sm:$0xff] %v13310_v28 }
 0x681   : > { %v13288_v45 = vpop.permute.xlu2 %3695  ;;  %9823 = vpow2.f32 %v3318_v40  ;;  %v16960_v40 = vld [vmem:[#allocation96_spill] sm:$0xff] }
 0x682   : > { %16943 = vst [vmem:[#allocation73_spill] sm:$0xff] %v13288_v45  ;;  %v13292_v7 = vpop.permute.xlu0 %3665  ;;  %v3316_v45 = vmul.f32 1.442695, %v3071_v19 }
 0x684   : > { %9825 = vpow2.f32 %v3316_v45  ;;  %v3078_v45 = vsub.f32 %v16960_v40, %v13135_v25 }
 0x687   : > { %3803 = vperm.xlu2 %9577, %v13294_v53   ;;  %v13312_v53 = vpop.eup %9821  ;;  %v13324_v19 = vpop.permute.xlu1 %3716 }
 0x688   : > { %3800 = vperm.xlu0 %9576, %v13296_v5   ;;  %16952 = vst [vmem:[#allocation79_spill] sm:$0xff] %v13312_v53  ;;  %v3074_v5 = vsub.f32 %v16955_v37, %v13135_v25  ;;  %v13326_v51 = vpop.eup %9823  ;;  %v16962_v37 = vld [vmem:[#allocation196_spill] sm:$0xff] }
 0x689   : > { %v13304_v9 = vpop.permute.xlu2 %3704  ;;  %16957 = vst [vmem:[#allocation82_spill] sm:$0xff] %v13324_v19 }
 0x68a   : > { %16948 = vst [vmem:[#allocation76_spill] sm:$0xff] %v13304_v9  ;;  %v13308_v49 = vpop.permute.xlu0 %3674  ;;  %v3324_v9 = vmul.f32 1.442695, %v3075_v44 }
 0x68b   : > { %16950 = vst [vmem:[#allocation95_spill] sm:$0xff] %v13308_v49  ;;  %v3322_v49 = vmul.f32 1.442695, %v3074_v5  ;;  %v3330_v5 = vmul.f32 1.442695, %v3078_v45  ;;  %v16969_v45 = vld [vmem:[#allocation100_spill] sm:$0xff] }
 0x68c   : > { %16958 = vst [vmem:[#allocation86_spill] sm:$0xff] %v13326_v51  ;;  %9827 = vpow2.f32 %v3324_v9  ;;  %v16967_v9 = vld [vmem:[#allocation99_spill] sm:$0xff] }
 0x68d   : > { %9829 = vpow2.f32 %v3322_v49  ;;  %v3081_v49 = vsub.f32 %v16967_v9, %v13135_v25 }
 0x68e   : > { %9831 = vpow2.f32 %v3330_v5 }
 0x68f   : > { %3812 = vperm.xlu2 %9577, %v13310_v28   ;;  %v13328_v28 = vpop.eup %9825 }
 0x690   : > { %3809 = vperm.xlu0 %9576, %v13312_v53   ;;  %16959 = vst [vmem:[#allocation85_spill] sm:$0xff] %v13328_v28  ;;  %v3077_v53 = vsub.f32 %v16962_v37, %v13135_v25  ;;  %v3080_v37 = vsub.f32 %v16969_v45, %v13135_v25 }
 0x691   : > { %v13318_v32 = vpop.permute.xlu2 %3713 }
 0x692   : > { %16954 = vst [vmem:[#allocation98_spill] sm:$0xff] %v13318_v32  ;;  %v13322_v33 = vpop.permute.xlu0 %3683  ;;  %v3328_v19 = vmul.f32 1.442695, %v3077_v53  ;;  %v13342_v32 = vpop.eup %9827  ;;  %v3336_v53 = vmul.f32 1.442695, %v3081_v49 }
 0x693   : > { %16956 = vst [vmem:[#allocation83_spill] sm:$0xff] %v13322_v33  ;;  %v13340_v33 = vpop.permute.xlu1 %3725 }
 0x694   : > { %16964 = vst [vmem:[#allocation88_spill] sm:$0xff] %v13340_v33  ;;  %9833 = vpow2.f32 %v3328_v19 }
 0x695   : > { %16965 = vst [vmem:[#allocation91_spill] sm:$0xff] %v13342_v32  ;;  %9835 = vpow2.f32 %v3336_v53 }
 0x697   : > { %3821 = vperm.xlu2 %9577, %v13326_v51   ;;  %v13344_v51 = vpop.eup %9829 }
 0x698   : > { %3818 = vperm.xlu0 %9576, %v13328_v28   ;;  %16966 = vst [vmem:[#allocation94_spill] sm:$0xff] %v13344_v51  ;;  %v13356_v33 = vpop.eup %9831 }
 0x699   : > { %v13334_v29 = vpop.permute.xlu2 %3722  ;;  %16971 = vst [vmem:[#allocation193_spill] sm:$0xff] %v13356_v33 }
 0x69a   : > { %16961 = vst [vmem:[#allocation89_spill] sm:$0xff] %v13334_v29  ;;  %v13338_v44 = vpop.permute.xlu0 %3692  ;;  %v13358_v29 = vpop.eup %9833 }
 0x69b   : > { %16963 = vst [vmem:[#allocation190_spill] sm:$0xff] %v13338_v44  ;;  %v3334_v44 = vmul.f32 1.442695, %v3080_v37  ;;  %v13368_v25 = vpop.eup %9835 }
 0x69c   : > { %16972 = vst [vmem:[#allocation96_spill] sm:$0xff] %v13358_v29 }
 0x69d   : > { %9837 = vpow2.f32 %v3334_v44  ;;  %16975 = vst [vmem:[#allocation100_spill] sm:$0xff] %v13368_v25 }
 0x69f   : > { %3830 = vperm.xlu2 %9577, %v13342_v32   ;;  %v13360_v32 = vpop.permute.xlu1 %3734 }
 0x6a0   : > { %3827 = vperm.xlu0 %9576, %v13344_v51   ;;  %16973 = vst [vmem:[#allocation196_spill] sm:$0xff] %v13360_v32  ;;  %v3884_v32 = vperm.slane %v12965_v18, %v12073_v11 }
 0x6a1   : > { %v13350_v40 = vpop.permute.xlu2 %3731 }
 0x6a2   : > { %16968 = vst [vmem:[#allocation93_spill] sm:$0xff] %v13350_v40  ;;  %v13354_v28 = vpop.permute.xlu0 %3701  ;;  %v3853_v40 = vperm.slane %v12815_v16, %v12073_v11  ;;  %v3886_v16 = vperm.slane %v12895_v1, %v12082_v12  ;;  %v3913_v1 = vperm.slane %v13071_v60, %v12068_v10 }
 0x6a3   : > { %16970 = vst [vmem:[#allocation97_spill] sm:$0xff] %v13354_v28  ;;  %v13370_v9 = vpop.eup %9837 }
 0x6a4   : > { %16976 = vst [vmem:[#allocation210_spill] sm:$0xff] %v13370_v9 }
 0x6a7   : > { %3839 = vperm.xlu2 %9577, %v13356_v33   ;;  %v13374_v49 = vpop.permute.xlu1 %3743 }
 0x6a8   : > { %3836 = vperm.xlu0 %9576, %v13358_v29   ;;  %16977 = vst [vmem:[#allocation211_spill] sm:$0xff] %v13374_v49 }
 0x6a9   : > { %v13364_v5 = vpop.permute.xlu2 %3740 }
 0x6aa   : > { %16974 = vst [vmem:[#allocation99_spill] sm:$0xff] %v13364_v5  ;;  %v13366_v19 = vpop.permute.xlu0 %3710 }
 0x6af   : > { %3848 = vperm.xlu2 %9577, %v13368_v25   ;;  %v13382_v29 = vpop.permute.xlu1 %3752 }
 0x6b0   : > { %3845 = vperm.xlu0 %9576, %v13370_v9   ;;  %16980 = vst [vmem:[#allocation214_spill] sm:$0xff] %v13382_v29  ;;  %v3850_v29 = vperm.slane %v12791_v27, %v12061_v63 }
 0x6b1   : > { %v13378_v37 = vpop.permute.xlu2 %3749 }
 0x6b2   : > { %v13376_v45 = vpop.permute.xlu0 %3719  ;;  %16978 = vst [vmem:[#allocation212_spill] sm:$0xff] %v13378_v37  ;;  %v3881_v37 = vperm.slane %v12874_v20, %v12061_v63 }
 0x6b7   : > { %v13388_v51 = vpop.permute.xlu1 %3761 }
 0x6b9   : > { %v13384_v44 = vpop.permute.xlu2 %3758 }
 0x6ba   : > { %v13380_v53 = vpop.permute.xlu0 %3728 }
 0x6bb   : > { %16979 = vst [vmem:[#allocation213_spill] sm:$0xff] %v13380_v53 }
 0x6bf   : > { %v13394_v9 = vpop.permute.xlu1 %3770 }
 0x6c0   : > { %16984 = vst [vmem:[#allocation218_spill] sm:$0xff] %v13394_v9  ;;  %v3851_v9 = vperm.slane %v12734_v34, %v12068_v10 }
 0x6c1   : > { %v13390_v28 = vpop.permute.xlu2 %3767 }
 0x6c2   : > { %v13386_v33 = vpop.permute.xlu0 %3737  ;;  %16982 = vst [vmem:[#allocation216_spill] sm:$0xff] %v13390_v28  ;;  %v3852_v53 = vsel %vm2645_vm0, %v3851_v9, %v3850_v29  ;;  %v3855_v28 = vperm.slane %v12751_v22, %v12082_v12  ;;  %v3888_v29 = vperm.slane %v12828_v36, %v12095_v41  ;;  %v3859_v22 = vperm.slane %v12768_v59, %v12100_v39 }
 0x6c3   : > { %16981 = vst [vmem:[#allocation215_spill] sm:$0xff] %v13386_v33  ;;  %v3912_v36 = vperm.slane %v12915_v57, %v12061_v63  ;;  %v3865_v59 = vperm.slane %v12878_v61, %v12141_v17 }
 0x6c7   : > { %v13406_v33 = vpop.permute.xlu1 %3779 }
 0x6c8   : > { %16986 = vst [vmem:[#allocation220_spill] sm:$0xff] %v13406_v33  ;;  %v3854_v33 = vsel %vm2649_vm1, %v3853_v40, %v3852_v53 }
 0x6c9   : > { %v13396_v49 = vpop.permute.xlu2 %3776 }
 0x6ca   : > { %v13392_v25 = vpop.permute.xlu0 %3746  ;;  %16985 = vst [vmem:[#allocation219_spill] sm:$0xff] %v13396_v49 }
 0x6cb   : > { %16983 = vst [vmem:[#allocation217_spill] sm:$0xff] %v13392_v25  ;;  %v3882_v25 = vperm.slane %v12807_v0, %v12068_v10  ;;  %v3857_v0 = vperm.slane %v12836_v55, %v12095_v41  ;;  %v3861_v55 = vperm.slane %v12857_v26, %v12106_v13  ;;  %v3892_v26 = vperm.slane %v12919_v43, %v12106_v13 }
 0x6cc   : > { %v3896_v43 = vperm.slane %v13007_v56, %v12141_v17  ;;  %v3867_v56 = vperm.slane %v12811_v6, %v12144_v24 }
 0x6cd   : > { %v3883_v27 = vsel %vm2645_vm0, %v3882_v25, %v3881_v37  ;;  %v3890_v25 = vperm.slane %v12986_v52, %v12100_v39 }
 0x6ce   : > { %v3885_v18 = vsel %vm2649_vm1, %v3884_v32, %v3883_v27  ;;  %v3856_v32 = vsel %vm2653_vm2, %v3855_v28, %v3854_v33  ;;  %v3914_v27 = vsel %vm2645_vm0, %v3913_v1, %v3912_v36  ;;  %v3871_v1 = vperm.slane %v12899_v38, %v12167_v42 }
 0x6cf   : > { %v3887_v34 = vsel %vm2653_vm2, %v3886_v16, %v3885_v18  ;;  %v3858_v40 = vsel %vm2657_vm3, %v3857_v0, %v3856_v32  ;;  %v13444_v37 = vpop.permute.xlu1 %3788  ;;  %v3863_v18 = vperm.slane %v12787_v54, %v12116_v15  ;;  %v3915_v0 = vperm.slane %v13003_v4, %v12073_v11 }
 0x6d0   : > { %v3889_v52 = vsel %vm2657_vm3, %v3888_v29, %v3887_v34  ;;  %v3860_v33 = vsel %vm16988_vm10, %v3859_v22, %v3858_v40  ;;  %v3894_v16 = vperm.slane %v12849_v14, %v12116_v15  ;;  %v3917_v29 = vperm.slane %v12936_v3, %v12082_v12 }
 0x6d1   : > { %v13416_v20 = vpop.permute.xlu2 %3785  ;;  %v3891_v28 = vsel %vm16987_vm8, %v3890_v25, %v3889_v52  ;;  %v3862_v53 = vsel %vm2665_vm5, %v3861_v55, %v3860_v33  ;;  %v3916_v61 = vsel %vm2649_vm1, %v3915_v0, %v3914_v27  ;;  %v3919_v25 = vperm.slane %v13092_v23, %v12095_v41  ;;  %v16996_v27 = vld [vmem:[#allocation109_spill] sm:$0xff] }
 0x6d2   : > { %v13398_v5 = vpop.permute.xlu0 %3755  ;;  %v3893_v57 = vsel %vm2665_vm5, %v3892_v26, %v3891_v28  ;;  %v3864_v34 = vsel %vm2669_vm6, %v3863_v18, %v3862_v53  ;;  %v3898_v40 = vperm.slane %v12940_v58, %v12144_v24  ;;  %v3918_v55 = vsel %vm2653_vm2, %v3917_v29, %v3916_v61  ;;  %v17001_v29 = vld [vmem:[#allocation132_spill] sm:$0xff] }
 0x6d3   : > { %v3866_v54 = vsel %vm2673_vm7, %v3865_v59, %v3864_v34  ;;  %v3895_v4 = vsel %vm2669_vm6, %v3894_v16, %v3893_v57  ;;  %vm16989_vm8 = vcmask 654912   ;;  %v3920_v3 = vsel %vm2657_vm3, %v3919_v25, %v3918_v55 }
 0x6d4   : > { %v3897_v14 = vsel %vm2673_vm7, %v3896_v43, %v3895_v4  ;;  %v3868_v23 = vsel %vm16989_vm8, %v3867_v56, %v3866_v54  ;;  %v3869_v52 = vperm.slane %v12783_v47, %v12138_v2  ;;  %vm16990_vm10 = vmmov %vm16989_vm8  ;;  %v3921_v36 = vperm.slane %v13022_v35, %v12100_v39  ;;  %v16998_v43 = vld [vmem:[#allocation116_spill] sm:$0xff]  ;;  %v17000_v54 = vld [vmem:[#allocation209_spill] sm:$0xff] }
 0x6d5   : > { %v3899_v6 = vsel %vm16990_vm10, %v3898_v40, %v3897_v14  ;;  %v3902_v58 = vperm.slane %v13026_v31, %v12167_v42  ;;  %v3900_v28 = vperm.slane %v12870_v46, %v12138_v2  ;;  %vm16991_vm8 = vcmask 720512   ;;  %v16995_v46 = vld [vmem:[#allocation208_spill] sm:$0xff] }
 0x6d6   : > { %v3870_v38 = vsel %vm16991_vm8, %v3869_v52, %v3868_v23  ;;  %v3922_v26 = vsel %vm16992_vm4, %v3921_v36, %v3920_v3  ;;  %v3925_v47 = vperm.slane %v13113_v30, %v12116_v15  ;;  %v3923_v35 = vperm.slane %v12957_v21, %v12106_v13  ;;  %vm16994_vm10 = vmmov %vm16991_vm8  ;;  %v17002_v14 = vld [vmem:[#allocation108_spill] sm:$0xff]  ;;  %v17003_v23 = vld [vmem:[#allocation122_spill] sm:$0xff] }
 0x6d7   : > { %v13487_v22 = vpop.permute.xlu1 %3797  ;;  %v3872_v53 = vsel %vm16993_vm9, %v3871_v1, %v3870_v38  ;;  %v3901_v59 = vsel %vm16994_vm10, %v3900_v28, %v3899_v6  ;;  %v3873_v31 = vperm.slane %v12832_v8, %v12183_v50  ;;  %v3875_v18 = vperm.slane %v16996_v27, %v16995_v46  ;;  %v16999_v8 = vld [vmem:[#allocation38_spill] sm:$0xff]  ;;  %v17004_v3 = vld [vmem:[#allocation37_spill] sm:$0xff]  ;;  %vm17015_vm9 = vmmov %vm16991_vm8 }
 0x6d8   : > { %v3903_v57 = vsel %vm16997_vm15, %v3902_v58, %v3901_v59  ;;  %v3904_v30 = vperm.slane %v16998_v43, %v12183_v50  ;;  %v3924_v16 = vsel %vm2665_vm5, %v3923_v35, %v3922_v26  ;;  %v3927_v25 = vperm.slane %v16999_v8, %v12141_v17  ;;  %v17005_v36 = vld [vmem:[#allocation58_spill] sm:$0xff]  ;;  %v17007_v59 = vld [vmem:[#allocation56_spill] sm:$0xff] }
 0x6d9   : > { %v13452_v60 = vpop.permute.xlu2 %3794  ;;  %v3874_v34 = vsel %vm2689_vm11, %v3873_v31, %v3872_v53  ;;  %v3926_v21 = vsel %vm2669_vm6, %v3925_v47, %v3924_v16  ;;  %v3908_v4 = vperm.slane %v17001_v29, %v17000_v54  ;;  %v3943_v56 = vperm.slane %v13177_v48, %v12061_v63  ;;  %v17006_v48 = vld [vmem:[#allocation121_spill] sm:$0xff] }
 0x6da   : > { %v13412_v49 = vpop.permute.xlu0 %3764  ;;  %v3905_v61 = vsel %vm2689_vm11, %v3904_v30, %v3903_v57  ;;  %v3906_v40 = vperm.slane %v17002_v14, %v16995_v46  ;;  %v3876_v55 = vsel %vm2693_vm12, %v3875_v18, %v3874_v34  ;;  %v3877_v1 = vperm.slane %v17003_v23, %v17000_v54  ;;  %v17008_v18 = vld [vmem:[#allocation150_spill] sm:$0xff]  ;;  %v17009_v57 = vld [vmem:[#allocation137_spill] sm:$0xff]  ;;  %v17016_v23 = vld [vmem:[#allocation44_spill] sm:$0xff] }
 0x6db   : > { %v3944_v52 = vperm.slane %v17004_v3, %v12068_v10  ;;  %v3928_v6 = vsel %vm2673_vm7, %v3927_v25, %v3926_v21  ;;  %v3931_v58 = vperm.slane %v17005_v36, %v12138_v2  ;;  %v3929_v38 = vperm.slane %v17006_v48, %v12144_v24  ;;  %v17010_v30 = vld [vmem:[#allocation29_spill] sm:$0xff]  ;;  %v17013_v25 = vld [vmem:[#allocation123_spill] sm:$0xff] }
 0x6dc   : > { %v3907_v26 = vsel %vm2693_vm12, %v3906_v40, %v3905_v61  ;;  %v13543_v47 = vsel %vm2697_vm13, %v3877_v1, %v3876_v55  ;;  %v3948_v31 = vperm.slane %v17007_v59, %v12082_v12  ;;  %v3910_v16 = vperm.slane %v17010_v30, %v17008_v18  ;;  %v17011_v34 = vld [vmem:[#allocation41_spill] sm:$0xff]  ;;  %v17020_v59 = vld [vmem:[#allocation39_spill] sm:$0xff] }
 0x6dd   : > { %v3909_v53 = vsel %vm2697_vm13, %v3908_v4, %v3907_v26  ;;  %v3945_v35 = vsel %vm2645_vm0, %v3944_v52, %v3943_v56  ;;  %v3946_v21 = vperm.slane %v17011_v34, %v12073_v11  ;;  %vm17012_vm4 = vcmask 654912   ;;  %v17014_v4 = vld [vmem:[#allocation130_spill] sm:$0xff]  ;;  %v17017_v52 = vld [vmem:[#allocation59_spill] sm:$0xff]  ;;  %v17018_v36 = vld [vmem:[#allocation141_spill] sm:$0xff] }
 0x6de   : > { %v3930_v61 = vsel %vm17012_vm4, %v3929_v38, %v3928_v6  ;;  %v3935_v29 = vperm.slane %v17013_v25, %v12183_v50  ;;  %v4006_v40 = vperm.slane %v13366_v19, %v12068_v10  ;;  %v13568_v55 = vsel %vm2701_vm14, %v3910_v16, %v3909_v53  ;;  %v17019_v26 = vld [vmem:[#allocation52_spill] sm:$0xff] }
 0x6df   : > { %v13537_v28 = vpop.permute.xlu1 %3806  ;;  %v3932_v14 = vsel %vm17015_vm9, %v3931_v58, %v3930_v61  ;;  %v3933_v1 = vperm.slane %v17016_v23, %v12167_v42  ;;  %v3947_v3 = vsel %vm2649_vm1, %v3946_v21, %v3945_v35  ;;  %v3974_v6 = vperm.slane %v17017_v52, %v12061_v63  ;;  %v17021_v16 = vld [vmem:[#allocation64_spill] sm:$0xff]  ;;  %v17022_v21 = vld [vmem:[#allocation31_spill] sm:$0xff] }
 0x6e0   : > { %v3952_v48 = vperm.slane %v17018_v36, %v12100_v39  ;;  %v3949_v38 = vsel %vm2653_vm2, %v3948_v31, %v3947_v3  ;;  %v4005_v58 = vperm.slane %v13302_v62, %v12061_v63  ;;  %v3977_v19 = vperm.slane %v13292_v7, %v12073_v11  ;;  %v17023_v61 = vld [vmem:[#allocation43_spill] sm:$0xff]  ;;  %v17027_v3 = vld [vmem:[#allocation161_spill] sm:$0xff] }
 0x6e1   : > { %v13498_v33 = vpop.permute.xlu2 %3803  ;;  %v3958_v53 = vperm.slane %v17019_v26, %v12141_v17  ;;  %v3950_v35 = vperm.slane %v17020_v59, %v12095_v41  ;;  %v3934_v30 = vsel %vm16997_vm15, %v3933_v1, %v3932_v14  ;;  %v3975_v34 = vperm.slane %v17021_v16, %v12068_v10  ;;  %v17024_v23 = vld [vmem:[#allocation147_spill] sm:$0xff]  ;;  %v17025_v1 = vld [vmem:[#allocation98_spill] sm:$0xff] }
 0x6e2   : > { %v13439_v9 = vpop.permute.xlu0 %3773  ;;  %v3939_v31 = vperm.slane %v17022_v21, %v17000_v54  ;;  %v3964_v62 = vperm.slane %v17023_v61, %v12167_v42  ;;  %v4007_v25 = vsel %vm2645_vm0, %v4006_v40, %v4005_v58  ;;  %v4036_v7 = vperm.slane %v13398_v5, %v12061_v63  ;;  %v17026_v16 = vld [vmem:[#allocation154_spill] sm:$0xff]  ;;  %v17050_v26 = vld [vmem:[#allocation87_spill] sm:$0xff] }
 0x6e3   : > { %v3951_v52 = vsel %vm2657_vm3, %v3950_v35, %v3949_v38  ;;  %v3976_v14 = vsel %vm2645_vm0, %v3975_v34, %v3974_v6  ;;  %v4008_v36 = vperm.slane %v17025_v1, %v12073_v11  ;;  %v3936_v59 = vsel %vm2689_vm11, %v3935_v29, %v3934_v30  ;;  %v17028_v6 = vld [vmem:[#allocation75_spill] sm:$0xff] }
 0x6e4   : > { %v3954_v43 = vperm.slane %v17026_v16, %v12106_v13  ;;  %v3978_v40 = vsel %vm2649_vm1, %v3977_v19, %v3976_v14  ;;  %v4037_v5 = vperm.slane %v13384_v44, %v12068_v10  ;;  %v3937_v38 = vperm.slane %v17027_v3, %v16995_v46  ;;  %v17030_v19 = vld [vmem:[#allocation82_spill] sm:$0xff] }
 0x6e5   : > { %v3979_v35 = vperm.slane %v17028_v6, %v12082_v12  ;;  %v4009_v34 = vsel %vm2649_vm1, %v4008_v36, %v4007_v25  ;;  %v4012_v29 = vperm.slane %v13376_v45, %v12095_v41  ;;  %vm17029_vm8 = vcmask 392512   ;;  %v17031_v25 = vld [vmem:[#allocation95_spill] sm:$0xff] }
 0x6e6   : > { %v3953_v1 = vsel %vm17029_vm8, %v3952_v48, %v3951_v52  ;;  %v4010_v14 = vperm.slane %v17030_v19, %v12082_v12  ;;  %v4038_v44 = vsel %vm2645_vm0, %v4037_v5, %v4036_v7  ;;  %v4041_v16 = vperm.slane %v13412_v49, %v12082_v12  ;;  %v17032_v52 = vld [vmem:[#allocation69_spill] sm:$0xff]  ;;  %vm17035_vm10 = vmmov %vm17029_vm8 }
 0x6e7   : > { %v13608_v58 = vpop.permute.xlu1 %3815  ;;  %v3980_v6 = vsel %vm2653_vm2, %v3979_v35, %v3978_v40  ;;  %v3983_v36 = vperm.slane %v17031_v25, %v12100_v39  ;;  %v4039_v45 = vperm.slane %v13388_v51, %v12073_v11  ;;  %v4067_v48 = vperm.slane %v13498_v33, %v12061_v63  ;;  %v17033_v40 = vld [vmem:[#allocation45_spill] sm:$0xff]  ;;  %vm17038_vm4 = vmmov %vm17029_vm8 }
 0x6e8   : > { %v3981_v19 = vperm.slane %v17032_v52, %v12095_v41  ;;  %v3955_v7 = vsel %vm2665_vm5, %v3954_v43, %v3953_v1  ;;  %v4011_v49 = vsel %vm2653_vm2, %v4010_v14, %v4009_v34  ;;  %v3956_v35 = vperm.slane %v17033_v40, %v12116_v15  ;;  %v17034_v43 = vld [vmem:[#allocation89_spill] sm:$0xff]  ;;  %vm17046_vm9 = vmmov %vm17038_vm4 }
 0x6e9   : > { %v13549_v27 = vpop.permute.xlu2 %3812  ;;  %v4013_v25 = vsel %vm2657_vm3, %v4012_v29, %v4011_v49  ;;  %v4068_v51 = vperm.slane %v13537_v28, %v12068_v10  ;;  %v4040_v56 = vsel %vm2649_vm1, %v4039_v45, %v4038_v44  ;;  %v13644_v33 = vsel %vm2693_vm12, %v3937_v38, %v3936_v59  ;;  %v17036_v29 = vld [vmem:[#allocation216_spill] sm:$0xff]  ;;  %v17037_v44 = vld [vmem:[#allocation81_spill] sm:$0xff]  ;;  %vm17052_vm8 = vmmov %vm17038_vm4 }
 0x6ea   : > { %v13475_v32 = vpop.permute.xlu0 %3782  ;;  %v3982_v52 = vsel %vm2657_vm3, %v3981_v19, %v3980_v6  ;;  %v4014_v34 = vperm.slane %v17034_v43, %v12100_v39  ;;  %v3957_v1 = vsel %vm2669_vm6, %v3956_v35, %v3955_v7  ;;  %v4043_v49 = vperm.slane %v17036_v29, %v12095_v41  ;;  %v17039_v6 = vld [vmem:[#allocation213_spill] sm:$0xff]  ;;  %v17041_v35 = vld [vmem:[#allocation156_spill] sm:$0xff]  ;;  %v17043_v43 = vld [vmem:[#allocation218_spill] sm:$0xff] }
 0x6eb   : > { %v3984_v14 = vsel %vm17035_vm10, %v3983_v36, %v3982_v52  ;;  %v4069_v28 = vsel %vm2645_vm0, %v4068_v51, %v4067_v48  ;;  %v3985_v59 = vperm.slane %v17037_v44, %v12106_v13  ;;  %v4018_v45 = vperm.slane %v17039_v6, %v12116_v15  ;;  %v17042_v52 = vld [vmem:[#allocation83_spill] sm:$0xff] }
 0x6ec   : > { %v4015_v38 = vsel %vm17038_vm4, %v4014_v34, %v4013_v25  ;;  %v4047_v7 = vperm.slane %v13439_v9, %v12106_v13  ;;  %v4072_v48 = vperm.slane %v13549_v27, %v12082_v12  ;;  %v3960_v25 = vperm.slane %v17041_v35, %v12144_v24  ;;  %v17045_v44 = vld [vmem:[#allocation51_spill] sm:$0xff] }
 0x6ed   : > { %v3986_v51 = vsel %vm2665_vm5, %v3985_v59, %v3984_v14  ;;  %v4045_v34 = vperm.slane %v17043_v43, %v12100_v39  ;;  %v3962_v6 = vperm.slane %v17045_v44, %v12138_v2  ;;  %v4074_v59 = vperm.slane %v13608_v58, %v12095_v41  ;;  %v17049_v58 = vld [vmem:[#allocation219_spill] sm:$0xff] }
 0x6ee   : > { %vm17048_vm15 = vcmask 654912   ;;  %vm17054_vm10 = vcmask 720512   ;;  %v17055_v44 = vld [vmem:[#allocation163_spill] sm:$0xff] }
 0x6ef   : > { %v3825_v29 = vpop.permute.xlu1 %3824  ;;  %vm17056_vm4 = vmmov %vm17048_vm15 }
 0x6f1   : > { %v13623_v3 = vpop.permute.xlu2 %3821 }
 0x6f2   : > { %v13513_v0 = vpop.permute.xlu0 %3791 }
 0x6f9   : > { %v3831_v35 = vpop.permute.xlu2 %3830 }
 0x6fa   : > { %v13558_v8 = vpop.permute.xlu0 %3800 }
 0x702   : > { %v3810_v30 = vpop.permute.xlu0 %3809 }
 0x703   : > { %v4070_v5 = vperm.slane %v3810_v30, %v12073_v11  ;;  %v4042_v30 = vsel %vm2653_vm2, %v4041_v16, %v4040_v56  ;;  %v17040_v56 = vld [vmem:[#allocation88_spill] sm:$0xff] }
 0x704   : > { %v4016_v16 = vperm.slane %v17040_v56, %v12106_v13  ;;  %v4044_v36 = vsel %vm2657_vm3, %v4043_v49, %v4042_v30  ;;  %v17044_v30 = vld [vmem:[#allocation160_spill] sm:$0xff] }
 0x705   : > { %v4071_v19 = vsel %vm2649_vm1, %v4070_v5, %v4069_v28  ;;  %v3989_v5 = vperm.slane %v17042_v52, %v12141_v17  ;;  %v3987_v49 = vperm.slane %v17044_v30, %v12116_v15  ;;  %v4046_v56 = vsel %vm17046_vm9, %v4045_v34, %v4044_v36  ;;  %vm17059_vm9 = vmmov %vm17056_vm4 }
 0x706   : > { %v4017_v9 = vsel %vm2665_vm5, %v4016_v16, %v4015_v38  ;;  %v4073_v27 = vsel %vm2653_vm2, %v4072_v48, %v4071_v19  ;;  %v3959_v38 = vsel %vm2673_vm7, %v3958_v53, %v3957_v1  ;;  %v17047_v16 = vld [vmem:[#allocation93_spill] sm:$0xff]  ;;  %v4049_v36 = vperm.slane %v17049_v58, %v12116_v15  ;;  %v17051_v1 = vld [vmem:[#allocation215_spill] sm:$0xff] }
 0x707   : > { %v4019_v14 = vsel %vm2669_vm6, %v4018_v45, %v4017_v9  ;;  %v3988_v19 = vsel %vm2669_vm6, %v3987_v49, %v3986_v51  ;;  %v4020_v48 = vperm.slane %v17047_v16, %v12141_v17  ;;  %v3961_v45 = vsel %vm17048_vm15, %v3960_v25, %v3959_v38  ;;  %vm17061_vm15 = vmmov %vm17054_vm10 }
 0x708   : > { %v3990_v52 = vsel %vm2673_vm7, %v3989_v5, %v3988_v19  ;;  %v4075_v43 = vsel %vm2657_vm3, %v4074_v59, %v4073_v27  ;;  %v3991_v34 = vperm.slane %v17050_v26, %v12144_v24  ;;  %v4024_v51 = vperm.slane %v17051_v1, %v12138_v2  ;;  %v17058_v19 = vld [vmem:[#allocation190_spill] sm:$0xff]  ;;  %v3834_v1 = vpop.permute.xlu1 %3833 }
 0x709   : > { %v4021_v53 = vsel %vm2673_vm7, %v4020_v48, %v4019_v14  ;;  %v4053_v49 = vperm.slane %v13475_v32, %v12144_v24  ;;  %v4078_v9 = vperm.slane %v13623_v3, %v12106_v13  ;;  %v3963_v27 = vsel %vm17054_vm10, %v3962_v6, %v3961_v45  ;;  %v17060_v6 = vld [vmem:[#allocation84_spill] sm:$0xff]  ;;  %vm17065_vm10 = vmmov %vm17056_vm4 }
 0x70a   : > { %v3819_v40 = vpop.permute.xlu0 %3818  ;;  %v3966_v14 = vperm.slane %v17055_v44, %v12183_v50  ;;  %v3992_v59 = vsel %vm17056_vm4, %v3991_v34, %v3990_v52  ;;  %v3995_v16 = vperm.slane %v17058_v19, %v12167_v42  ;;  %v4080_v52 = vperm.slane %v3825_v29, %v12116_v15  ;;  %v17064_v34 = vld [vmem:[#allocation99_spill] sm:$0xff]  ;;  %vm17066_vm4 = vmmov %vm17061_vm15 }
 0x70b   : > { %v4076_v28 = vperm.slane %v3819_v40, %v12100_v39  ;;  %v4048_v40 = vsel %vm2665_vm5, %v4047_v7, %v4046_v56  ;;  %v17053_v7 = vld [vmem:[#allocation196_spill] sm:$0xff] }
 0x70c   : > { %v4022_v25 = vperm.slane %v17053_v7, %v12144_v24  ;;  %v4050_v5 = vsel %vm2669_vm6, %v4049_v36, %v4048_v40  ;;  %v3993_v40 = vperm.slane %v17060_v6, %v12138_v2  ;;  %v17062_v36 = vld [vmem:[#allocation57_spill] sm:$0xff]  ;;  %v4055_v7 = vperm.slane %v13416_v20, %v12138_v2 }
 0x70d   : > { %v4077_v30 = vsel %vm17052_vm8, %v4076_v28, %v4075_v43  ;;  %v17057_v28 = vld [vmem:[#allocation220_spill] sm:$0xff]  ;;  %v3968_v43 = vperm.slane %v17062_v36, %v16995_v46  ;;  %vm17063_vm8 = vcmask 786112   ;;  %v4059_v20 = vperm.slane %v13513_v0, %v12183_v50  ;;  %v17077_v36 = vld [vmem:[#allocation71_spill] sm:$0xff] }
 0x70e   : > { %v4051_v56 = vperm.slane %v17057_v28, %v12141_v17  ;;  %v4023_v48 = vsel %vm17059_vm9, %v4022_v25, %v4021_v53  ;;  %v4079_v32 = vsel %vm2665_vm5, %v4078_v9, %v4077_v30  ;;  %v3965_v26 = vsel %vm17063_vm8, %v3964_v62, %v3963_v27  ;;  %vm17068_vm9 = vmmov %vm17063_vm8  ;;  %v3840_v27 = vpop.permute.xlu2 %3839 }
 0x70f   : > { %v4025_v45 = vsel %vm17061_vm15, %v4024_v51, %v4023_v48  ;;  %v4026_v53 = vperm.slane %v17064_v34, %v12167_v42  ;;  %v3967_v51 = vsel %vm2689_vm11, %v3966_v14, %v3965_v26  ;;  %v3994_v29 = vsel %vm17066_vm4, %v3993_v40, %v3992_v59  ;;  %vm17069_vm15 = vmmov %vm17063_vm8 }
 0x710   : > { %v4052_v58 = vsel %vm2673_vm7, %v4051_v56, %v4050_v5  ;;  %v4081_v25 = vsel %vm2669_vm6, %v4080_v52, %v4079_v32  ;;  %v17067_v5 = vld [vmem:[#allocation73_spill] sm:$0xff]  ;;  %v3996_v62 = vsel %vm17068_vm9, %v3995_v16, %v3994_v29  ;;  %vm17071_vm8 = vmmov %vm17066_vm4  ;;  %v4084_v28 = vperm.slane %v3831_v35, %v12144_v24  ;;  %v17073_v16 = vld [vmem:[#allocation211_spill] sm:$0xff] }
 0x711   : > { %v4054_v30 = vsel %vm17065_vm10, %v4053_v49, %v4052_v58  ;;  %v3997_v61 = vperm.slane %v17067_v5, %v12183_v50  ;;  %v4027_v9 = vsel %vm17069_vm15, %v4026_v53, %v4025_v45  ;;  %v17070_v49 = vld [vmem:[#allocation217_spill] sm:$0xff]  ;;  %v3940_v56 = vsel %vm2697_vm13, %v3939_v31, %v13644_v33  ;;  %vm17075_vm4 = vmmov %vm17068_vm9 }
 0x712   : > { %v3828_v38 = vpop.permute.xlu0 %3827  ;;  %v4030_v14 = vperm.slane %v17070_v49, %v16995_v46  ;;  %v4056_v59 = vsel %vm17071_vm8, %v4055_v7, %v4054_v30  ;;  %v4028_v48 = vperm.slane %v17073_v16, %v12183_v50  ;;  %v4057_v32 = vperm.slane %v13444_v37, %v12167_v42  ;;  %v17074_v35 = vld [vmem:[#allocation97_spill] sm:$0xff]  ;;  %vm17079_vm9 = vmmov %vm17071_vm8 }
 0x713   : > { %v4082_v3 = vperm.slane %v3828_v38, %v12141_v17  ;;  %v17072_v38 = vld [vmem:[#allocation74_spill] sm:$0xff]  ;;  %v3998_v0 = vsel %vm2689_vm11, %v3997_v61, %v3996_v62  ;;  %v4001_v6 = vperm.slane %v17074_v35, %v17000_v54  ;;  %v4086_v33 = vperm.slane %v3834_v1, %v12138_v2  ;;  %v17078_v1 = vld [vmem:[#allocation212_spill] sm:$0xff]  ;;  %vm17082_vm15 = vmmov %vm17075_vm4 }
 0x714   : > { %v3999_v19 = vperm.slane %v17072_v38, %v16995_v46  ;;  %v4029_v31 = vsel %vm2689_vm11, %v4028_v48, %v4027_v9  ;;  %v4058_v45 = vsel %vm17075_vm4, %v4057_v32, %v4056_v59  ;;  %v17076_v37 = vperm.slane %v17014_v4, %v17008_v18 }
 0x715   : > { %v4083_v44 = vsel %vm2673_vm7, %v4082_v3, %v4081_v25  ;;  %v3969_v3 = vsel %vm2693_vm12, %v3968_v43, %v3967_v51  ;;  %v3972_v43 = vperm.slane %v17077_v36, %v17008_v18  ;;  %v4031_v26 = vsel %vm2693_vm12, %v4030_v14, %v4029_v31  ;;  %v17081_v25 = vld [vmem:[#allocation76_spill] sm:$0xff] }
 0x716   : > { %v4085_v21 = vsel %vm17065_vm10, %v4084_v28, %v4083_v44  ;;  %v3942_v58 = vsel %vm2701_vm14, %v17076_v37, %v3940_v56  ;;  %v4060_v34 = vsel %vm2689_vm11, %v4059_v20, %v4058_v45  ;;  %v4000_v53 = vsel %vm2693_vm12, %v3999_v19, %v3998_v0  ;;  %v3843_v44 = vpop.permute.xlu1 %3842  ;;  %v17084_v28 = vld [vmem:[#allocation214_spill] sm:$0xff] }
 0x717   : > { %v4032_v30 = vperm.slane %v17078_v1, %v17000_v54  ;;  %v4061_v51 = vperm.slane %v13452_v60, %v16995_v46  ;;  %v4087_v29 = vsel %vm17079_vm9, %v4086_v33, %v4085_v21  ;;  %v17080_v4 = vperm.slane %v17024_v23, %v17000_v54 }
 0x718   : > { %v4003_v5 = vperm.slane %v17081_v25, %v17008_v18  ;;  %v4002_v61 = vsel %vm2697_vm13, %v4001_v6, %v4000_v53  ;;  %v4065_v60 = vperm.slane %v13558_v8, %v17008_v18  ;;  %v4090_v14 = vperm.slane %v3840_v27, %v12183_v50  ;;  %v3849_v27 = vpop.permute.xlu2 %3848  ;;  %v17093_v53 = vld [vmem:[#allocation172_spill] sm:$0xff] }
 0x719   : > { %v3971_v7 = vsel %vm2697_vm13, %v17080_v4, %v3969_v3  ;;  %v4033_v9 = vsel %vm2697_vm13, %v4032_v30, %v4031_v26  ;;  %v4062_v49 = vsel %vm2693_vm12, %v4061_v51, %v4060_v34  ;;  %v17083_v23 = vperm.slane %v17009_v57, %v17008_v18  ;;  %v17092_v26 = vld [vmem:[#allocation146_spill] sm:$0xff]  ;;  %v17094_v30 = vld [vmem:[#allocation144_spill] sm:$0xff] }
 0x71a   : > { %v3837_v40 = vpop.permute.xlu0 %3836  ;;  %v3973_v20 = vsel %vm2701_vm14, %v3972_v43, %v3971_v7  ;;  %v4034_v56 = vperm.slane %v17084_v28, %v17008_v18  ;;  %v4063_v38 = vperm.slane %v13487_v22, %v17000_v54  ;;  %vm17085_vm8 = vcmask 1041409  }
 0x71b   : > { %v4088_v52 = vperm.slane %v3837_v40, %v12167_v42  ;;  %v3880_v59 = vsel %vm2701_vm14, %v17083_v23, %v13543_v47  ;;  %v4004_v8 = vsel %vm2701_vm14, %v4003_v5, %v4002_v61  ;;  %vm17086_vm10 = vcmask 1042434   ;;  %v17097_v61 = vld [vmem:[#allocation176_spill] sm:$0xff] }
 0x71c   : > { %v4098_v19 = vsel %vm17085_vm8, %v13568_v55, %v3880_v59  ;;  %v4092_v47 = vperm.slane %v3843_v44, %v16995_v46  ;;  %v4035_v32 = vsel %vm2701_vm14, %v4034_v56, %v4033_v9  ;;  %v4064_v3 = vsel %vm2697_vm13, %v4063_v38, %v4062_v49  ;;  %v17098_v9 = vld [vmem:[#allocation158_spill] sm:$0xff] }
 0x71d   : > { %v4089_v62 = vsel %vm17082_vm15, %v4088_v52, %v4087_v29  ;;  %v4099_v57 = vsel %vm17086_vm10, %v3942_v58, %v4098_v19  ;;  %vm17087_vm4 = vcmask 1043459   ;;  %v4066_v55 = vsel %vm2701_vm14, %v4065_v60, %v4064_v3  ;;  %v17095_v29 = vld [vmem:[#allocation149_spill] sm:$0xff] }
 0x71e   : > { %v4091_v16 = vsel %vm2689_vm11, %v4090_v14, %v4089_v62  ;;  %v4100_v0 = vsel %vm17087_vm4, %v3973_v20, %v4099_v57  ;;  %v4096_v35 = vperm.slane %v3849_v27, %v17008_v18  ;;  %vm17088_vm9 = vcmask 1044484   ;;  %v17099_v27 = vld [vmem:[#allocation145_spill] sm:$0xff] }
 0x71f   : > { %v4093_v6 = vsel %vm2693_vm12, %v4092_v47, %v4091_v16  ;;  %v4101_v21 = vsel %vm17088_vm9, %v4004_v8, %v4100_v0  ;;  %vm17089_vm15 = vcmask 1045509   ;;  %vm17090_vm8 = vcmask 1046534   ;;  %v17101_v57 = vld [vmem:[#allocation153_spill] sm:$0xff] }
 0x720   : > { %v4102_v31 = vsel %vm17089_vm15, %v4035_v32, %v4101_v21  ;;  %vm17091_vm10 = vcmask 1047559   ;;  %v17103_v32 = vld [vmem:[#allocation167_spill] sm:$0xff]  ;;  %vm17206_vm4 = vcmask 392512   ;;  %vm17217_vm9 = vcmask 654912  }
 0x721   : > { %v4103_v45 = vsel %vm17090_vm8, %v4066_v55, %v4102_v31  ;;  %vm17220_vm15 = vcmask 720512   ;;  %vm17221_vm8 = vcmask 786112  }
 0x722   : > { %v3846_v48 = vpop.permute.xlu0 %3845 }
 0x723   : > { %v4094_v22 = vperm.slane %v3846_v48, %v17000_v54 }
 0x725   : > { %v4095_v40 = vsel %vm2697_vm13, %v4094_v22, %v4093_v6 }
 0x726   : > { %v4097_v33 = vsel %vm2701_vm14, %v4096_v35, %v4095_v40 }
 0x727   : > { %v4104_v52 = vsel %vm17091_vm10, %v4097_v33, %v4103_v45  ;;  %v17104_v33 = vld [vmem:[#allocation174_spill] sm:$0xff]  ;;  %vm17239_vm10 = vmmov %vm17206_vm4 }
 0x728   : > { %4106 = vadd.xlane.f32.xlu1 %v4104_v52  ;;  %v17106_v52 = vld [vmem:[#allocation175_spill] sm:$0xff] }
 0x79b   : > { %v4107_v37 = vpop.xlane.xlu1 %4106 }
 0x79c   : > { %9839 = vrcp.f32 %v4107_v37 }
 0x7a2   : > { %v13829_v58 = vpop.eup %9839 }
 0x7a3   : > { %v13832_v36 = vperm.slane %v13829_v58, 0  ;;  %v13835_v43 = vperm.slane %v13829_v58, 1 }
 0x7a5   : > { %v13839_v34 = vmul.f32 %v17092_v26, %v13832_v36  ;;  %v13843_v1 = vmul.f32 %v17093_v53, %v13832_v36  ;;  %v13847_v51 = vmul.f32 %v17094_v30, %v13832_v36  ;;  %v13851_v4 = vmul.f32 %v17095_v29, %v13835_v43  ;;  %v17107_v53 = vld [vmem:[#allocation148_spill] sm:$0xff] }
 0x7a6   : > { %v13861_v62 = vmul.f32 %v17097_v61, %v13832_v36  ;;  %v13865_v44 = vmul.f32 %v17098_v9, %v13832_v36  ;;  %v13875_v16 = vmul.f32 %v17099_v27, %v13835_v43  ;;  %v13879_v47 = vmul.f32 %v17101_v57, %v13832_v36 }
 0x7a7   : > { %17096 = vst [vmem:[#allocation208_spill] sm:$0xff] %v13851_v4  ;;  %v4264_v7 = vpack.c.bf16 %v13839_v34, %v13839_v34  ;;  %v4255_v25 = vpack.c.bf16 %v13843_v1, %v13843_v1  ;;  %v4254_v5 = vpack.c.bf16 %v13847_v51, %v13847_v51  ;;  %v4271_v23 = vpack.c.bf16 %v13851_v4, %v13851_v4 }
 0x7a8   : > { %v4257_v56 = vpack.c.bf16 %v13861_v62, %v13861_v62  ;;  %v4256_v38 = vpack.c.bf16 %v13865_v44, %v13865_v44  ;;  %17100 = vst [vmem:[#allocation109_spill] sm:$0xff] %v13875_v16  ;;  %v13883_v3 = vmul.f32 %v17103_v32, %v13832_v36  ;;  %v4274_v55 = vpack.c.bf16 %v13875_v16, %v13875_v16 }
 0x7a9   : > { %v4536_v49 = vunpack.c.l.b16 %v4264_v7  ;;  %v4527_v60 = vunpack.c.l.b16 %v4255_v25  ;;  %v4526_v14 = vunpack.c.l.b16 %v4254_v5  ;;  %v4725_v19 = vunpack.c.l.b16 %v4271_v23  ;;  %17102 = vst [vmem:[#allocation116_spill] sm:$0xff] %v13879_v47 }
 0x7aa   : > { %v4529_v8 = vunpack.c.l.b16 %v4257_v56  ;;  %v4528_v48 = vunpack.c.l.b16 %v4256_v38  ;;  %v4259_v35 = vpack.c.bf16 %v13879_v47, %v13879_v47  ;;  %v4258_v21 = vpack.c.bf16 %v13883_v3, %v13883_v3  ;;  %v17113_v56 = vld [vmem:[#allocation179_spill] sm:$0xff] }
 0x7ab   : > { %v8129_v59 = vunpack.i.l.s16 %v4536_v49  ;;  %v8120_v20 = vunpack.i.l.s16 %v4527_v60  ;;  %v8119_v28 = vunpack.i.l.s16 %v4526_v14  ;;  %v8168_v0 = vunpack.i.l.s16 %v4725_v19  ;;  %v17109_v14 = vld [vmem:[#allocation152_spill] sm:$0xff] }
 0x7ac   : > { %v8122_v22 = vunpack.i.l.s16 %v4529_v8  ;;  %v8121_v6 = vunpack.i.l.s16 %v4528_v48  ;;  %v4728_v40 = vunpack.c.l.b16 %v4274_v55  ;;  %v4531_v31 = vunpack.c.l.b16 %v4259_v35  ;;  %v17115_v55 = vld [vmem:[#allocation162_spill] sm:$0xff] }
 0x7ad   : > { %4597 = vperm.xlu1 %9575, %v8129_v59   ;;  %4570 = vperm.xlu2 %9577, %v8120_v20   ;;  %v13893_v45 = vmul.f32 %v17104_v33, %v13835_v43  ;;  %v13897_v37 = vmul.f32 %v17106_v52, %v13832_v36  ;;  %v4530_v26 = vunpack.c.l.b16 %v4258_v21  ;;  %v13901_v30 = vmul.f32 %v17107_v53, %v13832_v36  ;;  %v17111_v59 = vld [vmem:[#allocation170_spill] sm:$0xff] }
 0x7ae   : > { %4567 = vperm.xlu0 %9576, %v8119_v28   ;;  %v8171_v29 = vunpack.i.l.s16 %v4728_v40  ;;  %v8124_v7 = vunpack.i.l.s16 %v4531_v31  ;;  %v13911_v23 = vmul.f32 %v17109_v14, %v13835_v43  ;;  %v13915_v20 = vmul.f32 %v17111_v59, %v13832_v36  ;;  %v17119_v31 = vld [vmem:[#allocation169_spill] sm:$0xff]  ;;  %v17123_v14 = vld [vmem:[#allocation178_spill] sm:$0xff] }
 0x7af   : > { %17105 = vst [vmem:[#allocation38_spill] sm:$0xff] %v13893_v45  ;;  %v4277_v25 = vpack.c.bf16 %v13893_v45, %v13893_v45  ;;  %v4261_v5 = vpack.c.bf16 %v13897_v37, %v13897_v37  ;;  %v8123_v61 = vunpack.i.l.s16 %v4530_v26  ;;  %v4260_v9 = vpack.c.bf16 %v13901_v30, %v13901_v30 }
 0x7b0   : > { %17108 = vst [vmem:[#allocation209_spill] sm:$0xff] %v13901_v30  ;;  %v13919_v38 = vmul.f32 %v17113_v56, %v13832_v36  ;;  %v4280_v27 = vpack.c.bf16 %v13911_v23, %v13911_v23  ;;  %v4263_v57 = vpack.c.bf16 %v13915_v20, %v13915_v20  ;;  %v13929_v35 = vmul.f32 %v17115_v55, %v13835_v43  ;;  %v17125_v56 = vld [vmem:[#allocation166_spill] sm:$0xff] }
 0x7b1   : > { %v4731_v49 = vunpack.c.l.b16 %v4277_v25  ;;  %v4533_v60 = vunpack.c.l.b16 %v4261_v5  ;;  %17110 = vst [vmem:[#allocation132_spill] sm:$0xff] %v13911_v23  ;;  %v4532_v28 = vunpack.c.l.b16 %v4260_v9  ;;  %v13937_v33 = vmul.f32 %v17119_v31, %v13832_v36  ;;  %v17128_v31 = vld [vmem:[#allocation171_spill] sm:$0xff] }
 0x7b2   : > { %17112 = vst [vmem:[#allocation108_spill] sm:$0xff] %v13915_v20  ;;  %v4262_v32 = vpack.c.bf16 %v13919_v38, %v13919_v38  ;;  %v13940_v52 = vperm.slane %v13829_v58, 2  ;;  %v13954_v59 = vmul.f32 %v17123_v14, %v13832_v36 }
 0x7b3   : > { %17114 = vst [vmem:[#allocation122_spill] sm:$0xff] %v13919_v38  ;;  %v8174_v19 = vunpack.i.l.s16 %v4731_v49  ;;  %v8126_v8 = vunpack.i.l.s16 %v4533_v60  ;;  %v8125_v48 = vunpack.i.l.s16 %v4532_v28  ;;  %v4265_v5 = vpack.c.bf16 %v13937_v33, %v13937_v33  ;;  %v17121_v49 = vld [vmem:[#allocation177_spill] sm:$0xff] }
 0x7b4   : > { %17116 = vst [vmem:[#allocation37_spill] sm:$0xff] %v13929_v35  ;;  %v4534_v40 = vunpack.c.l.b16 %v4262_v32  ;;  %v13950_v60 = vmul.f32 %v17121_v49, %v13940_v52 }
 0x7b5   : > { %4768 = vperm.xlu1 %9575, %v8168_v0   ;;  %4576 = vperm.xlu2 %9577, %v8122_v22   ;;  %v4734_v0 = vunpack.c.l.b16 %v4280_v27  ;;  %v4535_v22 = vunpack.c.l.b16 %v4263_v57  ;;  %17120 = vst [vmem:[#allocation121_spill] sm:$0xff] %v13937_v33  ;;  %v4537_v28 = vunpack.c.l.b16 %v4265_v5 }
 0x7b6   : > { %4573 = vperm.xlu0 %9576, %v8121_v6   ;;  %v17117_v6 = vld [vmem:[#allocation155_spill] sm:$0xff]  ;;  %v8127_v25 = vunpack.i.l.s16 %v4534_v40  ;;  %17122 = vst [vmem:[#allocation56_spill] sm:$0xff] %v13950_v60  ;;  %v4286_v57 = vpack.c.bf16 %v13950_v60, %v13950_v60 }
 0x7b7   : > { %v13933_v21 = vmul.f32 %v17117_v6, %v13832_v36  ;;  %v8177_v26 = vunpack.i.l.s16 %v4734_v0  ;;  %v8128_v53 = vunpack.i.l.s16 %v4535_v22  ;;  %17124 = vst [vmem:[#allocation150_spill] sm:$0xff] %v13954_v59  ;;  %v8130_v32 = vunpack.i.l.s16 %v4537_v28  ;;  %v17126_v6 = vld [vmem:[#allocation168_spill] sm:$0xff] }
 0x7b8   : > { %v4922_v22 = vunpack.c.l.b16 %v4286_v57  ;;  %v13968_v40 = vmul.f32 %v17126_v6, %v13940_v52 }
 0x7b9   : > { %17118 = vst [vmem:[#allocation58_spill] sm:$0xff] %v13933_v21 }
 0x7ba   : > { %17127 = vst [vmem:[#allocation137_spill] sm:$0xff] %v13968_v40 }
 0x7bd   : > { %4777 = vperm.xlu1 %9575, %v8171_v29   ;;  %4582 = vperm.xlu2 %9577, %v8124_v7   ;;  %v4283_v29 = vpack.c.bf16 %v13929_v35, %v13929_v35  ;;  %v4266_v7 = vpack.c.bf16 %v13933_v21, %v13933_v21  ;;  %v17156_v35 = vld [vmem:[#allocation206_spill] sm:$0xff] }
 0x7be   : > { %4579 = vperm.xlu0 %9576, %v8123_v61  }
 0x7bf   : > { %v4737_v61 = vunpack.c.l.b16 %v4283_v29  ;;  %v4538_v9 = vunpack.c.l.b16 %v4266_v7  ;;  %v17129_v29 = vld [vmem:[#allocation182_spill] sm:$0xff] }
 0x7c0   : > { %v13976_v7 = vmul.f32 %v17129_v29, %v13832_v36 }
 0x7c1   : > { %v8131_v27 = vunpack.i.l.s16 %v4538_v9 }
 0x7c2   : > { %17130 = vst [vmem:[#allocation29_spill] sm:$0xff] %v13976_v7  ;;  %v4269_v14 = vpack.c.bf16 %v13976_v7, %v13976_v7 }
 0x7c5   : > { %4786 = vperm.xlu1 %9575, %v8174_v19   ;;  %4588 = vperm.xlu2 %9577, %v8126_v8   ;;  %v13958_v19 = vmul.f32 %v17125_v56, %v13832_v36  ;;  %v8180_v8 = vunpack.i.l.s16 %v4737_v61  ;;  %v4289_v61 = vpack.c.bf16 %v13968_v40, %v13968_v40  ;;  %v17131_v36 = vld [vmem:[#allocation180_spill] sm:$0xff]  ;;  %v14051_v40 = vperm.slane %v13829_v58, 3 }
 0x7c6   : > { %4585 = vperm.xlu0 %9576, %v8125_v48   ;;  %v4268_v48 = vpack.c.bf16 %v13954_v59, %v13954_v59 }
 0x7c7   : > { %v4267_v0 = vpack.c.bf16 %v13958_v19, %v13958_v19  ;;  %v4925_v28 = vunpack.c.l.b16 %v4289_v61  ;;  %v17136_v61 = vld [vmem:[#allocation192_spill] sm:$0xff] }
 0x7c8   : > { %v4540_v55 = vunpack.c.l.b16 %v4268_v48  ;;  %v4541_v48 = vunpack.c.l.b16 %v4269_v14 }
 0x7ca   : > { %v8133_v5 = vunpack.i.l.s16 %v4540_v55 }
 0x7cd   : > { %4795 = vperm.xlu1 %9575, %v8177_v26   ;;  %4594 = vperm.xlu2 %9577, %v8128_v53   ;;  %v13972_v26 = vmul.f32 %v17128_v31, %v13835_v43  ;;  %v4539_v53 = vunpack.c.l.b16 %v4267_v0 }
 0x7ce   : > { %4591 = vperm.xlu0 %9576, %v8127_v25   ;;  %v8215_v25 = vunpack.i.l.s16 %v4922_v22  ;;  %v8218_v22 = vunpack.i.l.s16 %v4925_v28 }
 0x7cf   : > { %v4270_v9 = vpack.c.bf16 %v13972_v26, %v13972_v26  ;;  %v8132_v49 = vunpack.i.l.s16 %v4539_v53  ;;  %v8134_v53 = vunpack.i.l.s16 %v4541_v48 }
 0x7d1   : > { %v4724_v56 = vunpack.c.l.b16 %v4270_v9  ;;  %v14004_v9 = vmul.f32 %v17136_v61, %v13940_v52 }
 0x7d3   : > { %v8167_v55 = vunpack.i.l.s16 %v4724_v56  ;;  %17137 = vst [vmem:[#allocation130_spill] sm:$0xff] %v14004_v9  ;;  %v17139_v56 = vld [vmem:[#allocation183_spill] sm:$0xff] }
 0x7d5   : > { %4804 = vperm.xlu1 %9575, %v8180_v8   ;;  %4603 = vperm.xlu2 %9577, %v8131_v27   ;;  %v13986_v8 = vmul.f32 %v17131_v36, %v13940_v52  ;;  %v17133_v27 = vld [vmem:[#allocation181_spill] sm:$0xff]  ;;  %v14012_v36 = vmul.f32 %v17139_v56, %v13835_v43  ;;  %v17144_v56 = vld [vmem:[#allocation194_spill] sm:$0xff] }
 0x7d6   : > { %4600 = vperm.xlu0 %9576, %v8130_v32   ;;  %v13990_v57 = vmul.f32 %v17133_v27, %v13835_v43  ;;  %v17134_v32 = vld [vmem:[#allocation185_spill] sm:$0xff] }
 0x7d7   : > { %17132 = vst [vmem:[#allocation41_spill] sm:$0xff] %v13986_v8  ;;  %v13994_v0 = vmul.f32 %v17134_v32, %v13835_v43  ;;  %v4292_v6 = vpack.c.bf16 %v13986_v8, %v13986_v8  ;;  %v4295_v32 = vpack.c.bf16 %v14004_v9, %v14004_v9 }
 0x7d8   : > { %v4273_v31 = vpack.c.bf16 %v13990_v57, %v13990_v57  ;;  %17140 = vst [vmem:[#allocation44_spill] sm:$0xff] %v14012_v36 }
 0x7d9   : > { %17135 = vst [vmem:[#allocation123_spill] sm:$0xff] %v13994_v0  ;;  %v4272_v29 = vpack.c.bf16 %v13994_v0, %v13994_v0 }
 0x7db   : > { %v4726_v28 = vunpack.c.l.b16 %v4272_v29  ;;  %v17141_v29 = vld [vmem:[#allocation204_spill] sm:$0xff] }
 0x7dc   : > { %v14022_v61 = vmul.f32 %v17141_v29, %v13940_v52  ;;  %v17146_v29 = vld [vmem:[#allocation184_spill] sm:$0xff] }
 0x7dd   : > { %4963 = vperm.xlu1 %9575, %v8215_v25   ;;  %4609 = vperm.xlu2 %9577, %v8133_v5   ;;  %v4928_v25 = vunpack.c.l.b16 %v4292_v6  ;;  %v4727_v5 = vunpack.c.l.b16 %v4273_v31  ;;  %v4275_v6 = vpack.c.bf16 %v14012_v36, %v14012_v36  ;;  %v4931_v31 = vunpack.c.l.b16 %v4295_v32 }
 0x7de   : > { %4606 = vperm.xlu0 %9576, %v8132_v49   ;;  %v17138_v49 = vld [vmem:[#allocation199_spill] sm:$0xff]  ;;  %17142 = vst [vmem:[#allocation59_spill] sm:$0xff] %v14022_v61 }
 0x7df   : > { %v14008_v14 = vmul.f32 %v17138_v49, %v13835_v43  ;;  %v8221_v27 = vunpack.i.l.s16 %v4928_v25  ;;  %v8170_v48 = vunpack.i.l.s16 %v4727_v5  ;;  %v17143_v25 = vld [vmem:[#allocation201_spill] sm:$0xff]  ;;  %v4729_v49 = vunpack.c.l.b16 %v4275_v6 }
 0x7e0   : > { %v14026_v5 = vmul.f32 %v17143_v25, %v13835_v43  ;;  %v8224_v9 = vunpack.i.l.s16 %v4931_v31  ;;  %v14040_v25 = vmul.f32 %v17146_v29, %v13940_v52  ;;  %v17148_v31 = vld [vmem:[#allocation191_spill] sm:$0xff] }
 0x7e1   : > { %v8172_v32 = vunpack.i.l.s16 %v4729_v49 }
 0x7e2   : > { %17147 = vst [vmem:[#allocation52_spill] sm:$0xff] %v14040_v25 }
 0x7e5   : > { %4972 = vperm.xlu1 %9575, %v8218_v22   ;;  %4765 = vperm.xlu2 %9577, %v8167_v55   ;;  %v4276_v22 = vpack.c.bf16 %v14008_v14, %v14008_v14  ;;  %v8169_v55 = vunpack.i.l.s16 %v4726_v28  ;;  %v14030_v28 = vmul.f32 %v17144_v56, %v13835_v43 }
 0x7e6   : > { %4612 = vperm.xlu0 %9576, %v8134_v53  }
 0x7e7   : > { %v4730_v53 = vunpack.c.l.b16 %v4276_v22  ;;  %17145 = vst [vmem:[#allocation141_spill] sm:$0xff] %v14030_v28  ;;  %v4278_v22 = vpack.c.bf16 %v14030_v28, %v14030_v28 }
 0x7e9   : > { %v8173_v8 = vunpack.i.l.s16 %v4730_v53  ;;  %v14044_v53 = vmul.f32 %v17148_v31, %v13835_v43  ;;  %v4732_v56 = vunpack.c.l.b16 %v4278_v22  ;;  %v17152_v31 = vld [vmem:[#allocation186_spill] sm:$0xff] }
 0x7ea   : > { %v14061_v60 = vmul.f32 %v17152_v31, %v14051_v40 }
 0x7eb   : > { %17149 = vst [vmem:[#allocation39_spill] sm:$0xff] %v14044_v53 }
 0x7ec   : > { %17153 = vst [vmem:[#allocation31_spill] sm:$0xff] %v14061_v60 }
 0x7ed   : > { %4981 = vperm.xlu1 %9575, %v8221_v27   ;;  %4774 = vperm.xlu2 %9577, %v8170_v48   ;;  %v4298_v27 = vpack.c.bf16 %v14022_v61, %v14022_v61  ;;  %v4279_v48 = vpack.c.bf16 %v14026_v5, %v14026_v5  ;;  %v17150_v61 = vld [vmem:[#allocation173_spill] sm:$0xff] }
 0x7ee   : > { %4771 = vperm.xlu0 %9576, %v8169_v55   ;;  %v14048_v49 = vmul.f32 %v17150_v61, %v13835_v43 }
 0x7ef   : > { %v4934_v55 = vunpack.c.l.b16 %v4298_v27  ;;  %v4733_v6 = vunpack.c.l.b16 %v4279_v48  ;;  %v4301_v27 = vpack.c.bf16 %v14040_v25, %v14040_v25  ;;  %v4282_v48 = vpack.c.bf16 %v14044_v53, %v14044_v53 }
 0x7f0   : > { %17151 = vst [vmem:[#allocation64_spill] sm:$0xff] %v14048_v49  ;;  %v4281_v29 = vpack.c.bf16 %v14048_v49, %v14048_v49 }
 0x7f1   : > { %v4937_v61 = vunpack.c.l.b16 %v4301_v27  ;;  %v4736_v22 = vunpack.c.l.b16 %v4282_v48 }
 0x7f2   : > { %v4735_v25 = vunpack.c.l.b16 %v4281_v29 }
 0x7f3   : > { %v8230_v23 = vunpack.i.l.s16 %v4937_v61  ;;  %v8179_v49 = vunpack.i.l.s16 %v4736_v22  ;;  %v17160_v22 = vld [vmem:[#allocation188_spill] sm:$0xff] }
 0x7f4   : > { %v8178_v27 = vunpack.i.l.s16 %v4735_v25  ;;  %v14085_v31 = vmul.f32 %v17160_v22, %v13940_v52  ;;  %v17162_v25 = vld [vmem:[#allocation197_spill] sm:$0xff] }
 0x7f5   : > { %4990 = vperm.xlu1 %9575, %v8224_v9   ;;  %4783 = vperm.xlu2 %9577, %v8173_v8   ;;  %v8227_v8 = vunpack.i.l.s16 %v4934_v55  ;;  %v8176_v9 = vunpack.i.l.s16 %v4733_v6  ;;  %v17154_v55 = vld [vmem:[#allocation200_spill] sm:$0xff] }
 0x7f6   : > { %4780 = vperm.xlu0 %9576, %v8172_v32   ;;  %v8175_v32 = vunpack.i.l.s16 %v4732_v56  ;;  %v14065_v6 = vmul.f32 %v17154_v55, %v13835_v43  ;;  %v14069_v56 = vmul.f32 %v17156_v35, %v13835_v43  ;;  %v17158_v35 = vld [vmem:[#allocation203_spill] sm:$0xff]  ;;  %17161 = vst [vmem:[#allocation154_spill] sm:$0xff] %v14085_v31 }
 0x7f7   : > { %v14081_v61 = vmul.f32 %v17158_v35, %v14051_v40 }
 0x7f8   : > { %17155 = vst [vmem:[#allocation43_spill] sm:$0xff] %v14065_v6  ;;  %v4284_v48 = vpack.c.bf16 %v14069_v56, %v14069_v56 }
 0x7f9   : > { %17157 = vst [vmem:[#allocation147_spill] sm:$0xff] %v14069_v56 }
 0x7fa   : > { %17159 = vst [vmem:[#allocation98_spill] sm:$0xff] %v14081_v61  ;;  %v4738_v55 = vunpack.c.l.b16 %v4284_v48 }
 0x7fd   : > { %4999 = vperm.xlu1 %9575, %v8227_v8   ;;  %4792 = vperm.xlu2 %9577, %v8176_v9   ;;  %v4304_v8 = vpack.c.bf16 %v14061_v60, %v14061_v60  ;;  %v4285_v9 = vpack.c.bf16 %v14065_v6, %v14065_v6  ;;  %v14089_v60 = vmul.f32 %v17162_v25, %v13940_v52 }
 0x7fe   : > { %4789 = vperm.xlu0 %9576, %v8175_v32  }
 0x7ff   : > { %v5122_v29 = vunpack.c.l.b16 %v4304_v8  ;;  %v4739_v43 = vunpack.c.l.b16 %v4285_v9  ;;  %17163 = vst [vmem:[#allocation161_spill] sm:$0xff] %v14089_v60  ;;  %v4288_v8 = vpack.c.bf16 %v14085_v31, %v14085_v31  ;;  %v8181_v9 = vunpack.i.l.s16 %v4738_v55  ;;  %v17168_v55 = vld [vmem:[#allocation195_spill] sm:$0xff] }
 0x800   : > { %v4287_v35 = vpack.c.bf16 %v14089_v60, %v14089_v60  ;;  %v14109_v28 = vmul.f32 %v17168_v55, %v13940_v52 }
 0x801   : > { %v4924_v25 = vunpack.c.l.b16 %v4288_v8 }
 0x802   : > { %v4923_v45 = vunpack.c.l.b16 %v4287_v35  ;;  %17169 = vst [vmem:[#allocation95_spill] sm:$0xff] %v14109_v28 }
 0x804   : > { %v8216_v8 = vunpack.i.l.s16 %v4923_v45  ;;  %v17174_v45 = vld [vmem:[#allocation198_spill] sm:$0xff] }
 0x805   : > { %5008 = vperm.xlu1 %9575, %v8230_v23   ;;  %4801 = vperm.xlu2 %9577, %v8179_v49   ;;  %v8265_v23 = vunpack.i.l.s16 %v5122_v29  ;;  %v8182_v49 = vunpack.i.l.s16 %v4739_v43  ;;  %v17164_v29 = vld [vmem:[#allocation101_spill] sm:$0xff]  ;;  %v14129_v36 = vmul.f32 %v17174_v45, %v13940_v52 }
 0x806   : > { %4798 = vperm.xlu0 %9576, %v8178_v27   ;;  %v4307_v27 = vpack.c.bf16 %v14081_v61, %v14081_v61  ;;  %v14101_v43 = vmul.f32 %v17164_v29, %v14051_v40  ;;  %v17166_v61 = vld [vmem:[#allocation202_spill] sm:$0xff]  ;;  %v4290_v29 = vpack.c.bf16 %v14109_v28, %v14109_v28  ;;  %v17176_v28 = vld [vmem:[#allocation205_spill] sm:$0xff] }
 0x807   : > { %v14077_v32 = vpop.permute.xlu2 %4570  ;;  %v14105_v56 = vmul.f32 %v17166_v61, %v13940_v52  ;;  %17175 = vst [vmem:[#allocation89_spill] sm:$0xff] %v14129_v36 }
 0x808   : > { %v5125_v22 = vunpack.c.l.b16 %v4307_v27  ;;  %17165 = vst [vmem:[#allocation75_spill] sm:$0xff] %v14101_v43  ;;  %v4926_v16 = vunpack.c.l.b16 %v4290_v29 }
 0x809   : > { %17167 = vst [vmem:[#allocation82_spill] sm:$0xff] %v14105_v56  ;;  %v4291_v27 = vpack.c.bf16 %v14105_v56, %v14105_v56  ;;  %v8943_v56 = vld [vmem:[#allocation5 + $0x30] sm:$0xff] }
 0x80b   : > { %v4927_v55 = vunpack.c.l.b16 %v4291_v27  ;;  %v8219_v27 = vunpack.i.l.s16 %v4926_v16 }
 0x80d   : > { %5167 = vperm.xlu1 %9575, %v8265_v23   ;;  %4810 = vperm.xlu2 %9577, %v8182_v49   ;;  %v8268_v23 = vunpack.i.l.s16 %v5125_v22  ;;  %v8217_v49 = vunpack.i.l.s16 %v4924_v25  ;;  %v17170_v22 = vld [vmem:[#allocation187_spill] sm:$0xff] }
 0x80e   : > { %4807 = vperm.xlu0 %9576, %v8181_v9   ;;  %v4310_v9 = vpack.c.bf16 %v14101_v43, %v14101_v43  ;;  %v14121_v25 = vmul.f32 %v17170_v22, %v14051_v40  ;;  %v17172_v43 = vld [vmem:[#allocation207_spill] sm:$0xff]  ;;  %v4293_v22 = vpack.c.bf16 %v14129_v36, %v14129_v36  ;;  %v14156_v36 = vperm.slane %v13829_v58, 4 }
 0x80f   : > { %v14097_v48 = vpop.permute.xlu2 %4576  ;;  %v14125_v60 = vmul.f32 %v17172_v43, %v13940_v52  ;;  %v8944_v43 = vld [vmem:[#allocation5 + $0x38] sm:$0xff] }
 0x810   : > { %v5128_v35 = vunpack.c.l.b16 %v4310_v9  ;;  %17171 = vst [vmem:[#allocation69_spill] sm:$0xff] %v14121_v25  ;;  %4695 = vmatpush.bf16.msra.mxu1 %v8944_v43  ;;  %v8942_v43 = vld [vmem:[#allocation5 + $0x28] sm:$0xff] }
 0x811   : > { %17173 = vst [vmem:[#allocation45_spill] sm:$0xff] %v14125_v60  ;;  %v4294_v9 = vpack.c.bf16 %v14125_v60, %v14125_v60  ;;  %v17178_v60 = vld [vmem:[#allocation189_spill] sm:$0xff] }
 0x812   : > { %v14147_v16 = vmul.f32 %v17178_v60, %v13940_v52 }
 0x814   : > { %17179 = vst [vmem:[#allocation81_spill] sm:$0xff] %v14147_v16  ;;  %v4297_v60 = vpack.c.bf16 %v14147_v16, %v14147_v16  ;;  %4696 = vmatpush.bf16.msra.mxu1 %v8943_v56 }
 0x815   : > { %5176 = vperm.xlu1 %9575, %v8268_v23   ;;  %4969 = vperm.xlu2 %9577, %v8217_v49   ;;  %v8271_v23 = vunpack.i.l.s16 %v5128_v35  ;;  %v8220_v49 = vunpack.i.l.s16 %v4927_v55  ;;  %v4930_v55 = vunpack.c.l.b16 %v4294_v9 }
 0x816   : > { %4966 = vperm.xlu0 %9576, %v8216_v8   ;;  %v4313_v8 = vpack.c.bf16 %v14121_v25, %v14121_v25  ;;  %v14143_v25 = vmul.f32 %v17176_v28, %v14051_v40  ;;  %v4933_v59 = vunpack.c.l.b16 %v4297_v60  ;;  %v8941_v60 = vld [vmem:[#allocation5 + $0x20] sm:$0xff] }
 0x817   : > { %v14117_v61 = vpop.permute.xlu2 %4582  ;;  %v8223_v9 = vunpack.i.l.s16 %v4930_v55 }
 0x818   : > { %v5131_v35 = vunpack.c.l.b16 %v4313_v8  ;;  %17177 = vst [vmem:[#allocation216_spill] sm:$0xff] %v14143_v25  ;;  %v4316_v28 = vpack.c.bf16 %v14143_v25, %v14143_v25  ;;  %v17182_v25 = vld [vmem:[#allocation111_spill] sm:$0xff]  ;;  %4697 = vmatpush.bf16.msra.mxu1 %v8942_v43  ;;  %v8226_v31 = vunpack.i.l.s16 %v4933_v59 }
 0x819   : > { %v14170_v7 = vmul.f32 %v17182_v25, %v14156_v36 }
 0x81a   : > { %v8274_v8 = vunpack.i.l.s16 %v5131_v35  ;;  %v5134_v55 = vunpack.c.l.b16 %v4316_v28 }
 0x81b   : > { %17183 = vst [vmem:[#allocation88_spill] sm:$0xff] %v14170_v7  ;;  %v4319_v28 = vpack.c.bf16 %v14170_v7, %v14170_v7 }
 0x81c   : > { %4698 = vmatpush.bf16.msra.mxu1 %v8941_v60  ;;  %v8939_v60 = vld [vmem:[#allocation5 + $0x10] sm:$0xff] }
 0x81d   : > { %5185 = vperm.xlu1 %9575, %v8271_v23   ;;  %4978 = vperm.xlu2 %9577, %v8220_v49   ;;  %v4929_v23 = vunpack.c.l.b16 %v4293_v22  ;;  %v17180_v49 = vld [vmem:[#allocation143_spill] sm:$0xff]  ;;  %v5319_v59 = vunpack.c.l.b16 %v4319_v28 }
 0x81e   : > { %4975 = vperm.xlu0 %9576, %v8219_v27   ;;  %v14153_v27 = vmul.f32 %v17180_v49, %v13940_v52 }
 0x81f   : > { %v14137_v29 = vpop.permute.xlu1 %4597  ;;  %v14139_v45 = vpop.permute.xlu2 %4588  ;;  %v8222_v0 = vunpack.i.l.s16 %v4929_v23  ;;  %v17184_v23 = vld [vmem:[#allocation104_spill] sm:$0xff]  ;;  %v8312_v21 = vunpack.i.l.s16 %v5319_v59 }
 0x820   : > { %v14149_v4 = vpop.permute.xlu0 %4567  ;;  %17181 = vst [vmem:[#allocation213_spill] sm:$0xff] %v14153_v27  ;;  %v4296_v22 = vpack.c.bf16 %v14153_v27, %v14153_v27  ;;  %v14174_v16 = vmul.f32 %v17184_v23, %v13940_v52 }
 0x822   : > { %17185 = vst [vmem:[#allocation156_spill] sm:$0xff] %v14174_v16  ;;  %v4300_v25 = vpack.c.bf16 %v14174_v16, %v14174_v16 }
 0x825   : > { %5194 = vperm.xlu1 %9575, %v8274_v8   ;;  %4987 = vperm.xlu2 %9577, %v8223_v9   ;;  %v4932_v8 = vunpack.c.l.b16 %v4296_v22  ;;  %v8277_v9 = vunpack.i.l.s16 %v5134_v55  ;;  %v4936_v55 = vunpack.c.l.b16 %v4300_v25 }
 0x826   : > { %4984 = vperm.xlu0 %9576, %v8222_v0   ;;  %v17186_v0 = vld [vmem:[#allocation103_spill] sm:$0xff] }
 0x827   : > { %v14164_v49 = vpop.permute.xlu1 %4768  ;;  %v14166_v35 = vpop.permute.xlu2 %4594  ;;  %v14180_v56 = vmul.f32 %v17186_v0, %v13940_v52  ;;  %v8225_v33 = vunpack.i.l.s16 %v4932_v8  ;;  %v8940_v52 = vld [vmem:[#allocation5 + $0x18] sm:$0xff]  ;;  %v17188_v0 = vld [vmem:[#allocation105_spill] sm:$0xff]  ;;  %v17190_v8 = vld [vmem:[#allocation102_spill] sm:$0xff]  ;;  %v8229_v6 = vunpack.i.l.s16 %v4936_v55 }
 0x828   : > { %v14176_v27 = vpop.permute.xlu0 %4573  ;;  %v14194_v7 = vmul.f32 %v17188_v0, %v14156_v36  ;;  %v14198_v16 = vmul.f32 %v17190_v8, %v14051_v40  ;;  %4699 = vmatpush.bf16.msra.mxu1 %v8940_v52 }
 0x829   : > { %17187 = vst [vmem:[#allocation83_spill] sm:$0xff] %v14180_v56  ;;  %v4299_v23 = vpack.c.bf16 %v14180_v56, %v14180_v56 }
 0x82a   : > { %17189 = vst [vmem:[#allocation218_spill] sm:$0xff] %v14194_v7  ;;  %v4322_v28 = vpack.c.bf16 %v14194_v7, %v14194_v7  ;;  %v4303_v25 = vpack.c.bf16 %v14198_v16, %v14198_v16  ;;  %v17194_v7 = vld [vmem:[#allocation106_spill] sm:$0xff] }
 0x82b   : > { %17191 = vst [vmem:[#allocation160_spill] sm:$0xff] %v14198_v16  ;;  %v14216_v38 = vmul.f32 %v17194_v7, %v14156_v36 }
 0x82c   : > { %4700 = vmatpush.bf16.msra.mxu1 %v8939_v60  ;;  %v5322_v59 = vunpack.c.l.b16 %v4322_v28  ;;  %v5121_v55 = vunpack.c.l.b16 %v4303_v25  ;;  %v8937_v28 = vld [vmem:[#allocation5] sm:$0xff] }
 0x82d   : > { %5203 = vperm.xlu1 %9575, %v8277_v9   ;;  %4996 = vperm.xlu2 %9577, %v8226_v31   ;;  %v4935_v9 = vunpack.c.l.b16 %v4299_v23  ;;  %v8938_v23 = vld [vmem:[#allocation5 + $0x8] sm:$0xff]  ;;  %17195 = vst [vmem:[#allocation93_spill] sm:$0xff] %v14216_v38  ;;  %v4325_v7 = vpack.c.bf16 %v14216_v38, %v14216_v38 }
 0x82e   : > { %4993 = vperm.xlu0 %9576, %v8225_v33   ;;  %v17192_v33 = vld [vmem:[#allocation125_spill] sm:$0xff]  ;;  %v8315_v25 = vunpack.i.l.s16 %v5322_v59  ;;  %v8264_v20 = vunpack.i.l.s16 %v5121_v55 }
 0x82f   : > { %v14188_v22 = vpop.permute.xlu1 %4777  ;;  %v14190_v43 = vpop.permute.xlu2 %4603  ;;  %v14202_v31 = vmul.f32 %v17192_v33, %v14051_v40  ;;  %v8228_v0 = vunpack.i.l.s16 %v4935_v9  ;;  %v17196_v9 = vld [vmem:[#allocation107_spill] sm:$0xff] }
 0x830   : > { %v4580_v56 = vpop.permute.xlu0 %4579  ;;  %v14220_v16 = vmul.f32 %v17196_v9, %v14051_v40  ;;  %4701 = vmatpush.bf16.msra.mxu1 %v8938_v23  ;;  %v17200_v23 = vld [vmem:[#allocation110_spill] sm:$0xff] }
 0x831   : > { %17193 = vst [vmem:[#allocation51_spill] sm:$0xff] %v14202_v31  ;;  %v4302_v8 = vpack.c.bf16 %v14202_v31, %v14202_v31  ;;  %v14240_v59 = vmul.f32 %v17200_v23, %v14156_v36 }
 0x832   : > { %17197 = vst [vmem:[#allocation219_spill] sm:$0xff] %v14220_v16  ;;  %v4306_v9 = vpack.c.bf16 %v14220_v16, %v14220_v16 }
 0x833   : > { %17201 = vst [vmem:[#allocation215_spill] sm:$0xff] %v14240_v59 }
 0x834   : > { %4702 = vmatpush.bf16.msra.mxu1 %v8937_v28  ;;  %v5124_v16 = vunpack.c.l.b16 %v4306_v9  ;;  %v17204_v28 = vld [vmem:[#allocation112_spill] sm:$0xff] }
 0x835   : > { %5362 = vperm.xlu1 %9575, %v8312_v21   ;;  %5005 = vperm.xlu2 %9577, %v8229_v6   ;;  %v5120_v21 = vunpack.c.l.b16 %v4302_v8  ;;  %v17198_v6 = vld [vmem:[#allocation128_spill] sm:$0xff]  ;;  %v4617_v8 = vperm.slane %v14176_v27, %v12073_v11  ;;  %v14255_v23 = vmul.f32 %v17204_v28, %v14051_v40 }
 0x836   : > { %5002 = vperm.xlu0 %9576, %v8228_v0   ;;  %v14224_v60 = vmul.f32 %v17198_v6, %v14051_v40  ;;  %v4614_v0 = vperm.slane %v14149_v4, %v12061_v63  ;;  %v4615_v4 = vperm.slane %v14077_v32, %v12068_v10 }
 0x837   : > { %v14210_v33 = vpop.permute.xlu1 %4786  ;;  %v14212_v52 = vpop.permute.xlu2 %4609  ;;  %v8263_v53 = vunpack.i.l.s16 %v5120_v21  ;;  %v5325_v21 = vunpack.c.l.b16 %v4325_v7  ;;  %17205 = vst [vmem:[#allocation163_spill] sm:$0xff] %v14255_v23  ;;  %v4328_v7 = vpack.c.bf16 %v14240_v59, %v14240_v59  ;;  %v4308_v28 = vpack.c.bf16 %v14255_v23, %v14255_v23 }
 0x838   : > { %v4586_v31 = vpop.permute.xlu0 %4585  ;;  %17199 = vst [vmem:[#allocation87_spill] sm:$0xff] %v14224_v60  ;;  %v4305_v6 = vpack.c.bf16 %v14224_v60, %v14224_v60  ;;  %v4616_v55 = vsel %vm2645_vm0, %v4615_v4, %v4614_v0  ;;  %v17202_v60 = vld [vmem:[#allocation131_spill] sm:$0xff]  ;;  %v4619_v0 = vperm.slane %v14097_v48, %v12082_v12  ;;  %v8267_v4 = vunpack.i.l.s16 %v5124_v16 }
 0x839   : > { %v14249_v47 = vmul.f32 %v17202_v60, %v14051_v40  ;;  %v8318_v60 = vunpack.i.l.s16 %v5325_v21  ;;  %v4623_v48 = vperm.slane %v14117_v61, %v12100_v39  ;;  %v8952_v21 = vld [vmem:[#allocation5 + $0x78] sm:$0xff] }
 0x83a   : > { %4893 = vmatpush.bf16.msra.mxu2 %v8952_v21 }
 0x83b   : > { %17203 = vst [vmem:[#allocation196_spill] sm:$0xff] %v14249_v47 }
 0x83d   : > { %5371 = vperm.xlu1 %9575, %v8315_v25   ;;  %5164 = vperm.xlu2 %9577, %v8264_v20   ;;  %v4618_v20 = vsel %vm2649_vm1, %v4617_v8, %v4616_v55  ;;  %v5123_v25 = vunpack.c.l.b16 %v4305_v6  ;;  %v4309_v8 = vpack.c.bf16 %v14249_v47, %v14249_v47  ;;  %v4625_v6 = vperm.slane %v4586_v31, %v12106_v13  ;;  %v17207_v31 = vld [vmem:[#allocation134_spill] sm:$0xff] }
 0x83e   : > { %5161 = vperm.xlu0 %9576, %v8263_v53   ;;  %v4621_v53 = vperm.slane %v4580_v56, %v12095_v41  ;;  %v4620_v9 = vsel %vm2653_vm2, %v4619_v0, %v4618_v20  ;;  %v5328_v20 = vunpack.c.l.b16 %v4328_v7 }
 0x83f   : > { %v14243_v38 = vpop.permute.xlu1 %4795  ;;  %v14245_v27 = vpop.permute.xlu2 %4765  ;;  %v8266_v55 = vunpack.i.l.s16 %v5123_v25  ;;  %v14277_v25 = vmul.f32 %v17207_v31, %v14156_v36 }
 0x840   : > { %v4592_v32 = vpop.permute.xlu0 %4591  ;;  %v4622_v56 = vsel %vm2657_vm3, %v4621_v53, %v4620_v9  ;;  %v5127_v53 = vunpack.c.l.b16 %v4309_v8  ;;  %v17209_v9 = vld [vmem:[#allocation113_spill] sm:$0xff]  ;;  %v4627_v8 = vperm.slane %v14139_v45, %v12116_v15  ;;  %v8321_v31 = vunpack.i.l.s16 %v5328_v20  ;;  %v8951_v45 = vld [vmem:[#allocation5 + $0x70] sm:$0xff] }
 0x841   : > { %v4624_v16 = vsel %vm17206_vm4, %v4623_v48, %v4622_v56  ;;  %17208 = vst [vmem:[#allocation220_spill] sm:$0xff] %v14277_v25  ;;  %v14281_v23 = vmul.f32 %v17209_v9, %v14051_v40  ;;  %v4629_v7 = vperm.slane %v4592_v32, %v12141_v17  ;;  %v17211_v56 = vld [vmem:[#allocation115_spill] sm:$0xff]  ;;  %v14292_v48 = vperm.slane %v13829_v58, 5  ;;  %4894 = vmatpush.bf16.msra.mxu2 %v8951_v45  ;;  %vm17249_vm4 = vmmov %vm17217_vm9 }
 0x842   : > { %v4626_v61 = vsel %vm2665_vm5, %v4625_v6, %v4624_v16  ;;  %v8270_v47 = vunpack.i.l.s16 %v5127_v53  ;;  %v4331_v32 = vpack.c.bf16 %v14277_v25, %v14277_v25  ;;  %v17213_v20 = vld [vmem:[#allocation119_spill] sm:$0xff] }
 0x843   : > { %17210 = vst [vmem:[#allocation190_spill] sm:$0xff] %v14281_v23  ;;  %v4628_v9 = vsel %vm2669_vm6, %v4627_v8, %v4626_v61  ;;  %v4312_v6 = vpack.c.bf16 %v14281_v23, %v14281_v23  ;;  %v14306_v53 = vmul.f32 %v17213_v20, %v14292_v48  ;;  %v17215_v61 = vld [vmem:[#allocation114_spill] sm:$0xff] }
 0x844   : > { %v14310_v8 = vmul.f32 %v17215_v61, %v14051_v40  ;;  %v17218_v61 = vld [vmem:[#allocation140_spill] sm:$0xff] }
 0x845   : > { %5380 = vperm.xlu1 %9575, %v8318_v60   ;;  %5173 = vperm.xlu2 %9577, %v8267_v4   ;;  %v5126_v4 = vunpack.c.l.b16 %v4308_v28  ;;  %v4630_v28 = vsel %vm2673_vm7, %v4629_v7, %v4628_v9  ;;  %17214 = vst [vmem:[#allocation57_spill] sm:$0xff] %v14306_v53  ;;  %v8950_v7 = vld [vmem:[#allocation5 + $0x68] sm:$0xff]  ;;  %v14322_v23 = vmul.f32 %v17218_v61, %v14051_v40 }
 0x846   : > { %5170 = vperm.xlu0 %9576, %v8266_v55   ;;  %v14287_v55 = vmul.f32 %v17211_v56, %v14051_v40  ;;  %v4631_v56 = vperm.slane %v14166_v35, %v12144_v24  ;;  %17216 = vst [vmem:[#allocation99_spill] sm:$0xff] %v14310_v8  ;;  %4895 = vmatpush.bf16.msra.mxu2 %v8950_v7 }
 0x847   : > { %v14271_v0 = vpop.permute.xlu1 %4804  ;;  %v14273_v59 = vpop.permute.xlu2 %4774  ;;  %v8269_v16 = vunpack.i.l.s16 %v5126_v4  ;;  %17219 = vst [vmem:[#allocation73_spill] sm:$0xff] %v14322_v23 }
 0x848   : > { %v4601_v60 = vpop.permute.xlu0 %4600  ;;  %17212 = vst [vmem:[#allocation84_spill] sm:$0xff] %v14287_v55  ;;  %v4311_v21 = vpack.c.bf16 %v14287_v55, %v14287_v55  ;;  %v4632_v4 = vsel %vm17217_vm9, %v4631_v56, %v4630_v28  ;;  %v4315_v28 = vpack.c.bf16 %v14310_v8, %v14310_v8  ;;  %vm17252_vm9 = vmmov %vm17220_vm15 }
 0x849   : > { %v4635_v9 = vperm.slane %v4601_v60, %v12167_v42  ;;  %v4334_v60 = vpack.c.bf16 %v14306_v53, %v14306_v53 }
 0x84a   : > { %v5129_v55 = vunpack.c.l.b16 %v4311_v21  ;;  %v4637_v21 = vperm.slane %v14190_v43, %v12183_v50 }
 0x84b   : > { %v5516_v53 = vunpack.c.l.b16 %v4334_v60  ;;  %v4641_v60 = vperm.slane %v14212_v52, %v17000_v54 }
 0x84c   : > { %v8272_v61 = vunpack.i.l.s16 %v5129_v55  ;;  %v17222_v55 = vld [vmem:[#allocation118_spill] sm:$0xff] }
 0x84d   : > { %5389 = vperm.xlu1 %9575, %v8321_v31   ;;  %5182 = vperm.xlu2 %9577, %v8270_v47   ;;  %v5331_v47 = vunpack.c.l.b16 %v4331_v32  ;;  %v5130_v31 = vunpack.c.l.b16 %v4312_v6 }
 0x84e   : > { %5179 = vperm.xlu0 %9576, %v8269_v16   ;;  %v4633_v16 = vperm.slane %v14137_v29, %v12138_v2 }
 0x84f   : > { %v14314_v25 = vpop.permute.xlu1 %4963  ;;  %v14316_v35 = vpop.permute.xlu2 %4783  ;;  %v8324_v29 = vunpack.i.l.s16 %v5331_v47  ;;  %v8273_v56 = vunpack.i.l.s16 %v5130_v31  ;;  %v5133_v31 = vunpack.c.l.b16 %v4315_v28 }
 0x850   : > { %v4607_v20 = vpop.permute.xlu0 %4606  ;;  %v4634_v45 = vsel %vm17220_vm15, %v4633_v16, %v4632_v4  ;;  %v4314_v4 = vpack.c.bf16 %v14322_v23, %v14322_v23  ;;  %v8949_v16 = vld [vmem:[#allocation5 + $0x60] sm:$0xff]  ;;  %vm17253_vm15 = vmmov %vm17221_vm8 }
 0x851   : > { %v4636_v32 = vsel %vm17221_vm8, %v4635_v9, %v4634_v45  ;;  %v4639_v6 = vperm.slane %v4607_v20, %v16995_v46  ;;  %4896 = vmatpush.bf16.msra.mxu2 %v8949_v16  ;;  %v8948_v9 = vld [vmem:[#allocation5 + $0x58] sm:$0xff]  ;;  %v14343_v20 = vmul.f32 %v17222_v55, %v14292_v48  ;;  %v8276_v55 = vunpack.i.l.s16 %v5133_v31  ;;  %vm17278_vm8 = vmmov %vm17239_vm10 }
 0x852   : > { %v4638_v7 = vsel %vm2689_vm11, %v4637_v21, %v4636_v32  ;;  %v5132_v21 = vunpack.c.l.b16 %v4314_v4  ;;  %v8947_v4 = vld [vmem:[#allocation5 + $0x50] sm:$0xff] }
 0x853   : > { %v4640_v43 = vsel %vm2693_vm12, %v4639_v6, %v4638_v7  ;;  %17223 = vst [vmem:[#allocation217_spill] sm:$0xff] %v14343_v20  ;;  %v8359_v6 = vunpack.i.l.s16 %v5516_v53  ;;  %v17227_v53 = vld [vmem:[#allocation120_spill] sm:$0xff] }
 0x854   : > { %v4642_v7 = vsel %vm2697_vm13, %v4641_v60, %v4640_v43  ;;  %v8275_v8 = vunpack.i.l.s16 %v5132_v21  ;;  %v17229_v21 = vld [vmem:[#allocation124_spill] sm:$0xff] }
 0x855   : > { %5398 = vperm.xlu1 %9575, %v8324_v29   ;;  %5191 = vperm.xlu2 %9577, %v8273_v56   ;;  %v17224_v29 = vld [vmem:[#allocation28_spill] sm:$0xff] }
 0x856   : > { %5188 = vperm.xlu0 %9576, %v8272_v61   ;;  %v14347_v56 = vmul.f32 %v17224_v29, %v14156_v36  ;;  %v17225_v61 = vld [vmem:[#allocation117_spill] sm:$0xff]  ;;  %4897 = vmatpush.bf16.msra.mxu2 %v8948_v9  ;;  %v4337_v29 = vpack.c.bf16 %v14343_v20, %v14343_v20  ;;  %v14366_v9 = vmul.f32 %v17227_v53, %v14292_v48 }
 0x857   : > { %v14336_v45 = vpop.permute.xlu1 %4972  ;;  %v14338_v47 = vpop.permute.xlu2 %4792  ;;  %v14353_v16 = vmul.f32 %v17225_v61, %v14051_v40  ;;  %v8946_v61 = vld [vmem:[#allocation5 + $0x48] sm:$0xff] }
 0x858   : > { %v4613_v32 = vpop.permute.xlu0 %4612  ;;  %v4318_v52 = vpack.c.bf16 %v14347_v56, %v14347_v56  ;;  %17228 = vst [vmem:[#allocation211_spill] sm:$0xff] %v14366_v9  ;;  %v5519_v60 = vunpack.c.l.b16 %v4337_v29 }
 0x859   : > { %17226 = vst [vmem:[#allocation74_spill] sm:$0xff] %v14353_v16  ;;  %v4643_v28 = vperm.slane %v4613_v32, %v17008_v18  ;;  %v4317_v40 = vpack.c.bf16 %v14353_v16, %v14353_v16  ;;  %v17235_v16 = vld [vmem:[#allocation32_spill] sm:$0xff] }
 0x85a   : > { %v5318_v32 = vunpack.c.l.b16 %v4318_v52  ;;  %4898 = vmatpush.bf16.msra.mxu2 %v8947_v4  ;;  %v8362_v52 = vunpack.i.l.s16 %v5519_v60  ;;  %v17233_v60 = vld [vmem:[#allocation127_spill] sm:$0xff] }
 0x85b   : > { %v4644_v23 = vsel %vm2701_vm14, %v4643_v28, %v4642_v7  ;;  %v4812_v7 = vperm.slane %v14245_v27, %v12061_v63 }
 0x85c   : > { %v4645_v30 = vpack.c.b16 %v4644_v23, %v4644_v23  ;;  %v14374_v23 = vmul.f32 %v17229_v21, %v14156_v36  ;;  %v8311_v53 = vunpack.i.l.s16 %v5318_v32  ;;  %v8945_v21 = vld [vmem:[#allocation5 + $0x40] sm:$0xff]  ;;  %v14394_v32 = vmul.f32 %v17233_v60, %v14292_v48 }
 0x85d   : > { %5557 = vperm.xlu1 %9575, %v8359_v6   ;;  %5200 = vperm.xlu2 %9577, %v8276_v55   ;;  %v5135_v6 = vunpack.c.l.b16 %v4317_v40  ;;  %v4340_v55 = vpack.c.bf16 %v14366_v9, %v14366_v9  ;;  %v4813_v40 = vperm.slane %v14164_v49, %v12068_v10 }
 0x85e   : > { %5197 = vperm.xlu0 %9576, %v8275_v8   ;;  %4703 = vmatmul.bf16.vlgmr.msra.gmra.mxu1 %v4645_v30  ;;  %17230 = vst [vmem:[#allocation97_spill] sm:$0xff] %v14374_v23  ;;  %v17231_v30 = vld [vmem:[#allocation30_spill] sm:$0xff]  ;;  %v4321_v4 = vpack.c.bf16 %v14374_v23, %v14374_v23 }
 0x85f   : > { %v14368_v31 = vpop.permute.xlu1 %4981  ;;  %v14370_v43 = vpop.permute.xlu2 %4801  ;;  %v14378_v8 = vmul.f32 %v17231_v30, %v14156_v36  ;;  %4899 = vmatpush.bf16.msra.mxu2 %v8946_v61  ;;  %v8278_v30 = vunpack.i.l.s16 %v5135_v6  ;;  %v4814_v27 = vsel %vm2645_vm0, %v4813_v40, %v4812_v7  ;;  %17234 = vst [vmem:[#allocation212_spill] sm:$0xff] %v14394_v32  ;;  %v5522_v49 = vunpack.c.l.b16 %v4340_v55  ;;  %v17237_v40 = vld [vmem:[#allocation126_spill] sm:$0xff] }
 0x860   : > { %v4772_v28 = vpop.permute.xlu0 %4771  ;;  %v5321_v6 = vunpack.c.l.b16 %v4321_v4  ;;  %v4817_v7 = vperm.slane %v14273_v59, %v12082_v12  ;;  %v4343_v55 = vpack.c.bf16 %v14394_v32, %v14394_v32  ;;  %v4835_v23 = vperm.slane %v14370_v43, %v12183_v50 }
 0x861   : > { %17232 = vst [vmem:[#allocation71_spill] sm:$0xff] %v14378_v8  ;;  %v4815_v29 = vperm.slane %v4772_v28, %v12073_v11  ;;  %v4320_v20 = vpack.c.bf16 %v14378_v8, %v14378_v8  ;;  %v14403_v8 = vmul.f32 %v17235_v16, %v14156_v36  ;;  %v4819_v16 = vperm.slane %v14188_v22, %v12095_v41 }
 0x862   : > { %v8365_v4 = vunpack.i.l.s16 %v5522_v49  ;;  %v4823_v22 = vperm.slane %v14316_v35, %v12106_v13 }
 0x863   : > { %v4816_v28 = vsel %vm2649_vm1, %v4815_v29, %v4814_v27  ;;  %17236 = vst [vmem:[#allocation76_spill] sm:$0xff] %v14403_v8  ;;  %4900 = vmatpush.bf16.msra.mxu2 %v8945_v21  ;;  %v8314_v21 = vunpack.i.l.s16 %v5321_v6  ;;  %v4324_v59 = vpack.c.bf16 %v14403_v8, %v14403_v8 }
 0x864   : > { %v4818_v29 = vsel %vm2653_vm2, %v4817_v7, %v4816_v28  ;;  %v5525_v7 = vunpack.c.l.b16 %v4343_v55  ;;  %v17244_v55 = vld [vmem:[#allocation133_spill] sm:$0xff] }
 0x865   : > { %5566 = vperm.xlu1 %9575, %v8362_v52   ;;  %5359 = vperm.xlu2 %9577, %v8311_v53   ;;  %v5320_v53 = vunpack.c.l.b16 %v4320_v20 }
 0x866   : > { %5206 = vperm.xlu0 %9576, %v8278_v30   ;;  %v14409_v30 = vmul.f32 %v17237_v40, %v14156_v36  ;;  %v4820_v40 = vsel %vm2657_vm3, %v4819_v16, %v4818_v29  ;;  %v17242_v29 = vld [vmem:[#allocation129_spill] sm:$0xff] }
 0x867   : > { %v14397_v61 = vpop.permute.xlu1 %4990  ;;  %v14399_v9 = vpop.permute.xlu2 %4810  ;;  %v8313_v20 = vunpack.i.l.s16 %v5320_v53  ;;  %v17240_v53 = vld [vmem:[#allocation35_spill] sm:$0xff]  ;;  %v14435_v16 = vmul.f32 %v17242_v29, %v14156_v36 }
 0x868   : > { %v4781_v52 = vpop.permute.xlu0 %4780  ;;  %17238 = vst [vmem:[#allocation214_spill] sm:$0xff] %v14409_v30  ;;  %v4323_v60 = vpack.c.bf16 %v14409_v30, %v14409_v30  ;;  %v14431_v32 = vmul.f32 %v17240_v53, %v14292_v48 }
 0x869   : > { %v4821_v27 = vperm.slane %v4781_v52, %v12100_v39  ;;  %v5324_v52 = vunpack.c.l.b16 %v4324_v59  ;;  %17243 = vst [vmem:[#allocation172_spill] sm:$0xff] %v14435_v16  ;;  %v4825_v59 = vperm.slane %v14210_v33, %v12116_v15  ;;  %v4327_v29 = vpack.c.bf16 %v14435_v16, %v14435_v16 }
 0x86a   : > { %17241 = vst [vmem:[#allocation146_spill] sm:$0xff] %v14431_v32  ;;  %v4346_v30 = vpack.c.bf16 %v14431_v32, %v14431_v32  ;;  %v4829_v33 = vperm.slane %v14338_v47, %v12144_v24 }
 0x86b   : > { %v4822_v28 = vsel %vm17239_vm10, %v4821_v27, %v4820_v40  ;;  %v5323_v27 = vunpack.c.l.b16 %v4323_v60  ;;  %v8368_v40 = vunpack.i.l.s16 %v5525_v7  ;;  %v8317_v53 = vunpack.i.l.s16 %v5324_v52  ;;  %v17246_v7 = vld [vmem:[#allocation136_spill] sm:$0xff]  ;;  %vm17285_vm10 = vmmov %vm17249_vm4 }
 0x86c   : > { %v4824_v35 = vsel %vm2665_vm5, %v4823_v22, %v4822_v28  ;;  %v8960_v28 = vld [vmem:[#allocation5 + $0xb8] sm:$0xff]  ;;  %v14457_v52 = vmul.f32 %v17246_v7, %v14292_v48  ;;  %v5327_v32 = vunpack.c.l.b16 %v4327_v29 }
 0x86d   : > { %5575 = vperm.xlu1 %9575, %v8365_v4   ;;  %5368 = vperm.xlu2 %9577, %v8314_v21   ;;  %v14439_v21 = vmul.f32 %v17244_v55, %v14156_v36  ;;  %v4826_v60 = vsel %vm2669_vm6, %v4825_v59, %v4824_v35  ;;  %v8316_v8 = vunpack.i.l.s16 %v5323_v27  ;;  %v5528_v59 = vunpack.c.l.b16 %v4346_v30 }
 0x86e   : > { %5365 = vperm.xlu0 %9576, %v8313_v20   ;;  %17247 = vst [vmem:[#allocation149_spill] sm:$0xff] %v14457_v52  ;;  %5091 = vmatpush.bf16.msra.mxu3 %v8960_v28  ;;  %v4831_v28 = vperm.slane %v14243_v38, %v12138_v2  ;;  %v14476_v30 = vperm.slane %v13829_v58, 6  ;;  %v4349_v29 = vpack.c.bf16 %v14457_v52, %v14457_v52  ;;  %v17256_v52 = vld [vmem:[#allocation142_spill] sm:$0xff] }
 0x86f   : > { %v14425_v49 = vpop.permute.xlu1 %4999  ;;  %v14427_v6 = vpop.permute.xlu2 %4969  ;;  %17245 = vst [vmem:[#allocation144_spill] sm:$0xff] %v14439_v21  ;;  %v4326_v55 = vpack.c.bf16 %v14439_v21, %v14439_v21  ;;  %v14499_v43 = vmul.f32 %v17256_v52, %v14156_v36 }
 0x870   : > { %v4790_v4 = vpop.permute.xlu0 %4789 }
 0x871   : > { %v4827_v20 = vperm.slane %v4790_v4, %v12141_v17  ;;  %v8959_v4 = vld [vmem:[#allocation5 + $0xb0] sm:$0xff]  ;;  %17257 = vst [vmem:[#allocation145_spill] sm:$0xff] %v14499_v43 }
 0x872   : > { %5092 = vmatpush.bf16.msra.mxu3 %v8959_v4  ;;  %v5531_v4 = vunpack.c.l.b16 %v4349_v29 }
 0x873   : > { %v4828_v22 = vsel %vm2673_vm7, %v4827_v20, %v4826_v60  ;;  %v17248_v20 = vld [vmem:[#allocation135_spill] sm:$0xff] }
 0x874   : > { %v17250_v60 = vld [vmem:[#allocation139_spill] sm:$0xff] }
 0x875   : > { %5584 = vperm.xlu1 %9575, %v8368_v40   ;;  %5377 = vperm.xlu2 %9577, %v8317_v53   ;;  %v14465_v40 = vmul.f32 %v17248_v20, %v14156_v36  ;;  %v4830_v53 = vsel %vm17249_vm4, %v4829_v33, %v4828_v22  ;;  %v14470_v7 = vmul.f32 %v17250_v60, %v14156_v36  ;;  %v8371_v33 = vunpack.i.l.s16 %v5528_v59  ;;  %v8957_v59 = vld [vmem:[#allocation5 + $0xa0] sm:$0xff]  ;;  %vm17286_vm4 = vmmov %vm17252_vm9 }
 0x876   : > { %5374 = vperm.xlu0 %9576, %v8316_v8   ;;  %v5326_v8 = vunpack.c.l.b16 %v4326_v55  ;;  %v4832_v22 = vsel %vm17252_vm9, %v4831_v28, %v4830_v53  ;;  %v8320_v55 = vunpack.i.l.s16 %v5327_v32  ;;  %vm17289_vm9 = vmmov %vm17253_vm15 }
 0x877   : > { %v14459_v35 = vpop.permute.xlu1 %5008  ;;  %v14461_v27 = vpop.permute.xlu2 %4978  ;;  %17251 = vst [vmem:[#allocation176_spill] sm:$0xff] %v14470_v7  ;;  %v4330_v20 = vpack.c.bf16 %v14465_v40, %v14465_v40  ;;  %v4329_v38 = vpack.c.bf16 %v14470_v7, %v14470_v7 }
 0x878   : > { %v4799_v47 = vpop.permute.xlu0 %4798  ;;  %v8319_v16 = vunpack.i.l.s16 %v5326_v8  ;;  %v17254_v8 = vld [vmem:[#allocation138_spill] sm:$0xff] }
 0x879   : > { %v4833_v21 = vperm.slane %v4799_v47, %v12167_v42  ;;  %v8958_v47 = vld [vmem:[#allocation5 + $0xa8] sm:$0xff]  ;;  %v5330_v28 = vunpack.c.l.b16 %v4330_v20 }
 0x87a   : > { %5093 = vmatpush.bf16.msra.mxu3 %v8958_v47 }
 0x87b   : > { %v4834_v60 = vsel %vm17253_vm15, %v4833_v21, %v4832_v22  ;;  %v14495_v22 = vmul.f32 %v17254_v8, %v14476_v30  ;;  %v8323_v52 = vunpack.i.l.s16 %v5330_v28  ;;  %vm17311_vm15 = vmmov %vm17278_vm8 }
 0x87c   : > { %v4836_v21 = vsel %vm2689_vm11, %v4835_v23, %v4834_v60  ;;  %v4841_v23 = vperm.slane %v14399_v9, %v17008_v18  ;;  %v8374_v60 = vunpack.i.l.s16 %v5531_v4  ;;  %v8956_v9 = vld [vmem:[#allocation5 + $0x98] sm:$0xff] }
 0x87d   : > { %5593 = vperm.xlu1 %9575, %v8371_v33   ;;  %5386 = vperm.xlu2 %9577, %v8320_v55   ;;  %17255 = vst [vmem:[#allocation158_spill] sm:$0xff] %v14495_v22  ;;  %v5329_v33 = vunpack.c.l.b16 %v4329_v38  ;;  %v17258_v55 = vld [vmem:[#allocation47_spill] sm:$0xff]  ;;  %v4333_v38 = vpack.c.bf16 %v14499_v43, %v14499_v43 }
 0x87e   : > { %5383 = vperm.xlu0 %9576, %v8319_v16   ;;  %v4837_v16 = vperm.slane %v14271_v0, %v16995_v46  ;;  %v14505_v47 = vmul.f32 %v17258_v55, %v14156_v36  ;;  %5094 = vmatpush.bf16.msra.mxu3 %v8957_v59  ;;  %v4352_v0 = vpack.c.bf16 %v14495_v22, %v14495_v22  ;;  %v17260_v59 = vld [vmem:[#allocation50_spill] sm:$0xff] }
 0x87f   : > { %v14488_v32 = vpop.permute.xlu1 %5167  ;;  %v14490_v53 = vpop.permute.xlu2 %4987  ;;  %v8322_v36 = vunpack.i.l.s16 %v5329_v33  ;;  %v14521_v28 = vmul.f32 %v17260_v59, %v14476_v30 }
 0x880   : > { %v4808_v29 = vpop.permute.xlu0 %4807  ;;  %17259 = vst [vmem:[#allocation153_spill] sm:$0xff] %v14505_v47  ;;  %v4838_v8 = vsel %vm2693_vm12, %v4837_v16, %v4836_v21  ;;  %v8955_v21 = vld [vmem:[#allocation5 + $0x90] sm:$0xff] }
 0x881   : > { %v4839_v20 = vperm.slane %v4808_v29, %v17000_v54  ;;  %v4332_v29 = vpack.c.bf16 %v14505_v47, %v14505_v47  ;;  %17261 = vst [vmem:[#allocation167_spill] sm:$0xff] %v14521_v28 }
 0x882   : > { %5095 = vmatpush.bf16.msra.mxu3 %v8956_v9  ;;  %v4355_v9 = vpack.c.bf16 %v14521_v28, %v14521_v28 }
 0x883   : > { %v4840_v7 = vsel %vm2697_vm13, %v4839_v20, %v4838_v8  ;;  %v5333_v20 = vunpack.c.l.b16 %v4333_v38 }
 0x884   : > { %v4842_v55 = vsel %vm2701_vm14, %v4841_v23, %v4840_v7  ;;  %v5716_v7 = vunpack.c.l.b16 %v4352_v0  ;;  %v17262_v23 = vld [vmem:[#allocation34_spill] sm:$0xff]  ;;  %v5719_v28 = vunpack.c.l.b16 %v4355_v9 }
 0x885   : > { %5602 = vperm.xlu1 %9575, %v8374_v60   ;;  %5395 = vperm.xlu2 %9577, %v8323_v52   ;;  %v4843_v4 = vpack.c.b16 %v4842_v55, %v4842_v55  ;;  %v14529_v8 = vmul.f32 %v17262_v23, %v14292_v48  ;;  %v5332_v52 = vunpack.c.l.b16 %v4332_v29  ;;  %v8326_v0 = vunpack.i.l.s16 %v5333_v20 }
 0x886   : > { %5392 = vperm.xlu0 %9576, %v8322_v36   ;;  %v17264_v36 = vld [vmem:[#allocation33_spill] sm:$0xff]  ;;  %5096 = vmatpush.bf16.msra.mxu3 %v8955_v21  ;;  %v8409_v22 = vunpack.i.l.s16 %v5716_v7 }
 0x887   : > { %4901 = vmatmul.bf16.vlgmr.msra.gmra.mxu2 %v4843_v4  ;;  %v14523_v16 = vpop.permute.xlu1 %5176  ;;  %v14525_v33 = vpop.permute.xlu2 %4996  ;;  %17263 = vst [vmem:[#allocation174_spill] sm:$0xff] %v14529_v8  ;;  %v14533_v55 = vmul.f32 %v17264_v36, %v14292_v48  ;;  %v8954_v4 = vld [vmem:[#allocation5 + $0x88] sm:$0xff]  ;;  %v4336_v38 = vpack.c.bf16 %v14529_v8, %v14529_v8  ;;  %v8325_v23 = vunpack.i.l.s16 %v5332_v52  ;;  %v5010_v36 = vperm.slane %v14314_v25, %v12061_v63  ;;  %v8953_v21 = vld [vmem:[#allocation5 + $0x80] sm:$0xff]  ;;  %v17266_v52 = vld [vmem:[#allocation36_spill] sm:$0xff] }
 0x888   : > { %v4967_v60 = vpop.permute.xlu0 %4966  ;;  %v14551_v8 = vmul.f32 %v17266_v52, %v14476_v30  ;;  %v5015_v52 = vperm.slane %v14336_v45, %v12082_v12  ;;  %v17272_v45 = vld [vmem:[#allocation42_spill] sm:$0xff] }
 0x889   : > { %17265 = vst [vmem:[#allocation175_spill] sm:$0xff] %v14533_v55  ;;  %v5011_v59 = vperm.slane %v4967_v60, %v12068_v10  ;;  %v4335_v29 = vpack.c.bf16 %v14533_v55, %v14533_v55  ;;  %v5518_v47 = vunpack.c.l.b16 %v4336_v38  ;;  %v17268_v55 = vld [vmem:[#allocation55_spill] sm:$0xff] }
 0x88a   : > { %5097 = vmatpush.bf16.msra.mxu3 %v8954_v4  ;;  %17267 = vst [vmem:[#allocation148_spill] sm:$0xff] %v14551_v8  ;;  %v14555_v25 = vmul.f32 %v17268_v55, %v14292_v48  ;;  %v4358_v43 = vpack.c.bf16 %v14551_v8, %v14551_v8 }
 0x88b   : > { %v5012_v60 = vsel %vm2645_vm0, %v5011_v59, %v5010_v36  ;;  %v5517_v4 = vunpack.c.l.b16 %v4335_v29  ;;  %v17270_v59 = vld [vmem:[#allocation40_spill] sm:$0xff]  ;;  %v8412_v36 = vunpack.i.l.s16 %v5719_v28  ;;  %v8361_v55 = vunpack.i.l.s16 %v5518_v47 }
 0x88c   : > { %17269 = vst [vmem:[#allocation152_spill] sm:$0xff] %v14555_v25  ;;  %v14577_v47 = vmul.f32 %v17272_v45, %v14476_v30  ;;  %v5021_v45 = vperm.slane %v14368_v31, %v12106_v13  ;;  %v5025_v31 = vperm.slane %v14490_v53, %v12141_v17 }
 0x88d   : > { %5761 = vperm.xlu1 %9575, %v8409_v22   ;;  %5404 = vperm.xlu2 %9577, %v8326_v0   ;;  %v5013_v22 = vperm.slane %v14427_v6, %v12073_v11  ;;  %v14561_v0 = vmul.f32 %v17270_v59, %v14292_v48  ;;  %v4339_v6 = vpack.c.bf16 %v14555_v25, %v14555_v25  ;;  %v8360_v29 = vunpack.i.l.s16 %v5517_v4 }
 0x88e   : > { %5401 = vperm.xlu0 %9576, %v8325_v23   ;;  %5098 = vmatpush.bf16.msra.mxu3 %v8953_v21  ;;  %17273 = vst [vmem:[#allocation179_spill] sm:$0xff] %v14577_v47  ;;  %v5019_v21 = vperm.slane %v14461_v27, %v12100_v39  ;;  %v5722_v4 = vunpack.c.l.b16 %v4358_v43 }
 0x88f   : > { %v14545_v7 = vpop.permute.xlu1 %5185  ;;  %v14547_v20 = vpop.permute.xlu2 %5005  ;;  %17271 = vst [vmem:[#allocation170_spill] sm:$0xff] %v14561_v0  ;;  %v5014_v23 = vsel %vm2649_vm1, %v5013_v22, %v5012_v60  ;;  %v4338_v59 = vpack.c.bf16 %v14561_v0, %v14561_v0  ;;  %v5521_v8 = vunpack.c.l.b16 %v4339_v6  ;;  %v4361_v6 = vpack.c.bf16 %v14577_v47, %v14577_v47  ;;  %v17281_v47 = vld [vmem:[#allocation165_spill] sm:$0xff] }
 0x890   : > { %v4976_v9 = vpop.permute.xlu0 %4975  ;;  %v5016_v60 = vsel %vm2653_vm2, %v5015_v52, %v5014_v23  ;;  %v17274_v23 = vld [vmem:[#allocation61_spill] sm:$0xff]  ;;  %v8415_v0 = vunpack.i.l.s16 %v5722_v4  ;;  %v8968_v4 = vld [vmem:[#allocation5 + $0xf8] sm:$0xff] }
 0x891   : > { %v5017_v38 = vperm.slane %v4976_v9, %v12095_v41  ;;  %v8364_v43 = vunpack.i.l.s16 %v5521_v8  ;;  %v17279_v8 = vld [vmem:[#allocation49_spill] sm:$0xff]  ;;  %5289 = vmatpush.bf16.msrb.mxu0 %v8968_v4 }
 0x893   : > { %v5018_v28 = vsel %vm2657_vm3, %v5017_v38, %v5016_v60  ;;  %v5520_v38 = vunpack.c.l.b16 %v4338_v59 }
 0x894   : > { %v5020_v60 = vsel %vm17278_vm8, %v5019_v21, %v5018_v28  ;;  %v14609_v21 = vmul.f32 %v17279_v8, %v14476_v30  ;;  %v5027_v8 = vperm.slane %v14397_v61, %v12144_v24  ;;  %vm17317_vm8 = vmmov %vm17285_vm10 }
 0x895   : > { %5770 = vperm.xlu1 %9575, %v8412_v36   ;;  %5563 = vperm.xlu2 %9577, %v8361_v55   ;;  %v14587_v36 = vmul.f32 %v17274_v23, %v14292_v48  ;;  %v17276_v55 = vld [vmem:[#allocation46_spill] sm:$0xff]  ;;  %v5022_v59 = vsel %vm2665_vm5, %v5021_v45, %v5020_v60  ;;  %v8363_v25 = vunpack.i.l.s16 %v5520_v38  ;;  %v5725_v38 = vunpack.c.l.b16 %v4361_v6 }
 0x896   : > { %5560 = vperm.xlu0 %9576, %v8360_v29   ;;  %v14591_v29 = vmul.f32 %v17276_v55, %v14292_v48  ;;  %17280 = vst [vmem:[#allocation169_spill] sm:$0xff] %v14609_v21  ;;  %v14628_v6 = vperm.slane %v13829_v58, 7  ;;  %v5031_v58 = vperm.slane %v14525_v33, %v12167_v42 }
 0x897   : > { %v14581_v22 = vpop.permute.xlu1 %5194  ;;  %v14583_v9 = vpop.permute.xlu2 %5164  ;;  %17275 = vst [vmem:[#allocation162_spill] sm:$0xff] %v14587_v36  ;;  %v4342_v23 = vpack.c.bf16 %v14587_v36, %v14587_v36 }
 0x898   : > { %v4985_v52 = vpop.permute.xlu0 %4984  ;;  %17277 = vst [vmem:[#allocation155_spill] sm:$0xff] %v14591_v29  ;;  %v4341_v55 = vpack.c.bf16 %v14591_v29, %v14591_v29 }
 0x899   : > { %v5023_v27 = vperm.slane %v4985_v52, %v12116_v15  ;;  %v5524_v45 = vunpack.c.l.b16 %v4342_v23 }
 0x89a   : > { %v5523_v53 = vunpack.c.l.b16 %v4341_v55 }
 0x89b   : > { %v5024_v28 = vsel %vm2669_vm6, %v5023_v27, %v5022_v59  ;;  %v14617_v27 = vmul.f32 %v17281_v47, %v14292_v48  ;;  %v4364_v47 = vpack.c.bf16 %v14609_v21, %v14609_v21  ;;  %v8367_v55 = vunpack.i.l.s16 %v5524_v45 }
 0x89d   : > { %5779 = vperm.xlu1 %9575, %v8415_v0   ;;  %5572 = vperm.xlu2 %9577, %v8364_v43   ;;  %17282 = vst [vmem:[#allocation177_spill] sm:$0xff] %v14617_v27  ;;  %v5026_v0 = vsel %vm2673_vm7, %v5025_v31, %v5024_v28  ;;  %v8418_v28 = vunpack.i.l.s16 %v5725_v38  ;;  %v4345_v31 = vpack.c.bf16 %v14617_v27, %v14617_v27  ;;  %v5728_v21 = vunpack.c.l.b16 %v4364_v47  ;;  %v17287_v38 = vld [vmem:[#allocation63_spill] sm:$0xff] }
 0x89e   : > { %5569 = vperm.xlu0 %9576, %v8363_v25   ;;  %v17283_v25 = vld [vmem:[#allocation48_spill] sm:$0xff]  ;;  %v5028_v23 = vsel %vm17285_vm10, %v5027_v8, %v5026_v0  ;;  %v14642_v45 = vmul.f32 %v17287_v38, %v14628_v6  ;;  %v8966_v0 = vld [vmem:[#allocation5 + $0xe8] sm:$0xff]  ;;  %v5033_v47 = vperm.slane %v14425_v49, %v12183_v50  ;;  %v5039_v49 = vperm.slane %v14459_v35, %v17008_v18  ;;  %vm17320_vm10 = vmmov %vm17286_vm4 }
 0x89f   : > { %v14611_v52 = vpop.permute.xlu1 %5203  ;;  %v14613_v60 = vpop.permute.xlu2 %5173  ;;  %v14622_v59 = vmul.f32 %v17283_v25, %v14292_v48  ;;  %v8366_v25 = vunpack.i.l.s16 %v5523_v53  ;;  %v8421_v38 = vunpack.i.l.s16 %v5728_v21  ;;  %v8965_v21 = vld [vmem:[#allocation5 + $0xe0] sm:$0xff]  ;;  %v17294_v35 = vld [vmem:[#allocation66_spill] sm:$0xff] }
 0x8a0   : > { %v4994_v43 = vpop.permute.xlu0 %4993  ;;  %17288 = vst [vmem:[#allocation166_spill] sm:$0xff] %v14642_v45 }
 0x8a1   : > { %17284 = vst [vmem:[#allocation178_spill] sm:$0xff] %v14622_v59  ;;  %v5029_v29 = vperm.slane %v4994_v43, %v12138_v2  ;;  %v4344_v61 = vpack.c.bf16 %v14622_v59, %v14622_v59  ;;  %v8967_v43 = vld [vmem:[#allocation5 + $0xf0] sm:$0xff]  ;;  %v17290_v59 = vld [vmem:[#allocation54_spill] sm:$0xff] }
 0x8a2   : > { %5290 = vmatpush.bf16.msrb.mxu0 %v8967_v43  ;;  %v14651_v33 = vmul.f32 %v17290_v59, %v14292_v48  ;;  %v4367_v59 = vpack.c.bf16 %v14642_v45, %v14642_v45 }
 0x8a3   : > { %v5030_v4 = vsel %vm17286_vm4, %v5029_v29, %v5028_v23  ;;  %v5527_v23 = vunpack.c.l.b16 %v4345_v31  ;;  %vm17323_vm4 = vmmov %vm17289_vm9 }
 0x8a4   : > { %v5032_v29 = vsel %vm17289_vm9, %v5031_v58, %v5030_v4  ;;  %17291 = vst [vmem:[#allocation168_spill] sm:$0xff] %v14651_v33  ;;  %v5037_v58 = vperm.slane %v14547_v20, %v17000_v54 }
 0x8a5   : > { %5788 = vperm.xlu1 %9575, %v8418_v28   ;;  %5581 = vperm.xlu2 %9577, %v8367_v55   ;;  %v5526_v55 = vunpack.c.l.b16 %v4344_v61  ;;  %v5034_v31 = vsel %vm2689_vm11, %v5033_v47, %v5032_v29  ;;  %v8370_v61 = vunpack.i.l.s16 %v5527_v23  ;;  %v14676_v23 = vmul.f32 %v17294_v35, %v14628_v6  ;;  %v8964_v47 = vld [vmem:[#allocation5 + $0xd8] sm:$0xff] }
 0x8a6   : > { %5578 = vperm.xlu0 %9576, %v8366_v25   ;;  %v17292_v25 = vld [vmem:[#allocation53_spill] sm:$0xff]  ;;  %5291 = vmatpush.bf16.msrb.mxu0 %v8966_v0 }
 0x8a7   : > { %v14645_v53 = vpop.permute.xlu1 %5362  ;;  %v14647_v8 = vpop.permute.xlu2 %5182  ;;  %v14657_v43 = vmul.f32 %v17292_v25, %v14292_v48  ;;  %v4348_v48 = vpack.c.bf16 %v14651_v33, %v14651_v33  ;;  %17295 = vst [vmem:[#allocation182_spill] sm:$0xff] %v14676_v23  ;;  %v8961_v33 = vld [vmem:[#allocation5 + $0xc0] sm:$0xff] }
 0x8a8   : > { %v5003_v28 = vpop.permute.xlu0 %5002 }
 0x8a9   : > { %17293 = vst [vmem:[#allocation171_spill] sm:$0xff] %v14657_v43  ;;  %v5035_v4 = vperm.slane %v5003_v28, %v16995_v46  ;;  %v8369_v28 = vunpack.i.l.s16 %v5526_v55  ;;  %v4347_v20 = vpack.c.bf16 %v14657_v43, %v14657_v43 }
 0x8aa   : > { %5292 = vmatpush.bf16.msrb.mxu0 %v8965_v21  ;;  %v4370_v21 = vpack.c.bf16 %v14676_v23, %v14676_v23 }
 0x8ab   : > { %v5036_v27 = vsel %vm2693_vm12, %v5035_v4, %v5034_v31  ;;  %v17296_v31 = vld [vmem:[#allocation60_spill] sm:$0xff] }
 0x8ac   : > { %v5038_v25 = vsel %vm2697_vm13, %v5037_v58, %v5036_v27  ;;  %v5913_v27 = vunpack.c.l.b16 %v4367_v59  ;;  %v5530_v58 = vunpack.c.l.b16 %v4348_v48 }
 0x8ad   : > { %5797 = vperm.xlu1 %9575, %v8421_v38   ;;  %5590 = vperm.xlu2 %9577, %v8370_v61   ;;  %v5040_v0 = vsel %vm2701_vm14, %v5039_v49, %v5038_v25  ;;  %v14684_v38 = vmul.f32 %v17296_v31, %v14476_v30  ;;  %v5529_v61 = vunpack.c.l.b16 %v4347_v20  ;;  %v5916_v20 = vunpack.c.l.b16 %v4370_v21  ;;  %v17303_v21 = vld [vmem:[#allocation157_spill] sm:$0xff] }
 0x8ae   : > { %5587 = vperm.xlu0 %9576, %v8369_v28   ;;  %v5041_v29 = vpack.c.b16 %v5040_v0, %v5040_v0  ;;  %v17298_v28 = vld [vmem:[#allocation151_spill] sm:$0xff]  ;;  %5293 = vmatpush.bf16.msrb.mxu0 %v8964_v47  ;;  %v8456_v0 = vunpack.i.l.s16 %v5913_v27  ;;  %v8373_v35 = vunpack.i.l.s16 %v5530_v58  ;;  %v8962_v47 = vld [vmem:[#allocation5 + $0xc8] sm:$0xff] }
 0x8af   : > { %v14678_v4 = vpop.permute.xlu1 %5371  ;;  %v14680_v55 = vpop.permute.xlu2 %5191  ;;  %17297 = vst [vmem:[#allocation180_spill] sm:$0xff] %v14684_v38  ;;  %v14688_v25 = vmul.f32 %v17298_v28, %v14476_v30  ;;  %v4351_v59 = vpack.c.bf16 %v14684_v38, %v14684_v38  ;;  %v8372_v48 = vunpack.i.l.s16 %v5529_v61  ;;  %v17300_v28 = vld [vmem:[#allocation72_spill] sm:$0xff] }
 0x8b0   : > { %5099 = vmatmul.bf16.vlgmr.msra.gmra.mxu3 %v5041_v29  ;;  %v5162_v49 = vpop.permute.xlu0 %5161  ;;  %v8963_v29 = vld [vmem:[#allocation5 + $0xd0] sm:$0xff]  ;;  %v14698_v45 = vmul.f32 %v17300_v28, %v14628_v6  ;;  %v8459_v28 = vunpack.i.l.s16 %v5916_v20 }
 0x8b1   : > { %17299 = vst [vmem:[#allocation181_spill] sm:$0xff] %v14688_v25  ;;  %v4350_v31 = vpack.c.bf16 %v14688_v25, %v14688_v25  ;;  %v5208_v27 = vperm.slane %v5162_v49, %v12061_v63  ;;  %v5715_v61 = vunpack.c.l.b16 %v4351_v59  ;;  %v17302_v25 = vld [vmem:[#allocation62_spill] sm:$0xff] }
 0x8b2   : > { %17301 = vst [vmem:[#allocation185_spill] sm:$0xff] %v14698_v45  ;;  %5294 = vmatpush.bf16.msrb.mxu0 %v8963_v29  ;;  %v14707_v43 = vmul.f32 %v17302_v25, %v14476_v30  ;;  %v5209_v29 = vperm.slane %v14583_v9, %v12068_v10  ;;  %v4373_v49 = vpack.c.bf16 %v14698_v45, %v14698_v45  ;;  %v17307_v45 = vld [vmem:[#allocation159_spill] sm:$0xff] }
 0x8b3   : > { %v8408_v25 = vunpack.i.l.s16 %v5715_v61 }
 0x8b4   : > { %v5210_v59 = vsel %vm2645_vm0, %v5209_v29, %v5208_v27 }
 0x8b5   : > { %5956 = vperm.xlu1 %9575, %v8456_v0   ;;  %5599 = vperm.xlu2 %9577, %v8373_v35   ;;  %v5714_v35 = vunpack.c.l.b16 %v4350_v31  ;;  %v4354_v31 = vpack.c.bf16 %v14707_v43, %v14707_v43 }
 0x8b6   : > { %5596 = vperm.xlu0 %9576, %v8372_v48   ;;  %v14711_v48 = vmul.f32 %v17303_v21, %v14476_v30  ;;  %5295 = vmatpush.bf16.msrb.mxu0 %v8962_v47  ;;  %v5211_v21 = vperm.slane %v14488_v32, %v12073_v11  ;;  %v5919_v47 = vunpack.c.l.b16 %v4373_v49  ;;  %v17305_v32 = vld [vmem:[#allocation78_spill] sm:$0xff] }
 0x8b7   : > { %v14701_v58 = vpop.permute.xlu1 %5380  ;;  %v14703_v23 = vpop.permute.xlu2 %5200  ;;  %v8407_v36 = vunpack.i.l.s16 %v5714_v35  ;;  %v5718_v29 = vunpack.c.l.b16 %v4354_v31  ;;  %v14733_v35 = vmul.f32 %v17305_v32, %v14628_v6 }
 0x8b8   : > { %v5171_v0 = vpop.permute.xlu0 %5170  ;;  %17304 = vst [vmem:[#allocation192_spill] sm:$0xff] %v14711_v48  ;;  %v4353_v9 = vpack.c.bf16 %v14711_v48, %v14711_v48  ;;  %v5212_v20 = vsel %vm2649_vm1, %v5211_v21, %v5210_v59  ;;  %v8462_v21 = vunpack.i.l.s16 %v5919_v47 }
 0x8b9   : > { %v5213_v38 = vperm.slane %v5171_v0, %v12082_v12  ;;  %17306 = vst [vmem:[#allocation199_spill] sm:$0xff] %v14733_v35  ;;  %v8411_v32 = vunpack.i.l.s16 %v5718_v29  ;;  %v8976_v29 = vld [vmem:[#allocation5 + $0x138] sm:$0xff] }
 0x8ba   : > { %5296 = vmatpush.bf16.msrb.mxu0 %v8961_v33  ;;  %v5717_v33 = vunpack.c.l.b16 %v4353_v9  ;;  %5487 = vmatpush.bf16.msrb.mxu1 %v8976_v29 }
 0x8bb   : > { %v5214_v27 = vsel %vm2653_vm2, %v5213_v38, %v5212_v20  ;;  %v17309_v38 = vld [vmem:[#allocation164_spill] sm:$0xff]  ;;  %v5217_v20 = vperm.slane %v14523_v16, %v12100_v39  ;;  %v17312_v16 = vld [vmem:[#allocation65_spill] sm:$0xff] }
 0x8bc   : > { %v14743_v59 = vmul.f32 %v17309_v38, %v14476_v30  ;;  %v8410_v9 = vunpack.i.l.s16 %v5717_v33 }
 0x8bd   : > { %5965 = vperm.xlu1 %9575, %v8459_v28   ;;  %5758 = vperm.xlu2 %9577, %v8408_v25   ;;  %v14737_v28 = vmul.f32 %v17307_v45, %v14476_v30  ;;  %v4376_v45 = vpack.c.bf16 %v14733_v35, %v14733_v35 }
 0x8be   : > { %5755 = vperm.xlu0 %9576, %v8407_v36   ;;  %v5215_v36 = vperm.slane %v14613_v60, %v12095_v41  ;;  %17310 = vst [vmem:[#allocation204_spill] sm:$0xff] %v14743_v59  ;;  %v4356_v38 = vpack.c.bf16 %v14743_v59, %v14743_v59 }
 0x8bf   : > { %v14727_v61 = vpop.permute.xlu1 %5389  ;;  %v14729_v0 = vpop.permute.xlu2 %5359  ;;  %17308 = vst [vmem:[#allocation183_spill] sm:$0xff] %v14737_v28  ;;  %v4357_v60 = vpack.c.bf16 %v14737_v28, %v14737_v28  ;;  %v5922_v35 = vunpack.c.l.b16 %v4376_v45 }
 0x8c0   : > { %v5180_v49 = vpop.permute.xlu0 %5179  ;;  %v5216_v25 = vsel %vm2657_vm3, %v5215_v36, %v5214_v27  ;;  %v14759_v27 = vmul.f32 %v17312_v16, %v14628_v6  ;;  %v5221_v36 = vperm.slane %v14647_v8, %v12116_v15  ;;  %v5223_v16 = vperm.slane %v14545_v7, %v12141_v17 }
 0x8c1   : > { %v5219_v31 = vperm.slane %v5180_v49, %v12106_v13  ;;  %v5218_v48 = vsel %vm17311_vm15, %v5217_v20, %v5216_v25  ;;  %v5721_v59 = vunpack.c.l.b16 %v4357_v60  ;;  %v17314_v25 = vld [vmem:[#allocation68_spill] sm:$0xff]  ;;  %v17315_v20 = vld [vmem:[#allocation67_spill] sm:$0xff]  ;;  %v8465_v45 = vunpack.i.l.s16 %v5922_v35  ;;  %v8974_v35 = vld [vmem:[#allocation5 + $0x128] sm:$0xff] }
 0x8c2   : > { %17313 = vst [vmem:[#allocation201_spill] sm:$0xff] %v14759_v27  ;;  %v5227_v7 = vperm.slane %v14680_v55, %v12138_v2  ;;  %v17321_v55 = vld [vmem:[#allocation90_spill] sm:$0xff] }
 0x8c3   : > { %v5220_v47 = vsel %vm2665_vm5, %v5219_v31, %v5218_v48  ;;  %v5720_v31 = vunpack.c.l.b16 %v4356_v38  ;;  %v8414_v60 = vunpack.i.l.s16 %v5721_v59 }
 0x8c5   : > { %5974 = vperm.xlu1 %9575, %v8462_v21   ;;  %5767 = vperm.xlu2 %9577, %v8411_v32   ;;  %v14769_v21 = vmul.f32 %v17314_v25, %v14476_v30  ;;  %v14773_v32 = vmul.f32 %v17315_v20, %v14476_v30  ;;  %v4379_v25 = vpack.c.bf16 %v14759_v27, %v14759_v27  ;;  %v8413_v20 = vunpack.i.l.s16 %v5720_v31 }
 0x8c6   : > { %5764 = vperm.xlu0 %9576, %v8410_v9   ;;  %v5222_v9 = vsel %vm2669_vm6, %v5221_v36, %v5220_v47  ;;  %v8975_v47 = vld [vmem:[#allocation5 + $0x130] sm:$0xff] }
 0x8c7   : > { %v14763_v49 = vpop.permute.xlu1 %5398  ;;  %v14765_v33 = vpop.permute.xlu2 %5368  ;;  %17316 = vst [vmem:[#allocation194_spill] sm:$0xff] %v14773_v32  ;;  %v4360_v38 = vpack.c.bf16 %v14769_v21, %v14769_v21  ;;  %v5224_v28 = vsel %vm2673_vm7, %v5223_v16, %v5222_v9  ;;  %v4359_v29 = vpack.c.bf16 %v14773_v32, %v14773_v32  ;;  %5488 = vmatpush.bf16.msrb.mxu1 %v8975_v47  ;;  %v5925_v9 = vunpack.c.l.b16 %v4379_v25  ;;  %v17318_v16 = vld [vmem:[#allocation70_spill] sm:$0xff] }
 0x8c8   : > { %v5189_v48 = vpop.permute.xlu0 %5188  ;;  %v14795_v27 = vmul.f32 %v17318_v16, %v14476_v30 }
 0x8c9   : > { %v5225_v8 = vperm.slane %v5189_v48, %v12144_v24  ;;  %v5724_v31 = vunpack.c.l.b16 %v4360_v38  ;;  %v8468_v38 = vunpack.i.l.s16 %v5925_v9  ;;  %v17325_v9 = vld [vmem:[#allocation92_spill] sm:$0xff] }
 0x8ca   : > { %17319 = vst [vmem:[#allocation184_spill] sm:$0xff] %v14795_v27  ;;  %v4363_v16 = vpack.c.bf16 %v14795_v27, %v14795_v27 }
 0x8cb   : > { %v5226_v36 = vsel %vm17317_vm8, %v5225_v8, %v5224_v28  ;;  %5489 = vmatpush.bf16.msrb.mxu1 %v8974_v35  ;;  %v8417_v32 = vunpack.i.l.s16 %v5724_v31  ;;  %v5233_v35 = vperm.slane %v14703_v23, %v16995_v46  ;;  %v14819_v31 = vmul.f32 %v17325_v9, %v14628_v6 }
 0x8cc   : > { %v5228_v28 = vsel %vm17320_vm10, %v5227_v7, %v5226_v36  ;;  %v740_v7 = vld [vmem:[%s17324_s28] sm:$0xff]  ;;  %v5235_v23 = vperm.slane %v14611_v52, %v17000_v54  ;;  %v10216_v9 = vmov 0.0   ;;  %s7834_s28 = sshll.u32 %s10456_s3, 4  ;;  %s7835_s28 = int_to_ptr.vmem [resolvable:$true] %s7834_s28 }
 0x8cd   : > { %5983 = vperm.xlu1 %9575, %v8465_v45   ;;  %5776 = vperm.xlu2 %9577, %v8414_v60   ;;  %v5723_v45 = vunpack.c.l.b16 %v4359_v29  ;;  %v14800_v60 = vmul.f32 %v17321_v55, %v14476_v30  ;;  %v741_v55 = vstv %s10195_s26  ;;  %v4366_v52 = vpack.c.bf16 %v14819_v31, %v14819_v31 }
 0x8ce   : > { %5773 = vperm.xlu0 %9576, %v8413_v20   ;;  %v5229_v20 = vperm.slane %v14581_v22, %v12167_v42  ;;  %vm742_vm9 = vcmp.gt.s32.totalorder %v740_v7, %v741_v55 }
 0x8cf   : > { %v14789_v59 = vpop.permute.xlu1 %5557  ;;  %v14791_v48 = vpop.permute.xlu2 %5377  ;;  %17322 = vst [vmem:[#allocation191_spill] sm:$0xff] %v14800_v60  ;;  %v8416_v29 = vunpack.i.l.s16 %v5723_v45  ;;  %v4362_v22 = vpack.c.bf16 %v14800_v60, %v14800_v60  ;;  %v14833_v27 = vsel %vm742_vm9, 1.0, %v10216_v9  ;;  %vm17343_vm9 = vcmask 1041409  }
 0x8d0   : > { %v5198_v8 = vpop.permute.xlu0 %5197  ;;  %v5230_v25 = vsel %vm17323_vm4, %v5229_v20, %v5228_v28  ;;  %v8972_v28 = vld [vmem:[#allocation5 + $0x118] sm:$0xff] }
 0x8d1   : > { %v5231_v47 = vperm.slane %v5198_v8, %v12183_v50  ;;  %v8973_v8 = vld [vmem:[#allocation5 + $0x120] sm:$0xff] }
 0x8d2   : > { %5490 = vmatpush.bf16.msrb.mxu1 %v8973_v8 }
 0x8d3   : > { %v5232_v36 = vsel %vm2689_vm11, %v5231_v47, %v5230_v25  ;;  %v5727_v25 = vunpack.c.l.b16 %v4363_v16 }
 0x8d4   : > { %v5234_v45 = vsel %vm2693_vm12, %v5233_v35, %v5232_v36 }
 0x8d5   : > { %5992 = vperm.xlu1 %9575, %v8468_v38   ;;  %5785 = vperm.xlu2 %9577, %v8417_v32   ;;  %v5726_v32 = vunpack.c.l.b16 %v4362_v22  ;;  %v5236_v36 = vsel %vm2697_vm13, %v5235_v23, %v5234_v45  ;;  %v8420_v16 = vunpack.i.l.s16 %v5727_v25  ;;  %v5912_v25 = vunpack.c.l.b16 %v4366_v52  ;;  %v17328_v23 = vld [vmem:[#allocation80_spill] sm:$0xff] }
 0x8d6   : > { %5782 = vperm.xlu0 %9576, %v8416_v29   ;;  %v17326_v29 = vld [vmem:[#allocation77_spill] sm:$0xff]  ;;  %5491 = vmatpush.bf16.msrb.mxu1 %v8972_v28 }
 0x8d7   : > { %v14822_v20 = vpop.permute.xlu1 %5566  ;;  %v14824_v47 = vpop.permute.xlu2 %5386  ;;  %v14830_v60 = vmul.f32 %v17326_v29, %v14476_v30  ;;  %v8419_v55 = vunpack.i.l.s16 %v5726_v32  ;;  %v14850_v29 = vmul.f32 %v17328_v23, %v14628_v6  ;;  %v8970_v32 = vld [vmem:[#allocation5 + $0x108] sm:$0xff]  ;;  %v8969_v23 = vld [vmem:[#allocation5 + $0x100] sm:$0xff] }
 0x8d8   : > { %v5207_v38 = vpop.permute.xlu0 %5206 }
 0x8d9   : > { %17327 = vst [vmem:[#allocation173_spill] sm:$0xff] %v14830_v60  ;;  %v5237_v8 = vperm.slane %v5207_v38, %v17008_v18  ;;  %v4365_v30 = vpack.c.bf16 %v14830_v60, %v14830_v60  ;;  %v8971_v38 = vld [vmem:[#allocation5 + $0x110] sm:$0xff]  ;;  %v8455_v60 = vunpack.i.l.s16 %v5912_v25  ;;  %v4369_v52 = vpack.c.bf16 %v14850_v29, %v14850_v29 }
 0x8da   : > { %17329 = vst [vmem:[#allocation186_spill] sm:$0xff] %v14850_v29  ;;  %5492 = vmatpush.bf16.msrb.mxu1 %v8971_v38  ;;  %v5407_v38 = vperm.slane %v14645_v53, %v12068_v10  ;;  %v17332_v29 = vld [vmem:[#allocation86_spill] sm:$0xff] }
 0x8db   : > { %v14836_v35 = vpop.f32.mrf.mxu1  ;;  %v5238_v7 = vsel %vm2701_vm14, %v5237_v8, %v5236_v36  ;;  %v5729_v9 = vunpack.c.l.b16 %v4365_v30  ;;  %v17330_v36 = vld [vmem:[#allocation79_spill] sm:$0xff]  ;;  %v14874_v53 = vmul.f32 %v17332_v29, %v14628_v6 }
 0x8dc   : > { %v5239_v22 = vpack.c.b16 %v5238_v7, %v5238_v7  ;;  %v14854_v7 = vmul.f32 %v17330_v36, %v14628_v6 }
 0x8dd   : > { %7027 = vperm.xlu1 %9575, %v14833_v27   ;;  %5794 = vperm.xlu2 %9577, %v8420_v16   ;;  %v5406_v16 = vperm.slane %v14729_v0, %v12061_v63  ;;  %v8422_v30 = vunpack.i.l.s16 %v5729_v9  ;;  %v5411_v9 = vperm.slane %v14765_v33, %v12082_v12  ;;  %v4372_v29 = vpack.c.bf16 %v14874_v53, %v14874_v53 }
 0x8de   : > { %5791 = vperm.xlu0 %9576, %v8419_v55   ;;  %5297 = vmatmul.bf16.vlgmr.msrb.gmra.mxu0 %v5239_v22  ;;  %17331 = vst [vmem:[#allocation200_spill] sm:$0xff] %v14854_v7  ;;  %v4368_v36 = vpack.c.bf16 %v14854_v7, %v14854_v7  ;;  %v8984_v7 = vld [vmem:[#allocation5 + $0x178] sm:$0xff] }
 0x8df   : > { %v14844_v28 = vpop.permute.xlu1 %5575  ;;  %v14846_v45 = vpop.permute.xlu2 %5395  ;;  %5493 = vmatpush.bf16.msrb.mxu1 %v8970_v32  ;;  %v5408_v0 = vsel %vm2645_vm0, %v5407_v38, %v5406_v16  ;;  %v5915_v32 = vunpack.c.l.b16 %v4369_v52  ;;  %v17333_v16 = vld [vmem:[#allocation85_spill] sm:$0xff]  ;;  %v5413_v52 = vperm.slane %v14678_v4, %v12095_v41  ;;  %5685 = vmatpush.bf16.msrb.mxu2 %v8984_v7 }
 0x8e0   : > { %v5366_v8 = vpop.permute.xlu0 %5365  ;;  %v14880_v38 = vmul.f32 %v17333_v16, %v14628_v6 }
 0x8e1   : > { %v5409_v55 = vperm.slane %v5366_v8, %v12073_v11 }
 0x8e2   : > { %17334 = vst [vmem:[#allocation206_spill] sm:$0xff] %v14880_v38  ;;  %v4371_v33 = vpack.c.bf16 %v14880_v38, %v14880_v38 }
 0x8e3   : > { %v4706_v22 = vpop.f32.mrf.mxu1  ;;  %v5410_v25 = vsel %vm2649_vm1, %v5409_v55, %v5408_v0  ;;  %5494 = vmatpush.bf16.msrb.mxu1 %v8969_v23  ;;  %v8458_v0 = vunpack.i.l.s16 %v5915_v32 }
 0x8e4   : > { %v5412_v55 = vsel %vm2653_vm2, %v5411_v9, %v5410_v25  ;;  %v5417_v9 = vperm.slane %v14791_v48, %v12106_v13  ;;  %v5419_v48 = vperm.slane %v14701_v58, %v12116_v15  ;;  %v8983_v58 = vld [vmem:[#allocation5 + $0x170] sm:$0xff] }
 0x8e5   : > { %7177 = vperm.xlu1 %9575, %v13843_v1   ;;  %5953 = vperm.xlu2 %9577, %v8455_v60   ;;  %v5914_v60 = vunpack.c.l.b16 %v4368_v36  ;;  %v5414_v36 = vsel %vm2657_vm3, %v5413_v52, %v5412_v55  ;;  %v5917_v55 = vunpack.c.l.b16 %v4371_v33 }
 0x8e6   : > { %5800 = vperm.xlu0 %9576, %v8422_v30   ;;  %5686 = vmatpush.bf16.msrb.mxu2 %v8983_v58 }
 0x8e7   : > { %v14868_v8 = vpop.permute.xlu1 %5584  ;;  %v14870_v22 = vpop.permute.xlu2 %5404  ;;  %v8457_v23 = vunpack.i.l.s16 %v5914_v60  ;;  %v17335_v60 = vld [vmem:[#allocation91_spill] sm:$0xff] }
 0x8e8   : > { %v5375_v1 = vpop.permute.xlu0 %5374  ;;  %v14901_v16 = vmul.f32 %v17335_v60, %v14628_v6  ;;  %v8460_v60 = vunpack.i.l.s16 %v5917_v55  ;;  %v17338_v55 = vld [vmem:[#allocation193_spill] sm:$0xff] }
 0x8e9   : > { %v5415_v30 = vperm.slane %v5375_v1, %v12100_v39  ;;  %v5918_v1 = vunpack.c.l.b16 %v4372_v29 }
 0x8ea   : > { %v4375_v29 = vpack.c.bf16 %v14901_v16, %v14901_v16 }
 0x8eb   : > { %v5416_v25 = vsel %vm17311_vm15, %v5415_v30, %v5414_v36 }
 0x8ec   : > { %v5418_v30 = vsel %vm2665_vm5, %v5417_v9, %v5416_v25 }
 0x8ed   : > { %7186 = vperm.xlu1 %9575, %v13883_v3   ;;  %5962 = vperm.xlu2 %9577, %v8458_v0   ;;  %v17336_v3 = vld [vmem:[#allocation94_spill] sm:$0xff]  ;;  %v5420_v36 = vsel %vm2669_vm6, %v5419_v48, %v5418_v30  ;;  %v14926_v30 = vmul.f32 %v17338_v55, %v14628_v6 }
 0x8ee   : > { %5959 = vperm.xlu0 %9576, %v8457_v23   ;;  %v14905_v52 = vmul.f32 %v17336_v3, %v14628_v6  ;;  %v8461_v23 = vunpack.i.l.s16 %v5918_v1  ;;  %v5921_v1 = vunpack.c.l.b16 %v4375_v29 }
 0x8ef   : > { %v14895_v4 = vpop.permute.xlu1 %5593  ;;  %v14897_v32 = vpop.permute.xlu2 %5563  ;;  %v4378_v55 = vpack.c.bf16 %v14926_v30, %v14926_v30 }
 0x8f0   : > { %v5384_v38 = vpop.permute.xlu0 %5383  ;;  %17337 = vst [vmem:[#allocation203_spill] sm:$0xff] %v14905_v52  ;;  %v4374_v33 = vpack.c.bf16 %v14905_v52, %v14905_v52  ;;  %v5429_v52 = vperm.slane %v14846_v45, %v12183_v50  ;;  %v5431_v45 = vperm.slane %v14763_v49, %v16995_v46 }
 0x8f1   : > { %v5421_v0 = vperm.slane %v5384_v38, %v12141_v17  ;;  %v5423_v38 = vperm.slane %v14824_v47, %v12144_v24  ;;  %v5425_v47 = vperm.slane %v14727_v61, %v12138_v2  ;;  %v8981_v61 = vld [vmem:[#allocation5 + $0x160] sm:$0xff] }
 0x8f3   : > { %v5422_v3 = vsel %vm2673_vm7, %v5421_v0, %v5420_v36 }
 0x8f4   : > { %v5424_v0 = vsel %vm17317_vm8, %v5423_v38, %v5422_v3 }
 0x8f5   : > { %7195 = vperm.xlu1 %9575, %v13897_v37   ;;  %5971 = vperm.xlu2 %9577, %v8461_v23   ;;  %v5920_v37 = vunpack.c.l.b16 %v4374_v33  ;;  %v17339_v23 = vld [vmem:[#allocation96_spill] sm:$0xff]  ;;  %v5426_v29 = vsel %vm17320_vm10, %v5425_v47, %v5424_v0 }
 0x8f6   : > { %5968 = vperm.xlu0 %9576, %v8460_v60   ;;  %v14931_v36 = vmul.f32 %v17339_v23, %v14628_v6  ;;  %v8464_v60 = vunpack.i.l.s16 %v5921_v1  ;;  %v8982_v23 = vld [vmem:[#allocation5 + $0x168] sm:$0xff] }
 0x8f7   : > { %v14920_v25 = vpop.permute.xlu1 %5602  ;;  %v14922_v9 = vpop.permute.xlu2 %5572  ;;  %v8463_v38 = vunpack.i.l.s16 %v5920_v37  ;;  %5687 = vmatpush.bf16.msrb.mxu2 %v8982_v23  ;;  %v17340_v37 = vld [vmem:[#allocation100_spill] sm:$0xff] }
 0x8f8   : > { %v5393_v48 = vpop.permute.xlu0 %5392  ;;  %v4377_v33 = vpack.c.bf16 %v14931_v36, %v14931_v36  ;;  %v14952_v47 = vmul.f32 %v17340_v37, %v14628_v6 }
 0x8f9   : > { %v5427_v7 = vperm.slane %v5393_v48, %v12167_v42  ;;  %v5924_v48 = vunpack.c.l.b16 %v4378_v55 }
 0x8fa   : > { %v4381_v49 = vpack.c.bf16 %v14952_v47, %v14952_v47 }
 0x8fb   : > { %v5428_v3 = vsel %vm17323_vm4, %v5427_v7, %v5426_v29  ;;  %v17341_v29 = vld [vmem:[#allocation210_spill] sm:$0xff]  ;;  %5688 = vmatpush.bf16.msrb.mxu2 %v8981_v61  ;;  %v8467_v23 = vunpack.i.l.s16 %v5924_v48  ;;  %v8979_v61 = vld [vmem:[#allocation5 + $0x150] sm:$0xff] }
 0x8fc   : > { %v5430_v58 = vsel %vm2689_vm11, %v5429_v52, %v5428_v3  ;;  %v5435_v3 = vperm.slane %v14870_v22, %v17008_v18 }
 0x8fd   : > { %7204 = vperm.xlu1 %9575, %v13839_v34   ;;  %5980 = vperm.xlu2 %9577, %v8464_v60   ;;  %v5923_v34 = vunpack.c.l.b16 %v4377_v33  ;;  %v14958_v60 = vmul.f32 %v17341_v29, %v14628_v6  ;;  %v5432_v55 = vsel %vm2693_vm12, %v5431_v45, %v5430_v58  ;;  %v8980_v29 = vld [vmem:[#allocation5 + $0x158] sm:$0xff]  ;;  %v5927_v45 = vunpack.c.l.b16 %v4381_v49  ;;  %v8977_v49 = vld [vmem:[#allocation5 + $0x140] sm:$0xff] }
 0x8fe   : > { %5977 = vperm.xlu0 %9576, %v8463_v38  }
 0x8ff   : > { %v14946_v1 = vpop.permute.xlu1 %5761  ;;  %v14948_v0 = vpop.permute.xlu2 %5581  ;;  %17342 = vst [vmem:[#allocation188_spill] sm:$0xff] %v14958_v60  ;;  %v8466_v37 = vunpack.i.l.s16 %v5923_v34  ;;  %v4380_v6 = vpack.c.bf16 %v14958_v60, %v14958_v60  ;;  %5689 = vmatpush.bf16.msrb.mxu2 %v8980_v29  ;;  %v17411_v60 = vld [vmem:[#allocation162_spill] sm:$0xff] }
 0x900   : > { %v5402_v7 = vpop.permute.xlu0 %5401 }
 0x901   : > { %v5433_v52 = vperm.slane %v5402_v7, %v17000_v54  ;;  %v5926_v34 = vunpack.c.l.b16 %v4380_v6 }
 0x903   : > { %v5434_v38 = vsel %vm2697_vm13, %v5433_v52, %v5432_v55  ;;  %5690 = vmatpush.bf16.msrb.mxu2 %v8979_v61  ;;  %v5607_v61 = vperm.slane %v14897_v32, %v12073_v11 }
 0x904   : > { %v5436_v33 = vsel %vm2701_vm14, %v5435_v3, %v5434_v38  ;;  %v8470_v38 = vunpack.i.l.s16 %v5927_v45 }
 0x905   : > { %7213 = vperm.xlu1 %9575, %v13958_v19   ;;  %5989 = vperm.xlu2 %9577, %v8467_v23   ;;  %v5437_v22 = vpack.c.b16 %v5436_v33, %v5436_v33  ;;  %v8978_v19 = vld [vmem:[#allocation5 + $0x148] sm:$0xff]  ;;  %v8469_v23 = vunpack.i.l.s16 %v5926_v34  ;;  %v5609_v34 = vperm.slane %v14822_v20, %v12082_v12 }
 0x906   : > { %5986 = vperm.xlu0 %9576, %v8466_v37   ;;  %v5604_v37 = vperm.slane %v14789_v59, %v12061_v63  ;;  %v7031_v59 = vsub.f32 1.0, %v14833_v27  ;;  %v5613_v27 = vperm.slane %v14922_v9, %v12100_v39  ;;  %v5619_v9 = vperm.slane %v14948_v0, %v12141_v17 }
 0x907   : > { %5495 = vmatmul.bf16.vlgmr.msrb.gmra.mxu1 %v5437_v22  ;;  %v14971_v58 = vpop.permute.xlu1 %5770  ;;  %v14973_v48 = vpop.permute.xlu2 %5590  ;;  %5691 = vmatpush.bf16.msrb.mxu2 %v8978_v19 }
 0x908   : > { %v5561_v7 = vpop.permute.xlu0 %5560 }
 0x909   : > { %v5605_v3 = vperm.slane %v5561_v7, %v12068_v10 }
 0x90a   : > { %v4902_v52 = vpop.f32.mrf.mxu2 }
 0x90b   : > { %v6202_v55 = vrot.slane %v4902_v52, 7  ;;  %v5606_v6 = vsel %vm2645_vm0, %v5605_v3, %v5604_v37  ;;  %5692 = vmatpush.bf16.msrb.mxu2 %v8977_v49  ;;  %v8992_v37 = vld [vmem:[#allocation5 + $0x1b8] sm:$0xff] }
 0x90c   : > { %5883 = vmatpush.bf16.msrb.mxu3 %v8992_v37 }
 0x90d   : > { %v14980_v33 = vsel %vm17343_vm9, %v6202_v55, %v14836_v35  ;;  %7222 = vperm.xlu1 %9575, %v13972_v26   ;;  %5998 = vperm.xlu2 %9577, %v8470_v38   ;;  %v5608_v35 = vsel %vm2649_vm1, %v5607_v61, %v5606_v6  ;;  %vm17351_vm9 = vcmask 1042434  }
 0x90e   : > { %5995 = vperm.xlu0 %9576, %v8469_v23   ;;  %v5610_v52 = vsel %vm2653_vm2, %v5609_v34, %v5608_v35  ;;  %v17344_v35 = vld [vmem:[#allocation209_spill] sm:$0xff] }
 0x90f   : > { %v14984_v29 = vpop.permute.xlu1 %5779  ;;  %v5600_v22 = vpop.permute.xlu2 %5599 }
 0x910   : > { %v5570_v45 = vpop.permute.xlu0 %5569 }
 0x911   : > { %v5611_v7 = vperm.slane %v5570_v45, %v12095_v41  ;;  %v5621_v45 = vperm.slane %v14868_v8, %v12144_v24 }
 0x912   : > { %v4904_v26 = vpop.f32.mrf.mxu2 }
 0x913   : > { %v5612_v32 = vsel %vm2657_vm3, %v5611_v7, %v5610_v52  ;;  %v17345_v7 = vld [vmem:[#allocation116_spill] sm:$0xff]  ;;  %v8990_v26 = vld [vmem:[#allocation5 + $0x1a8] sm:$0xff] }
 0x914   : > { %v5614_v19 = vsel %vm17311_vm15, %v5613_v27, %v5612_v32  ;;  %v5627_v32 = vperm.slane %v14895_v4, %v12183_v50  ;;  %v17347_v4 = vld [vmem:[#allocation108_spill] sm:$0xff] }
 0x915   : > { %7231 = vperm.xlu1 %9575, %v13990_v57   ;;  %7174 = vperm.xlu2 %9577, %v13847_v51   ;;  %v5615_v57 = vperm.slane %v14844_v28, %v12106_v13 }
 0x916   : > { %7034 = vperm.xlu0 %9576, %v7031_v59   ;;  %v8991_v59 = vld [vmem:[#allocation5 + $0x1b0] sm:$0xff] }
 0x917   : > { %v14999_v3 = vpop.permute.xlu1 %5788  ;;  %v15001_v55 = vpop.permute.xlu2 %5758  ;;  %v5616_v51 = vsel %vm2665_vm5, %v5615_v57, %v5614_v19  ;;  %5884 = vmatpush.bf16.msrb.mxu3 %v8991_v59  ;;  %v5633_v19 = vperm.slane %v14920_v25, %v17008_v18 }
 0x918   : > { %v5579_v38 = vpop.permute.xlu0 %5578 }
 0x919   : > { %v5617_v20 = vperm.slane %v5579_v38, %v12116_v15 }
 0x91b   : > { %v5618_v23 = vsel %vm2669_vm6, %v5617_v20, %v5616_v51  ;;  %5885 = vmatpush.bf16.msrb.mxu3 %v8990_v26  ;;  %v9008_v51 = vld [vmem:[#allocation14 + $0x38] sm:$0xff] }
 0x91c   : > { %v5620_v28 = vsel %vm2673_vm7, %v5619_v9, %v5618_v23  ;;  %v8989_v23 = vld [vmem:[#allocation5 + $0x1a0] sm:$0xff]  ;;  %v17346_v9 = vld [vmem:[#allocation39_spill] sm:$0xff]  ;;  %6162 = vmatpush.bf16.msra.mxu1 %v9008_v51  ;;  %v17350_v26 = vld [vmem:[#allocation58_spill] sm:$0xff] }
 0x91d   : > { %7240 = vperm.xlu1 %9575, %v14008_v14   ;;  %7183 = vperm.xlu2 %9577, %v13861_v62   ;;  %v5622_v62 = vsel %vm17317_vm8, %v5621_v45, %v5620_v28  ;;  %v17348_v28 = vld [vmem:[#allocation122_spill] sm:$0xff] }
 0x91e   : > { %7180 = vperm.xlu0 %9576, %v13865_v44   ;;  %v5625_v44 = vperm.slane %v14973_v48, %v12167_v42  ;;  %v9004_v51 = vld [vmem:[#allocation14 + $0x18] sm:$0xff] }
 0x91f   : > { %v15014_v49 = vpop.permute.xlu1 %5797  ;;  %v15016_v6 = vpop.permute.xlu2 %5767  ;;  %5886 = vmatpush.bf16.msrb.mxu3 %v8989_v23 }
 0x920   : > { %v5588_v61 = vpop.permute.xlu0 %5587 }
 0x921   : > { %v5623_v14 = vperm.slane %v5588_v61, %v12138_v2  ;;  %v9007_v61 = vld [vmem:[#allocation14 + $0x30] sm:$0xff] }
 0x922   : > { %6163 = vmatpush.bf16.msra.mxu1 %v9007_v61  ;;  %v17355_v61 = vld [vmem:[#allocation150_spill] sm:$0xff] }
 0x923   : > { %v5624_v0 = vsel %vm17320_vm10, %v5623_v14, %v5622_v62  ;;  %v8988_v14 = vld [vmem:[#allocation5 + $0x198] sm:$0xff] }
 0x924   : > { %v5626_v8 = vsel %vm17323_vm4, %v5625_v44, %v5624_v0  ;;  %5887 = vmatpush.bf16.msrb.mxu3 %v8988_v14  ;;  %v9006_v44 = vld [vmem:[#allocation14 + $0x28] sm:$0xff]  ;;  %v9003_v14 = vld [vmem:[#allocation14 + $0x10] sm:$0xff] }
 0x925   : > { %7249 = vperm.xlu1 %9575, %v14026_v5   ;;  %7192 = vperm.xlu2 %9577, %v17344_v35   ;;  %v5631_v5 = vperm.slane %v5600_v22, %v17000_v54  ;;  %v5628_v38 = vsel %vm2689_vm11, %v5627_v32, %v5626_v8  ;;  %v8987_v35 = vld [vmem:[#allocation5 + $0x190] sm:$0xff]  ;;  %v17352_v32 = vld [vmem:[#allocation121_spill] sm:$0xff] }
 0x926   : > { %7189 = vperm.xlu0 %9576, %v17345_v7   ;;  %v17349_v7 = vld [vmem:[#allocation43_spill] sm:$0xff]  ;;  %6164 = vmatpush.bf16.msra.mxu1 %v9006_v44 }
 0x927   : > { %v15030_v34 = vpop.permute.xlu1 %5956  ;;  %v15032_v52 = vpop.permute.xlu2 %5776 }
 0x928   : > { %v5597_v27 = vpop.permute.xlu0 %5596  ;;  %5888 = vmatpush.bf16.msrb.mxu3 %v8987_v35 }
 0x929   : > { %v5629_v48 = vperm.slane %v5597_v27, %v16995_v46  ;;  %v9005_v27 = vld [vmem:[#allocation14 + $0x20] sm:$0xff] }
 0x92a   : > { %6165 = vmatpush.bf16.msra.mxu1 %v9005_v27 }
 0x92b   : > { %v5630_v20 = vsel %vm2693_vm12, %v5629_v48, %v5628_v38 }
 0x92c   : > { %v5632_v57 = vsel %vm2697_vm13, %v5631_v5, %v5630_v20 }
 0x92d   : > { %7258 = vperm.xlu1 %9575, %v17346_v9   ;;  %7201 = vperm.xlu2 %9577, %v17347_v4   ;;  %v5634_v37 = vsel %vm2701_vm14, %v5633_v19, %v5632_v57  ;;  %v8986_v19 = vld [vmem:[#allocation5 + $0x188] sm:$0xff]  ;;  %v5803_v57 = vperm.slane %v15001_v55, %v12068_v10  ;;  %v5805_v4 = vperm.slane %v14946_v1, %v12073_v11  ;;  %v8985_v55 = vld [vmem:[#allocation5 + $0x180] sm:$0xff] }
 0x92e   : > { %7198 = vperm.xlu0 %9576, %v17348_v28   ;;  %v5635_v22 = vpack.c.b16 %v5634_v37, %v5634_v37  ;;  %5889 = vmatpush.bf16.msrb.mxu3 %v8986_v19  ;;  %v17353_v37 = vld [vmem:[#allocation154_spill] sm:$0xff]  ;;  %v17354_v28 = vld [vmem:[#allocation29_spill] sm:$0xff]  ;;  %v5809_v1 = vperm.slane %v15016_v6, %v12095_v41  ;;  %v17357_v19 = vld [vmem:[#allocation123_spill] sm:$0xff] }
 0x92f   : > { %v15047_v45 = vpop.permute.xlu1 %5965  ;;  %v15049_v25 = vpop.permute.xlu2 %5785  ;;  %6166 = vmatpush.bf16.msra.mxu1 %v9004_v51  ;;  %v17358_v6 = vld [vmem:[#allocation208_spill] sm:$0xff] }
 0x930   : > { %5693 = vmatmul.bf16.vlgmr.msrb.gmra.mxu2 %v5635_v22  ;;  %v5756_v62 = vpop.permute.xlu0 %5755  ;;  %v9000_v51 = vld [vmem:[#allocation5 + $0x1f8] sm:$0xff] }
 0x931   : > { %v5802_v48 = vperm.slane %v5756_v62, %v12061_v63  ;;  %6081 = vmatpush.bf16.msra.mxu0 %v9000_v51  ;;  %v17365_v51 = vld [vmem:[#allocation141_spill] sm:$0xff] }
 0x932   : > { %5890 = vmatpush.bf16.msrb.mxu3 %v8985_v55 }
 0x933   : > { %v5100_v0 = vpop.f32.mrf.mxu3  ;;  %6167 = vmatpush.bf16.msra.mxu1 %v9003_v14  ;;  %v17360_v14 = vld [vmem:[#allocation44_spill] sm:$0xff] }
 0x934   : > { %v6204_v59 = vrot.slane %v5100_v0, 6 }
 0x935   : > { %7267 = vperm.xlu1 %9575, %v17349_v7   ;;  %7210 = vperm.xlu2 %9577, %v17350_v26   ;;  %v5811_v26 = vperm.slane %v14971_v58, %v12100_v39 }
 0x936   : > { %v15055_v8 = vsel %vm17351_vm9, %v6204_v59, %v14980_v33  ;;  %7207 = vperm.xlu0 %9576, %v17352_v32   ;;  %v5804_v33 = vsel %vm2645_vm0, %v5803_v57, %v5802_v48  ;;  %v9002_v32 = vld [vmem:[#allocation14 + $0x8] sm:$0xff]  ;;  %v17356_v48 = vld [vmem:[#allocation82_spill] sm:$0xff]  ;;  %v9001_v57 = vld [vmem:[#allocation14] sm:$0xff]  ;;  %vm17369_vm9 = vcmask 1043459  }
 0x937   : > { %v15059_v5 = vpop.permute.xlu1 %5974  ;;  %v15061_v38 = vpop.permute.xlu2 %5794  ;;  %v5806_v22 = vsel %vm2649_vm1, %v5805_v4, %v5804_v33  ;;  %6168 = vmatpush.bf16.msra.mxu1 %v9002_v32  ;;  %v5815_v33 = vperm.slane %v15032_v52, %v12116_v15  ;;  %v17359_v52 = vld [vmem:[#allocation45_spill] sm:$0xff] }
 0x938   : > { %v5765_v20 = vpop.permute.xlu0 %5764 }
 0x939   : > { %v5807_v23 = vperm.slane %v5765_v20, %v12082_v12 }
 0x93b   : > { %v5102_v9 = vpop.f32.mrf.mxu3  ;;  %v5808_v62 = vsel %vm2653_vm2, %v5807_v23, %v5806_v22  ;;  %6169 = vmatpush.bf16.msra.mxu1 %v9001_v57  ;;  %v17364_v57 = vld [vmem:[#allocation81_spill] sm:$0xff] }
 0x93c   : > { %v5810_v35 = vsel %vm2657_vm3, %v5809_v1, %v5808_v62  ;;  %v5821_v62 = vperm.slane %v15049_v25, %v12138_v2  ;;  %v17361_v1 = vld [vmem:[#allocation109_spill] sm:$0xff] }
 0x93d   : > { %7276 = vperm.xlu1 %9575, %v17353_v37   ;;  %7219 = vperm.xlu2 %9577, %v17354_v28   ;;  %v5812_v27 = vsel %vm17311_vm15, %v5811_v26, %v5810_v35  ;;  %v5817_v28 = vperm.slane %v14984_v29, %v12141_v17 }
 0x93e   : > { %7216 = vperm.xlu0 %9576, %v17355_v61   ;;  %v8999_v61 = vld [vmem:[#allocation5 + $0x1f0] sm:$0xff] }
 0x93f   : > { %v15074_v0 = vpop.permute.xlu1 %5983  ;;  %v15076_v59 = vpop.permute.xlu2 %5953  ;;  %6082 = vmatpush.bf16.msra.mxu0 %v8999_v61 }
 0x940   : > { %v5774_v44 = vpop.permute.xlu0 %5773 }
 0x941   : > { %v5813_v7 = vperm.slane %v5774_v44, %v12106_v13  ;;  %v17362_v44 = vld [vmem:[#allocation27_spill] sm:$0xff] }
 0x942   : > { %6170 = vmatmul.bf16.vlgmr.msra.gmra.mxu1 %v17362_v44 }
 0x943   : > { %v5814_v20 = vsel %vm2665_vm5, %v5813_v7, %v5812_v27  ;;  %v8998_v7 = vld [vmem:[#allocation5 + $0x1e8] sm:$0xff]  ;;  %v5823_v27 = vperm.slane %v14999_v3, %v12167_v42 }
 0x944   : > { %v5816_v4 = vsel %vm2669_vm6, %v5815_v33, %v5814_v20  ;;  %6083 = vmatpush.bf16.msra.mxu0 %v8998_v7  ;;  %v8997_v20 = vld [vmem:[#allocation5 + $0x1e0] sm:$0xff]  ;;  %v17366_v33 = vld [vmem:[#allocation38_spill] sm:$0xff]  ;;  %v17367_v7 = vld [vmem:[#allocation156_spill] sm:$0xff] }
 0x945   : > { %7285 = vperm.xlu1 %9575, %v17356_v48   ;;  %7228 = vperm.xlu2 %9577, %v17357_v19   ;;  %v5818_v22 = vsel %vm2673_vm7, %v5817_v28, %v5816_v4  ;;  %v5829_v28 = vperm.slane %v15014_v49, %v17000_v54  ;;  %v17370_v49 = vld [vmem:[#allocation132_spill] sm:$0xff] }
 0x946   : > { %7225 = vperm.xlu0 %9576, %v17358_v6   ;;  %v5827_v6 = vperm.slane %v15061_v38, %v16995_v46 }
 0x947   : > { %v15091_v23 = vpop.permute.xlu1 %5992  ;;  %v15093_v58 = vpop.permute.xlu2 %5962 }
 0x948   : > { %v5783_v9 = vpop.permute.xlu0 %5782  ;;  %6084 = vmatpush.bf16.msra.mxu0 %v8997_v20  ;;  %v6000_v20 = vperm.slane %v15076_v59, %v12061_v63 }
 0x949   : > { %v5819_v37 = vperm.slane %v5783_v9, %v12144_v24 }
 0x94b   : > { %v5820_v55 = vsel %vm17317_vm8, %v5819_v37, %v5818_v22  ;;  %v8996_v37 = vld [vmem:[#allocation5 + $0x1d8] sm:$0xff] }
 0x94c   : > { %v5822_v26 = vsel %vm17320_vm10, %v5821_v62, %v5820_v55  ;;  %6085 = vmatpush.bf16.msra.mxu0 %v8996_v37  ;;  %v17373_v37 = vld [vmem:[#allocation37_spill] sm:$0xff] }
 0x94d   : > { %7294 = vperm.xlu1 %9575, %v17359_v52   ;;  %7237 = vperm.xlu2 %9577, %v17360_v14   ;;  %v5824_v25 = vsel %vm17323_vm4, %v5823_v27, %v5822_v26  ;;  %v17368_v26 = vld [vmem:[#allocation64_spill] sm:$0xff] }
 0x94e   : > { %7234 = vperm.xlu0 %9576, %v17361_v1   ;;  %v8995_v1 = vld [vmem:[#allocation5 + $0x1d0] sm:$0xff] }
 0x94f   : > { %v15107_v35 = vpop.permute.xlu1 %7027  ;;  %v15109_v29 = vpop.permute.xlu2 %5971 }
 0x950   : > { %17363 = vst [vmem:[#allocation197_spill] sm:$0xff] %v15107_v35  ;;  %v5792_v32 = vpop.permute.xlu0 %5791  ;;  %6086 = vmatpush.bf16.msra.mxu0 %v8995_v1  ;;  %v17374_v1 = vld [vmem:[#allocation219_spill] sm:$0xff]  ;;  %v8572_v35 = vld [vmem:[#allocation16 + $0x50] sm:$0xf0] }
 0x951   : > { %v5825_v48 = vperm.slane %v5792_v32, %v12183_v50 }
 0x953   : > { %v5826_v19 = vsel %vm2689_vm11, %v5825_v48, %v5824_v25  ;;  %v8994_v25 = vld [vmem:[#allocation5 + $0x1c8] sm:$0xff] }
 0x954   : > { %v5828_v9 = vsel %vm2693_vm12, %v5827_v6, %v5826_v19  ;;  %6087 = vmatpush.bf16.msra.mxu0 %v8994_v25 }
 0x955   : > { %7303 = vperm.xlu1 %9575, %v17364_v57   ;;  %7246 = vperm.xlu2 %9577, %v17365_v51   ;;  %v5830_v38 = vsel %vm2697_vm13, %v5829_v28, %v5828_v9  ;;  %v17371_v51 = vld [vmem:[#allocation160_spill] sm:$0xff] }
 0x956   : > { %7243 = vperm.xlu0 %9576, %v17366_v33   ;;  %v17372_v33 = vld [vmem:[#allocation147_spill] sm:$0xff] }
 0x957   : > { %v7178_v3 = vpop.permute.xlu1 %7177  ;;  %v15123_v4 = vpop.permute.xlu2 %5980 }
 0x958   : > { %v5801_v22 = vpop.permute.xlu0 %5800 }
 0x959   : > { %v5831_v61 = vperm.slane %v5801_v22, %v17008_v18 }
 0x95b   : > { %v5298_v55 = vpop.f32.mrf.mxu0  ;;  %v5832_v52 = vsel %vm2701_vm14, %v5831_v61, %v5830_v38  ;;  %v8993_v61 = vld [vmem:[#allocation5 + $0x1c0] sm:$0xff]  ;;  %v6005_v38 = vperm.slane %v15093_v58, %v12082_v12  ;;  %v6011_v58 = vperm.slane %v15109_v29, %v12106_v13 }
 0x95c   : > { %v6206_v14 = vrot.slane %v5298_v55, 5  ;;  %v5833_v62 = vpack.c.b16 %v5832_v52, %v5832_v52  ;;  %6088 = vmatpush.bf16.msra.mxu0 %v8993_v61  ;;  %v17379_v61 = vld [vmem:[#allocation137_spill] sm:$0xff] }
 0x95d   : > { %7312 = vperm.xlu1 %9575, %v17367_v7   ;;  %7255 = vperm.xlu2 %9577, %v17368_v26   ;;  %v17375_v7 = vld [vmem:[#allocation161_spill] sm:$0xff] }
 0x95e   : > { %v15134_v32 = vsel %vm17369_vm9, %v6206_v14, %v15055_v8  ;;  %7252 = vperm.xlu0 %9576, %v17370_v49   ;;  %5891 = vmatmul.bf16.vlgmr.msrb.gmra.mxu3 %v5833_v62  ;;  %v6001_v8 = vperm.slane %v15030_v34, %v12068_v10  ;;  %v6007_v14 = vperm.slane %v15047_v45, %v12095_v41  ;;  %v17376_v49 = vld [vmem:[#allocation56_spill] sm:$0xff]  ;;  %vm17386_vm9 = vcmask 1044484  }
 0x95f   : > { %v15137_v27 = vpop.permute.xlu1 %7186  ;;  %v5990_v48 = vpop.permute.xlu2 %5989 }
 0x960   : > { %v5960_v19 = vpop.permute.xlu0 %5959  ;;  %v6002_v9 = vsel %vm2645_vm0, %v6001_v8, %v6000_v20  ;;  %v7558_v20 = vperm.slane %v7178_v3, %v12068_v10  ;;  %v6017_v3 = vperm.slane %v15123_v4, %v12144_v24  ;;  %v17380_v4 = vld [vmem:[#allocation190_spill] sm:$0xff] }
 0x961   : > { %v6003_v6 = vperm.slane %v5960_v19, %v12073_v11 }
 0x963   : > { %v5300_v57 = vpop.f32.mrf.mxu0  ;;  %v6004_v28 = vsel %vm2649_vm1, %v6003_v6, %v6002_v9 }
 0x964   : > { %v6006_v34 = vsel %vm2653_vm2, %v6005_v38, %v6004_v28  ;;  %v17378_v28 = vld [vmem:[#allocation95_spill] sm:$0xff] }
 0x965   : > { %7321 = vperm.xlu1 %9575, %v17371_v51   ;;  %7264 = vperm.xlu2 %9577, %v17372_v33   ;;  %v6008_v62 = vsel %vm2657_vm3, %v6007_v14, %v6006_v34  ;;  %v6013_v51 = vperm.slane %v15059_v5, %v12116_v15 }
 0x966   : > { %7261 = vperm.xlu0 %9576, %v17373_v37   ;;  %v17377_v37 = vld [vmem:[#allocation196_spill] sm:$0xff] }
 0x967   : > { %v15149_v22 = vpop.permute.xlu1 %7195  ;;  %v5999_v59 = vpop.permute.xlu2 %5998 }
 0x968   : > { %v5969_v55 = vpop.permute.xlu0 %5968 }
 0x969   : > { %v6009_v52 = vperm.slane %v5969_v55, %v12100_v39 }
 0x96b   : > { %v6010_v26 = vsel %vm17311_vm15, %v6009_v52, %v6008_v62  ;;  %v6019_v52 = vperm.slane %v15074_v0, %v12138_v2  ;;  %v6025_v0 = vperm.slane %v15091_v23, %v16995_v46 }
 0x96c   : > { %v6012_v57 = vsel %vm2665_vm5, %v6011_v58, %v6010_v26  ;;  %v17381_v26 = vld [vmem:[#allocation89_spill] sm:$0xff] }
 0x96d   : > { %7330 = vperm.xlu1 %9575, %v17374_v1   ;;  %7273 = vperm.xlu2 %9577, %v17375_v7   ;;  %v6014_v9 = vsel %vm2669_vm6, %v6013_v51, %v6012_v57  ;;  %v6023_v7 = vperm.slane %v5990_v48, %v12183_v50  ;;  %v6029_v57 = vperm.slane %v5999_v59, %v17008_v18 }
 0x96e   : > { %7270 = vperm.xlu0 %9576, %v17376_v49   ;;  %v17382_v49 = vld [vmem:[#allocation41_spill] sm:$0xff] }
 0x96f   : > { %v15164_v25 = vpop.permute.xlu1 %7204  ;;  %v7175_v19 = vpop.permute.xlu2 %7174 }
 0x970   : > { %v7557_v45 = vperm.slane %v7175_v19, %v12061_v63  ;;  %v5978_v6 = vpop.permute.xlu0 %5977 }
 0x971   : > { %v6015_v8 = vperm.slane %v5978_v6, %v12141_v17 }
 0x972   : > { %v7559_v33 = vsel %vm2645_vm0, %v7558_v20, %v7557_v45 }
 0x973   : > { %v6016_v29 = vsel %vm2673_vm7, %v6015_v8, %v6014_v9 }
 0x974   : > { %v6018_v5 = vsel %vm17317_vm8, %v6017_v3, %v6016_v29 }
 0x975   : > { %7339 = vperm.xlu1 %9575, %v17377_v37   ;;  %7282 = vperm.xlu2 %9577, %v17378_v28   ;;  %v6020_v62 = vsel %vm17320_vm10, %v6019_v52, %v6018_v5  ;;  %v17383_v37 = vld [vmem:[#allocation99_spill] sm:$0xff]  ;;  %v17384_v28 = vld [vmem:[#allocation213_spill] sm:$0xff] }
 0x976   : > { %7279 = vperm.xlu0 %9576, %v17379_v61   ;;  %v17385_v61 = vld [vmem:[#allocation130_spill] sm:$0xff] }
 0x977   : > { %v15180_v38 = vpop.permute.xlu1 %7213  ;;  %v7184_v55 = vpop.permute.xlu2 %7183 }
 0x978   : > { %v5987_v34 = vpop.permute.xlu0 %5986 }
 0x979   : > { %v6021_v14 = vperm.slane %v5987_v34, %v12167_v42 }
 0x97b   : > { %v6022_v1 = vsel %vm17323_vm4, %v6021_v14, %v6020_v62  ;;  %v17388_v14 = vld [vmem:[#allocation83_spill] sm:$0xff] }
 0x97c   : > { %v6024_v58 = vsel %vm2689_vm11, %v6023_v7, %v6022_v1  ;;  %v17389_v62 = vld [vmem:[#allocation59_spill] sm:$0xff] }
 0x97d   : > { %7348 = vperm.xlu1 %9575, %v17380_v4   ;;  %7291 = vperm.xlu2 %9577, %v17381_v26   ;;  %v6026_v48 = vsel %vm2693_vm12, %v6025_v0, %v6024_v58  ;;  %v7562_v26 = vperm.slane %v7184_v55, %v12082_v12  ;;  %v17390_v0 = vld [vmem:[#allocation97_spill] sm:$0xff] }
 0x97e   : > { %7288 = vperm.xlu0 %9576, %v17382_v49   ;;  %v7564_v49 = vperm.slane %v15137_v27, %v12095_v41  ;;  %v8890_v27 = vld [vmem:[#allocation16 + $0x2c0] sm:$0xf] }
 0x97f   : > { %v15193_v19 = vpop.permute.xlu1 %7222  ;;  %v7193_v20 = vpop.permute.xlu2 %7192 }
 0x980   : > { %v5996_v45 = vpop.permute.xlu0 %5995 }
 0x981   : > { %v6027_v6 = vperm.slane %v5996_v45, %v17000_v54  ;;  %v17391_v45 = vld [vmem:[#allocation51_spill] sm:$0xff] }
 0x983   : > { %v6028_v8 = vsel %vm2697_vm13, %v6027_v6, %v6026_v48  ;;  %v8906_v48 = vld [vmem:[#allocation16 + $0x2e0] sm:$0xf] }
 0x984   : > { %v6030_v51 = vsel %vm2701_vm14, %v6029_v57, %v6028_v8  ;;  %v5496_v9 = vpop.f32.mrf.mxu1  ;;  %v17392_v57 = vld [vmem:[#allocation52_spill] sm:$0xff]  ;;  %v9103_v8 = vld [vmem:[#allocation16 + $0x2ec] sm:$0xf0] }
 0x985   : > { %v6208_v29 = vrot.slane %v5496_v9, 4  ;;  %7357 = vperm.xlu1 %9575, %v17383_v37   ;;  %7300 = vperm.xlu2 %9577, %v17384_v28   ;;  %v6031_v3 = vpack.c.b16 %v6030_v51, %v6030_v51  ;;  %v8907_v9 = vor.u32 %v9103_v8, %v8906_v48  ;;  %v7568_v28 = vperm.slane %v7193_v20, %v12106_v13 }
 0x986   : > { %7297 = vperm.xlu0 %9576, %v17385_v61   ;;  %v7570_v61 = vperm.slane %v15149_v22, %v12116_v15  ;;  %v8858_v22 = vld [vmem:[#allocation16 + $0x280] sm:$0xf] }
 0x987   : > { %v15207_v23 = vsel %vm17386_vm9, %v6208_v29, %v15134_v32  ;;  %6089 = vmatmul.bf16.vlgmr.msra.gmra.mxu0 %v6031_v3  ;;  %v15209_v59 = vpop.permute.xlu1 %7231  ;;  %v7202_v5 = vpop.permute.xlu2 %7201  ;;  %v9099_v29 = vld [vmem:[#allocation16 + $0x2cc] sm:$0xf0]  ;;  %vm17403_vm9 = vcmask 1045509  }
 0x988   : > { %v15211_v34 = vpop.permute.xlu0 %7034  ;;  %6832 = vmatpush.bf16.msrb.mxu0 %v8907_v9  ;;  %v8891_v3 = vor.u32 %v9099_v29, %v8890_v27  ;;  %v7574_v48 = vperm.slane %v7202_v5, %v12144_v24  ;;  %v7576_v9 = vperm.slane %v15164_v25, %v12138_v2  ;;  %v9087_v5 = vld [vmem:[#allocation16 + $0x26c] sm:$0xf0]  ;;  %v8634_v25 = vld [vmem:[#allocation16 + $0xc0] sm:$0xf] }
 0x989   : > { %17387 = vst [vmem:[#allocation101_spill] sm:$0xff] %v15211_v34  ;;  %v8764_v34 = vld [vmem:[#allocation16 + $0x1d0] sm:$0xf0] }
 0x98c   : > { %v5498_v52 = vpop.f32.mrf.mxu1  ;;  %6833 = vmatpush.bf16.msrb.mxu0 %v8891_v3  ;;  %v17396_v3 = vld [vmem:[#allocation172_spill] sm:$0xff] }
 0x98d   : > { %7366 = vperm.xlu1 %9575, %v14347_v56   ;;  %7309 = vperm.xlu2 %9577, %v17388_v14  }
 0x98e   : > { %7306 = vperm.xlu0 %9576, %v17389_v62   ;;  %v8874_v62 = vld [vmem:[#allocation16 + $0x2a0] sm:$0xf] }
 0x98f   : > { %v15216_v1 = vpop.permute.xlu1 %7240  ;;  %v15218_v7 = vpop.permute.xlu2 %7210 }
 0x990   : > { %v7181_v4 = vpop.permute.xlu0 %7180 }
 0x991   : > { %v7560_v32 = vperm.slane %v7181_v4, %v12073_v11  ;;  %v9095_v4 = vld [vmem:[#allocation16 + $0x2ac] sm:$0xf0] }
 0x992   : > { %v8875_v20 = vor.u32 %v9095_v4, %v8874_v62  ;;  %v17398_v62 = vld [vmem:[#allocation98_spill] sm:$0xff] }
 0x993   : > { %v7561_v58 = vsel %vm2649_vm1, %v7560_v32, %v7559_v33  ;;  %v17393_v32 = vld [vmem:[#allocation76_spill] sm:$0xff] }
 0x994   : > { %v7563_v56 = vsel %vm2653_vm2, %v7562_v26, %v7561_v58  ;;  %v17394_v26 = vld [vmem:[#allocation87_spill] sm:$0xff]  ;;  %6834 = vmatpush.bf16.msrb.mxu0 %v8875_v20 }
 0x995   : > { %7375 = vperm.xlu1 %9575, %v17390_v0   ;;  %7318 = vperm.xlu2 %9577, %v17391_v45   ;;  %v7565_v6 = vsel %vm2657_vm3, %v7564_v49, %v7563_v56  ;;  %v17395_v58 = vld [vmem:[#allocation31_spill] sm:$0xff]  ;;  %v9091_v45 = vld [vmem:[#allocation16 + $0x28c] sm:$0xf0] }
 0x996   : > { %7315 = vperm.xlu0 %9576, %v17392_v57   ;;  %v8859_v8 = vor.u32 %v9091_v45, %v8858_v22  ;;  %v8826_v20 = vld [vmem:[#allocation16 + $0x240] sm:$0xf]  ;;  %v9083_v22 = vld [vmem:[#allocation16 + $0x24c] sm:$0xf0] }
 0x997   : > { %v15230_v51 = vpop.permute.xlu1 %7249  ;;  %v15232_v55 = vpop.permute.xlu2 %7219 }
 0x998   : > { %v7190_v33 = vpop.permute.xlu0 %7189  ;;  %6835 = vmatpush.bf16.msrb.mxu0 %v8859_v8  ;;  %v7582_v8 = vperm.slane %v15180_v38, %v16995_v46 }
 0x999   : > { %v7566_v37 = vperm.slane %v7190_v33, %v12100_v39  ;;  %v8650_v33 = vld [vmem:[#allocation16 + $0xe0] sm:$0xf] }
 0x99b   : > { %v7567_v52 = vsel %vm17311_vm15, %v7566_v37, %v7565_v6  ;;  %v9039_v37 = vld [vmem:[#allocation16 + $0xec] sm:$0xf0] }
 0x99c   : > { %v7569_v14 = vsel %vm2665_vm5, %v7568_v28, %v7567_v52  ;;  %v8842_v28 = vld [vmem:[#allocation16 + $0x260] sm:$0xf] }
 0x99d   : > { %7384 = vperm.xlu1 %9575, %v17393_v32   ;;  %7327 = vperm.xlu2 %9577, %v17394_v26   ;;  %v7571_v49 = vsel %vm2669_vm6, %v7570_v61, %v7569_v14  ;;  %v17397_v61 = vld [vmem:[#allocation163_spill] sm:$0xff]  ;;  %v8651_v14 = vor.u32 %v9039_v37, %v8650_v33  ;;  %v8843_v4 = vor.u32 %v9087_v5, %v8842_v28  ;;  %v9035_v32 = vld [vmem:[#allocation16 + $0xcc] sm:$0xf0]  ;;  %v17399_v28 = vld [vmem:[#allocation84_spill] sm:$0xff] }
 0x99e   : > { %7324 = vperm.xlu0 %9576, %v17395_v58   ;;  %v8635_v58 = vor.u32 %v9035_v32, %v8634_v25  ;;  %v9031_v33 = vld [vmem:[#allocation16 + $0xac] sm:$0xf0]  ;;  %v8810_v37 = vld [vmem:[#allocation16 + $0x220] sm:$0xf] }
 0x99f   : > { %v15244_v56 = vpop.permute.xlu1 %7258  ;;  %v15246_v0 = vpop.permute.xlu2 %7228  ;;  %6806 = vmatpush.bf16.msra.mxu2 %v8651_v14  ;;  %6836 = vmatpush.bf16.msrb.mxu0 %v8843_v4  ;;  %v17400_v14 = vld [vmem:[#allocation75_spill] sm:$0xff] }
 0x9a0   : > { %v7199_v6 = vpop.permute.xlu0 %7198  ;;  %v8602_v5 = vld [vmem:[#allocation16 + $0x80] sm:$0xf] }
 0x9a1   : > { %v7572_v57 = vperm.slane %v7199_v6, %v12141_v17  ;;  %v8794_v32 = vld [vmem:[#allocation16 + $0x200] sm:$0xf] }
 0x9a3   : > { %v7573_v27 = vsel %vm2673_vm7, %v7572_v57, %v7571_v49  ;;  %v7580_v57 = vperm.slane %v15218_v7, %v12183_v50  ;;  %6807 = vmatpush.bf16.msra.mxu2 %v8635_v58 }
 0x9a4   : > { %v7575_v29 = vsel %vm17317_vm8, %v7574_v48, %v7573_v27  ;;  %v8827_v48 = vor.u32 %v9083_v22, %v8826_v20  ;;  %v9037_v20 = vld [vmem:[#allocation16 + $0xe4] sm:$0xf]  ;;  %v8652_v22 = vld [vmem:[#allocation16 + $0xf0] sm:$0xf0] }
 0x9a5   : > { %7393 = vperm.xlu1 %9575, %v17396_v3   ;;  %7336 = vperm.xlu2 %9577, %v17397_v61   ;;  %v7577_v52 = vsel %vm17320_vm10, %v7576_v9, %v7575_v29  ;;  %v8618_v29 = vld [vmem:[#allocation16 + $0xa0] sm:$0xf]  ;;  %v9079_v61 = vld [vmem:[#allocation16 + $0x22c] sm:$0xf0] }
 0x9a6   : > { %7333 = vperm.xlu0 %9576, %v17398_v62   ;;  %v8619_v7 = vor.u32 %v9031_v33, %v8618_v29  ;;  %6837 = vmatpush.bf16.msrb.mxu0 %v8827_v48  ;;  %v8811_v38 = vor.u32 %v9079_v61, %v8810_v37  ;;  %v7586_v48 = vperm.slane %v15232_v55, %v17008_v18  ;;  %v9023_v61 = vld [vmem:[#allocation16 + $0x6c] sm:$0xf0]  ;;  %v8778_v55 = vld [vmem:[#allocation16 + $0x1e0] sm:$0xf] }
 0x9a7   : > { %v15258_v26 = vpop.permute.xlu1 %7267  ;;  %v15260_v49 = vpop.permute.xlu2 %7237 }
 0x9a8   : > { %v7208_v45 = vpop.permute.xlu0 %7207  ;;  %6808 = vmatpush.bf16.msra.mxu2 %v8619_v7  ;;  %v8586_v7 = vld [vmem:[#allocation16 + $0x60] sm:$0xf] }
 0x9a9   : > { %v7578_v6 = vperm.slane %v7208_v45, %v12167_v42  ;;  %v8658_v45 = vld [vmem:[#allocation16 + $0xe8] sm:$0xf] }
 0x9aa   : > { %6838 = vmatpush.bf16.msrb.mxu0 %v8811_v38  ;;  %v9071_v38 = vld [vmem:[#allocation16 + $0x1ec] sm:$0xf0] }
 0x9ab   : > { %v7579_v9 = vsel %vm17323_vm4, %v7578_v6, %v7577_v52  ;;  %v9027_v52 = vld [vmem:[#allocation16 + $0x8c] sm:$0xf0] }
 0x9ac   : > { %v7581_v27 = vsel %vm2689_vm11, %v7580_v57, %v7579_v9  ;;  %v8603_v25 = vor.u32 %v9027_v52, %v8602_v5  ;;  %v8655_v57 = vor.u32 %v9037_v20, %v8652_v22  ;;  %v17402_v5 = vld [vmem:[#allocation73_spill] sm:$0xff]  ;;  %v8587_v52 = vor.u32 %v9023_v61, %v8586_v7  ;;  %v8642_v20 = vld [vmem:[#allocation16 + $0xc8] sm:$0xf]  ;;  %v9036_v22 = vld [vmem:[#allocation16 + $0xd4] sm:$0xf0] }
 0x9ad   : > { %7402 = vperm.xlu1 %9575, %v14465_v40   ;;  %7345 = vperm.xlu2 %9577, %v17399_v28   ;;  %v7583_v3 = vsel %vm2693_vm12, %v7582_v8, %v7581_v27  ;;  %v9075_v40 = vld [vmem:[#allocation16 + $0x20c] sm:$0xf0]  ;;  %v9040_v8 = vld [vmem:[#allocation16 + $0xf4] sm:$0xf0]  ;;  %v8620_v61 = vld [vmem:[#allocation16 + $0xb0] sm:$0xf0] }
 0x9ae   : > { %7342 = vperm.xlu0 %9576, %v17400_v14   ;;  %v8795_v9 = vor.u32 %v9075_v40, %v8794_v32  ;;  %6809 = vmatpush.bf16.msra.mxu2 %v8603_v25  ;;  %v8659_v33 = vor.u32 %v9040_v8, %v8658_v45  ;;  %v17401_v14 = vld [vmem:[#allocation145_spill] sm:$0xff]  ;;  %v9033_v32 = vld [vmem:[#allocation16 + $0xc4] sm:$0xf]  ;;  %v8779_v40 = vor.u32 %v9071_v38, %v8778_v55 }
 0x9af   : > { %v15273_v62 = vpop.permute.xlu1 %7276  ;;  %v15275_v4 = vpop.permute.xlu2 %7246  ;;  %6845 = vmatpush.bf16.msrb.mxu1 %v8655_v57  ;;  %v17404_v25 = vld [vmem:[#allocation69_spill] sm:$0xff]  ;;  %v8643_v8 = vor.u32 %v9036_v22, %v8642_v20  ;;  %v7591_v38 = vperm.slane %v15246_v0, %v12073_v11  ;;  %v17405_v22 = vld [vmem:[#allocation174_spill] sm:$0xff]  ;;  %v8554_v0 = vld [vmem:[#allocation16 + $0x20] sm:$0xf] }
 0x9b0   : > { %v7217_v58 = vpop.permute.xlu0 %7216  ;;  %6839 = vmatpush.bf16.msrb.mxu0 %v8795_v9  ;;  %6819 = vmatpush.bf16.msra.mxu3 %v8779_v40  ;;  %v9067_v7 = vld [vmem:[#allocation16 + $0x1cc] sm:$0xf0]  ;;  %v9029_v9 = vld [vmem:[#allocation16 + $0xa4] sm:$0xf] }
 0x9b1   : > { %v7584_v6 = vperm.slane %v7217_v58, %v17000_v54  ;;  %v8636_v58 = vld [vmem:[#allocation16 + $0xd0] sm:$0xf0] }
 0x9b2   : > { %6810 = vmatpush.bf16.msra.mxu2 %v8587_v52  ;;  %v8639_v57 = vor.u32 %v9033_v32, %v8636_v58  ;;  %v9032_v52 = vld [vmem:[#allocation16 + $0xb4] sm:$0xf0]  ;;  %v8623_v32 = vor.u32 %v9029_v9, %v8620_v61 }
 0x9b3   : > { %v7585_v27 = vsel %vm2697_vm13, %v7584_v6, %v7583_v3  ;;  %v5694_v29 = vpop.f32.mrf.mxu2  ;;  %6840 = vmatmul.bf16.vlgmr.msrb.gmra.mxu0 %v17362_v44 }
 0x9b4   : > { %v15282_v37 = vsel %vm2701_vm14, %v7586_v48, %v7585_v27  ;;  %v6210_v28 = vrot.slane %v5694_v29, 3  ;;  %6884 = vmatpush.bf16.msra.mxu0 %v8659_v33  ;;  %v8570_v48 = vld [vmem:[#allocation16 + $0x40] sm:$0xf]  ;;  %v9019_v27 = vld [vmem:[#allocation16 + $0x4c] sm:$0xf0]  ;;  %6846 = vmatpush.bf16.msrb.mxu1 %v8639_v57  ;;  %v17406_v57 = vld [vmem:[#allocation74_spill] sm:$0xff] }
 0x9b5   : > { %7411 = vperm.xlu1 %9575, %v17401_v14   ;;  %7354 = vperm.xlu2 %9577, %v17402_v5   ;;  %v8762_v29 = vld [vmem:[#allocation16 + $0x1c0] sm:$0xf]  ;;  %v7588_v14 = vperm.slane %v15193_v19, %v12061_v63  ;;  %v8626_v33 = vld [vmem:[#allocation16 + $0xa8] sm:$0xf] }
 0x9b6   : > { %v15288_v3 = vsel %vm17403_vm9, %v6210_v28, %v15207_v23  ;;  %7351 = vperm.xlu0 %9576, %v17404_v25   ;;  %v8571_v28 = vor.u32 %v9019_v27, %v8570_v48  ;;  %v8763_v55 = vor.u32 %v9067_v7, %v8762_v29  ;;  %v7593_v25 = vperm.slane %v15209_v59, %v12082_v12  ;;  %v9015_v27 = vld [vmem:[#allocation16 + $0x2c] sm:$0xf0]  ;;  %v8746_v29 = vld [vmem:[#allocation16 + $0x1a0] sm:$0xf] }
 0x9b7   : > { %v15291_v45 = vpop.permute.xlu1 %7285  ;;  %v15293_v6 = vpop.permute.xlu2 %7255  ;;  %v8627_v19 = vor.u32 %v9032_v52, %v8626_v33  ;;  %v8555_v59 = vor.u32 %v9015_v27, %v8554_v0  ;;  %v9063_v7 = vld [vmem:[#allocation16 + $0x1ac] sm:$0xf0]  ;;  %v9028_v33 = vld [vmem:[#allocation16 + $0x94] sm:$0xf0]  ;;  %v8538_v52 = vld [vmem:[#allocation16] sm:$0xf] }
 0x9b8   : > { %v7226_v23 = vpop.permute.xlu0 %7225  ;;  %6885 = vmatpush.bf16.msra.mxu0 %v8643_v8  ;;  %6811 = vmatpush.bf16.msra.mxu2 %v8571_v28  ;;  %v9025_v8 = vld [vmem:[#allocation16 + $0x84] sm:$0xf]  ;;  %v8604_v28 = vld [vmem:[#allocation16 + $0x90] sm:$0xf0]  ;;  %vm17424_vm9 = vcmask 1041409  }
 0x9b9   : > { %v7589_v5 = vperm.slane %v7226_v23, %v12068_v10  ;;  %6820 = vmatpush.bf16.msra.mxu3 %v8763_v55  ;;  %v17407_v23 = vld [vmem:[#allocation216_spill] sm:$0xff]  ;;  %6847 = vmatpush.bf16.msrb.mxu1 %v8623_v32  ;;  %v9059_v32 = vld [vmem:[#allocation16 + $0x18c] sm:$0xf0]  ;;  %v8588_v0 = vld [vmem:[#allocation16 + $0x70] sm:$0xf0] }
 0x9ba   : > { %v8610_v55 = vld [vmem:[#allocation16 + $0x88] sm:$0xf]  ;;  %v9069_v27 = vld [vmem:[#allocation16 + $0x1e4] sm:$0xf] }
 0x9bb   : > { %v7590_v40 = vsel %vm2645_vm0, %v7589_v5, %v7588_v14  ;;  %v5696_v58 = vpop.f32.mrf.mxu2  ;;  %v8747_v14 = vor.u32 %v9063_v7, %v8746_v29  ;;  %v8607_v5 = vor.u32 %v9025_v8, %v8604_v28  ;;  %v8594_v7 = vld [vmem:[#allocation16 + $0x68] sm:$0xf]  ;;  %v9024_v8 = vld [vmem:[#allocation16 + $0x74] sm:$0xf0] }
 0x9bc   : > { %v7592_v20 = vsel %vm2649_vm1, %v7591_v38, %v7590_v40  ;;  %6886 = vmatpush.bf16.msra.mxu0 %v8627_v19  ;;  %6812 = vmatpush.bf16.msra.mxu2 %v8555_v59  ;;  %v9011_v40 = vld [vmem:[#allocation16 + $0xc] sm:$0xf0]  ;;  %v8730_v58 = vld [vmem:[#allocation16 + $0x180] sm:$0xf]  ;;  %v7597_v19 = vperm.slane %v15260_v49, %v12100_v39  ;;  %v7599_v59 = vperm.slane %v15216_v1, %v12106_v13  ;;  %v9017_v49 = vld [vmem:[#allocation16 + $0x44] sm:$0xf] }
 0x9bd   : > { %7420 = vperm.xlu1 %9575, %v17405_v22   ;;  %7363 = vperm.xlu2 %9577, %v17406_v57   ;;  %v7594_v48 = vsel %vm2653_vm2, %v7593_v25, %v7592_v20  ;;  %v8611_v25 = vor.u32 %v9028_v33, %v8610_v55  ;;  %v8539_v22 = vor.u32 %v9011_v40, %v8538_v52  ;;  %v9021_v57 = vld [vmem:[#allocation16 + $0x64] sm:$0xf]  ;;  %v9055_v40 = vld [vmem:[#allocation16 + $0x16c] sm:$0xf0] }
 0x9be   : > { %7360 = vperm.xlu0 %9576, %v17407_v23   ;;  %6821 = vmatpush.bf16.msra.mxu3 %v8747_v14  ;;  %v8731_v29 = vor.u32 %v9059_v32, %v8730_v58  ;;  %v8780_v23 = vld [vmem:[#allocation16 + $0x1f0] sm:$0xf0]  ;;  %v8591_v55 = vor.u32 %v9021_v57, %v8588_v0  ;;  %v8595_v52 = vor.u32 %v9024_v8, %v8594_v7  ;;  %v17409_v58 = vld [vmem:[#allocation71_spill] sm:$0xff]  ;;  %v9020_v57 = vld [vmem:[#allocation16 + $0x54] sm:$0xf0] }
 0x9bf   : > { %v15309_v9 = vpop.permute.xlu1 %7294  ;;  %v15311_v61 = vpop.permute.xlu2 %7264  ;;  %6848 = vmatpush.bf16.msrb.mxu1 %v8607_v5  ;;  %v8783_v14 = vor.u32 %v9069_v27, %v8780_v23  ;;  %v17408_v5 = vld [vmem:[#allocation152_spill] sm:$0xff]  ;;  %v9065_v1 = vld [vmem:[#allocation16 + $0x1c4] sm:$0xf]  ;;  %v8575_v27 = vor.u32 %v9017_v49, %v8572_v35  ;;  %v8698_v23 = vld [vmem:[#allocation16 + $0x140] sm:$0xf]  ;;  %v7603_v35 = vperm.slane %v15275_v4, %v12141_v17 }
 0x9c0   : > { %v7235_v38 = vpop.permute.xlu0 %7234  ;;  %6887 = vmatpush.bf16.msra.mxu0 %v8611_v25  ;;  %6813 = vmatpush.bf16.msra.mxu2 %v8539_v22  ;;  %v9051_v7 = vld [vmem:[#allocation16 + $0x14c] sm:$0xf0]  ;;  %v17412_v4 = vld [vmem:[#allocation214_spill] sm:$0xff] }
 0x9c1   : > { %v7595_v20 = vperm.slane %v7235_v38, %v12095_v41  ;;  %v8714_v38 = vld [vmem:[#allocation16 + $0x160] sm:$0xf] }
 0x9c2   : > { %6822 = vmatpush.bf16.msra.mxu3 %v8731_v29  ;;  %v8715_v25 = vor.u32 %v9055_v40, %v8714_v38  ;;  %v8748_v38 = vld [vmem:[#allocation16 + $0x1b0] sm:$0xf0]  ;;  %v8562_v40 = vld [vmem:[#allocation16 + $0x28] sm:$0xf] }
 0x9c3   : > { %v7596_v28 = vsel %vm2657_vm3, %v7595_v20, %v7594_v48  ;;  %v17410_v48 = vld [vmem:[#allocation88_spill] sm:$0xff]  ;;  %6849 = vmatpush.bf16.msrb.mxu1 %v8591_v55 }
 0x9c4   : > { %v7598_v33 = vsel %vm17311_vm15, %v7597_v19, %v7596_v28  ;;  %v8578_v20 = vld [vmem:[#allocation16 + $0x48] sm:$0xf]  ;;  %6858 = vmatpush.bf16.msrb.mxu2 %v8783_v14  ;;  %v8767_v19 = vor.u32 %v9065_v1, %v8764_v34  ;;  %6888 = vmatpush.bf16.msra.mxu0 %v8595_v52  ;;  %v9013_v28 = vld [vmem:[#allocation16 + $0x24] sm:$0xf]  ;;  %v8699_v34 = vor.u32 %v9051_v7, %v8698_v23  ;;  %v15334_v14 = vpop.f32.mrf.mxu1  ;;  %v17413_v23 = vld [vmem:[#allocation218_spill] sm:$0xff] }
 0x9c5   : > { %7429 = vperm.xlu1 %9575, %v17408_v5   ;;  %7372 = vperm.xlu2 %9577, %v17409_v58   ;;  %v7600_v32 = vsel %vm2665_vm5, %v7599_v59, %v7598_v33  ;;  %v8579_v59 = vor.u32 %v9020_v57, %v8578_v20  ;;  %v8556_v33 = vld [vmem:[#allocation16 + $0x30] sm:$0xf0]  ;;  %v9061_v5 = vld [vmem:[#allocation16 + $0x1a4] sm:$0xf]  ;;  %v9016_v58 = vld [vmem:[#allocation16 + $0x34] sm:$0xf0] }
 0x9c6   : > { %7369 = vperm.xlu0 %9576, %v17410_v48   ;;  %v7605_v48 = vperm.slane %v15230_v51, %v12144_v24  ;;  %6823 = vmatpush.bf16.msra.mxu3 %v8715_v25  ;;  %v8559_v52 = vor.u32 %v9013_v28, %v8556_v33  ;;  %v8751_v49 = vor.u32 %v9061_v5, %v8748_v38  ;;  %v8682_v57 = vld [vmem:[#allocation16 + $0x120] sm:$0xf]  ;;  %v9009_v51 = vld [vmem:[#allocation16 + $0x4] sm:$0xf]  ;;  %v8546_v28 = vld [vmem:[#allocation16 + $0x8] sm:$0xf] }
 0x9c7   : > { %v15324_v22 = vpop.permute.xlu1 %7303  ;;  %v15326_v0 = vpop.permute.xlu2 %7273  ;;  %6850 = vmatpush.bf16.msrb.mxu1 %v8575_v27  ;;  %v8563_v20 = vor.u32 %v9016_v58, %v8562_v40  ;;  %v9057_v27 = vld [vmem:[#allocation16 + $0x184] sm:$0xf]  ;;  %v9012_v33 = vld [vmem:[#allocation16 + $0x14] sm:$0xf0]  ;;  %v8786_v38 = vld [vmem:[#allocation16 + $0x1e8] sm:$0xf] }
 0x9c8   : > { %v7244_v8 = vpop.permute.xlu0 %7243  ;;  %6859 = vmatpush.bf16.msrb.mxu2 %v8767_v19  ;;  %6889 = vmatpush.bf16.msra.mxu0 %v8579_v59  ;;  %v8732_v19 = vld [vmem:[#allocation16 + $0x190] sm:$0xf0]  ;;  %v9072_v40 = vld [vmem:[#allocation16 + $0x1f4] sm:$0xf0]  ;;  %v9070_v58 = vld [vmem:[#allocation16 + $0x1ec] sm:$0xf] }
 0x9c9   : > { %v7601_v29 = vperm.slane %v7244_v8, %v12116_v15  ;;  %v9047_v8 = vld [vmem:[#allocation16 + $0x12c] sm:$0xf0] }
 0x9ca   : > { %6824 = vmatpush.bf16.msra.mxu3 %v8699_v34  ;;  %v8683_v7 = vor.u32 %v9047_v8, %v8682_v57  ;;  %v8666_v34 = vld [vmem:[#allocation16 + $0x100] sm:$0xf]  ;;  %v9043_v57 = vld [vmem:[#allocation16 + $0x10c] sm:$0xf0] }
 0x9cb   : > { %v7602_v55 = vsel %vm2669_vm6, %v7601_v29, %v7600_v32  ;;  %v8540_v32 = vld [vmem:[#allocation16 + $0x10] sm:$0xf0]  ;;  %6851 = vmatpush.bf16.msrb.mxu1 %v8559_v52  ;;  %v8735_v29 = vor.u32 %v9057_v27, %v8732_v19  ;;  %v7611_v52 = vperm.slane %v15244_v56, %v12183_v50  ;;  %v9101_v27 = vld [vmem:[#allocation16 + $0x2e4] sm:$0xf] }
 0x9cc   : > { %v7604_v1 = vsel %vm2673_vm7, %v7603_v35, %v7602_v55  ;;  %6860 = vmatpush.bf16.msrb.mxu2 %v8751_v49  ;;  %6890 = vmatpush.bf16.msra.mxu0 %v8563_v20  ;;  %v8547_v35 = vor.u32 %v9012_v33, %v8546_v28  ;;  %v8787_v55 = vor.u32 %v9072_v40, %v8786_v38  ;;  %v9053_v20 = vld [vmem:[#allocation16 + $0x164] sm:$0xf]  ;;  %v8908_v33 = vld [vmem:[#allocation16 + $0x2f0] sm:$0xf0]  ;;  %v6173_v38 = vpop.f32.mrf.mxu1 }
 0x9cd   : > { %7438 = vperm.xlu1 %9575, %v17411_v60   ;;  %7381 = vperm.xlu2 %9577, %v17412_v4   ;;  %v7606_v25 = vsel %vm17317_vm8, %v7605_v48, %v7604_v1  ;;  %v8543_v60 = vor.u32 %v9009_v51, %v8540_v32  ;;  %v8788_v1 = vld [vmem:[#allocation16 + $0x1f8] sm:$0xf0]  ;;  %v7609_v49 = vperm.slane %v15293_v6, %v12167_v42  ;;  %v8716_v32 = vld [vmem:[#allocation16 + $0x170] sm:$0xf0]  ;;  %v9068_v6 = vld [vmem:[#allocation16 + $0x1d4] sm:$0xf0] }
 0x9ce   : > { %7378 = vperm.xlu0 %9576, %v17413_v23   ;;  %v9582_v4 = vld [vmem:[%s17414_s14] ss:$0 sm:$0xff]  ;;  %6825 = vmatpush.bf16.msra.mxu3 %v8683_v7  ;;  %v8791_v51 = vor.u32 %v9070_v58, %v8788_v1  ;;  %v8667_v23 = vor.u32 %v9043_v57, %v8666_v34  ;;  %v8719_v28 = vor.u32 %v9053_v20, %v8716_v32  ;;  %v9066_v7 = vld [vmem:[#allocation16 + $0x1cc] sm:$0xf]  ;;  %v17415_v58 = vld [vmem:[#allocation177_spill] sm:$0xff]  ;;  %s10087_s14 = sshra.s32 %s7837_s11, 4  ;;  %s10088_s14 = int_to_ptr.hbm [resolvable:$true] %s10087_s14 }
 0x9cf   : > { %v15341_v59 = vpop.permute.xlu1 %7312  ;;  %v15343_v5 = vpop.permute.xlu2 %7282  ;;  %6852 = vmatpush.bf16.msrb.mxu1 %v8543_v60  ;;  %v8911_v56 = vor.u32 %v9101_v27, %v8908_v33  ;;  %v17416_v1 = vld [vmem:[#allocation144_spill] sm:$0xff]  ;;  %v9049_v34 = vld [vmem:[#allocation16 + $0x144] sm:$0xf]  ;;  %v8700_v57 = vld [vmem:[#allocation16 + $0x150] sm:$0xf0]  ;;  %p10094_p9 = scmp.lt.s32.totalorder %s10088_s14, %s17479_s15 }
 0x9d0   : > { %v7253_v48 = vpop.permute.xlu0 %7252  ;;  %6861 = vmatpush.bf16.msrb.mxu2 %v8735_v29  ;;  %6891 = vmatpush.bf16.msra.mxu0 %v8547_v35  ;;  %v8772_v29 = vld [vmem:[#allocation16 + $0x1d8] sm:$0xf0]  ;;  %v8892_v20 = vld [vmem:[#allocation16 + $0x2d0] sm:$0xf0]  ;;  %v8754_v32 = vld [vmem:[#allocation16 + $0x1a8] sm:$0xf] }
 0x9d1   : > { %v7607_v8 = vperm.slane %v7253_v48, %v12138_v2  ;;  %v8770_v48 = vld [vmem:[#allocation16 + $0x1c8] sm:$0xf]  ;;  %v8775_v35 = vor.u32 %v9066_v7, %v8772_v29  ;;  %v9064_v33 = vld [vmem:[#allocation16 + $0x1b4] sm:$0xf0]  ;;  %v9062_v38 = vld [vmem:[#allocation16 + $0x1ac] sm:$0xf]  ;;  %v7615_v29 = vperm.slane %v15311_v61, %v17000_v54 }
 0x9d2   : > { %v8771_v60 = vor.u32 %v9068_v6, %v8770_v48  ;;  %6826 = vmatpush.bf16.msra.mxu3 %v8667_v23  ;;  %v8755_v6 = vor.u32 %v9064_v33, %v8754_v32  ;;  %v9058_v32 = vld [vmem:[#allocation16 + $0x18c] sm:$0xf]  ;;  %v8740_v33 = vld [vmem:[#allocation16 + $0x198] sm:$0xf0] }
 0x9d3   : > { %v7608_v19 = vsel %vm17320_vm10, %v7607_v8, %v7606_v25  ;;  %6897 = vmatpush.bf16.msra.mxu1 %v8787_v55  ;;  %v17417_v8 = vld [vmem:[#allocation93_spill] sm:$0xff]  ;;  %v9097_v55 = vld [vmem:[#allocation16 + $0x2c4] sm:$0xf] }
 0x9d4   : > { %v7610_v40 = vsel %vm17323_vm4, %v7609_v49, %v7608_v19  ;;  %v6172_v49 = vadd.f32 %v9582_v4, %v15334_v14  ;;  %6936 = vmatpush.bf16.msrb.mxu0 %v8791_v51  ;;  %6862 = vmatpush.bf16.msrb.mxu2 %v8719_v28  ;;  %v8895_v48 = vor.u32 %v9097_v55, %v8892_v20  ;;  %v8756_v14 = vld [vmem:[#allocation16 + $0x1b8] sm:$0xf0]  ;;  %v9045_v4 = vld [vmem:[#allocation16 + $0x124] sm:$0xf]  ;;  %v8684_v51 = vld [vmem:[#allocation16 + $0x130] sm:$0xf0] }
 0x9d5   : > { %7447 = vperm.xlu1 %9575, %v17415_v58   ;;  %7390 = vperm.xlu2 %9577, %v17416_v1   ;;  %v7612_v25 = vsel %vm2689_vm11, %v7611_v52, %v7610_v40  ;;  %v8703_v52 = vor.u32 %v9049_v34, %v8700_v57  ;;  %v9093_v58 = vld [vmem:[#allocation16 + $0x2a4] sm:$0xf]  ;;  %v8876_v1 = vld [vmem:[#allocation16 + $0x2b0] sm:$0xf0]  ;;  %v8759_v28 = vor.u32 %v9062_v38, %v8756_v14  ;;  %v8738_v55 = vld [vmem:[#allocation16 + $0x188] sm:$0xf] }
 0x9d6   : > { %7387 = vperm.xlu0 %9576, %v17417_v8   ;;  %6871 = vmatpush.bf16.msrb.mxu3 %v8911_v56  ;;  %v8535_v23 = vmul.f32 -1.442695, %v6172_v49  ;;  %v7617_v34 = vperm.slane %v15258_v26, %v17008_v18  ;;  %v8879_v8 = vor.u32 %v9093_v58, %v8876_v1  ;;  %v9060_v20 = vld [vmem:[#allocation16 + $0x194] sm:$0xf0]  ;;  %v17418_v49 = vld [vmem:[#allocation168_spill] sm:$0xff]  ;;  %v17420_v38 = vld [vmem:[#allocation215_spill] sm:$0xff] }
 0x9d7   : > { %v15360_v27 = vpop.permute.xlu1 %7321  ;;  %v15362_v19 = vpop.permute.xlu2 %7291  ;;  %6898 = vmatpush.bf16.msra.mxu1 %v8771_v60  ;;  %v8687_v60 = vor.u32 %v9045_v4, %v8684_v51  ;;  %v8739_v26 = vor.u32 %v9060_v20, %v8738_v55  ;;  %v8860_v14 = vld [vmem:[#allocation16 + $0x290] sm:$0xf0]  ;;  %v8722_v58 = vld [vmem:[#allocation16 + $0x168] sm:$0xf]  ;;  %v9056_v1 = vld [vmem:[#allocation16 + $0x174] sm:$0xf0]  ;;  %v7620_v55 = vperm.slane %v15326_v0, %v12068_v10 }
 0x9d8   : > { %v7262_v40 = vpop.permute.xlu0 %7261  ;;  %6937 = vmatpush.bf16.msrb.mxu0 %v8775_v35  ;;  %6863 = vmatpush.bf16.msrb.mxu2 %v8703_v52  ;;  %v17419_v35 = vld [vmem:[#allocation176_spill] sm:$0xff]  ;;  %v9041_v52 = vld [vmem:[#allocation16 + $0x104] sm:$0xf]  ;;  %9841 = vpow2.f32 %v8535_v23 }
 0x9d9   : > { %v7613_v7 = vperm.slane %v7262_v40, %v16995_v46  ;;  %v8743_v40 = vor.u32 %v9058_v32, %v8740_v33 }
 0x9da   : > { %6872 = vmatpush.bf16.msrb.mxu3 %v8895_v48  ;;  %v8668_v48 = vld [vmem:[#allocation16 + $0x110] sm:$0xf0] }
 0x9db   : > { %v7614_v56 = vsel %vm2693_vm12, %v7613_v7, %v7612_v25  ;;  %6899 = vmatpush.bf16.msra.mxu1 %v8755_v6  ;;  %v15377_v25 = vld [vmem:[%s10441_s22] sm:$0xf]  ;;  %v9089_v6 = vld [vmem:[#allocation16 + $0x284] sm:$0xf]  ;;  %v8671_v7 = vor.u32 %v9041_v52, %v8668_v48  ;;  %s10089_s22 = scalar_lea.hbm %s10088_s14, 8 }
 0x9dc   : > { %v7616_v57 = vsel %vm2697_vm13, %v7615_v29, %v7614_v56  ;;  %6938 = vmatpush.bf16.msrb.mxu0 %v8759_v28  ;;  %6864 = vmatpush.bf16.msrb.mxu2 %v8687_v60  ;;  %v8914_v29 = vld [vmem:[#allocation16 + $0x2e8] sm:$0xf]  ;;  %v8863_v23 = vor.u32 %v9089_v6, %v8860_v14  ;;  %v9104_v28 = vld [vmem:[#allocation16 + $0x2f4] sm:$0xf0]  ;;  %v9054_v56 = vld [vmem:[#allocation16 + $0x16c] sm:$0xf]  ;;  %v8723_v60 = vor.u32 %v9056_v1, %v8722_v58  ;;  %p10090_p1 = scmp.ne.s32.totalorder %s10088_s14, %s10089_s22  ;;  %p10095_p10 = scmp.lt.s32.totalorder %s10093_s29, %s10089_s22 }
 0x9dd   : > { %v15372_v61 = vsel %vm2701_vm14, %v7617_v34, %v7616_v57  ;;  %7456 = vperm.xlu1 %9575, %v17418_v49   ;;  %7399 = vperm.xlu2 %9577, %v17419_v35   ;;  %v8724_v57 = vld [vmem:[#allocation16 + $0x178] sm:$0xf0]  ;;  %v9085_v49 = vld [vmem:[#allocation16 + $0x264] sm:$0xf]  ;;  %v8844_v35 = vld [vmem:[#allocation16 + $0x270] sm:$0xf0] }
 0x9de   : > { %7396 = vperm.xlu0 %9576, %v17420_v38   ;;  %6853 = vmatmul.bf16.vlgmr.msrb.gmra.mxu1 %v15377_v25  ;;  %v8727_v0 = vor.u32 %v9054_v56, %v8724_v57  ;;  %v9842_v52 = vpop.eup %9841  ;;  %v8847_v48 = vor.u32 %v9085_v49, %v8844_v35  ;;  %v8706_v6 = vld [vmem:[#allocation16 + $0x148] sm:$0xf]  ;;  %v9052_v14 = vld [vmem:[#allocation16 + $0x154] sm:$0xf0]  ;;  %p10091_p7 = pnand %p10090_p1, %p10406_p0  ;;  %p10096_p11 = por %p10095_p10, %p10094_p9 }
 0x9df   : > { %v15380_v4 = vpop.permute.xlu1 %7330  ;;  %v15382_v51 = vpop.permute.xlu2 %7300  ;;  %6873 = vmatpush.bf16.msrb.mxu3 %v8879_v8  ;;  %6900 = vmatpush.bf16.msra.mxu1 %v8739_v26  ;;  %v7622_v8 = vperm.slane %v15273_v62, %v12073_v11  ;;  %v8915_v26 = vor.u32 %v9104_v28, %v8914_v29  ;;  %v8898_v58 = vld [vmem:[#allocation16 + $0x2c8] sm:$0xf]  ;;  %v8707_v62 = vor.u32 %v9052_v14, %v8706_v6  ;;  %v9050_v29 = vld [vmem:[#allocation16 + $0x14c] sm:$0xf]  ;;  %v8708_v28 = vld [vmem:[#allocation16 + $0x158] sm:$0xf0] }
 0x9e0   : > { %v7271_v34 = vpop.permute.xlu0 %7270  ;;  %6814 = vmatmul.bf16.vlgmr.msra.gmra.mxu2 %v15377_v25  ;;  %6892 = vmatmul.bf16.vlgmr.msra.gmra.mxu0 %v15377_v25  ;;  %v17421_v1 = vld [vmem:[#allocation180_spill] sm:$0xff]  ;;  %v15399_v56 = vadd.f32 1.0, %v9842_v52  ;;  %v15411_v6 = vsel %vm17424_vm9, %v15372_v61, %v15282_v37  ;;  %v9077_v37 = vld [vmem:[#allocation16 + $0x224] sm:$0xf]  ;;  %p10092_p8 = pneg %p10091_p7 }
 0x9e1   : > { %v7619_v20 = vperm.slane %v7271_v34, %v12061_v63  ;;  %v15388_v32 = vpop.f32.mrf.mxu3  ;;  %6939 = vmatpush.bf16.msrb.mxu0 %v8743_v40  ;;  %6865 = vmatpush.bf16.msrb.mxu2 %v8671_v7  ;;  %v17422_v34 = vld [vmem:[#allocation153_spill] sm:$0xff]  ;;  %v9100_v40 = vld [vmem:[#allocation16 + $0x2d4] sm:$0xf0]  ;;  %v8690_v52 = vld [vmem:[#allocation16 + $0x128] sm:$0xf] }
 0x9e2   : > { %v8899_v7 = vor.u32 %v9100_v40, %v8898_v58  ;;  %9843 = vrcp.f32 %v15399_v56  ;;  %v9048_v58 = vld [vmem:[#allocation16 + $0x134] sm:$0xf0]  ;;  %v17425_v61 = vld [vmem:[#allocation175_spill] sm:$0xff]  ;;  %vm6184_vm9 = vweird.f32 %v15399_v56  ;;  %p10097_p12 = pnand %p10096_p11, %p10092_p8 }
 0x9e3   : > { %v7621_v33 = vsel %vm2645_vm0, %v7620_v55, %v7619_v20  ;;  %6874 = vmatpush.bf16.msrb.mxu3 %v8863_v23  ;;  %6901 = vmatpush.bf16.msra.mxu1 %v8723_v60  ;;  %v17423_v55 = vld [vmem:[#allocation220_spill] sm:$0xff]  ;;  %v8711_v20 = vor.u32 %v9050_v29, %v8708_v28  ;;  %v8692_v28 = vld [vmem:[#allocation16 + $0x138] sm:$0xf0] }
 0x9e4   : > { %v7623_v38 = vsel %vm2649_vm1, %v7622_v8, %v7621_v33  ;;  %v7626_v8 = vperm.slane %v15343_v5, %v12095_v41  ;;  %v8828_v33 = vld [vmem:[#allocation16 + $0x250] sm:$0xf0]  ;;  %v8882_v5 = vld [vmem:[#allocation16 + $0x2a8] sm:$0xf]  ;;  %v9046_v29 = vld [vmem:[#allocation16 + $0x12c] sm:$0xf] }
 0x9e5   : > { %7465 = vperm.xlu1 %9575, %v17421_v1   ;;  %7408 = vperm.xlu2 %9577, %v17422_v34   ;;  %v9096_v1 = vld [vmem:[#allocation16 + $0x2b4] sm:$0xf0] }
 0x9e6   : > { %7405 = vperm.xlu0 %9576, %v17423_v55   ;;  %6910 = vmatpush.bf16.msra.mxu2 %v8915_v26  ;;  %v9081_v26 = vld [vmem:[#allocation16 + $0x244] sm:$0xf]  ;;  %v8883_v40 = vor.u32 %v9096_v1, %v8882_v5  ;;  %v8695_v55 = vor.u32 %v9046_v29, %v8692_v28  ;;  %v8796_v5 = vld [vmem:[#allocation16 + $0x210] sm:$0xf0]  ;;  %v7651_v1 = vperm.slane %v15360_v27, %v12068_v10  ;;  %v8850_v28 = vld [vmem:[#allocation16 + $0x268] sm:$0xf] }
 0x9e7   : > { %v15401_v23 = vpop.permute.xlu1 %7339  ;;  %v15403_v57 = vpop.permute.xlu2 %7309  ;;  %6940 = vmatpush.bf16.msrb.mxu0 %v8727_v0  ;;  %6875 = vmatpush.bf16.msrb.mxu3 %v8847_v48  ;;  %v7628_v0 = vperm.slane %v15291_v45, %v12100_v39  ;;  %v8831_v14 = vor.u32 %v9081_v26, %v8828_v33  ;;  %v9042_v26 = vld [vmem:[#allocation16 + $0x10c] sm:$0xf]  ;;  %v7634_v27 = vperm.slane %v15309_v9, %v12141_v17  ;;  %v17429_v9 = vld [vmem:[#allocation217_spill] sm:$0xff] }
 0x9e8   : > { %v7280_v60 = vpop.permute.xlu0 %7279  ;;  %6902 = vmatpush.bf16.msra.mxu1 %v8707_v62  ;;  %v8691_v62 = vor.u32 %v9048_v58, %v8690_v52  ;;  %v8676_v58 = vld [vmem:[#allocation16 + $0x118] sm:$0xf0] }
 0x9e9   : > { %v7624_v49 = vperm.slane %v7280_v60, %v12082_v12  ;;  %v5894_v35 = vpop.f32.mrf.mxu3  ;;  %v17426_v60 = vld [vmem:[#allocation57_spill] sm:$0xff]  ;;  %v8679_v29 = vor.u32 %v9042_v26, %v8676_v58  ;;  %v17427_v26 = vld [vmem:[#allocation183_spill] sm:$0xff]  ;;  %v9102_v58 = vld [vmem:[#allocation16 + $0x2ec] sm:$0xf] }
 0x9ea   : > { %6911 = vmatpush.bf16.msra.mxu2 %v8899_v7  ;;  %v8674_v7 = vld [vmem:[#allocation16 + $0x108] sm:$0xf] }
 0x9eb   : > { %v7625_v48 = vsel %vm2653_vm2, %v7624_v49, %v7623_v38  ;;  %6941 = vmatpush.bf16.msrb.mxu0 %v8711_v20  ;;  %v8812_v38 = vld [vmem:[#allocation16 + $0x230] sm:$0xf0]  ;;  %v9044_v20 = vld [vmem:[#allocation16 + $0x114] sm:$0xf0]  ;;  %6876 = vmatpush.bf16.msrb.mxu3 %v8831_v14  ;;  %v8866_v35 = vld [vmem:[#allocation16 + $0x288] sm:$0xf] }
 0x9ec   : > { %v7627_v34 = vsel %vm2657_vm3, %v7626_v8, %v7625_v48  ;;  %v8815_v49 = vor.u32 %v9077_v37, %v8812_v38  ;;  %v9092_v8 = vld [vmem:[#allocation16 + $0x294] sm:$0xf0]  ;;  %6903 = vmatpush.bf16.msra.mxu1 %v8691_v62 }
 0x9ed   : > { %7474 = vperm.xlu1 %9575, %v14707_v43   ;;  %7417 = vperm.xlu2 %9577, %v17425_v61   ;;  %v7629_v45 = vsel %vm17311_vm15, %v7628_v0, %v7627_v34  ;;  %v8675_v43 = vor.u32 %v9044_v20, %v8674_v7  ;;  %v8867_v48 = vor.u32 %v9092_v8, %v8866_v35  ;;  %v9073_v0 = vld [vmem:[#allocation16 + $0x204] sm:$0xf]  ;;  %v9088_v37 = vld [vmem:[#allocation16 + $0x274] sm:$0xf0]  ;;  %v15427_v61 = vpop.eup %9843 }
 0x9ee   : > { %7414 = vperm.xlu0 %9576, %v17426_v60   ;;  %6912 = vmatpush.bf16.msra.mxu2 %v8883_v40  ;;  %v7632_v40 = vperm.slane %v15362_v19, %v12116_v15  ;;  %v8799_v7 = vor.u32 %v9073_v0, %v8796_v5  ;;  %v8851_v20 = vor.u32 %v9088_v37, %v8850_v28  ;;  %v8834_v19 = vld [vmem:[#allocation16 + $0x248] sm:$0xf]  ;;  %v9084_v8 = vld [vmem:[#allocation16 + $0x254] sm:$0xf0]  ;;  %v8916_v0 = vld [vmem:[#allocation16 + $0x2f8] sm:$0xf0]  ;;  %vm6185_vm15 = vweird.f32 %v15427_v61 }
 0x9ef   : > { %v15422_v33 = vpop.permute.xlu1 %7348  ;;  %v7319_v52 = vpop.permute.xlu2 %7318  ;;  %6942 = vmatpush.bf16.msrb.mxu0 %v8695_v55  ;;  %6877 = vmatpush.bf16.msrb.mxu3 %v8815_v49  ;;  %v6180_v60 = vmul.f32 %v15427_v61, %v15399_v56  ;;  %v17428_v49 = vld [vmem:[#allocation170_spill] sm:$0xff]  ;;  %v7638_v37 = vperm.slane %v15382_v51, %v12138_v2 }
 0x9f0   : > { %v7650_v34 = vperm.slane %v7319_v52, %v12061_v63  ;;  %v7289_v14 = vpop.permute.xlu0 %7288  ;;  %6904 = vmatpush.bf16.msra.mxu1 %v8675_v43 }
 0x9f1   : > { %v7630_v62 = vperm.slane %v7289_v14, %v12106_v13  ;;  %v6181_v5 = vsub.f32 1.0, %v6180_v60  ;;  %v9080_v14 = vld [vmem:[#allocation16 + $0x234] sm:$0xf0] }
 0x9f2   : > { %v15433_v38 = vsel %vm2645_vm0, %v7651_v1, %v7650_v34  ;;  %6913 = vmatpush.bf16.msra.mxu2 %v8867_v48  ;;  %v8835_v48 = vor.u32 %v9084_v8, %v8834_v19  ;;  %v8818_v34 = vld [vmem:[#allocation16 + $0x228] sm:$0xf]  ;;  %v9076_v60 = vld [vmem:[#allocation16 + $0x214] sm:$0xf0]  ;;  %v9098_v19 = vld [vmem:[#allocation16 + $0x2cc] sm:$0xf] }
 0x9f3   : > { %v7631_v55 = vsel %vm2665_vm5, %v7630_v62, %v7629_v45  ;;  %6943 = vmatpush.bf16.msrb.mxu0 %v8679_v29  ;;  %6878 = vmatpush.bf16.msrb.mxu3 %v8799_v7  ;;  %v8919_v29 = vor.u32 %v9102_v58, %v8916_v0  ;;  %v7640_v62 = vperm.slane %v15324_v22, %v12167_v42  ;;  %v8900_v8 = vld [vmem:[#allocation16 + $0x2d8] sm:$0xf0] }
 0x9f4   : > { %v7633_v35 = vsel %vm2669_vm6, %v7632_v40, %v7631_v55  ;;  %v8819_v7 = vor.u32 %v9080_v14, %v8818_v34  ;;  %v6182_v55 = vmul.f32 %v15427_v61, %v6181_v5  ;;  %v8903_v22 = vor.u32 %v9098_v19, %v8900_v8  ;;  %v17437_v19 = vld [vmem:[#allocation212_spill] sm:$0xff] }
 0x9f5   : > { %7483 = vperm.xlu1 %9575, %v17427_v26   ;;  %7426 = vperm.xlu2 %9577, %v17428_v49   ;;  %v7635_v52 = vsel %vm2673_vm7, %v7634_v27, %v7633_v35  ;;  %v17430_v35 = vld [vmem:[#allocation155_spill] sm:$0xff]  ;;  %v6188_v5 = vand.u32 2147483647, %v15399_v56 }
 0x9f6   : > { %7423 = vperm.xlu0 %9576, %v17429_v9   ;;  %6914 = vmatpush.bf16.msra.mxu2 %v8851_v20  ;;  %v8802_v20 = vld [vmem:[#allocation16 + $0x208] sm:$0xf]  ;;  %v17431_v26 = vld [vmem:[#allocation211_spill] sm:$0xff]  ;;  %v6183_v0 = vadd.f32 %v15427_v61, %v6182_v55 }
 0x9f7   : > { %v15445_v45 = vpop.permute.xlu1 %7357  ;;  %v15447_v43 = vpop.permute.xlu2 %7327  ;;  %6949 = vmatpush.bf16.msrb.mxu1 %v8919_v29  ;;  %v8803_v9 = vor.u32 %v9076_v60, %v8802_v20  ;;  %v17434_v60 = vld [vmem:[#allocation184_spill] sm:$0xff] }
 0x9f8   : > { %v7298_v1 = vpop.permute.xlu0 %7297 }
 0x9f9   : > { %v7636_v28 = vperm.slane %v7298_v1, %v12144_v24 }
 0x9fa   : > { %6915 = vmatpush.bf16.msra.mxu2 %v8835_v48  ;;  %v8884_v48 = vld [vmem:[#allocation16 + $0x2b8] sm:$0xf0] }
 0x9fb   : > { %v7637_v40 = vsel %vm17317_vm8, %v7636_v28, %v7635_v52  ;;  %v6190_v52 = vand.u32 2147483648, %v15399_v56  ;;  %6950 = vmatpush.bf16.msrb.mxu1 %v8903_v22  ;;  %vm15475_vm8 = vmor %vm6184_vm9, %vm6185_vm15  ;;  %v6212_v28 = vrot.slane %v15388_v32, 2  ;;  %v9090_v32 = vld [vmem:[#allocation16 + $0x28c] sm:$0xf]  ;;  %vm17438_vm9 = vcmask 1047559  }
 0x9fc   : > { %v7639_v27 = vsel %vm17320_vm10, %v7638_v37, %v7637_v40  ;;  %v7644_v37 = vperm.slane %v15403_v57, %v16995_v46  ;;  %v6187_v56 = vsel %vm15475_vm8, %v15427_v61, %v6183_v0  ;;  %vm6189_vm10 = vcmp.eq.f32.partialorder %v6188_v5, 8.507059e+37  ;;  %v17435_v57 = vld [vmem:[#allocation178_spill] sm:$0xff]  ;;  %v9086_v0 = vld [vmem:[#allocation16 + $0x26c] sm:$0xf] }
 0x9fd   : > { %7492 = vperm.xlu1 %9575, %v14769_v21   ;;  %7435 = vperm.xlu2 %9577, %v17430_v35   ;;  %v7641_v51 = vsel %vm17323_vm4, %v7640_v62, %v7639_v27  ;;  %v9094_v21 = vld [vmem:[#allocation16 + $0x2ac] sm:$0xf]  ;;  %v7646_v62 = vperm.slane %v15341_v59, %v17000_v54  ;;  %v8868_v35 = vld [vmem:[#allocation16 + $0x298] sm:$0xf0]  ;;  %vm17436_vm4 = vcmask 1046534   ;;  %vm17439_vm15 = vcmask 1042434  }
 0x9fe   : > { %7432 = vperm.xlu0 %9576, %v17431_v26   ;;  %6916 = vmatpush.bf16.msra.mxu2 %v8819_v7  ;;  %v8887_v1 = vor.u32 %v9094_v21, %v8884_v48  ;;  %v6191_v7 = vor.u32 1.1754944e-38, %v6190_v52  ;;  %v8871_v8 = vor.u32 %v9090_v32, %v8868_v35  ;;  %v9038_v52 = vld [vmem:[#allocation16 + $0xec] sm:$0xf]  ;;  %v8852_v5 = vld [vmem:[#allocation16 + $0x278] sm:$0xf0]  ;;  %v17440_v32 = vld [vmem:[#allocation171_spill] sm:$0xff] }
 0x9ff   : > { %v15463_v49 = vpop.permute.xlu2 %7336  ;;  %v15468_v34 = vpop.permute.xlu1 %7366  ;;  %vm17445_vm8 = vcmask 392512  }
 0xa00   : > { %v7307_v58 = vpop.permute.xlu0 %7306  ;;  %6951 = vmatpush.bf16.msrb.mxu1 %v8887_v1  ;;  %v6192_v26 = vsel %vm6189_vm10, %v6191_v7, %v6187_v56  ;;  %v8855_v7 = vor.u32 %v9086_v0, %v8852_v5  ;;  %vm17448_vm10 = vcmask 654912  }
 0xa01   : > { %v7642_v14 = vperm.slane %v7307_v58, %v12183_v50 }
 0xa02   : > { %6917 = vmatpush.bf16.msra.mxu2 %v8803_v9  ;;  %v8660_v9 = vld [vmem:[#allocation16 + $0xf8] sm:$0xf0] }
 0xa03   : > { %v7643_v40 = vsel %vm2689_vm11, %v7642_v14, %v7641_v51  ;;  %v6213_v51 = vsel %vm17436_vm4, %v6212_v28, %v15288_v3  ;;  %v8663_v14 = vor.u32 %v9038_v52, %v8660_v9  ;;  %v9034_v28 = vld [vmem:[#allocation16 + $0xcc] sm:$0xf]  ;;  %vm17449_vm4 = vcmask 720512  }
 0xa04   : > { %v7645_v27 = vsel %vm2693_vm12, %v7644_v37, %v7643_v40  ;;  %v6090_v55 = vpop.f32.mrf.mxu0  ;;  %6952 = vmatpush.bf16.msrb.mxu1 %v8871_v8  ;;  %v8644_v37 = vld [vmem:[#allocation16 + $0xd8] sm:$0xf0]  ;;  %v9026_v9 = vld [vmem:[#allocation16 + $0x8c] sm:$0xf] }
 0xa05   : > { %v6214_v20 = vrot.slane %v6090_v55, 1  ;;  %7501 = vperm.xlu1 %9575, %v17434_v60   ;;  %7444 = vperm.xlu2 %9577, %v17435_v57   ;;  %v7647_v59 = vsel %vm2697_vm13, %v7646_v62, %v7645_v27  ;;  %v9082_v27 = vld [vmem:[#allocation16 + $0x24c] sm:$0xf]  ;;  %v8836_v55 = vld [vmem:[#allocation16 + $0x258] sm:$0xf0]  ;;  %v8647_v56 = vor.u32 %v9034_v28, %v8644_v37  ;;  %v17444_v28 = vld [vmem:[#allocation149_spill] sm:$0xff] }
 0xa06   : > { %7441 = vperm.xlu0 %9576, %v17437_v19   ;;  %v8628_v57 = vld [vmem:[#allocation16 + $0xb8] sm:$0xf0]  ;;  %v8839_v35 = vor.u32 %v9082_v27, %v8836_v55  ;;  %v9078_v19 = vld [vmem:[#allocation16 + $0x22c] sm:$0xf] }
 0xa07   : > { %v6215_v61 = vsel %vm17438_vm9, %v6214_v20, %v6213_v51  ;;  %v15496_v22 = vpop.permute.xlu2 %7345  ;;  %v15499_v3 = vpop.permute.xlu1 %7375  ;;  %v17441_v20 = vld [vmem:[#allocation146_spill] sm:$0xff]  ;;  %v9022_v37 = vld [vmem:[#allocation16 + $0x6c] sm:$0xf]  ;;  %vm17452_vm9 = vcmask 786112  }
 0xa08   : > { %v6217_v21 = vmul.f32 %v6215_v61, %v6192_v26  ;;  %v7316_v48 = vpop.permute.xlu0 %7315  ;;  %6953 = vmatpush.bf16.msrb.mxu1 %v8855_v7  ;;  %v8820_v8 = vld [vmem:[#allocation16 + $0x238] sm:$0xf0]  ;;  %v7655_v26 = vperm.slane %v15447_v43, %v12082_v12  ;;  %v7657_v61 = vperm.slane %v15380_v4, %v12095_v41  ;;  %v17443_v4 = vld [vmem:[#allocation181_spill] sm:$0xff] }
 0xa09   : > { %v7648_v58 = vperm.slane %v7316_v48, %v17008_v18  ;;  %v17442_v43 = vld [vmem:[#allocation186_spill] sm:$0xff] }
 0xa0a   : > { %v6219_v1 = vpack.c.bf16 %v6217_v21, %v6217_v21  ;;  %v8612_v21 = vld [vmem:[#allocation16 + $0x98] sm:$0xf0] }
 0xa0b   : > { %v7649_v29 = vsel %vm2701_vm14, %v7648_v58, %v7647_v59  ;;  %v8823_v58 = vor.u32 %v9078_v19, %v8820_v8  ;;  %v17447_v8 = vld [vmem:[#allocation158_spill] sm:$0xff] }
 0xa0c   : > { %v15504_v62 = vsel %vm17439_vm15, %v7649_v29, %v15411_v6  ;;  %v6092_v40 = vpop.f32.mrf.mxu0  ;;  %6827 = vmatmul.bf16.vlgmr.msra.gmra.mxu3 %v6219_v1  ;;  %6866 = vmatmul.bf16.vlgmr.msrb.gmra.mxu2 %v6219_v1  ;;  %v9030_v6 = vld [vmem:[#allocation16 + $0xac] sm:$0xf]  ;;  %v8804_v29 = vld [vmem:[#allocation16 + $0x218] sm:$0xf0]  ;;  %vm17455_vm15 = vcmask 1043459  }
 0xa0d   : > { %6905 = vmatmul.bf16.vlgmr.msra.gmra.mxu1 %v6219_v1  ;;  %6944 = vmatmul.bf16.vlgmr.msrb.gmra.mxu0 %v6219_v1  ;;  %v8615_v1 = vor.u32 %v9026_v9, %v8612_v21  ;;  %v8596_v40 = vld [vmem:[#allocation16 + $0x78] sm:$0xf0]  ;;  %v7667_v21 = vperm.slane %v15496_v22, %v12144_v24  ;;  %v17451_v22 = vld [vmem:[#allocation167_spill] sm:$0xff] }
 0xa0e   : > { %6923 = vmatpush.bf16.msra.mxu3 %v8663_v14  ;;  %7510 = vperm.xlu1 %9575, %v14819_v31   ;;  %v8631_v31 = vor.u32 %v9030_v6, %v8628_v57  ;;  %v9074_v14 = vld [vmem:[#allocation16 + $0x20c] sm:$0xf] }
 0xa0f   : > { %7453 = vperm.xlu2 %9577, %v17440_v32   ;;  %7450 = vperm.xlu0 %9576, %v17441_v20   ;;  %v15509_v60 = vpop.permute.xlu2 %7354  ;;  %v15519_v0 = vpop.permute.xlu1 %7384  ;;  %v8807_v55 = vor.u32 %v9074_v14, %v8804_v29  ;;  %v8599_v32 = vor.u32 %v9022_v37, %v8596_v40  ;;  %v7663_v20 = vperm.slane %v15401_v23, %v12116_v15  ;;  %v9018_v57 = vld [vmem:[#allocation16 + $0x4c] sm:$0xf] }
 0xa10   : > { %v7325_v59 = vpop.permute.xlu0 %7324  ;;  %6954 = vmatpush.bf16.msrb.mxu1 %v8839_v35  ;;  %v17446_v23 = vld [vmem:[#allocation192_spill] sm:$0xff]  ;;  %v7673_v40 = vperm.slane %v15509_v60, %v12183_v50 }
 0xa11   : > { %v7653_v51 = vperm.slane %v7325_v59, %v12073_v11  ;;  %v8580_v59 = vld [vmem:[#allocation16 + $0x58] sm:$0xf0]  ;;  %v17450_v29 = vld [vmem:[#allocation204_spill] sm:$0xff] }
 0xa12   : > { %6924 = vmatpush.bf16.msra.mxu3 %v8647_v56  ;;  %v7661_v56 = vperm.slane %v15463_v49, %v12106_v13  ;;  %v8583_v49 = vor.u32 %v9018_v57, %v8580_v59 }
 0xa13   : > { %v7654_v52 = vsel %vm2649_vm1, %v7653_v51, %v15433_v38 }
 0xa14   : > { %v7656_v48 = vsel %vm2653_vm2, %v7655_v26, %v7654_v52  ;;  %6955 = vmatpush.bf16.msrb.mxu1 %v8823_v58 }
 0xa15   : > { %v7658_v5 = vsel %vm2657_vm3, %v7657_v61, %v7656_v48  ;;  %v8564_v61 = vld [vmem:[#allocation16 + $0x38] sm:$0xf0]  ;;  %v7669_v48 = vperm.slane %v15422_v33, %v12138_v2 }
 0xa16   : > { %6925 = vmatpush.bf16.msra.mxu3 %v8631_v31  ;;  %7519 = vperm.xlu1 %9575, %v17442_v43   ;;  %v9014_v31 = vld [vmem:[#allocation16 + $0x2c] sm:$0xf]  ;;  %v8548_v43 = vld [vmem:[#allocation16 + $0x18] sm:$0xf0] }
 0xa17   : > { %7462 = vperm.xlu2 %9577, %v17443_v4   ;;  %7459 = vperm.xlu0 %9576, %v17444_v28   ;;  %v15525_v38 = vpop.permute.xlu2 %7363  ;;  %v15538_v19 = vpop.permute.xlu1 %7393 }
 0xa18   : > { %v7334_v7 = vpop.permute.xlu0 %7333  ;;  %6956 = vmatpush.bf16.msrb.mxu1 %v8807_v55 }
 0xa19   : > { %v7659_v27 = vperm.slane %v7334_v7, %v12100_v39  ;;  %v7675_v7 = vperm.slane %v15445_v45, %v16995_v46  ;;  %v7679_v45 = vperm.slane %v15525_v38, %v17008_v18  ;;  %v7681_v38 = vperm.slane %v15468_v34, %v12061_v63 }
 0xa1a   : > { %6926 = vmatpush.bf16.msra.mxu3 %v8615_v1 }
 0xa1b   : > { %v7660_v6 = vsel %vm17445_vm8, %v7659_v27, %v7658_v5  ;;  %v9010_v5 = vld [vmem:[#allocation16 + $0xc] sm:$0xf] }
 0xa1c   : > { %v7662_v35 = vsel %vm2665_vm5, %v7661_v56, %v7660_v6  ;;  %6879 = vmatmul.bf16.vlgmr.msrb.gmra.mxu3 %v17362_v44  ;;  %6918 = vmatmul.bf16.vlgmr.msra.gmra.mxu2 %v17362_v44  ;;  %v17453_v56 = vld [vmem:[#allocation194_spill] sm:$0xff] }
 0xa1d   : > { %v7664_v51 = vsel %vm2669_vm6, %v7663_v20, %v7662_v35  ;;  %6957 = vmatmul.bf16.vlgmr.msrb.gmra.mxu1 %v17362_v44  ;;  %v8551_v44 = vor.u32 %v9010_v5, %v8548_v43  ;;  %v17456_v35 = vld [vmem:[#allocation191_spill] sm:$0xff] }
 0xa1e   : > { %6927 = vmatpush.bf16.msra.mxu3 %v8599_v32  ;;  %7528 = vperm.xlu1 %9575, %v14874_v53   ;;  %v8567_v53 = vor.u32 %v9014_v31, %v8564_v61  ;;  %v17454_v32 = vld [vmem:[#allocation148_spill] sm:$0xff]  ;;  %v7686_v61 = vperm.slane %v15499_v3, %v12082_v12  ;;  %v7692_v3 = vperm.slane %v15519_v0, %v12106_v13 }
 0xa1f   : > { %7471 = vperm.xlu2 %9577, %v17446_v23   ;;  %7468 = vperm.xlu0 %9576, %v17447_v8   ;;  %v7373_v26 = vpop.permute.xlu2 %7372  ;;  %v15554_v37 = vpop.permute.xlu1 %7402  ;;  %v7698_v0 = vperm.slane %v15538_v19, %v12144_v24 }
 0xa20   : > { %v7343_v52 = vpop.permute.xlu0 %7342  ;;  %v7684_v31 = vperm.slane %v7373_v26, %v12073_v11  ;;  %v7704_v19 = vperm.slane %v15554_v37, %v12183_v50 }
 0xa21   : > { %v7665_v9 = vperm.slane %v7343_v52, %v12141_v17 }
 0xa22   : > { %6928 = vmatpush.bf16.msra.mxu3 %v8583_v49 }
 0xa23   : > { %v7666_v58 = vsel %vm2673_vm7, %v7665_v9, %v7664_v51  ;;  %v17457_v51 = vld [vmem:[#allocation179_spill] sm:$0xff] }
 0xa24   : > { %v7668_v1 = vsel %vm17448_vm10, %v7667_v21, %v7666_v58  ;;  %v17458_v21 = vld [vmem:[#allocation173_spill] sm:$0xff] }
 0xa25   : > { %v7670_v14 = vsel %vm17449_vm4, %v7669_v48, %v7668_v1 }
 0xa26   : > { %6929 = vmatpush.bf16.msra.mxu3 %v8567_v53  ;;  %7537 = vperm.xlu1 %9575, %v14901_v16   ;;  %v17459_v53 = vld [vmem:[#allocation169_spill] sm:$0xff] }
 0xa27   : > { %7480 = vperm.xlu2 %9577, %v17450_v29   ;;  %7477 = vperm.xlu0 %9576, %v17451_v22   ;;  %v7382_v4 = vpop.permute.xlu2 %7381  ;;  %v15571_v57 = vpop.permute.xlu1 %7411  ;;  %v17461_v29 = vld [vmem:[#allocation166_spill] sm:$0xff] }
 0xa28   : > { %v7352_v28 = vpop.permute.xlu0 %7351  ;;  %v7690_v26 = vperm.slane %v7382_v4, %v12100_v39  ;;  %v7710_v37 = vperm.slane %v15571_v57, %v17008_v18 }
 0xa29   : > { %v7671_v33 = vperm.slane %v7352_v28, %v12167_v42 }
 0xa2a   : > { %6930 = vmatpush.bf16.msra.mxu3 %v8551_v44  ;;  %v17460_v44 = vld [vmem:[#allocation200_spill] sm:$0xff] }
 0xa2b   : > { %v7672_v16 = vsel %vm17452_vm9, %v7671_v33, %v7670_v14 }
 0xa2c   : > { %v7674_v27 = vsel %vm2689_vm11, %v7673_v40, %v7672_v16 }
 0xa2d   : > { %6931 = vmatmul.bf16.vlgmr.msra.gmra.mxu3 %v15377_v25  ;;  %v7676_v55 = vsel %vm2693_vm12, %v7675_v7, %v7674_v27 }
 0xa2e   : > { %7546 = vperm.xlu1 %9575, %v14926_v30  }
 0xa2f   : > { %7489 = vperm.xlu2 %9577, %v17453_v56   ;;  %7486 = vperm.xlu0 %9576, %v17454_v32   ;;  %v7391_v20 = vpop.permute.xlu2 %7390  ;;  %v7421_v52 = vpop.permute.xlu1 %7420  ;;  %v17463_v56 = vld [vmem:[#allocation182_spill] sm:$0xff] }
 0xa30   : > { %v7361_v60 = vpop.permute.xlu0 %7360  ;;  %v7696_v4 = vperm.slane %v7391_v20, %v12141_v17  ;;  %v15610_v16 = vpop.f32.mrf.mxu0 }
 0xa31   : > { %v7677_v6 = vperm.slane %v7361_v60, %v17000_v54 }
 0xa33   : > { %v7678_v59 = vsel %vm2697_vm13, %v7677_v6, %v7676_v55  ;;  %v17462_v55 = vld [vmem:[#allocation206_spill] sm:$0xff] }
 0xa34   : > { %v7680_v25 = vsel %vm2701_vm14, %v7679_v45, %v7678_v59 }
 0xa35   : > { %v15577_v30 = vsel %vm17455_vm15, %v7680_v25, %v15504_v62  ;;  %vm17469_vm15 = vcmask 1044484  }
 0xa36   : > { %7555 = vperm.xlu1 %9575, %v14952_v47  }
 0xa37   : > { %7498 = vperm.xlu2 %9577, %v17456_v35   ;;  %7495 = vperm.xlu0 %9576, %v17457_v51   ;;  %v7400_v49 = vpop.permute.xlu2 %7399  ;;  %v15600_v14 = vpop.permute.xlu1 %7429 }
 0xa38   : > { %v7370_v23 = vpop.permute.xlu0 %7369  ;;  %v7702_v45 = vperm.slane %v7400_v49, %v12167_v42  ;;  %v6843_v35 = vpop.f32.mrf.mxu0 }
 0xa39   : > { %v7682_v8 = vperm.slane %v7370_v23, %v12068_v10  ;;  %v17464_v23 = vld [vmem:[#allocation203_spill] sm:$0xff] }
 0xa3b   : > { %v7683_v62 = vsel %vm2645_vm0, %v7682_v8, %v7681_v38  ;;  %v17465_v38 = vld [vmem:[#allocation185_spill] sm:$0xff] }
 0xa3c   : > { %v7685_v47 = vsel %vm2649_vm1, %v7684_v31, %v7683_v62 }
 0xa3d   : > { %v7687_v9 = vsel %vm2653_vm2, %v7686_v61, %v7685_v47 }
 0xa3f   : > { %7507 = vperm.xlu2 %9577, %v17458_v21   ;;  %7504 = vperm.xlu0 %9576, %v17459_v53   ;;  %v7409_v48 = vpop.permute.xlu2 %7408  ;;  %v7439_v6 = vpop.permute.xlu1 %7438 }
 0xa40   : > { %v7379_v34 = vpop.permute.xlu0 %7378  ;;  %v7708_v49 = vperm.slane %v7409_v48, %v17000_v54 }
 0xa41   : > { %v7688_v58 = vperm.slane %v7379_v34, %v12095_v41 }
 0xa43   : > { %v7689_v5 = vsel %vm2657_vm3, %v7688_v58, %v7687_v9  ;;  %v17466_v58 = vld [vmem:[#allocation199_spill] sm:$0xff] }
 0xa44   : > { %v7691_v43 = vsel %vm17445_vm8, %v7690_v26, %v7689_v5  ;;  %v7715_v5 = vperm.slane %v7421_v52, %v12073_v11 }
 0xa45   : > { %v7693_v1 = vsel %vm2665_vm5, %v7692_v3, %v7691_v43 }
 0xa47   : > { %7516 = vperm.xlu2 %9577, %v17460_v44   ;;  %7513 = vperm.xlu0 %9576, %v17461_v29   ;;  %v7418_v22 = vpop.permute.xlu2 %7417  ;;  %v7448_v62 = vpop.permute.xlu1 %7447 }
 0xa48   : > { %v7388_v28 = vpop.permute.xlu0 %7387  ;;  %v7713_v3 = vperm.slane %v7418_v22, %v12068_v10 }
 0xa49   : > { %v7694_v33 = vperm.slane %v7388_v28, %v12116_v15 }
 0xa4b   : > { %v7695_v40 = vsel %vm2669_vm6, %v7694_v33, %v7693_v1 }
 0xa4c   : > { %v7697_v7 = vsel %vm2673_vm7, %v7696_v4, %v7695_v40  ;;  %v17467_v4 = vld [vmem:[#allocation188_spill] sm:$0xff] }
 0xa4d   : > { %v7699_v27 = vsel %vm17448_vm10, %v7698_v0, %v7697_v7 }
 0xa4f   : > { %7525 = vperm.xlu2 %9577, %v17462_v55   ;;  %7522 = vperm.xlu0 %9576, %v17463_v56   ;;  %v7427_v32 = vpop.permute.xlu2 %7426  ;;  %v7457_v28 = vpop.permute.xlu1 %7456 }
 0xa50   : > { %v7397_v60 = vpop.permute.xlu0 %7396  ;;  %v7719_v7 = vperm.slane %v7427_v32, %v12095_v41 }
 0xa51   : > { %v7700_v20 = vperm.slane %v7397_v60, %v12138_v2 }
 0xa53   : > { %v7701_v59 = vsel %vm17449_vm4, %v7700_v20, %v7699_v27  ;;  %v7721_v27 = vperm.slane %v15600_v14, %v12100_v39  ;;  %v7727_v14 = vperm.slane %v7439_v6, %v12141_v17 }
 0xa54   : > { %v7703_v25 = vsel %vm17452_vm9, %v7702_v45, %v7701_v59 }
 0xa55   : > { %v7705_v51 = vsel %vm2689_vm11, %v7704_v19, %v7703_v25 }
 0xa57   : > { %7534 = vperm.xlu2 %9577, %v17464_v23   ;;  %7531 = vperm.xlu0 %9576, %v17465_v38   ;;  %v7436_v8 = vpop.permute.xlu2 %7435  ;;  %v7466_v45 = vpop.permute.xlu1 %7465 }
 0xa58   : > { %v7406_v31 = vpop.permute.xlu0 %7405  ;;  %v7744_v32 = vperm.slane %v7466_v45, %v12068_v10  ;;  %v7725_v35 = vperm.slane %v7436_v8, %v12116_v15 }
 0xa59   : > { %v7706_v61 = vperm.slane %v7406_v31, %v16995_v46 }
 0xa5b   : > { %v7707_v47 = vsel %vm2693_vm12, %v7706_v61, %v7705_v51  ;;  %v15630_v21 = vpop.f32.mrf.mxu1 }
 0xa5c   : > { %v7709_v9 = vsel %vm2697_vm13, %v7708_v49, %v7707_v47  ;;  %v7733_v47 = vperm.slane %v7448_v62, %v12167_v42 }
 0xa5d   : > { %v7711_v53 = vsel %vm2701_vm14, %v7710_v37, %v7709_v9  ;;  %v15633_v34 = vpop.f32.mrf.mxu0 }
 0xa5e   : > { %v7808_v52 = vsel %vm17469_vm15, %v7711_v53, %v15577_v30  ;;  %vm17471_vm15 = vcmask 1045509  }
 0xa5f   : > { %7543 = vperm.xlu2 %9577, %v14931_v36   ;;  %7540 = vperm.xlu0 %9576, %v17466_v58   ;;  %v7445_v26 = vpop.permute.xlu2 %7444  ;;  %v17468_v36 = vld [vmem:[#allocation201_spill] sm:$0xff] }
 0xa60   : > { %v7415_v48 = vpop.permute.xlu0 %7414  ;;  %v7731_v37 = vperm.slane %v7445_v26, %v12138_v2 }
 0xa61   : > { %v7712_v57 = vperm.slane %v7415_v48, %v12061_v63 }
 0xa63   : > { %v7714_v43 = vsel %vm2645_vm0, %v7713_v3, %v7712_v57  ;;  %v6815_v44 = vpop.f32.mrf.mxu2  ;;  %v6856_v29 = vpop.f32.mrf.mxu1  ;;  %v7739_v3 = vperm.slane %v7457_v28, %v17000_v54 }
 0xa64   : > { %v7716_v1 = vsel %vm2649_vm1, %v7715_v5, %v7714_v43  ;;  %v7475_v57 = vpop.permute.xlu1 %7474 }
 0xa65   : > { %v6895_v33 = vpop.f32.mrf.mxu0 }
 0xa67   : > { %7552 = vperm.xlu2 %9577, %v17467_v4   ;;  %7549 = vperm.xlu0 %9576, %v17468_v36  }
 0xa68   : > { %v7424_v0 = vpop.permute.xlu0 %7423 }
 0xa69   : > { %v7454_v40 = vpop.permute.xlu2 %7453  ;;  %v7717_v22 = vperm.slane %v7424_v0, %v12082_v12 }
 0xa6a   : > { %v7737_v48 = vperm.slane %v7454_v40, %v16995_v46 }
 0xa6b   : > { %v7718_v55 = vsel %vm2653_vm2, %v7717_v22, %v7716_v1  ;;  %v6817_v60 = vpop.f32.mrf.mxu2  ;;  %v15677_v1 = vld [vmem:[%s17470_s21] sm:$0xf] }
 0xa6c   : > { %v7720_v56 = vsel %vm2657_vm3, %v7719_v7, %v7718_v55  ;;  %v6318_v29 = vperm.slane %v15677_v1, 0  ;;  %v15687_v7 = vpop.permute.xlu1 %7483 }
 0xa6d   : > { %v7722_v20 = vsel %vm17445_vm8, %v7721_v27, %v7720_v56 }
 0xa6e   : > { %v6816_v0 = vadd.f32 %v6815_v44, %v6318_v29  ;;  %v7750_v29 = vperm.slane %v7475_v57, %v12095_v41 }
 0xa70   : > { %v7433_v19 = vpop.permute.xlu0 %7432 }
 0xa71   : > { %v7463_v59 = vpop.permute.xlu2 %7462  ;;  %v7723_v25 = vperm.slane %v7433_v19, %v12106_v13 }
 0xa72   : > { %v7743_v30 = vperm.slane %v7463_v59, %v12061_v63 }
 0xa73   : > { %v7724_v51 = vsel %vm2665_vm5, %v7723_v25, %v7722_v20 }
 0xa74   : > { %v7745_v23 = vsel %vm2645_vm0, %v7744_v32, %v7743_v30  ;;  %v7726_v38 = vsel %vm2669_vm6, %v7725_v35, %v7724_v51  ;;  %v6319_v32 = vperm.slane %v15677_v1, 1  ;;  %v6320_v51 = vperm.slane %v15677_v1, 2 }
 0xa75   : > { %v7728_v31 = vsel %vm2673_vm7, %v7727_v14, %v7726_v38 }
 0xa76   : > { %v6855_v14 = vadd.f32 %v15630_v21, %v6319_v32 }
 0xa78   : > { %v7442_v61 = vpop.permute.xlu0 %7441 }
 0xa79   : > { %v7729_v49 = vperm.slane %v7442_v61, %v12144_v24  ;;  %v7472_v5 = vpop.permute.xlu2 %7471 }
 0xa7b   : > { %v7730_v8 = vsel %vm17448_vm10, %v7729_v49, %v7728_v31 }
 0xa7c   : > { %v7732_v9 = vsel %vm17449_vm4, %v7731_v37, %v7730_v8  ;;  %v6894_v37 = vadd.f32 %v15633_v34, %v6320_v51  ;;  %v6321_v51 = vperm.slane %v15677_v1, 3 }
 0xa7d   : > { %v7734_v6 = vsel %vm17452_vm9, %v7733_v47, %v7732_v9 }
 0xa81   : > { %v7451_v53 = vpop.permute.xlu0 %7450  ;;  %v7481_v27 = vpop.permute.xlu2 %7480 }
 0xa82   : > { %v7735_v58 = vperm.slane %v7451_v53, %v12183_v50 }
 0xa84   : > { %v7736_v43 = vsel %vm2689_vm11, %v7735_v58, %v7734_v6 }
 0xa85   : > { %v7738_v26 = vsel %vm2693_vm12, %v7737_v48, %v7736_v43  ;;  %v7748_v48 = vperm.slane %v7472_v5, %v12082_v12 }
 0xa86   : > { %v7740_v62 = vsel %vm2697_vm13, %v7739_v3, %v7738_v26 }
 0xa89   : > { %v7460_v33 = vpop.permute.xlu0 %7459  ;;  %v15691_v30 = vpop.permute.xlu2 %7489 }
 0xa8a   : > { %v7741_v4 = vperm.slane %v7460_v33, %v17008_v18  ;;  %v6906_v36 = vpop.f32.mrf.mxu1  ;;  %v15681_v28 = vpop.f32.mrf.mxu0 }
 0xa8b   : > { %v6907_v3 = vadd.f32 %v6906_v36, %v6894_v37 }
 0xa8c   : > { %v7742_v40 = vsel %vm2701_vm14, %v7741_v4, %v7740_v62 }
 0xa8d   : > { %v15685_v22 = vsel %vm17471_vm15, %v7742_v40, %v7808_v52  ;;  %v15693_v52 = vpop.permute.xlu1 %7492 }
 0xa8f   : > { %v6828_v55 = vpop.f32.mrf.mxu3  ;;  %v6867_v56 = vpop.f32.mrf.mxu2 }
 0xa90   : > { %v6829_v60 = vadd.f32 %v6828_v55, %v6816_v0  ;;  %v6868_v61 = vadd.f32 %v6867_v56, %v6855_v14 }
 0xa91   : > { %v7469_v59 = vpop.permute.xlu0 %7468  ;;  %v15699_v6 = vpop.permute.xlu2 %7498 }
 0xa92   : > { %v6842_v20 = vadd.f32 %v15610_v16, %v6829_v60  ;;  %v6908_v45 = vpop.f32.mrf.mxu1  ;;  %v6947_v19 = vpop.f32.mrf.mxu0  ;;  %v7746_v49 = vperm.slane %v7469_v59, %v12073_v11 }
 0xa94   : > { %v8920_v25 = vmul.f32 -1.442695, %v6842_v20  ;;  %v7747_v53 = vsel %vm2649_vm1, %v7746_v49, %v7745_v23  ;;  %v7754_v20 = vperm.slane %v7481_v27, %v12106_v13 }
 0xa95   : > { %v15702_v21 = vpop.permute.xlu1 %7501  ;;  %v7749_v26 = vsel %vm2653_vm2, %v7748_v48, %v7747_v53 }
 0xa96   : > { %9845 = vpow2.f32 %v8920_v25  ;;  %v7751_v23 = vsel %vm2657_vm3, %v7750_v29, %v7749_v26 }
 0xa97   : > { %v6830_v44 = vpop.f32.mrf.mxu3  ;;  %v6869_v35 = vpop.f32.mrf.mxu2 }
 0xa98   : > { %v7756_v35 = vperm.slane %v15687_v7, %v12116_v15  ;;  %v7760_v7 = vperm.slane %v15691_v30, %v12144_v24 }
 0xa99   : > { %v7478_v16 = vpop.permute.xlu0 %7477  ;;  %v15711_v57 = vpop.permute.xlu2 %7507 }
 0xa9a   : > { %v7752_v34 = vperm.slane %v7478_v16, %v12100_v39  ;;  %v6958_v55 = vpop.f32.mrf.mxu1 }
 0xa9c   : > { %v9846_v38 = vpop.eup %9845  ;;  %v7753_v5 = vsel %vm17445_vm8, %v7752_v34, %v7751_v23  ;;  %vm17472_vm8 = vcmask 654912  }
 0xa9d   : > { %v6965_v31 = vadd.f32 1.0, %v9846_v38  ;;  %v7755_v25 = vsel %vm2665_vm5, %v7754_v20, %v7753_v5  ;;  %v15717_v14 = vpop.permute.xlu1 %7510  ;;  %v7768_v20 = vperm.slane %v15702_v21, %v16995_v46 }
 0xa9e   : > { %v7757_v49 = vsel %vm2669_vm6, %v7756_v35, %v7755_v25  ;;  %v738_v25 = vld [vmem:[#allocation3] sm:$0xff] }
 0xa9f   : > { %9847 = vrcp.f32 %v6965_v31  ;;  %v6880_v47 = vpop.f32.mrf.mxu3  ;;  %v6919_v9 = vpop.f32.mrf.mxu2  ;;  %v6977_v36 = vand.u32 2147483648, %v6965_v31  ;;  %v6975_v19 = vand.u32 2147483647, %v6965_v31  ;;  %vm6971_vm4 = vweird.f32 %v6965_v31 }
 0xaa0   : > { %v6881_v8 = vadd.f32 %v6880_v47, %v6868_v61  ;;  %v6920_v62 = vadd.f32 %v6919_v9, %v6907_v3 }
 0xaa1   : > { %v7487_v4 = vpop.permute.xlu0 %7486  ;;  %v6978_v27 = vor.u32 1.1754944e-38, %v6977_v36  ;;  %vm6976_vm15 = vcmp.eq.f32.partialorder %v6975_v19, 8.507059e+37  ;;  %v7517_v29 = vpop.permute.xlu2 %7516 }
 0xaa2   : > { %v8921_v58 = vmul.f32 -1.442695, %v6881_v8  ;;  %v7758_v44 = vperm.slane %v7487_v4, %v12141_v17  ;;  %v6960_v9 = vpop.f32.mrf.mxu1 }
 0xaa4   : > { %9849 = vpow2.f32 %v8921_v58  ;;  %v7759_v47 = vsel %vm2673_vm7, %v7758_v44, %v7757_v49 }
 0xaa5   : > { %v9848_v43 = vpop.eup %9847  ;;  %9851 = vtanh.f32 %v6920_v62  ;;  %v7761_v48 = vsel %vm17472_vm8, %v7760_v7, %v7759_v47  ;;  %v7520_v4 = vpop.permute.xlu1 %7519 }
 0xaa6   : > { %v6967_v33 = vmul.f32 %v9848_v43, %v6965_v31  ;;  %vm6972_vm10 = vweird.f32 %v9848_v43 }
 0xaa7   : > { %v6882_v0 = vpop.f32.mrf.mxu3  ;;  %v6921_v56 = vpop.f32.mrf.mxu2  ;;  %vm6973_vm9 = vmor %vm6971_vm4, %vm6972_vm10  ;;  %vm17473_vm10 = vcmask 720512   ;;  %vm17474_vm4 = vcmask 786112  }
 0xaa8   : > { %v6968_v40 = vsub.f32 1.0, %v6967_v33  ;;  %v7766_v56 = vperm.slane %v15699_v6, %v12183_v50 }
 0xaa9   : > { %v7496_v37 = vpop.permute.xlu0 %7495 }
 0xaaa   : > { %v9850_v60 = vpop.eup %9849  ;;  %v6969_v45 = vmul.f32 %v9848_v43, %v6968_v40  ;;  %v7764_v1 = vperm.slane %v7496_v37, %v12167_v42  ;;  %v17475_v37 = vld [vmem:[#allocation101_spill] sm:$0xff] }
 0xaab   : > { %v6984_v59 = vadd.f32 1.0, %v9850_v60  ;;  %v9852_v16 = vpop.eup %9851  ;;  %v7040_v47 = vmul.f32 %v17475_v37, %v738_v25 }
 0xaac   : > { %v6970_v32 = vadd.f32 %v9848_v43, %v6969_v45 }
 0xaad   : > { %9853 = vrcp.f32 %v6984_v59  ;;  %v6996_v0 = vand.u32 2147483648, %v6984_v59  ;;  %v7529_v21 = vpop.permute.xlu1 %7528 }
 0xaae   : > { %v6974_v38 = vsel %vm6973_vm9, %v9848_v43, %v6970_v32  ;;  %v7762_v43 = vperm.slane %v15693_v52, %v12138_v2 }
 0xaaf   : > { %v6979_v61 = vsel %vm6976_vm15, %v6978_v27, %v6974_v38  ;;  %vm6990_vm15 = vweird.f32 %v6984_v59  ;;  %v6997_v45 = vor.u32 1.1754944e-38, %v6996_v0  ;;  %v7772_v27 = vperm.slane %v15711_v57, %v17008_v18 }
 0xab0   : > { %v7021_v31 = vmul.f32 %v9852_v16, %v6979_v61  ;;  %v6932_v8 = vpop.f32.mrf.mxu3  ;;  %v7763_v33 = vsel %vm17473_vm10, %v7762_v43, %v7761_v48  ;;  %v7526_v16 = vpop.permute.xlu2 %7525  ;;  %v7777_v48 = vperm.slane %v7517_v29, %v12073_v11 }
 0xab1   : > { %v6933_v53 = vadd.f32 %v6932_v8, %v6321_v51  ;;  %v7765_v30 = vsel %vm17474_vm4, %v7764_v1, %v7763_v33  ;;  %v7505_v40 = vpop.permute.xlu0 %7504  ;;  %v17476_v8 = vld [vmem:[#allocation197_spill] sm:$0xff]  ;;  %vm17477_vm4 = vcmask 1046534   ;;  %v7783_v11 = vperm.slane %v7526_v16, %v12100_v39 }
 0xab2   : > { %v7770_v60 = vperm.slane %v7505_v40, %v17000_v54 }
 0xab3   : > { %v9854_v58 = vpop.eup %9853  ;;  %v6946_v3 = vadd.f32 %v15681_v28, %v6933_v53  ;;  %v6994_v28 = vand.u32 2147483647, %v6984_v59  ;;  %v7774_v53 = vperm.slane %v15717_v14, %v12061_v63 }
 0xab4   : > { %v6986_v26 = vmul.f32 %v9854_v58, %v6984_v59  ;;  %vm6991_vm9 = vweird.f32 %v9854_v58 }
 0xab5   : > { %v6959_v34 = vadd.f32 %v6958_v55, %v6946_v3  ;;  %v7767_v55 = vsel %vm2689_vm11, %v7766_v56, %v7765_v30  ;;  %vm6992_vm8 = vmor %vm6990_vm15, %vm6991_vm9  ;;  %vm6995_vm10 = vcmp.eq.f32.partialorder %v6994_v28, 8.507059e+37  ;;  %v7538_v14 = vpop.permute.xlu1 %7537  ;;  %vm17478_vm9 = vcmask 392512  }
 0xab6   : > { %v6987_v62 = vsub.f32 1.0, %v6986_v26  ;;  %v7769_v32 = vsel %vm2693_vm12, %v7768_v20, %v7767_v55  ;;  %v7779_v26 = vperm.slane %v7520_v4, %v12082_v12  ;;  %v9862_v20 = vld [vmem:[#allocation2] sm:$0xff] }
 0xab7   : > { %v8922_v23 = vmul.f32 -1.442695, %v6959_v34  ;;  %v7771_v35 = vsel %vm2697_vm13, %v7770_v60, %v7769_v32  ;;  %v7791_v32 = vperm.slane %v7538_v14, %v12144_v24 }
 0xab8   : > { %v6988_v5 = vmul.f32 %v9854_v58, %v6987_v62  ;;  %v6934_v36 = vpop.f32.mrf.mxu3  ;;  %v7773_v49 = vsel %vm2701_vm14, %v7772_v27, %v7771_v35  ;;  %v7535_v34 = vpop.permute.xlu2 %7534 }
 0xab9   : > { %9855 = vpow2.f32 %v8922_v23  ;;  %v7514_v51 = vpop.permute.xlu0 %7513  ;;  %v15749_v57 = vsel %vm17477_vm4, %v7773_v49, %v15685_v22  ;;  %v7785_v23 = vperm.slane %v7529_v21, %v12106_v13  ;;  %v7789_v13 = vperm.slane %v7535_v34, %v12141_v17 }
 0xaba   : > { %v6989_v52 = vadd.f32 %v9854_v58, %v6988_v5  ;;  %v7775_v7 = vperm.slane %v7514_v51, %v12068_v10 }
 0xabc   : > { %v6993_v19 = vsel %vm6992_vm8, %v9854_v58, %v6989_v52 }
 0xabd   : > { %v6998_v6 = vsel %vm6995_vm10, %v6997_v45, %v6993_v19  ;;  %v7547_v60 = vpop.permute.xlu1 %7546  ;;  %v7037_v45 = vmul.f32 %v9862_v20, %v17475_v37 }
 0xabe   : > { %v7020_v44 = vmul.f32 %v6998_v6, %v738_v25 }
 0xabf   : > { %v9856_v59 = vpop.eup %9855 }
 0xac0   : > { %v7022_v38 = vadd.f32 %v7021_v31, %v7020_v44  ;;  %v7004_v61 = vadd.f32 1.0, %v9856_v59  ;;  %v7776_v31 = vsel %vm2645_vm0, %v7775_v7, %v7774_v53  ;;  %v7544_v52 = vpop.permute.xlu2 %7543 }
 0xac1   : > { %v7523_v1 = vpop.permute.xlu0 %7522  ;;  %v7778_v43 = vsel %vm2649_vm1, %v7777_v48, %v7776_v31  ;;  %v7795_v27 = vperm.slane %v7544_v52, %v12167_v42 }
 0xac2   : > { %v7039_v9 = vmul.f32 %v17476_v8, %v7022_v38  ;;  %9857 = vrcp.f32 %v7004_v61  ;;  %v7781_v10 = vperm.slane %v7523_v1, %v12095_v41  ;;  %v7780_v22 = vsel %vm2653_vm2, %v7779_v26, %v7778_v43 }
 0xac3   : > { %9859 = vtanh.f32 %v7022_v38  ;;  %v7016_v0 = vand.u32 2147483648, %v7004_v61  ;;  %v7014_v30 = vand.u32 2147483647, %v7004_v61  ;;  %vm7010_vm1 = vweird.f32 %v7004_v61 }
 0xac4   : > { %v7041_v58 = vadd.f32 %v7040_v47, %v7039_v9  ;;  %v7782_v33 = vsel %vm2657_vm3, %v7781_v10, %v7780_v22 }
 0xac5   : > { %v7784_v12 = vsel %vm17478_vm9, %v7783_v11, %v7782_v33  ;;  %v7017_v56 = vor.u32 1.1754944e-38, %v7016_v0  ;;  %vm7015_vm3 = vcmp.eq.f32.partialorder %v7014_v30, 8.507059e+37 }
 0xac6   : > { %7043 = vst [vmem:[#allocation3] sm:$0xff] %v7041_v58  ;;  %v7786_v28 = vsel %vm2665_vm5, %v7785_v23, %v7784_v12  ;;  %vm17480_vm5 = vcmask 654912  }
 0xac8   : > { %v9858_v3 = vpop.eup %9857 }
 0xac9   : > { %v7006_v63 = vmul.f32 %v9858_v3, %v7004_v61  ;;  %vm7011_vm0 = vweird.f32 %v9858_v3  ;;  %v7532_v41 = vpop.permute.xlu0 %7531  ;;  %v9860_v39 = vpop.eup %9859 }
 0xaca   : > { %v7787_v4 = vperm.slane %v7532_v41, %v12116_v15  ;;  %vm7012_vm2 = vmor %vm7010_vm1, %vm7011_vm0 }
 0xacb   : > { %v7007_v62 = vsub.f32 1.0, %v7006_v63 }
 0xacc   : > { %v7788_v15 = vsel %vm2669_vm6, %v7787_v4, %v7786_v28  ;;  %vm17481_vm6 = vcmask 720512  }
 0xacd   : > { %v7008_v29 = vmul.f32 %v9858_v3, %v7007_v62  ;;  %v7790_v25 = vsel %vm2673_vm7, %v7789_v13, %v7788_v15 }
 0xace   : > { %v7792_v17 = vsel %vm17480_vm5, %v7791_v32, %v7790_v25 }
 0xacf   : > { %v7009_v40 = vadd.f32 %v9858_v3, %v7008_v29 }
 0xad1   : > { %v7013_v5 = vsel %vm7012_vm2, %v9858_v3, %v7009_v40  ;;  %v7541_v6 = vpop.permute.xlu0 %7540 }
 0xad2   : > { %v7018_v36 = vsel %vm7015_vm3, %v7017_v56, %v7013_v5  ;;  %v7793_v44 = vperm.slane %v7541_v6, %v12138_v2 }
 0xad3   : > { %v7024_v55 = vmul.f32 %v9860_v39, %v7018_v36 }
 0xad4   : > { %v7794_v59 = vsel %vm17481_vm6, %v7793_v44, %v7792_v17 }
 0xad5   : > { %v7030_v19 = vmul.f32 %v17476_v8, %v7024_v55 }
 0xad7   : > { %v7038_v35 = vadd.f32 %v7037_v45, %v7030_v19 }
 0xad9   : > { %7042 = vst [vmem:[#allocation2] sm:$0xff] %v7038_v35 }
 0xada   : > { %7044 = vst [vmem:[%s10456_s3] sm:$0xff] %v7038_v35 }
 0xadb   : > { %10100 = shalt.err (!%p10097_p12)
}
 0xadc   : > { %9450 = dma.vmem_to_hbm [thread:$0]  (%p10406_p0), %s7835_s28, 128, %s7837_s11, %s7816_s12   ;;  %v7553_v2 = vpop.permute.xlu2 %7552  ;;  %vm17482_vm7 = vcmask 786112   ;;  %v7797_v42 = vperm.slane %v7547_v60, %v12183_v50  ;;  %v7556_v51 = vpop.permute.xlu1 %7555  ;;  %vm17484_vm15 = vcmask 1047559  }
 0xadd   : > { %v7796_v24 = vsel %vm17482_vm7, %v7795_v27, %v7794_v59  ;;  %v7550_v38 = vpop.permute.xlu0 %7549  ;;  %s17483_s22 = sld [smem:[#allocation231_spill]]  ;;  %v7801_v61 = vperm.slane %v7553_v2, %v17000_v54  ;;  %v7803_v49 = vperm.slane %v7556_v51, %v17008_v18  ;;  %s7849_s28 = sshll.u32 %s10458_s7, 4  ;;  %s7850_s28 = int_to_ptr.vmem [resolvable:$true] %s7849_s28 }
 0xade   : > { %v7799_v16 = vperm.slane %v7550_v38, %v16995_v46  ;;  %v7798_v21 = vsel %vm2689_vm11, %v7797_v42, %v7796_v24  ;;  %s7821_s26 = scalar_lea.sflag [#allocation19], %s10438_s2 }
 0xae0   : > { %v7800_v50 = vsel %vm2693_vm12, %v7799_v16, %v7798_v21 }
 0xae1   : > { %v7802_v37 = vsel %vm2697_vm13, %v7801_v61, %v7800_v50 }
 0xae2   : > { %v7804_v46 = vsel %vm2701_vm14, %v7803_v49, %v7802_v37 }
 0xae3   : > { %s7847_s18 = scalar_lea.hbm %s17483_s22, %s8925_s17  ;;  %v7811_v47 = vsel %vm17484_vm15, %v7804_v46, %v15749_v57  ;;  %s10121_s1 = scalar_lea.hbm %s17483_s22, 56 }
 0xae4   : > { %s7851_s11 = sshll.u32 %s7847_s18, 4  ;;  %v7813_v9 = vmul.f32 %v7811_v47, %v17476_v8  ;;  %s7852_s11 = int_to_ptr.hbm [resolvable:$true] %s7851_s11 }
 0xae5   : > { %s10115_s17 = sshra.s32 %s7852_s11, 4  ;;  %s10116_s17 = int_to_ptr.hbm [resolvable:$true] %s10115_s17 }
 0xae6   : > { %7814 = vst [vmem:[%s10458_s7] sm:$0xff] %v7813_v9  ;;  %s10117_s12 = scalar_lea.hbm %s10116_s17, 8  ;;  %p10122_p6 = scmp.lt.s32.totalorder %s10116_s17, %s17483_s22 }
 0xae7   : > { %p10118_p13 = scmp.ne.s32.totalorder %s10116_s17, %s10117_s12  ;;  %p10123_p3 = scmp.lt.s32.totalorder %s10121_s1, %s10117_s12 }
 0xae9   : > { %p10119_p2 = pnand %p10118_p13, %p10406_p0  ;;  %p10124_p1 = por %p10123_p3, %p10122_p6 }
 0xaeb   : > { %p10120_p5 = pneg %p10119_p2 }
 0xaed   : > { %p10125_p7 = pnand %p10124_p1, %p10120_p5 }
 0xaef   : > { %10128 = shalt.err (!%p10125_p7)
}
 0xaf0   : > { %9451 = dma.vmem_to_hbm [thread:$0]  (%p10406_p0), %s7850_s28, 128, %s7852_s11, %s7821_s26  }
 0xaf1 PF: > { %p9497_p8 = scmp.ge.s32.totalorder %s10203_s10, 2  ;;  %s7863_s2 = sand.u32 1, %s10183_s23  }
 0xaf2   : > { %s7864_s7 = scalar_lea.sflag [#allocation7], %s7863_s2 }
 0xaf3   : > { %p9478_p9 = pnand %p9497_p8, %p10413_p4 }
 0xaf5   : > { %p9479_p10 = pneg %p9478_p9 }
 0xaf7   : > { %10174 = dma.done.wait (%p9479_p10), %s7864_s7, 128  }
 0xaf8   : > { %10176 = vsyncadd (%p9479_p10), %s7864_s7, 4294967168  ;;  %s7874_s14 = scalar_lea.sflag [#allocation19], %s7863_s2 }
 0xaf9   : > { %10178 = dma.done.wait (%p9479_p10), %s7874_s14, 128  }
 0xafa   : > { %10180 = vsyncadd (%p9479_p10), %s7874_s14, 4294967168  ;;  %s41_s10 = sadd.s32 1, %s10203_s10   ;;  %s17485_s23 = smov %s10187_s24 }
 0xafb   : > { %p38_p11 = scmp.ge.s32.totalorder %s41_s10, 9   ;;  %s17486_s24 = smov %s10191_s25 }
 0xafc   : > { %s17487_s25 = smov %s10411_s0  ;;  %s17488_s26 = smov %s10199_s27 }
 0xafd   : > { %s17489_s27 = smov %s17491_s20  ;;  %40 = sbr.rel (!%p38_p11) target bundleno = 23 (0x17), region = 180 }
 0xb02   :  { %7880 = vsyncpa [#allocation6], 1 }
 0xb03   :  { %7882 = vsyncpa [#allocation6 + $0x1], 1 }
 0xb04   :  { %7883 = vsyncpa [#allocation9], 1 }
 0xb05   :  { %7884 = vsyncpa [#allocation12], 1 }
 0xb06   :  { %7886 = vsyncpa [#allocation12 + $0x1], 1 }
 0xb07   :  { %7887 = vsyncpa [#allocation15], 1 }
 0xb08   :  { %7888 = vsyncpa [#allocation7], 1 }
 0xb09   :  { %7890 = vsyncpa [#allocation7 + $0x1], 1 }
 0xb0a   :  { %7891 = vsyncpa [#allocation19], 1 }
 0xb0b   :  { %7893 = vsyncpa [#allocation19 + $0x1], 1 }

</bundles_post_ra>
